<compile_context>
chip_gen: v7x
topology: tpu7x:2x2x1
jax: 0.10.0
libtpu: 0.0.40
codegen_flags: <defaults>
</compile_context>

<pallas_src>
import functools

import numpy as np
import jax
import jax.numpy as jnp
from jax.experimental import pallas as pl
from jax.experimental.pallas import tpu as pltpu


# ----------------------------------------------------------------------------
# Low-pass filter constructors (faithful ports of the torch helpers, in numpy)
# ----------------------------------------------------------------------------
def _dist_grid(shape):
    rows, cols = shape
    crow, ccol = rows // 2, cols // 2
    u = np.arange(rows, dtype=np.float64)[:, None]
    v = np.arange(cols, dtype=np.float64)[None, :]
    return np.sqrt((u - crow) ** 2 + (v - ccol) ** 2)


def ideal_filter(shape, cutoff):
    f = (_dist_grid(shape) <= cutoff).astype(np.float64)
    return (f / f.sum()).astype(np.float32)


def butterworth_filter(shape, cutoff, order):
    d = _dist_grid(shape)
    f = 1.0 / (1.0 + (d / cutoff) ** (2 * order))
    return (f / f.sum()).astype(np.float32)


def gaussian_filter(shape, cutoff):
    d2 = _dist_grid(shape) ** 2
    f = np.exp(-d2 / (2.0 * cutoff ** 2))
    return (f / f.sum()).astype(np.float32)


def sigmoid_filter(shape, cutoff, sharpness):
    d = _dist_grid(shape)
    f = 1.0 / (1.0 + np.exp((d - cutoff) / sharpness))
    return (f / f.sum()).astype(np.float32)


# ----------------------------------------------------------------------------
# Bicubic (antialias=True, align_corners=False) separable resize matrix.
# Matches PyTorch's _upsample_bicubic2d_aa weight computation (a = -0.5).
# ----------------------------------------------------------------------------
def bicubic_aa_matrix(in_size, out_size):
    a = -0.5

    def cubic(x):
        x = abs(x)
        if x < 1.0:
            return ((a + 2.0) * x - (a + 3.0)) * x * x + 1.0
        if x < 2.0:
            return (((x - 5.0) * x + 8.0) * x - 4.0) * a
        return 0.0

    scale = in_size / out_size
    support = 2.0 * max(scale, 1.0)
    invscale = 1.0 / max(scale, 1.0)
    W = np.zeros((out_size, in_size), dtype=np.float64)
    for i in range(out_size):
        center = scale * (i + 0.5)
        xmin = max(int(center - support + 0.5), 0)
        xmax = min(in_size, int(center + support + 0.5))
        ws = [cubic((j - center + 0.5) * invscale) for j in range(xmin, xmax)]
        s = sum(ws)
        for j, w in zip(range(xmin, xmax), ws):
            W[i, j] = w / s
    return W.astype(np.float32)


@functools.lru_cache(maxsize=None)
def _resize_matrices_np(in_h, in_w, out_h, out_w):
    return bicubic_aa_matrix(in_h, out_h), bicubic_aa_matrix(in_w, out_w)


# ----------------------------------------------------------------------------
# DFT constant matrices.
# ----------------------------------------------------------------------------
def _row_dft_consts(H):
    """Forward/inverse row-DFT constants (applied on the LEFT, full complex)."""
    k = np.arange(H, dtype=np.float64)
    ang = 2.0 * np.pi * np.outer(k, k) / H
    fr, fi = np.cos(ang), -np.sin(ang)                 # forward: e^{-i ang}
    gr, gi = np.cos(ang) / H, np.sin(ang) / H          # inverse: e^{+i ang} / H
    fhs = np.concatenate([fr, fi], axis=0)             # (2H, H): [Re; Im] rows of Fh@D
    gh_re = np.concatenate([gr, gi], axis=0)           # (2H, H): [Pr;Pi] += GH_RE @ Yr
    gh_im = np.concatenate([-gi, gr], axis=0)          # (2H, H): [Pr;Pi] += GH_IM @ Yi
    return (fhs.astype(np.float32), gh_re.astype(np.float32), gh_im.astype(np.float32))


def _col_half_dft_consts(W):
    """Hermitian half-spectrum column transforms (applied on the RIGHT)."""
    Wr = W // 2 + 1
    n = np.arange(W, dtype=np.float64)
    v = np.arange(Wr, dtype=np.float64)
    ang_f = 2.0 * np.pi * np.outer(n, v) / W           # (W, Wr)
    fwr = np.cos(ang_f)                                # Re(F[:, :Wr]) = X @ fwr
    fwi = -np.sin(ang_f)                               # Im(F[:, :Wr]) = X @ fwi
    # Weighted irfft: x[n] = sum_v d_v (Pr[v] cos - Pi[v] sin)(2 pi v n / W) / W
    d = np.full((Wr,), 2.0)
    d[0] = 1.0
    if W % 2 == 0:
        d[W // 2] = 1.0
    ang_i = 2.0 * np.pi * np.outer(v, n) / W           # (Wr, W)
    gwr = d[:, None] * np.cos(ang_i) / W
    gwi = d[:, None] * np.sin(ang_i) / W
    return (fwr.astype(np.float32), fwi.astype(np.float32),
            gwr.astype(np.float32), gwi.astype(np.float32))


# ----------------------------------------------------------------------------
# Per-generation hardware queries (VMEM capacity, TensorCores per chip).
# ----------------------------------------------------------------------------
def _device_kind():
    try:
        return jax.devices()[0].device_kind.lower()
    except Exception:
        return ""


def _vmem_capacity_bytes():
    try:
        info = pltpu.get_tpu_info()
        for name in ("vmem_capacity_bytes", "vmem_size_bytes", "vmem_bytes"):
            v = getattr(info, name, None)
            if v:
                return int(v)
    except Exception:
        pass
    kind = _device_kind()
    if "v7" in kind or "7x" in kind:
        return 64 << 20
    return 128 << 20


def _num_tensorcores():
    kind = _device_kind()
    if any(t in kind for t in ("v4", "v5p", "v7", "7x")):
        return 2          # megacore / dual-TensorCore chips: split the grid across cores
    return 1


# ----------------------------------------------------------------------------
# Block-size selection under an explicit per-step VMEM budget.
# ----------------------------------------------------------------------------
def _round_up(x, m):
    return (x + m - 1) // m * m


def _tile_bytes(rows, cols, itemsize, copies=1):
    return _round_up(max(int(rows), 1), 8) * _round_up(max(int(cols), 1), 128) * itemsize * copies


def _step_vmem_bytes(B, H, W, Wr, hl, wl, single_buf_consts):
    blocks = (_tile_bytes(B * hl, wl, 2, 2)          # lr   bf16, double-buffered
              + _tile_bytes(B * H, W, 4, 2)          # sr   f32
              + _tile_bytes(B * H, W, 4, 2))         # out  f32
    cb = 1 if single_buf_consts else 2
    consts = (_tile_bytes(H, hl, 2, cb) + _tile_bytes(wl, W, 2, cb)
              + 3 * _tile_bytes(2 * H, H, 2, cb)     # fhs, gh_re, gh_im
              + 2 * _tile_bytes(W, Wr, 2, cb)        # fwr, fwi
              + 2 * _tile_bytes(Wr, W, 2, cb)        # gwr, gwi
              + _tile_bytes(H, Wr, 4, cb))           # mask (f32)
    scratch = (_tile_bytes(B * hl, W, 2)             # up stack      bf16
               + _tile_bytes(2 * B * H, W, 2)        # [Re;Im] stack bf16
               + 2 * _tile_bytes(2 * B * H, Wr, 4)   # col-DFT real/imag f32
               + 2 * _tile_bytes(B * H, Wr, 2))      # Pr / Pi stacks bf16
    return blocks + consts + scratch


def _pick_block_b(bc, H, W, Wr, hl, wl, vmem_budget, n_tc):
    """Images per grid step: as large as fits the VMEM budget; on single-TC chips prefer
    one grid step, on dual-TC chips prefer a grid that splits evenly across cores."""
    limit = int(vmem_budget * 0.75)     # leave headroom for compiler temporaries
    cands = []
    for B in range(1, bc + 1):
        if bc % B:
            continue
        grid = bc // B
        if grid > 1:
            # (sublane, lane) layout rule for partial blocks (bf16 lr needs 16 rows).
            if (B * hl) % 16 or (B * H) % 8:
                continue
        cands.append((B, grid))
    if not cands:
        return bc

    def score(item):
        B, grid = item
        fits = _step_vmem_bytes(B, H, W, Wr, hl, wl, True) <= limit
        small = B <= 16                              # bound unrolled per-image loop
        split_ok = (n_tc == 1 and grid == 1) or (n_tc > 1 and grid % n_tc == 0)
        mxu_aligned = (2 * B * H) % 128 == 0
        return (fits, small, split_ok, mxu_aligned, B)

    return max(cands, key=score)[0]


# ----------------------------------------------------------------------------
# Pallas kernel: B images (stacked along rows) per grid step.
# ----------------------------------------------------------------------------
def _mm(a, b):
    # bf16 operands at native MXU rate, f32 accumulation.
    return jnp.dot(a.astype(jnp.bfloat16), b.astype(jnp.bfloat16),
                   preferred_element_type=jnp.float32)


def fourier_constraint_kernel(lr_ref, sr_ref, uh_ref, uwt_ref,
                              fhs_ref, fwr_ref, fwi_ref,
                              ghre_ref, ghim_ref, gwr_ref, gwi_ref, ml_ref,
                              out_ref,
                              up_scr, s_scr, tr_scr, ti_scr, pr_scr, pi_scr,
                              *, B, H, W, Wr, hl, wl):
    bf16 = jnp.bfloat16

    # Width upsample of the whole lr row-stack: one tall MXU matmul, bf16 scratch.
    up_scr[...] = _mm(lr_ref[...], uwt_ref[...]).astype(bf16)            # (B*hl, W)

    # Per image: height upsample, residual D = lr_up - sr, forward row-DFT [Re; Im].
    for b in range(B):
        up_b = _mm(uh_ref[...], up_scr[b * hl:(b + 1) * hl, :])          # (H, W)  f32
        d_b = up_b - sr_ref[b * H:(b + 1) * H, :]                        # (H, W)  f32
        s_scr[2 * H * b:2 * H * (b + 1), :] = _mm(fhs_ref[...], d_b).astype(bf16)

    # Forward column half-DFT (Wr = W//2+1 columns) on the whole stack: two tall matmuls.
    tr_scr[...] = _mm(s_scr[...], fwr_ref[...])                          # (2BH, Wr) f32
    ti_scr[...] = _mm(s_scr[...], fwi_ref[...])                          # (2BH, Wr) f32

    # Per image: assemble half spectrum, apply low-pass mask, inverse row-DFT.
    # The mask-multiplied spectrum feeds the MXU directly (no scratch round-trip).
    for b in range(B):
        top = 2 * H * b
        bot = top + H
        ml = ml_ref[...]                                                 # (H, Wr)  f32
        yr = (tr_scr[top:top + H, :] - ti_scr[bot:bot + H, :]) * ml      # Re(fft2 D)*ml
        yi = (ti_scr[top:top + H, :] + tr_scr[bot:bot + H, :]) * ml      # Im(fft2 D)*ml
        p = _mm(ghre_ref[...], yr) + _mm(ghim_ref[...], yi)              # (2H,Wr)=[Pr;Pi]
        pr_scr[H * b:H * (b + 1), :] = p[:H, :].astype(bf16)
        pi_scr[H * b:H * (b + 1), :] = p[H:, :].astype(bf16)

    # Inverse column half-DFT (weighted irfft) + residual add, staged through out_ref so
    # only one (B*H, W) f32 temporary is live at a time.
    out_ref[...] = _mm(pr_scr[...], gwr_ref[...])
    out_ref[...] -= _mm(pi_scr[...], gwi_ref[...])
    out_ref[...] += sr_ref[...]


# ----------------------------------------------------------------------------
# Module wrapper.
# ----------------------------------------------------------------------------
class FourierHardConstraintPallas:
    def __init__(self, filter_method, filter_hyperparameters, sr_image_size, scale_factor):
        h, w = sr_image_size
        center_h, center_w = h // 2, w // 2
        radius = min(center_h, center_w) // scale_factor
        if filter_method == "ideal":
            low_pass_mask = ideal_filter((h, w), radius)
        elif filter_method == "butterworth":
            low_pass_mask = butterworth_filter((h, w), radius, order=filter_hyperparameters["order"])
        elif filter_method == "gaussian":
            low_pass_mask = gaussian_filter((h, w), radius)
        elif filter_method == "sigmoid":
            low_pass_mask = sigmoid_filter((h, w), radius, sharpness=filter_hyperparameters["sharpness"])
        else:
            raise ValueError(f"Unsupported fourier_method: {filter_method}")

        self.H, self.W = h, w
        self.Wr = w // 2 + 1
        self.scale_factor = scale_factor

        # fftshift(X) * M -> ifftshift  ==  X * ifftshift(M) in the unshifted FFT domain.
        # The mask is point-symmetric, so the masked spectrum stays Hermitian and only
        # the first Wr columns are ever needed by the kernel.
        ml_u = np.fft.ifftshift(low_pass_mask).astype(np.float32)
        self.ml_full = jnp.asarray(ml_u)                       # (H, W)  for reference()
        self.ml_half = jnp.asarray(ml_u[:, :self.Wr])          # (H, Wr) kernel constant

        bf = jnp.bfloat16
        fhs, gh_re, gh_im = _row_dft_consts(h)
        fwr, fwi, gwr, gwi = _col_half_dft_consts(w)
        self.fhs = jnp.asarray(fhs, bf)        # (2H, H)
        self.gh_re = jnp.asarray(gh_re, bf)    # (2H, H)
        self.gh_im = jnp.asarray(gh_im, bf)    # (2H, H)
        self.fwr = jnp.asarray(fwr, bf)        # (W, Wr)
        self.fwi = jnp.asarray(fwi, bf)        # (W, Wr)
        self.gwr = jnp.asarray(gwr, bf)        # (Wr, W)
        self.gwi = jnp.asarray(gwi, bf)        # (Wr, W)

        # Per-generation budgets: ~2/3 of physical VMEM, grid split only on dual-TC chips.
        self._vmem_budget = (_vmem_capacity_bytes() * 11) // 16
        self._n_tc = _num_tensorcores()

        self._resize_cache = {}
        self._single_buffer_consts = True
        self._forward = jax.jit(self._forward_impl, static_argnames=("single_buffer",))

    def _resize_mats(self, hl, wl):
        key = (hl, wl)
        if key not in self._resize_cache:
            uh_np, uw_np = _resize_matrices_np(hl, wl, self.H, self.W)
            self._resize_cache[key] = (
                jnp.asarray(uh_np, dtype=jnp.bfloat16),      # (H, hl)
                jnp.asarray(uw_np.T, dtype=jnp.bfloat16),    # (wl, W)
                jnp.asarray(uh_np), jnp.asarray(uw_np),      # f32, for reference()
            )
        return self._resize_cache[key]

    def _forward_impl(self, lr, sr, uh, uwt, *, single_buffer):
        n, c, hl, wl = lr.shape
        H, W, Wr = self.H, self.W, self.Wr
        bc = n * c
        B = _pick_block_b(bc, H, W, Wr, hl, wl, self._vmem_budget, self._n_tc)
        grid = bc // B

        lr_f = lr.reshape(bc * hl, wl).astype(jnp.bfloat16)   # bf16: only a matmul operand
        sr_f = sr.reshape(bc * H, W).astype(jnp.float32)

        kernel = functools.partial(fourier_constraint_kernel,
                                   B=B, H=H, W=W, Wr=Wr, hl=hl, wl=wl)

        if single_buffer:
            # Constants are never re-DMA'd; a single VMEM copy is enough.
            const = lambda shape: pl.BlockSpec(shape, lambda i: (0, 0),
                                               pipeline_mode=pl.Buffered(buffer_count=1))
        else:
            const = lambda shape: pl.BlockSpec(shape, lambda i: (0, 0))

        flops_per_img = (2 * hl * wl * W + 2 * H * hl * W + 4 * H * H * W
                         + 8 * H * W * Wr + 8 * H * H * Wr + 4 * H * Wr * W)
        const_bytes = (2 * (H * hl + wl * W + 6 * H * H + 2 * W * Wr + 2 * Wr * W)
                       + 4 * H * Wr)
        bytes_accessed = 2 * bc * hl * wl + 8 * bc * H * W + const_bytes

        out = pl.pallas_call(
            kernel,
            out_shape=jax.ShapeDtypeStruct((bc * H, W), jnp.float32),
            grid_spec=pltpu.PrefetchScalarGridSpec(
                num_scalar_prefetch=0,
                grid=(grid,),
                in_specs=[
                    pl.BlockSpec((B * hl, wl), lambda i: (i, 0)),   # lr  (bf16 row stack)
                    pl.BlockSpec((B * H, W), lambda i: (i, 0)),     # sr  (f32 row stack)
                    const((H, hl)), const((wl, W)),                 # Uh, Uw^T
                    const((2 * H, H)),                              # [Fr; Fi]
                    const((W, Wr)), const((W, Wr)),                 # Fwr_h, Fwi_h
                    const((2 * H, H)), const((2 * H, H)),           # GH_RE, GH_IM
                    const((Wr, W)), const((Wr, W)),                 # Gwr_h, Gwi_h
                    const((H, Wr)),                                 # low-pass mask (half)
                ],
                out_specs=pl.BlockSpec((B * H, W), lambda i: (i, 0)),
                scratch_shapes=[
                    pltpu.VMEM((B * hl, W), jnp.bfloat16),          # width-upsampled lr
                    pltpu.VMEM((2 * B * H, W), jnp.bfloat16),       # forward row-DFT [Re;Im]
                    pltpu.VMEM((2 * B * H, Wr), jnp.float32),       # col-DFT real half-spec
                    pltpu.VMEM((2 * B * H, Wr), jnp.float32),       # col-DFT imag half-spec
                    pltpu.VMEM((B * H, Wr), jnp.bfloat16),          # Pr stack
                    pltpu.VMEM((B * H, Wr), jnp.bfloat16),          # Pi stack
                ],
            ),
            compiler_params=pltpu.CompilerParams(
                dimension_semantics=("parallel",),
                vmem_limit_bytes=int(self._vmem_budget),
            ),
            cost_estimate=pl.CostEstimate(flops=int(bc * flops_per_img), transcendentals=0,
                                          bytes_accessed=int(bytes_accessed)),
        )(lr_f, sr_f, uh, uwt,
          self.fhs, self.fwr, self.fwi,
          self.gh_re, self.gh_im, self.gwr, self.gwi, self.ml_half)
        return out.reshape(n, c, H, W)

    def __call__(self, lr, sr):
        n, c, hl, wl = lr.shape
        assert sr.shape[-2:] == (self.H, self.W)
        uh, uwt, _, _ = self._resize_mats(hl, wl)
        try:
            return self._forward(lr, sr, uh, uwt, single_buffer=self._single_buffer_consts)
        except Exception:
            if not self._single_buffer_consts:
                raise
            # This jax build rejects pl.Buffered(buffer_count=1): fall back to the
            # default double-buffered constant specs (correctness identical).
            self._single_buffer_consts = False
            return self._forward(lr, sr, uh, uwt, single_buffer=False)

    # pure-JAX reference (same resize matrices in f32, jnp.fft, original mask-blend form)
    def reference(self, lr, sr):
        n, c, hl, wl = lr.shape
        _, _, uh, uw = self._resize_mats(hl, wl)
        lr_up = jnp.einsum("oh,nchw,pw->ncop", uh, lr.astype(jnp.float32), uw,
                           precision=jax.lax.Precision.HIGHEST)
        sr_fft = jnp.fft.fftn(sr.astype(jnp.float32), axes=(-2, -1))
        lr_fft = jnp.fft.fftn(lr_up, axes=(-2, -1))
        combined = lr_fft * self.ml_full + sr_fft * (1.0 - self.ml_full)
        return jnp.real(jnp.fft.ifft2(combined))


if __name__ == "__main__":
    key = jax.random.PRNGKey(0)
    k1, k2 = jax.random.split(key)

    N, C = 2, 4
    H, W = 16, 16
    scale = 2
    lr = jax.random.normal(k1, (N, C, H // scale, W // scale), dtype=jnp.float32)
    sr = jax.random.normal(k2, (N, C, H, W), dtype=jnp.float32)

    mod = FourierHardConstraintPallas(
        filter_method="ideal",
        filter_hyperparameters={},
        sr_image_size=(H, W),
        scale_factor=scale,
    )

    out = mod(lr, sr)
    jax.block_until_ready(out)

    ref = mod.reference(lr, sr)
    jax.block_until_ready(ref)
    # bf16 MXU operands with f32 accumulation -> slightly looser tolerance than pure f32.
    np.testing.assert_allclose(np.asarray(out), np.asarray(ref), atol=3e-2, rtol=3e-2)

    print("KERNEL_OK")
</pallas_src>

<mosaic_0001>
module attributes {stable_mosaic.version = 11 : i64} {
  func.func @fourier_constraint_kernel(%arg0: i32, %arg1: memref<64x8xbf16, #tpu.memory_space<vmem>>, %arg2: memref<128x16xf32, #tpu.memory_space<vmem>>, %arg3: memref<16x8xbf16, #tpu.memory_space<vmem>>, %arg4: memref<8x16xbf16, #tpu.memory_space<vmem>>, %arg5: memref<32x16xbf16, #tpu.memory_space<vmem>>, %arg6: memref<16x9xbf16, #tpu.memory_space<vmem>>, %arg7: memref<16x9xbf16, #tpu.memory_space<vmem>>, %arg8: memref<32x16xbf16, #tpu.memory_space<vmem>>, %arg9: memref<32x16xbf16, #tpu.memory_space<vmem>>, %arg10: memref<9x16xbf16, #tpu.memory_space<vmem>>, %arg11: memref<9x16xbf16, #tpu.memory_space<vmem>>, %arg12: memref<16x9xf32, #tpu.memory_space<vmem>>, %arg13: memref<128x16xf32, #tpu.memory_space<vmem>>, %arg14: memref<64x16xbf16, #tpu.memory_space<vmem>>, %arg15: memref<256x16xbf16, #tpu.memory_space<vmem>>, %arg16: memref<256x9xf32, #tpu.memory_space<vmem>>, %arg17: memref<256x9xf32, #tpu.memory_space<vmem>>, %arg18: memref<128x9xbf16, #tpu.memory_space<vmem>>, %arg19: memref<128x9xbf16, #tpu.memory_space<vmem>>) attributes {dimension_semantics = [#tpu.dimension_semantics<parallel>], iteration_bounds = array<i64: 1>, scalar_prefetch = 0 : i64, scratch_operands = 6 : i64, tpu.core_type = #tpu.core_type<tc>, window_params = [{transform_indices = @transform_0, window_bounds = array<i64: 64, 8>}, {transform_indices = @transform_1, window_bounds = array<i64: 128, 16>}, {pipeline_mode = #tpu.pipeline_mode<synchronous>, transform_indices = @transform_2, window_bounds = array<i64: 16, 8>}, {pipeline_mode = #tpu.pipeline_mode<synchronous>, transform_indices = @transform_3, window_bounds = array<i64: 8, 16>}, {pipeline_mode = #tpu.pipeline_mode<synchronous>, transform_indices = @transform_4, window_bounds = array<i64: 32, 16>}, {pipeline_mode = #tpu.pipeline_mode<synchronous>, transform_indices = @transform_5, window_bounds = array<i64: 16, 9>}, {pipeline_mode = #tpu.pipeline_mode<synchronous>, transform_indices = @transform_6, window_bounds = array<i64: 16, 9>}, {pipeline_mode = #tpu.pipeline_mode<synchronous>, transform_indices = @transform_7, window_bounds = array<i64: 32, 16>}, {pipeline_mode = #tpu.pipeline_mode<synchronous>, transform_indices = @transform_8, window_bounds = array<i64: 32, 16>}, {pipeline_mode = #tpu.pipeline_mode<synchronous>, transform_indices = @transform_9, window_bounds = array<i64: 9, 16>}, {pipeline_mode = #tpu.pipeline_mode<synchronous>, transform_indices = @transform_10, window_bounds = array<i64: 9, 16>}, {pipeline_mode = #tpu.pipeline_mode<synchronous>, transform_indices = @transform_11, window_bounds = array<i64: 16, 9>}, {transform_indices = @transform_12, window_bounds = array<i64: 128, 16>}]} {
    %c0 = arith.constant 0 : index
    %c0_0 = arith.constant 0 : index
    %0 = vector.load %arg1[%c0, %c0_0] : memref<64x8xbf16, #tpu.memory_space<vmem>>, vector<64x8xbf16>
    %c0_1 = arith.constant 0 : index
    %c0_2 = arith.constant 0 : index
    %1 = vector.load %arg4[%c0_1, %c0_2] : memref<8x16xbf16, #tpu.memory_space<vmem>>, vector<8x16xbf16>
    %cst = arith.constant dense<0.000000e+00> : vector<64x16xf32>
    %2 = tpu.matmul %0, %1, %cst {dimension_numbers = #tpu.dot_dimension_numbers<[1], [0], [0], [1], [0, 0, 1, 1], [], []>} : vector<64x8xbf16>, vector<8x16xbf16>, vector<64x16xf32> -> vector<64x16xf32>
    %3 = arith.truncf %2 : vector<64x16xf32> to vector<64x16xbf16>
    %c0_3 = arith.constant 0 : index
    %c0_4 = arith.constant 0 : index
    %4 = vector.load %arg14[%c0_3, %c0_4] : memref<64x16xbf16, #tpu.memory_space<vmem>>, vector<64x16xbf16>
    tpu.vector_store %arg14[%c0_3, %c0_4], %3 {strides = array<i32>} : memref<64x16xbf16, #tpu.memory_space<vmem>>, vector<64x16xbf16>,
    %c0_5 = arith.constant 0 : index
    %c0_6 = arith.constant 0 : index
    %5 = vector.load %arg3[%c0_5, %c0_6] : memref<16x8xbf16, #tpu.memory_space<vmem>>, vector<16x8xbf16>
    %c0_7 = arith.constant 0 : index
    %c0_8 = arith.constant 0 : index
    %6 = vector.load %arg14[%c0_7, %c0_8] : memref<64x16xbf16, #tpu.memory_space<vmem>>, vector<8x16xbf16>
    %cst_9 = arith.constant dense<0.000000e+00> : vector<16x16xf32>
    %7 = tpu.matmul %5, %6, %cst_9 {dimension_numbers = #tpu.dot_dimension_numbers<[1], [0], [0], [1], [0, 0, 1, 1], [], []>} : vector<16x8xbf16>, vector<8x16xbf16>, vector<16x16xf32> -> vector<16x16xf32>
    %c0_10 = arith.constant 0 : index
    %c0_11 = arith.constant 0 : index
    %8 = vector.load %arg2[%c0_10, %c0_11] : memref<128x16xf32, #tpu.memory_space<vmem>>, vector<16x16xf32>
    %9 = arith.subf %7, %8 : vector<16x16xf32>
    %c0_12 = arith.constant 0 : index
    %c0_13 = arith.constant 0 : index
    %10 = vector.load %arg5[%c0_12, %c0_13] : memref<32x16xbf16, #tpu.memory_space<vmem>>, vector<32x16xbf16>
    %11 = arith.truncf %9 : vector<16x16xf32> to vector<16x16xbf16>
    %cst_14 = arith.constant dense<0.000000e+00> : vector<32x16xf32>
    %12 = tpu.matmul %10, %11, %cst_14 {dimension_numbers = #tpu.dot_dimension_numbers<[1], [0], [0], [1], [0, 0, 1, 1], [], []>} : vector<32x16xbf16>, vector<16x16xbf16>, vector<32x16xf32> -> vector<32x16xf32>
    %13 = arith.truncf %12 : vector<32x16xf32> to vector<32x16xbf16>
    %c0_15 = arith.constant 0 : index
    %c0_16 = arith.constant 0 : index
    %14 = vector.load %arg15[%c0_15, %c0_16] : memref<256x16xbf16, #tpu.memory_space<vmem>>, vector<32x16xbf16>
    tpu.vector_store %arg15[%c0_15, %c0_16], %13 {strides = array<i32>} : memref<256x16xbf16, #tpu.memory_space<vmem>>, vector<32x16xbf16>,
    %c0_17 = arith.constant 0 : index
    %c0_18 = arith.constant 0 : index
    %15 = vector.load %arg3[%c0_17, %c0_18] : memref<16x8xbf16, #tpu.memory_space<vmem>>, vector<16x8xbf16>
    %c8 = arith.constant 8 : index
    %c0_19 = arith.constant 0 : index
    %16 = vector.load %arg14[%c8, %c0_19] : memref<64x16xbf16, #tpu.memory_space<vmem>>, vector<8x16xbf16>
    %cst_20 = arith.constant dense<0.000000e+00> : vector<16x16xf32>
    %17 = tpu.matmul %15, %16, %cst_20 {dimension_numbers = #tpu.dot_dimension_numbers<[1], [0], [0], [1], [0, 0, 1, 1], [], []>} : vector<16x8xbf16>, vector<8x16xbf16>, vector<16x16xf32> -> vector<16x16xf32>
    %c16 = arith.constant 16 : index
    %c0_21 = arith.constant 0 : index
    %18 = vector.load %arg2[%c16, %c0_21] : memref<128x16xf32, #tpu.memory_space<vmem>>, vector<16x16xf32>
    %19 = arith.subf %17, %18 : vector<16x16xf32>
    %c0_22 = arith.constant 0 : index
    %c0_23 = arith.constant 0 : index
    %20 = vector.load %arg5[%c0_22, %c0_23] : memref<32x16xbf16, #tpu.memory_space<vmem>>, vector<32x16xbf16>
    %21 = arith.truncf %19 : vector<16x16xf32> to vector<16x16xbf16>
    %cst_24 = arith.constant dense<0.000000e+00> : vector<32x16xf32>
    %22 = tpu.matmul %20, %21, %cst_24 {dimension_numbers = #tpu.dot_dimension_numbers<[1], [0], [0], [1], [0, 0, 1, 1], [], []>} : vector<32x16xbf16>, vector<16x16xbf16>, vector<32x16xf32> -> vector<32x16xf32>
    %23 = arith.truncf %22 : vector<32x16xf32> to vector<32x16xbf16>
    %c32 = arith.constant 32 : index
    %c0_25 = arith.constant 0 : index
    %24 = vector.load %arg15[%c32, %c0_25] : memref<256x16xbf16, #tpu.memory_space<vmem>>, vector<32x16xbf16>
    tpu.vector_store %arg15[%c32, %c0_25], %23 {strides = array<i32>} : memref<256x16xbf16, #tpu.memory_space<vmem>>, vector<32x16xbf16>,
    %c0_26 = arith.constant 0 : index
    %c0_27 = arith.constant 0 : index
    %25 = vector.load %arg3[%c0_26, %c0_27] : memref<16x8xbf16, #tpu.memory_space<vmem>>, vector<16x8xbf16>
    %c16_28 = arith.constant 16 : index
    %c0_29 = arith.constant 0 : index
    %26 = vector.load %arg14[%c16_28, %c0_29] : memref<64x16xbf16, #tpu.memory_space<vmem>>, vector<8x16xbf16>
    %cst_30 = arith.constant dense<0.000000e+00> : vector<16x16xf32>
    %27 = tpu.matmul %25, %26, %cst_30 {dimension_numbers = #tpu.dot_dimension_numbers<[1], [0], [0], [1], [0, 0, 1, 1], [], []>} : vector<16x8xbf16>, vector<8x16xbf16>, vector<16x16xf32> -> vector<16x16xf32>
    %c32_31 = arith.constant 32 : index
    %c0_32 = arith.constant 0 : index
    %28 = vector.load %arg2[%c32_31, %c0_32] : memref<128x16xf32, #tpu.memory_space<vmem>>, vector<16x16xf32>
    %29 = arith.subf %27, %28 : vector<16x16xf32>
    %c0_33 = arith.constant 0 : index
    %c0_34 = arith.constant 0 : index
    %30 = vector.load %arg5[%c0_33, %c0_34] : memref<32x16xbf16, #tpu.memory_space<vmem>>, vector<32x16xbf16>
    %31 = arith.truncf %29 : vector<16x16xf32> to vector<16x16xbf16>
    %cst_35 = arith.constant dense<0.000000e+00> : vector<32x16xf32>
    %32 = tpu.matmul %30, %31, %cst_35 {dimension_numbers = #tpu.dot_dimension_numbers<[1], [0], [0], [1], [0, 0, 1, 1], [], []>} : vector<32x16xbf16>, vector<16x16xbf16>, vector<32x16xf32> -> vector<32x16xf32>
    %33 = arith.truncf %32 : vector<32x16xf32> to vector<32x16xbf16>
    %c64 = arith.constant 64 : index
    %c0_36 = arith.constant 0 : index
    %34 = vector.load %arg15[%c64, %c0_36] : memref<256x16xbf16, #tpu.memory_space<vmem>>, vector<32x16xbf16>
    tpu.vector_store %arg15[%c64, %c0_36], %33 {strides = array<i32>} : memref<256x16xbf16, #tpu.memory_space<vmem>>, vector<32x16xbf16>,
    %c0_37 = arith.constant 0 : index
    %c0_38 = arith.constant 0 : index
    %35 = vector.load %arg3[%c0_37, %c0_38] : memref<16x8xbf16, #tpu.memory_space<vmem>>, vector<16x8xbf16>
    %c24 = arith.constant 24 : index
    %c0_39 = arith.constant 0 : index
    %36 = vector.load %arg14[%c24, %c0_39] : memref<64x16xbf16, #tpu.memory_space<vmem>>, vector<8x16xbf16>
    %cst_40 = arith.constant dense<0.000000e+00> : vector<16x16xf32>
    %37 = tpu.matmul %35, %36, %cst_40 {dimension_numbers = #tpu.dot_dimension_numbers<[1], [0], [0], [1], [0, 0, 1, 1], [], []>} : vector<16x8xbf16>, vector<8x16xbf16>, vector<16x16xf32> -> vector<16x16xf32>
    %c48 = arith.constant 48 : index
    %c0_41 = arith.constant 0 : index
    %38 = vector.load %arg2[%c48, %c0_41] : memref<128x16xf32, #tpu.memory_space<vmem>>, vector<16x16xf32>
    %39 = arith.subf %37, %38 : vector<16x16xf32>
    %c0_42 = arith.constant 0 : index
    %c0_43 = arith.constant 0 : index
    %40 = vector.load %arg5[%c0_42, %c0_43] : memref<32x16xbf16, #tpu.memory_space<vmem>>, vector<32x16xbf16>
    %41 = arith.truncf %39 : vector<16x16xf32> to vector<16x16xbf16>
    %cst_44 = arith.constant dense<0.000000e+00> : vector<32x16xf32>
    %42 = tpu.matmul %40, %41, %cst_44 {dimension_numbers = #tpu.dot_dimension_numbers<[1], [0], [0], [1], [0, 0, 1, 1], [], []>} : vector<32x16xbf16>, vector<16x16xbf16>, vector<32x16xf32> -> vector<32x16xf32>
    %43 = arith.truncf %42 : vector<32x16xf32> to vector<32x16xbf16>
    %c96 = arith.constant 96 : index
    %c0_45 = arith.constant 0 : index
    %44 = vector.load %arg15[%c96, %c0_45] : memref<256x16xbf16, #tpu.memory_space<vmem>>, vector<32x16xbf16>
    tpu.vector_store %arg15[%c96, %c0_45], %43 {strides = array<i32>} : memref<256x16xbf16, #tpu.memory_space<vmem>>, vector<32x16xbf16>,
    %c0_46 = arith.constant 0 : index
    %c0_47 = arith.constant 0 : index
    %45 = vector.load %arg3[%c0_46, %c0_47] : memref<16x8xbf16, #tpu.memory_space<vmem>>, vector<16x8xbf16>
    %c32_48 = arith.constant 32 : index
    %c0_49 = arith.constant 0 : index
    %46 = vector.load %arg14[%c32_48, %c0_49] : memref<64x16xbf16, #tpu.memory_space<vmem>>, vector<8x16xbf16>
    %cst_50 = arith.constant dense<0.000000e+00> : vector<16x16xf32>
    %47 = tpu.matmul %45, %46, %cst_50 {dimension_numbers = #tpu.dot_dimension_numbers<[1], [0], [0], [1], [0, 0, 1, 1], [], []>} : vector<16x8xbf16>, vector<8x16xbf16>, vector<16x16xf32> -> vector<16x16xf32>
    %c64_51 = arith.constant 64 : index
    %c0_52 = arith.constant 0 : index
    %48 = vector.load %arg2[%c64_51, %c0_52] : memref<128x16xf32, #tpu.memory_space<vmem>>, vector<16x16xf32>
    %49 = arith.subf %47, %48 : vector<16x16xf32>
    %c0_53 = arith.constant 0 : index
    %c0_54 = arith.constant 0 : index
    %50 = vector.load %arg5[%c0_53, %c0_54] : memref<32x16xbf16, #tpu.memory_space<vmem>>, vector<32x16xbf16>
    %51 = arith.truncf %49 : vector<16x16xf32> to vector<16x16xbf16>
    %cst_55 = arith.constant dense<0.000000e+00> : vector<32x16xf32>
    %52 = tpu.matmul %50, %51, %cst_55 {dimension_numbers = #tpu.dot_dimension_numbers<[1], [0], [0], [1], [0, 0, 1, 1], [], []>} : vector<32x16xbf16>, vector<16x16xbf16>, vector<32x16xf32> -> vector<32x16xf32>
    %53 = arith.truncf %52 : vector<32x16xf32> to vector<32x16xbf16>
    %c128 = arith.constant 128 : index
    %c0_56 = arith.constant 0 : index
    %54 = vector.load %arg15[%c128, %c0_56] : memref<256x16xbf16, #tpu.memory_space<vmem>>, vector<32x16xbf16>
    tpu.vector_store %arg15[%c128, %c0_56], %53 {strides = array<i32>} : memref<256x16xbf16, #tpu.memory_space<vmem>>, vector<32x16xbf16>,
    %c0_57 = arith.constant 0 : index
    %c0_58 = arith.constant 0 : index
    %55 = vector.load %arg3[%c0_57, %c0_58] : memref<16x8xbf16, #tpu.memory_space<vmem>>, vector<16x8xbf16>
    %c40 = arith.constant 40 : index
    %c0_59 = arith.constant 0 : index
    %56 = vector.load %arg14[%c40, %c0_59] : memref<64x16xbf16, #tpu.memory_space<vmem>>, vector<8x16xbf16>
    %cst_60 = arith.constant dense<0.000000e+00> : vector<16x16xf32>
    %57 = tpu.matmul %55, %56, %cst_60 {dimension_numbers = #tpu.dot_dimension_numbers<[1], [0], [0], [1], [0, 0, 1, 1], [], []>} : vector<16x8xbf16>, vector<8x16xbf16>, vector<16x16xf32> -> vector<16x16xf32>
    %c80 = arith.constant 80 : index
    %c0_61 = arith.constant 0 : index
    %58 = vector.load %arg2[%c80, %c0_61] : memref<128x16xf32, #tpu.memory_space<vmem>>, vector<16x16xf32>
    %59 = arith.subf %57, %58 : vector<16x16xf32>
    %c0_62 = arith.constant 0 : index
    %c0_63 = arith.constant 0 : index
    %60 = vector.load %arg5[%c0_62, %c0_63] : memref<32x16xbf16, #tpu.memory_space<vmem>>, vector<32x16xbf16>
    %61 = arith.truncf %59 : vector<16x16xf32> to vector<16x16xbf16>
    %cst_64 = arith.constant dense<0.000000e+00> : vector<32x16xf32>
    %62 = tpu.matmul %60, %61, %cst_64 {dimension_numbers = #tpu.dot_dimension_numbers<[1], [0], [0], [1], [0, 0, 1, 1], [], []>} : vector<32x16xbf16>, vector<16x16xbf16>, vector<32x16xf32> -> vector<32x16xf32>
    %63 = arith.truncf %62 : vector<32x16xf32> to vector<32x16xbf16>
    %c160 = arith.constant 160 : index
    %c0_65 = arith.constant 0 : index
    %64 = vector.load %arg15[%c160, %c0_65] : memref<256x16xbf16, #tpu.memory_space<vmem>>, vector<32x16xbf16>
    tpu.vector_store %arg15[%c160, %c0_65], %63 {strides = array<i32>} : memref<256x16xbf16, #tpu.memory_space<vmem>>, vector<32x16xbf16>,
    %c0_66 = arith.constant 0 : index
    %c0_67 = arith.constant 0 : index
    %65 = vector.load %arg3[%c0_66, %c0_67] : memref<16x8xbf16, #tpu.memory_space<vmem>>, vector<16x8xbf16>
    %c48_68 = arith.constant 48 : index
    %c0_69 = arith.constant 0 : index
    %66 = vector.load %arg14[%c48_68, %c0_69] : memref<64x16xbf16, #tpu.memory_space<vmem>>, vector<8x16xbf16>
    %cst_70 = arith.constant dense<0.000000e+00> : vector<16x16xf32>
    %67 = tpu.matmul %65, %66, %cst_70 {dimension_numbers = #tpu.dot_dimension_numbers<[1], [0], [0], [1], [0, 0, 1, 1], [], []>} : vector<16x8xbf16>, vector<8x16xbf16>, vector<16x16xf32> -> vector<16x16xf32>
    %c96_71 = arith.constant 96 : index
    %c0_72 = arith.constant 0 : index
    %68 = vector.load %arg2[%c96_71, %c0_72] : memref<128x16xf32, #tpu.memory_space<vmem>>, vector<16x16xf32>
    %69 = arith.subf %67, %68 : vector<16x16xf32>
    %c0_73 = arith.constant 0 : index
    %c0_74 = arith.constant 0 : index
    %70 = vector.load %arg5[%c0_73, %c0_74] : memref<32x16xbf16, #tpu.memory_space<vmem>>, vector<32x16xbf16>
    %71 = arith.truncf %69 : vector<16x16xf32> to vector<16x16xbf16>
    %cst_75 = arith.constant dense<0.000000e+00> : vector<32x16xf32>
    %72 = tpu.matmul %70, %71, %cst_75 {dimension_numbers = #tpu.dot_dimension_numbers<[1], [0], [0], [1], [0, 0, 1, 1], [], []>} : vector<32x16xbf16>, vector<16x16xbf16>, vector<32x16xf32> -> vector<32x16xf32>
    %73 = arith.truncf %72 : vector<32x16xf32> to vector<32x16xbf16>
    %c192 = arith.constant 192 : index
    %c0_76 = arith.constant 0 : index
    %74 = vector.load %arg15[%c192, %c0_76] : memref<256x16xbf16, #tpu.memory_space<vmem>>, vector<32x16xbf16>
    tpu.vector_store %arg15[%c192, %c0_76], %73 {strides = array<i32>} : memref<256x16xbf16, #tpu.memory_space<vmem>>, vector<32x16xbf16>,
    %c0_77 = arith.constant 0 : index
    %c0_78 = arith.constant 0 : index
    %75 = vector.load %arg3[%c0_77, %c0_78] : memref<16x8xbf16, #tpu.memory_space<vmem>>, vector<16x8xbf16>
    %c56 = arith.constant 56 : index
    %c0_79 = arith.constant 0 : index
    %76 = vector.load %arg14[%c56, %c0_79] : memref<64x16xbf16, #tpu.memory_space<vmem>>, vector<8x16xbf16>
    %cst_80 = arith.constant dense<0.000000e+00> : vector<16x16xf32>
    %77 = tpu.matmul %75, %76, %cst_80 {dimension_numbers = #tpu.dot_dimension_numbers<[1], [0], [0], [1], [0, 0, 1, 1], [], []>} : vector<16x8xbf16>, vector<8x16xbf16>, vector<16x16xf32> -> vector<16x16xf32>
    %c112 = arith.constant 112 : index
    %c0_81 = arith.constant 0 : index
    %78 = vector.load %arg2[%c112, %c0_81] : memref<128x16xf32, #tpu.memory_space<vmem>>, vector<16x16xf32>
    %79 = arith.subf %77, %78 : vector<16x16xf32>
    %c0_82 = arith.constant 0 : index
    %c0_83 = arith.constant 0 : index
    %80 = vector.load %arg5[%c0_82, %c0_83] : memref<32x16xbf16, #tpu.memory_space<vmem>>, vector<32x16xbf16>
    %81 = arith.truncf %79 : vector<16x16xf32> to vector<16x16xbf16>
    %cst_84 = arith.constant dense<0.000000e+00> : vector<32x16xf32>
    %82 = tpu.matmul %80, %81, %cst_84 {dimension_numbers = #tpu.dot_dimension_numbers<[1], [0], [0], [1], [0, 0, 1, 1], [], []>} : vector<32x16xbf16>, vector<16x16xbf16>, vector<32x16xf32> -> vector<32x16xf32>
    %83 = arith.truncf %82 : vector<32x16xf32> to vector<32x16xbf16>
    %c224 = arith.constant 224 : index
    %c0_85 = arith.constant 0 : index
    %84 = vector.load %arg15[%c224, %c0_85] : memref<256x16xbf16, #tpu.memory_space<vmem>>, vector<32x16xbf16>
    tpu.vector_store %arg15[%c224, %c0_85], %83 {strides = array<i32>} : memref<256x16xbf16, #tpu.memory_space<vmem>>, vector<32x16xbf16>,
    %c0_86 = arith.constant 0 : index
    %c0_87 = arith.constant 0 : index
    %85 = vector.load %arg15[%c0_86, %c0_87] : memref<256x16xbf16, #tpu.memory_space<vmem>>, vector<256x16xbf16>
    %c0_88 = arith.constant 0 : index
    %c0_89 = arith.constant 0 : index
    %86 = vector.load %arg6[%c0_88, %c0_89] : memref<16x9xbf16, #tpu.memory_space<vmem>>, vector<16x9xbf16>
    %cst_90 = arith.constant dense<0.000000e+00> : vector<256x9xf32>
    %87 = tpu.matmul %85, %86, %cst_90 {dimension_numbers = #tpu.dot_dimension_numbers<[1], [0], [0], [1], [0, 0, 1, 1], [], []>} : vector<256x16xbf16>, vector<16x9xbf16>, vector<256x9xf32> -> vector<256x9xf32>
    %c0_91 = arith.constant 0 : index
    %c0_92 = arith.constant 0 : index
    %88 = vector.load %arg16[%c0_91, %c0_92] : memref<256x9xf32, #tpu.memory_space<vmem>>, vector<256x9xf32>
    tpu.vector_store %arg16[%c0_91, %c0_92], %87 {strides = array<i32>} : memref<256x9xf32, #tpu.memory_space<vmem>>, vector<256x9xf32>,
    %c0_93 = arith.constant 0 : index
    %c0_94 = arith.constant 0 : index
    %89 = vector.load %arg15[%c0_93, %c0_94] : memref<256x16xbf16, #tpu.memory_space<vmem>>, vector<256x16xbf16>
    %c0_95 = arith.constant 0 : index
    %c0_96 = arith.constant 0 : index
    %90 = vector.load %arg7[%c0_95, %c0_96] : memref<16x9xbf16, #tpu.memory_space<vmem>>, vector<16x9xbf16>
    %cst_97 = arith.constant dense<0.000000e+00> : vector<256x9xf32>
    %91 = tpu.matmul %89, %90, %cst_97 {dimension_numbers = #tpu.dot_dimension_numbers<[1], [0], [0], [1], [0, 0, 1, 1], [], []>} : vector<256x16xbf16>, vector<16x9xbf16>, vector<256x9xf32> -> vector<256x9xf32>
    %c0_98 = arith.constant 0 : index
    %c0_99 = arith.constant 0 : index
    %92 = vector.load %arg17[%c0_98, %c0_99] : memref<256x9xf32, #tpu.memory_space<vmem>>, vector<256x9xf32>
    tpu.vector_store %arg17[%c0_98, %c0_99], %91 {strides = array<i32>} : memref<256x9xf32, #tpu.memory_space<vmem>>, vector<256x9xf32>,
    %c0_100 = arith.constant 0 : index
    %c0_101 = arith.constant 0 : index
    %93 = vector.load %arg12[%c0_100, %c0_101] : memref<16x9xf32, #tpu.memory_space<vmem>>, vector<16x9xf32>
    %c0_102 = arith.constant 0 : index
    %c0_103 = arith.constant 0 : index
    %94 = vector.load %arg16[%c0_102, %c0_103] : memref<256x9xf32, #tpu.memory_space<vmem>>, vector<16x9xf32>
    %c16_104 = arith.constant 16 : index
    %c0_105 = arith.constant 0 : index
    %95 = vector.load %arg17[%c16_104, %c0_105] : memref<256x9xf32, #tpu.memory_space<vmem>>, vector<16x9xf32>
    %96 = arith.subf %94, %95 : vector<16x9xf32>
    %97 = arith.mulf %96, %93 : vector<16x9xf32>
    %c0_106 = arith.constant 0 : index
    %c0_107 = arith.constant 0 : index
    %98 = vector.load %arg17[%c0_106, %c0_107] : memref<256x9xf32, #tpu.memory_space<vmem>>, vector<16x9xf32>
    %c16_108 = arith.constant 16 : index
    %c0_109 = arith.constant 0 : index
    %99 = vector.load %arg16[%c16_108, %c0_109] : memref<256x9xf32, #tpu.memory_space<vmem>>, vector<16x9xf32>
    %100 = arith.addf %98, %99 : vector<16x9xf32>
    %101 = arith.mulf %100, %93 : vector<16x9xf32>
    %c0_110 = arith.constant 0 : index
    %c0_111 = arith.constant 0 : index
    %102 = vector.load %arg8[%c0_110, %c0_111] : memref<32x16xbf16, #tpu.memory_space<vmem>>, vector<32x16xbf16>
    %103 = arith.truncf %97 : vector<16x9xf32> to vector<16x9xbf16>
    %cst_112 = arith.constant dense<0.000000e+00> : vector<32x9xf32>
    %104 = tpu.matmul %102, %103, %cst_112 {dimension_numbers = #tpu.dot_dimension_numbers<[1], [0], [0], [1], [0, 0, 1, 1], [], []>} : vector<32x16xbf16>, vector<16x9xbf16>, vector<32x9xf32> -> vector<32x9xf32>
    %c0_113 = arith.constant 0 : index
    %c0_114 = arith.constant 0 : index
    %105 = vector.load %arg9[%c0_113, %c0_114] : memref<32x16xbf16, #tpu.memory_space<vmem>>, vector<32x16xbf16>
    %106 = arith.truncf %101 : vector<16x9xf32> to vector<16x9xbf16>
    %cst_115 = arith.constant dense<0.000000e+00> : vector<32x9xf32>
    %107 = tpu.matmul %105, %106, %cst_115 {dimension_numbers = #tpu.dot_dimension_numbers<[1], [0], [0], [1], [0, 0, 1, 1], [], []>} : vector<32x16xbf16>, vector<16x9xbf16>, vector<32x9xf32> -> vector<32x9xf32>
    %108 = arith.addf %104, %107 : vector<32x9xf32>
    %109 = vector.extract_strided_slice %108 {offsets = [0, 0], sizes = [16, 9], strides = [1, 1]} : vector<32x9xf32> to vector<16x9xf32>
    %110 = arith.truncf %109 : vector<16x9xf32> to vector<16x9xbf16>
    %c0_116 = arith.constant 0 : index
    %c0_117 = arith.constant 0 : index
    %111 = vector.load %arg18[%c0_116, %c0_117] : memref<128x9xbf16, #tpu.memory_space<vmem>>, vector<16x9xbf16>
    tpu.vector_store %arg18[%c0_116, %c0_117], %110 {strides = array<i32>} : memref<128x9xbf16, #tpu.memory_space<vmem>>, vector<16x9xbf16>,
    %112 = vector.extract_strided_slice %108 {offsets = [16, 0], sizes = [16, 9], strides = [1, 1]} : vector<32x9xf32> to vector<16x9xf32>
    %113 = arith.truncf %112 : vector<16x9xf32> to vector<16x9xbf16>
    %c0_118 = arith.constant 0 : index
    %c0_119 = arith.constant 0 : index
    %114 = vector.load %arg19[%c0_118, %c0_119] : memref<128x9xbf16, #tpu.memory_space<vmem>>, vector<16x9xbf16>
    tpu.vector_store %arg19[%c0_118, %c0_119], %113 {strides = array<i32>} : memref<128x9xbf16, #tpu.memory_space<vmem>>, vector<16x9xbf16>,
    %c0_120 = arith.constant 0 : index
    %c0_121 = arith.constant 0 : index
    %115 = vector.load %arg12[%c0_120, %c0_121] : memref<16x9xf32, #tpu.memory_space<vmem>>, vector<16x9xf32>
    %c32_122 = arith.constant 32 : index
    %c0_123 = arith.constant 0 : index
    %116 = vector.load %arg16[%c32_122, %c0_123] : memref<256x9xf32, #tpu.memory_space<vmem>>, vector<16x9xf32>
    %c48_124 = arith.constant 48 : index
    %c0_125 = arith.constant 0 : index
    %117 = vector.load %arg17[%c48_124, %c0_125] : memref<256x9xf32, #tpu.memory_space<vmem>>, vector<16x9xf32>
    %118 = arith.subf %116, %117 : vector<16x9xf32>
    %119 = arith.mulf %118, %115 : vector<16x9xf32>
    %c32_126 = arith.constant 32 : index
    %c0_127 = arith.constant 0 : index
    %120 = vector.load %arg17[%c32_126, %c0_127] : memref<256x9xf32, #tpu.memory_space<vmem>>, vector<16x9xf32>
    %c48_128 = arith.constant 48 : index
    %c0_129 = arith.constant 0 : index
    %121 = vector.load %arg16[%c48_128, %c0_129] : memref<256x9xf32, #tpu.memory_space<vmem>>, vector<16x9xf32>
    %122 = arith.addf %120, %121 : vector<16x9xf32>
    %123 = arith.mulf %122, %115 : vector<16x9xf32>
    %c0_130 = arith.constant 0 : index
    %c0_131 = arith.constant 0 : index
    %124 = vector.load %arg8[%c0_130, %c0_131] : memref<32x16xbf16, #tpu.memory_space<vmem>>, vector<32x16xbf16>
    %125 = arith.truncf %119 : vector<16x9xf32> to vector<16x9xbf16>
    %cst_132 = arith.constant dense<0.000000e+00> : vector<32x9xf32>
    %126 = tpu.matmul %124, %125, %cst_132 {dimension_numbers = #tpu.dot_dimension_numbers<[1], [0], [0], [1], [0, 0, 1, 1], [], []>} : vector<32x16xbf16>, vector<16x9xbf16>, vector<32x9xf32> -> vector<32x9xf32>
    %c0_133 = arith.constant 0 : index
    %c0_134 = arith.constant 0 : index
    %127 = vector.load %arg9[%c0_133, %c0_134] : memref<32x16xbf16, #tpu.memory_space<vmem>>, vector<32x16xbf16>
    %128 = arith.truncf %123 : vector<16x9xf32> to vector<16x9xbf16>
    %cst_135 = arith.constant dense<0.000000e+00> : vector<32x9xf32>
    %129 = tpu.matmul %127, %128, %cst_135 {dimension_numbers = #tpu.dot_dimension_numbers<[1], [0], [0], [1], [0, 0, 1, 1], [], []>} : vector<32x16xbf16>, vector<16x9xbf16>, vector<32x9xf32> -> vector<32x9xf32>
    %130 = arith.addf %126, %129 : vector<32x9xf32>
    %131 = vector.extract_strided_slice %130 {offsets = [0, 0], sizes = [16, 9], strides = [1, 1]} : vector<32x9xf32> to vector<16x9xf32>
    %132 = arith.truncf %131 : vector<16x9xf32> to vector<16x9xbf16>
    %c16_136 = arith.constant 16 : index
    %c0_137 = arith.constant 0 : index
    %133 = vector.load %arg18[%c16_136, %c0_137] : memref<128x9xbf16, #tpu.memory_space<vmem>>, vector<16x9xbf16>
    tpu.vector_store %arg18[%c16_136, %c0_137], %132 {strides = array<i32>} : memref<128x9xbf16, #tpu.memory_space<vmem>>, vector<16x9xbf16>,
    %134 = vector.extract_strided_slice %130 {offsets = [16, 0], sizes = [16, 9], strides = [1, 1]} : vector<32x9xf32> to vector<16x9xf32>
    %135 = arith.truncf %134 : vector<16x9xf32> to vector<16x9xbf16>
    %c16_138 = arith.constant 16 : index
    %c0_139 = arith.constant 0 : index
    %136 = vector.load %arg19[%c16_138, %c0_139] : memref<128x9xbf16, #tpu.memory_space<vmem>>, vector<16x9xbf16>
    tpu.vector_store %arg19[%c16_138, %c0_139], %135 {strides = array<i32>} : memref<128x9xbf16, #tpu.memory_space<vmem>>, vector<16x9xbf16>,
    %c0_140 = arith.constant 0 : index
    %c0_141 = arith.constant 0 : index
    %137 = vector.load %arg12[%c0_140, %c0_141] : memref<16x9xf32, #tpu.memory_space<vmem>>, vector<16x9xf32>
    %c64_142 = arith.constant 64 : index
    %c0_143 = arith.constant 0 : index
    %138 = vector.load %arg16[%c64_142, %c0_143] : memref<256x9xf32, #tpu.memory_space<vmem>>, vector<16x9xf32>
    %c80_144 = arith.constant 80 : index
    %c0_145 = arith.constant 0 : index
    %139 = vector.load %arg17[%c80_144, %c0_145] : memref<256x9xf32, #tpu.memory_space<vmem>>, vector<16x9xf32>
    %140 = arith.subf %138, %139 : vector<16x9xf32>
    %141 = arith.mulf %140, %137 : vector<16x9xf32>
    %c64_146 = arith.constant 64 : index
    %c0_147 = arith.constant 0 : index
    %142 = vector.load %arg17[%c64_146, %c0_147] : memref<256x9xf32, #tpu.memory_space<vmem>>, vector<16x9xf32>
    %c80_148 = arith.constant 80 : index
    %c0_149 = arith.constant 0 : index
    %143 = vector.load %arg16[%c80_148, %c0_149] : memref<256x9xf32, #tpu.memory_space<vmem>>, vector<16x9xf32>
    %144 = arith.addf %142, %143 : vector<16x9xf32>
    %145 = arith.mulf %144, %137 : vector<16x9xf32>
    %c0_150 = arith.constant 0 : index
    %c0_151 = arith.constant 0 : index
    %146 = vector.load %arg8[%c0_150, %c0_151] : memref<32x16xbf16, #tpu.memory_space<vmem>>, vector<32x16xbf16>
    %147 = arith.truncf %141 : vector<16x9xf32> to vector<16x9xbf16>
    %cst_152 = arith.constant dense<0.000000e+00> : vector<32x9xf32>
    %148 = tpu.matmul %146, %147, %cst_152 {dimension_numbers = #tpu.dot_dimension_numbers<[1], [0], [0], [1], [0, 0, 1, 1], [], []>} : vector<32x16xbf16>, vector<16x9xbf16>, vector<32x9xf32> -> vector<32x9xf32>
    %c0_153 = arith.constant 0 : index
    %c0_154 = arith.constant 0 : index
    %149 = vector.load %arg9[%c0_153, %c0_154] : memref<32x16xbf16, #tpu.memory_space<vmem>>, vector<32x16xbf16>
    %150 = arith.truncf %145 : vector<16x9xf32> to vector<16x9xbf16>
    %cst_155 = arith.constant dense<0.000000e+00> : vector<32x9xf32>
    %151 = tpu.matmul %149, %150, %cst_155 {dimension_numbers = #tpu.dot_dimension_numbers<[1], [0], [0], [1], [0, 0, 1, 1], [], []>} : vector<32x16xbf16>, vector<16x9xbf16>, vector<32x9xf32> -> vector<32x9xf32>
    %152 = arith.addf %148, %151 : vector<32x9xf32>
    %153 = vector.extract_strided_slice %152 {offsets = [0, 0], sizes = [16, 9], strides = [1, 1]} : vector<32x9xf32> to vector<16x9xf32>
    %154 = arith.truncf %153 : vector<16x9xf32> to vector<16x9xbf16>
    %c32_156 = arith.constant 32 : index
    %c0_157 = arith.constant 0 : index
    %155 = vector.load %arg18[%c32_156, %c0_157] : memref<128x9xbf16, #tpu.memory_space<vmem>>, vector<16x9xbf16>
    tpu.vector_store %arg18[%c32_156, %c0_157], %154 {strides = array<i32>} : memref<128x9xbf16, #tpu.memory_space<vmem>>, vector<16x9xbf16>,
    %156 = vector.extract_strided_slice %152 {offsets = [16, 0], sizes = [16, 9], strides = [1, 1]} : vector<32x9xf32> to vector<16x9xf32>
    %157 = arith.truncf %156 : vector<16x9xf32> to vector<16x9xbf16>
    %c32_158 = arith.constant 32 : index
    %c0_159 = arith.constant 0 : index
    %158 = vector.load %arg19[%c32_158, %c0_159] : memref<128x9xbf16, #tpu.memory_space<vmem>>, vector<16x9xbf16>
    tpu.vector_store %arg19[%c32_158, %c0_159], %157 {strides = array<i32>} : memref<128x9xbf16, #tpu.memory_space<vmem>>, vector<16x9xbf16>,
    %c0_160 = arith.constant 0 : index
    %c0_161 = arith.constant 0 : index
    %159 = vector.load %arg12[%c0_160, %c0_161] : memref<16x9xf32, #tpu.memory_space<vmem>>, vector<16x9xf32>
    %c96_162 = arith.constant 96 : index
    %c0_163 = arith.constant 0 : index
    %160 = vector.load %arg16[%c96_162, %c0_163] : memref<256x9xf32, #tpu.memory_space<vmem>>, vector<16x9xf32>
    %c112_164 = arith.constant 112 : index
    %c0_165 = arith.constant 0 : index
    %161 = vector.load %arg17[%c112_164, %c0_165] : memref<256x9xf32, #tpu.memory_space<vmem>>, vector<16x9xf32>
    %162 = arith.subf %160, %161 : vector<16x9xf32>
    %163 = arith.mulf %162, %159 : vector<16x9xf32>
    %c96_166 = arith.constant 96 : index
    %c0_167 = arith.constant 0 : index
    %164 = vector.load %arg17[%c96_166, %c0_167] : memref<256x9xf32, #tpu.memory_space<vmem>>, vector<16x9xf32>
    %c112_168 = arith.constant 112 : index
    %c0_169 = arith.constant 0 : index
    %165 = vector.load %arg16[%c112_168, %c0_169] : memref<256x9xf32, #tpu.memory_space<vmem>>, vector<16x9xf32>
    %166 = arith.addf %164, %165 : vector<16x9xf32>
    %167 = arith.mulf %166, %159 : vector<16x9xf32>
    %c0_170 = arith.constant 0 : index
    %c0_171 = arith.constant 0 : index
    %168 = vector.load %arg8[%c0_170, %c0_171] : memref<32x16xbf16, #tpu.memory_space<vmem>>, vector<32x16xbf16>
    %169 = arith.truncf %163 : vector<16x9xf32> to vector<16x9xbf16>
    %cst_172 = arith.constant dense<0.000000e+00> : vector<32x9xf32>
    %170 = tpu.matmul %168, %169, %cst_172 {dimension_numbers = #tpu.dot_dimension_numbers<[1], [0], [0], [1], [0, 0, 1, 1], [], []>} : vector<32x16xbf16>, vector<16x9xbf16>, vector<32x9xf32> -> vector<32x9xf32>
    %c0_173 = arith.constant 0 : index
    %c0_174 = arith.constant 0 : index
    %171 = vector.load %arg9[%c0_173, %c0_174] : memref<32x16xbf16, #tpu.memory_space<vmem>>, vector<32x16xbf16>
    %172 = arith.truncf %167 : vector<16x9xf32> to vector<16x9xbf16>
    %cst_175 = arith.constant dense<0.000000e+00> : vector<32x9xf32>
    %173 = tpu.matmul %171, %172, %cst_175 {dimension_numbers = #tpu.dot_dimension_numbers<[1], [0], [0], [1], [0, 0, 1, 1], [], []>} : vector<32x16xbf16>, vector<16x9xbf16>, vector<32x9xf32> -> vector<32x9xf32>
    %174 = arith.addf %170, %173 : vector<32x9xf32>
    %175 = vector.extract_strided_slice %174 {offsets = [0, 0], sizes = [16, 9], strides = [1, 1]} : vector<32x9xf32> to vector<16x9xf32>
    %176 = arith.truncf %175 : vector<16x9xf32> to vector<16x9xbf16>
    %c48_176 = arith.constant 48 : index
    %c0_177 = arith.constant 0 : index
    %177 = vector.load %arg18[%c48_176, %c0_177] : memref<128x9xbf16, #tpu.memory_space<vmem>>, vector<16x9xbf16>
    tpu.vector_store %arg18[%c48_176, %c0_177], %176 {strides = array<i32>} : memref<128x9xbf16, #tpu.memory_space<vmem>>, vector<16x9xbf16>,
    %178 = vector.extract_strided_slice %174 {offsets = [16, 0], sizes = [16, 9], strides = [1, 1]} : vector<32x9xf32> to vector<16x9xf32>
    %179 = arith.truncf %178 : vector<16x9xf32> to vector<16x9xbf16>
    %c48_178 = arith.constant 48 : index
    %c0_179 = arith.constant 0 : index
    %180 = vector.load %arg19[%c48_178, %c0_179] : memref<128x9xbf16, #tpu.memory_space<vmem>>, vector<16x9xbf16>
    tpu.vector_store %arg19[%c48_178, %c0_179], %179 {strides = array<i32>} : memref<128x9xbf16, #tpu.memory_space<vmem>>, vector<16x9xbf16>,
    %c0_180 = arith.constant 0 : index
    %c0_181 = arith.constant 0 : index
    %181 = vector.load %arg12[%c0_180, %c0_181] : memref<16x9xf32, #tpu.memory_space<vmem>>, vector<16x9xf32>
    %c128_182 = arith.constant 128 : index
    %c0_183 = arith.constant 0 : index
    %182 = vector.load %arg16[%c128_182, %c0_183] : memref<256x9xf32, #tpu.memory_space<vmem>>, vector<16x9xf32>
    %c144 = arith.constant 144 : index
    %c0_184 = arith.constant 0 : index
    %183 = vector.load %arg17[%c144, %c0_184] : memref<256x9xf32, #tpu.memory_space<vmem>>, vector<16x9xf32>
    %184 = arith.subf %182, %183 : vector<16x9xf32>
    %185 = arith.mulf %184, %181 : vector<16x9xf32>
    %c128_185 = arith.constant 128 : index
    %c0_186 = arith.constant 0 : index
    %186 = vector.load %arg17[%c128_185, %c0_186] : memref<256x9xf32, #tpu.memory_space<vmem>>, vector<16x9xf32>
    %c144_187 = arith.constant 144 : index
    %c0_188 = arith.constant 0 : index
    %187 = vector.load %arg16[%c144_187, %c0_188] : memref<256x9xf32, #tpu.memory_space<vmem>>, vector<16x9xf32>
    %188 = arith.addf %186, %187 : vector<16x9xf32>
    %189 = arith.mulf %188, %181 : vector<16x9xf32>
    %c0_189 = arith.constant 0 : index
    %c0_190 = arith.constant 0 : index
    %190 = vector.load %arg8[%c0_189, %c0_190] : memref<32x16xbf16, #tpu.memory_space<vmem>>, vector<32x16xbf16>
    %191 = arith.truncf %185 : vector<16x9xf32> to vector<16x9xbf16>
    %cst_191 = arith.constant dense<0.000000e+00> : vector<32x9xf32>
    %192 = tpu.matmul %190, %191, %cst_191 {dimension_numbers = #tpu.dot_dimension_numbers<[1], [0], [0], [1], [0, 0, 1, 1], [], []>} : vector<32x16xbf16>, vector<16x9xbf16>, vector<32x9xf32> -> vector<32x9xf32>
    %c0_192 = arith.constant 0 : index
    %c0_193 = arith.constant 0 : index
    %193 = vector.load %arg9[%c0_192, %c0_193] : memref<32x16xbf16, #tpu.memory_space<vmem>>, vector<32x16xbf16>
    %194 = arith.truncf %189 : vector<16x9xf32> to vector<16x9xbf16>
    %cst_194 = arith.constant dense<0.000000e+00> : vector<32x9xf32>
    %195 = tpu.matmul %193, %194, %cst_194 {dimension_numbers = #tpu.dot_dimension_numbers<[1], [0], [0], [1], [0, 0, 1, 1], [], []>} : vector<32x16xbf16>, vector<16x9xbf16>, vector<32x9xf32> -> vector<32x9xf32>
    %196 = arith.addf %192, %195 : vector<32x9xf32>
    %197 = vector.extract_strided_slice %196 {offsets = [0, 0], sizes = [16, 9], strides = [1, 1]} : vector<32x9xf32> to vector<16x9xf32>
    %198 = arith.truncf %197 : vector<16x9xf32> to vector<16x9xbf16>
    %c64_195 = arith.constant 64 : index
    %c0_196 = arith.constant 0 : index
    %199 = vector.load %arg18[%c64_195, %c0_196] : memref<128x9xbf16, #tpu.memory_space<vmem>>, vector<16x9xbf16>
    tpu.vector_store %arg18[%c64_195, %c0_196], %198 {strides = array<i32>} : memref<128x9xbf16, #tpu.memory_space<vmem>>, vector<16x9xbf16>,
    %200 = vector.extract_strided_slice %196 {offsets = [16, 0], sizes = [16, 9], strides = [1, 1]} : vector<32x9xf32> to vector<16x9xf32>
    %201 = arith.truncf %200 : vector<16x9xf32> to vector<16x9xbf16>
    %c64_197 = arith.constant 64 : index
    %c0_198 = arith.constant 0 : index
    %202 = vector.load %arg19[%c64_197, %c0_198] : memref<128x9xbf16, #tpu.memory_space<vmem>>, vector<16x9xbf16>
    tpu.vector_store %arg19[%c64_197, %c0_198], %201 {strides = array<i32>} : memref<128x9xbf16, #tpu.memory_space<vmem>>, vector<16x9xbf16>,
    %c0_199 = arith.constant 0 : index
    %c0_200 = arith.constant 0 : index
    %203 = vector.load %arg12[%c0_199, %c0_200] : memref<16x9xf32, #tpu.memory_space<vmem>>, vector<16x9xf32>
    %c160_201 = arith.constant 160 : index
    %c0_202 = arith.constant 0 : index
    %204 = vector.load %arg16[%c160_201, %c0_202] : memref<256x9xf32, #tpu.memory_space<vmem>>, vector<16x9xf32>
    %c176 = arith.constant 176 : index
    %c0_203 = arith.constant 0 : index
    %205 = vector.load %arg17[%c176, %c0_203] : memref<256x9xf32, #tpu.memory_space<vmem>>, vector<16x9xf32>
    %206 = arith.subf %204, %205 : vector<16x9xf32>
    %207 = arith.mulf %206, %203 : vector<16x9xf32>
    %c160_204 = arith.constant 160 : index
    %c0_205 = arith.constant 0 : index
    %208 = vector.load %arg17[%c160_204, %c0_205] : memref<256x9xf32, #tpu.memory_space<vmem>>, vector<16x9xf32>
    %c176_206 = arith.constant 176 : index
    %c0_207 = arith.constant 0 : index
    %209 = vector.load %arg16[%c176_206, %c0_207] : memref<256x9xf32, #tpu.memory_space<vmem>>, vector<16x9xf32>
    %210 = arith.addf %208, %209 : vector<16x9xf32>
    %211 = arith.mulf %210, %203 : vector<16x9xf32>
    %c0_208 = arith.constant 0 : index
    %c0_209 = arith.constant 0 : index
    %212 = vector.load %arg8[%c0_208, %c0_209] : memref<32x16xbf16, #tpu.memory_space<vmem>>, vector<32x16xbf16>
    %213 = arith.truncf %207 : vector<16x9xf32> to vector<16x9xbf16>
    %cst_210 = arith.constant dense<0.000000e+00> : vector<32x9xf32>
    %214 = tpu.matmul %212, %213, %cst_210 {dimension_numbers = #tpu.dot_dimension_numbers<[1], [0], [0], [1], [0, 0, 1, 1], [], []>} : vector<32x16xbf16>, vector<16x9xbf16>, vector<32x9xf32> -> vector<32x9xf32>
    %c0_211 = arith.constant 0 : index
    %c0_212 = arith.constant 0 : index
    %215 = vector.load %arg9[%c0_211, %c0_212] : memref<32x16xbf16, #tpu.memory_space<vmem>>, vector<32x16xbf16>
    %216 = arith.truncf %211 : vector<16x9xf32> to vector<16x9xbf16>
    %cst_213 = arith.constant dense<0.000000e+00> : vector<32x9xf32>
    %217 = tpu.matmul %215, %216, %cst_213 {dimension_numbers = #tpu.dot_dimension_numbers<[1], [0], [0], [1], [0, 0, 1, 1], [], []>} : vector<32x16xbf16>, vector<16x9xbf16>, vector<32x9xf32> -> vector<32x9xf32>
    %218 = arith.addf %214, %217 : vector<32x9xf32>
    %219 = vector.extract_strided_slice %218 {offsets = [0, 0], sizes = [16, 9], strides = [1, 1]} : vector<32x9xf32> to vector<16x9xf32>
    %220 = arith.truncf %219 : vector<16x9xf32> to vector<16x9xbf16>
    %c80_214 = arith.constant 80 : index
    %c0_215 = arith.constant 0 : index
    %221 = vector.load %arg18[%c80_214, %c0_215] : memref<128x9xbf16, #tpu.memory_space<vmem>>, vector<16x9xbf16>
    tpu.vector_store %arg18[%c80_214, %c0_215], %220 {strides = array<i32>} : memref<128x9xbf16, #tpu.memory_space<vmem>>, vector<16x9xbf16>,
    %222 = vector.extract_strided_slice %218 {offsets = [16, 0], sizes = [16, 9], strides = [1, 1]} : vector<32x9xf32> to vector<16x9xf32>
    %223 = arith.truncf %222 : vector<16x9xf32> to vector<16x9xbf16>
    %c80_216 = arith.constant 80 : index
    %c0_217 = arith.constant 0 : index
    %224 = vector.load %arg19[%c80_216, %c0_217] : memref<128x9xbf16, #tpu.memory_space<vmem>>, vector<16x9xbf16>
    tpu.vector_store %arg19[%c80_216, %c0_217], %223 {strides = array<i32>} : memref<128x9xbf16, #tpu.memory_space<vmem>>, vector<16x9xbf16>,
    %c0_218 = arith.constant 0 : index
    %c0_219 = arith.constant 0 : index
    %225 = vector.load %arg12[%c0_218, %c0_219] : memref<16x9xf32, #tpu.memory_space<vmem>>, vector<16x9xf32>
    %c192_220 = arith.constant 192 : index
    %c0_221 = arith.constant 0 : index
    %226 = vector.load %arg16[%c192_220, %c0_221] : memref<256x9xf32, #tpu.memory_space<vmem>>, vector<16x9xf32>
    %c208 = arith.constant 208 : index
    %c0_222 = arith.constant 0 : index
    %227 = vector.load %arg17[%c208, %c0_222] : memref<256x9xf32, #tpu.memory_space<vmem>>, vector<16x9xf32>
    %228 = arith.subf %226, %227 : vector<16x9xf32>
    %229 = arith.mulf %228, %225 : vector<16x9xf32>
    %c192_223 = arith.constant 192 : index
    %c0_224 = arith.constant 0 : index
    %230 = vector.load %arg17[%c192_223, %c0_224] : memref<256x9xf32, #tpu.memory_space<vmem>>, vector<16x9xf32>
    %c208_225 = arith.constant 208 : index
    %c0_226 = arith.constant 0 : index
    %231 = vector.load %arg16[%c208_225, %c0_226] : memref<256x9xf32, #tpu.memory_space<vmem>>, vector<16x9xf32>
    %232 = arith.addf %230, %231 : vector<16x9xf32>
    %233 = arith.mulf %232, %225 : vector<16x9xf32>
    %c0_227 = arith.constant 0 : index
    %c0_228 = arith.constant 0 : index
    %234 = vector.load %arg8[%c0_227, %c0_228] : memref<32x16xbf16, #tpu.memory_space<vmem>>, vector<32x16xbf16>
    %235 = arith.truncf %229 : vector<16x9xf32> to vector<16x9xbf16>
    %cst_229 = arith.constant dense<0.000000e+00> : vector<32x9xf32>
    %236 = tpu.matmul %234, %235, %cst_229 {dimension_numbers = #tpu.dot_dimension_numbers<[1], [0], [0], [1], [0, 0, 1, 1], [], []>} : vector<32x16xbf16>, vector<16x9xbf16>, vector<32x9xf32> -> vector<32x9xf32>
    %c0_230 = arith.constant 0 : index
    %c0_231 = arith.constant 0 : index
    %237 = vector.load %arg9[%c0_230, %c0_231] : memref<32x16xbf16, #tpu.memory_space<vmem>>, vector<32x16xbf16>
    %238 = arith.truncf %233 : vector<16x9xf32> to vector<16x9xbf16>
    %cst_232 = arith.constant dense<0.000000e+00> : vector<32x9xf32>
    %239 = tpu.matmul %237, %238, %cst_232 {dimension_numbers = #tpu.dot_dimension_numbers<[1], [0], [0], [1], [0, 0, 1, 1], [], []>} : vector<32x16xbf16>, vector<16x9xbf16>, vector<32x9xf32> -> vector<32x9xf32>
    %240 = arith.addf %236, %239 : vector<32x9xf32>
    %241 = vector.extract_strided_slice %240 {offsets = [0, 0], sizes = [16, 9], strides = [1, 1]} : vector<32x9xf32> to vector<16x9xf32>
    %242 = arith.truncf %241 : vector<16x9xf32> to vector<16x9xbf16>
    %c96_233 = arith.constant 96 : index
    %c0_234 = arith.constant 0 : index
    %243 = vector.load %arg18[%c96_233, %c0_234] : memref<128x9xbf16, #tpu.memory_space<vmem>>, vector<16x9xbf16>
    tpu.vector_store %arg18[%c96_233, %c0_234], %242 {strides = array<i32>} : memref<128x9xbf16, #tpu.memory_space<vmem>>, vector<16x9xbf16>,
    %244 = vector.extract_strided_slice %240 {offsets = [16, 0], sizes = [16, 9], strides = [1, 1]} : vector<32x9xf32> to vector<16x9xf32>
    %245 = arith.truncf %244 : vector<16x9xf32> to vector<16x9xbf16>
    %c96_235 = arith.constant 96 : index
    %c0_236 = arith.constant 0 : index
    %246 = vector.load %arg19[%c96_235, %c0_236] : memref<128x9xbf16, #tpu.memory_space<vmem>>, vector<16x9xbf16>
    tpu.vector_store %arg19[%c96_235, %c0_236], %245 {strides = array<i32>} : memref<128x9xbf16, #tpu.memory_space<vmem>>, vector<16x9xbf16>,
    %c0_237 = arith.constant 0 : index
    %c0_238 = arith.constant 0 : index
    %247 = vector.load %arg12[%c0_237, %c0_238] : memref<16x9xf32, #tpu.memory_space<vmem>>, vector<16x9xf32>
    %c224_239 = arith.constant 224 : index
    %c0_240 = arith.constant 0 : index
    %248 = vector.load %arg16[%c224_239, %c0_240] : memref<256x9xf32, #tpu.memory_space<vmem>>, vector<16x9xf32>
    %c240 = arith.constant 240 : index
    %c0_241 = arith.constant 0 : index
    %249 = vector.load %arg17[%c240, %c0_241] : memref<256x9xf32, #tpu.memory_space<vmem>>, vector<16x9xf32>
    %250 = arith.subf %248, %249 : vector<16x9xf32>
    %251 = arith.mulf %250, %247 : vector<16x9xf32>
    %c224_242 = arith.constant 224 : index
    %c0_243 = arith.constant 0 : index
    %252 = vector.load %arg17[%c224_242, %c0_243] : memref<256x9xf32, #tpu.memory_space<vmem>>, vector<16x9xf32>
    %c240_244 = arith.constant 240 : index
    %c0_245 = arith.constant 0 : index
    %253 = vector.load %arg16[%c240_244, %c0_245] : memref<256x9xf32, #tpu.memory_space<vmem>>, vector<16x9xf32>
    %254 = arith.addf %252, %253 : vector<16x9xf32>
    %255 = arith.mulf %254, %247 : vector<16x9xf32>
    %c0_246 = arith.constant 0 : index
    %c0_247 = arith.constant 0 : index
    %256 = vector.load %arg8[%c0_246, %c0_247] : memref<32x16xbf16, #tpu.memory_space<vmem>>, vector<32x16xbf16>
    %257 = arith.truncf %251 : vector<16x9xf32> to vector<16x9xbf16>
    %cst_248 = arith.constant dense<0.000000e+00> : vector<32x9xf32>
    %258 = tpu.matmul %256, %257, %cst_248 {dimension_numbers = #tpu.dot_dimension_numbers<[1], [0], [0], [1], [0, 0, 1, 1], [], []>} : vector<32x16xbf16>, vector<16x9xbf16>, vector<32x9xf32> -> vector<32x9xf32>
    %c0_249 = arith.constant 0 : index
    %c0_250 = arith.constant 0 : index
    %259 = vector.load %arg9[%c0_249, %c0_250] : memref<32x16xbf16, #tpu.memory_space<vmem>>, vector<32x16xbf16>
    %260 = arith.truncf %255 : vector<16x9xf32> to vector<16x9xbf16>
    %cst_251 = arith.constant dense<0.000000e+00> : vector<32x9xf32>
    %261 = tpu.matmul %259, %260, %cst_251 {dimension_numbers = #tpu.dot_dimension_numbers<[1], [0], [0], [1], [0, 0, 1, 1], [], []>} : vector<32x16xbf16>, vector<16x9xbf16>, vector<32x9xf32> -> vector<32x9xf32>
    %262 = arith.addf %258, %261 : vector<32x9xf32>
    %263 = vector.extract_strided_slice %262 {offsets = [0, 0], sizes = [16, 9], strides = [1, 1]} : vector<32x9xf32> to vector<16x9xf32>
    %264 = arith.truncf %263 : vector<16x9xf32> to vector<16x9xbf16>
    %c112_252 = arith.constant 112 : index
    %c0_253 = arith.constant 0 : index
    %265 = vector.load %arg18[%c112_252, %c0_253] : memref<128x9xbf16, #tpu.memory_space<vmem>>, vector<16x9xbf16>
    tpu.vector_store %arg18[%c112_252, %c0_253], %264 {strides = array<i32>} : memref<128x9xbf16, #tpu.memory_space<vmem>>, vector<16x9xbf16>,
    %266 = vector.extract_strided_slice %262 {offsets = [16, 0], sizes = [16, 9], strides = [1, 1]} : vector<32x9xf32> to vector<16x9xf32>
    %267 = arith.truncf %266 : vector<16x9xf32> to vector<16x9xbf16>
    %c112_254 = arith.constant 112 : index
    %c0_255 = arith.constant 0 : index
    %268 = vector.load %arg19[%c112_254, %c0_255] : memref<128x9xbf16, #tpu.memory_space<vmem>>, vector<16x9xbf16>
    tpu.vector_store %arg19[%c112_254, %c0_255], %267 {strides = array<i32>} : memref<128x9xbf16, #tpu.memory_space<vmem>>, vector<16x9xbf16>,
    %c0_256 = arith.constant 0 : index
    %c0_257 = arith.constant 0 : index
    %269 = vector.load %arg18[%c0_256, %c0_257] : memref<128x9xbf16, #tpu.memory_space<vmem>>, vector<128x9xbf16>
    %c0_258 = arith.constant 0 : index
    %c0_259 = arith.constant 0 : index
    %270 = vector.load %arg10[%c0_258, %c0_259] : memref<9x16xbf16, #tpu.memory_space<vmem>>, vector<9x16xbf16>
    %cst_260 = arith.constant dense<0.000000e+00> : vector<128x16xf32>
    %271 = tpu.matmul %269, %270, %cst_260 {dimension_numbers = #tpu.dot_dimension_numbers<[1], [0], [0], [1], [0, 0, 1, 1], [], []>} : vector<128x9xbf16>, vector<9x16xbf16>, vector<128x16xf32> -> vector<128x16xf32>
    %c0_261 = arith.constant 0 : index
    %c0_262 = arith.constant 0 : index
    %272 = vector.load %arg13[%c0_261, %c0_262] : memref<128x16xf32, #tpu.memory_space<vmem>>, vector<128x16xf32>
    tpu.vector_store %arg13[%c0_261, %c0_262], %271 {strides = array<i32>} : memref<128x16xf32, #tpu.memory_space<vmem>>, vector<128x16xf32>,
    %c0_263 = arith.constant 0 : index
    %c0_264 = arith.constant 0 : index
    %273 = vector.load %arg13[%c0_263, %c0_264] : memref<128x16xf32, #tpu.memory_space<vmem>>, vector<128x16xf32>
    %c0_265 = arith.constant 0 : index
    %c0_266 = arith.constant 0 : index
    %274 = vector.load %arg19[%c0_265, %c0_266] : memref<128x9xbf16, #tpu.memory_space<vmem>>, vector<128x9xbf16>
    %c0_267 = arith.constant 0 : index
    %c0_268 = arith.constant 0 : index
    %275 = vector.load %arg11[%c0_267, %c0_268] : memref<9x16xbf16, #tpu.memory_space<vmem>>, vector<9x16xbf16>
    %cst_269 = arith.constant dense<0.000000e+00> : vector<128x16xf32>
    %276 = tpu.matmul %274, %275, %cst_269 {dimension_numbers = #tpu.dot_dimension_numbers<[1], [0], [0], [1], [0, 0, 1, 1], [], []>} : vector<128x9xbf16>, vector<9x16xbf16>, vector<128x16xf32> -> vector<128x16xf32>
    %277 = arith.subf %273, %276 : vector<128x16xf32>
    %c0_270 = arith.constant 0 : index
    %c0_271 = arith.constant 0 : index
    %278 = vector.load %arg13[%c0_270, %c0_271] : memref<128x16xf32, #tpu.memory_space<vmem>>, vector<128x16xf32>
    tpu.vector_store %arg13[%c0_270, %c0_271], %277 {strides = array<i32>} : memref<128x16xf32, #tpu.memory_space<vmem>>, vector<128x16xf32>,
    %c0_272 = arith.constant 0 : index
    %c0_273 = arith.constant 0 : index
    %279 = vector.load %arg13[%c0_272, %c0_273] : memref<128x16xf32, #tpu.memory_space<vmem>>, vector<128x16xf32>
    %c0_274 = arith.constant 0 : index
    %c0_275 = arith.constant 0 : index
    %280 = vector.load %arg2[%c0_274, %c0_275] : memref<128x16xf32, #tpu.memory_space<vmem>>, vector<128x16xf32>
    %281 = arith.addf %279, %280 : vector<128x16xf32>
    %c0_276 = arith.constant 0 : index
    %c0_277 = arith.constant 0 : index
    %282 = vector.load %arg13[%c0_276, %c0_277] : memref<128x16xf32, #tpu.memory_space<vmem>>, vector<128x16xf32>
    tpu.vector_store %arg13[%c0_276, %c0_277], %281 {strides = array<i32>} : memref<128x16xf32, #tpu.memory_space<vmem>>, vector<128x16xf32>,
    return
  }
  func.func @transform_0(%arg0: i32) -> (i32, i32) {
    %c0_i32 = arith.constant 0 : i32
    %c0_i32_0 = arith.constant 0 : i32
    return %arg0, %c0_i32 : i32, i32
  }
  func.func @transform_1(%arg0: i32) -> (i32, i32) {
    %c0_i32 = arith.constant 0 : i32
    %c0_i32_0 = arith.constant 0 : i32
    return %arg0, %c0_i32 : i32, i32
  }
  func.func @transform_2(%arg0: i32) -> (i32, i32) {
    %c0_i32 = arith.constant 0 : i32
    %c0_i32_0 = arith.constant 0 : i32
    %c0_i32_1 = arith.constant 0 : i32
    return %c0_i32, %c0_i32_0 : i32, i32
  }
  func.func @transform_3(%arg0: i32) -> (i32, i32) {
    %c0_i32 = arith.constant 0 : i32
    %c0_i32_0 = arith.constant 0 : i32
    %c0_i32_1 = arith.constant 0 : i32
    return %c0_i32, %c0_i32_0 : i32, i32
  }
  func.func @transform_4(%arg0: i32) -> (i32, i32) {
    %c0_i32 = arith.constant 0 : i32
    %c0_i32_0 = arith.constant 0 : i32
    %c0_i32_1 = arith.constant 0 : i32
    return %c0_i32, %c0_i32_0 : i32, i32
  }
  func.func @transform_5(%arg0: i32) -> (i32, i32) {
    %c0_i32 = arith.constant 0 : i32
    %c0_i32_0 = arith.constant 0 : i32
    %c0_i32_1 = arith.constant 0 : i32
    return %c0_i32, %c0_i32_0 : i32, i32
  }
  func.func @transform_6(%arg0: i32) -> (i32, i32) {
    %c0_i32 = arith.constant 0 : i32
    %c0_i32_0 = arith.constant 0 : i32
    %c0_i32_1 = arith.constant 0 : i32
    return %c0_i32, %c0_i32_0 : i32, i32
  }
  func.func @transform_7(%arg0: i32) -> (i32, i32) {
    %c0_i32 = arith.constant 0 : i32
    %c0_i32_0 = arith.constant 0 : i32
    %c0_i32_1 = arith.constant 0 : i32
    return %c0_i32, %c0_i32_0 : i32, i32
  }
  func.func @transform_8(%arg0: i32) -> (i32, i32) {
    %c0_i32 = arith.constant 0 : i32
    %c0_i32_0 = arith.constant 0 : i32
    %c0_i32_1 = arith.constant 0 : i32
    return %c0_i32, %c0_i32_0 : i32, i32
  }
  func.func @transform_9(%arg0: i32) -> (i32, i32) {
    %c0_i32 = arith.constant 0 : i32
    %c0_i32_0 = arith.constant 0 : i32
    %c0_i32_1 = arith.constant 0 : i32
    return %c0_i32, %c0_i32_0 : i32, i32
  }
  func.func @transform_10(%arg0: i32) -> (i32, i32) {
    %c0_i32 = arith.constant 0 : i32
    %c0_i32_0 = arith.constant 0 : i32
    %c0_i32_1 = arith.constant 0 : i32
    return %c0_i32, %c0_i32_0 : i32, i32
  }
  func.func @transform_11(%arg0: i32) -> (i32, i32) {
    %c0_i32 = arith.constant 0 : i32
    %c0_i32_0 = arith.constant 0 : i32
    %c0_i32_1 = arith.constant 0 : i32
    return %c0_i32, %c0_i32_0 : i32, i32
  }
  func.func @transform_12(%arg0: i32) -> (i32, i32) {
    %c0_i32 = arith.constant 0 : i32
    %c0_i32_0 = arith.constant 0 : i32
    return %arg0, %c0_i32 : i32, i32
  }
}

module attributes {stable_mosaic.version = 11 : i64} {
  func.func @fourier_constraint_kernel(%arg0: i32, %arg1: memref<64x8xbf16, #tpu.memory_space<vmem>>, %arg2: memref<128x16xf32, #tpu.memory_space<vmem>>, %arg3: memref<16x8xbf16, #tpu.memory_space<vmem>>, %arg4: memref<8x16xbf16, #tpu.memory_space<vmem>>, %arg5: memref<32x16xbf16, #tpu.memory_space<vmem>>, %arg6: memref<16x9xbf16, #tpu.memory_space<vmem>>, %arg7: memref<16x9xbf16, #tpu.memory_space<vmem>>, %arg8: memref<32x16xbf16, #tpu.memory_space<vmem>>, %arg9: memref<32x16xbf16, #tpu.memory_space<vmem>>, %arg10: memref<9x16xbf16, #tpu.memory_space<vmem>>, %arg11: memref<9x16xbf16, #tpu.memory_space<vmem>>, %arg12: memref<16x9xf32, #tpu.memory_space<vmem>>, %arg13: memref<128x16xf32, #tpu.memory_space<vmem>>, %arg14: memref<64x16xbf16, #tpu.memory_space<vmem>>, %arg15: memref<256x16xbf16, #tpu.memory_space<vmem>>, %arg16: memref<256x9xf32, #tpu.memory_space<vmem>>, %arg17: memref<256x9xf32, #tpu.memory_space<vmem>>, %arg18: memref<128x9xbf16, #tpu.memory_space<vmem>>, %arg19: memref<128x9xbf16, #tpu.memory_space<vmem>>) attributes {dimension_semantics = [#tpu.dimension_semantics<parallel>], iteration_bounds = array<i64: 1>, scalar_prefetch = 0 : i64, scratch_operands = 6 : i64, tpu.core_type = #tpu.core_type<tc>, window_params = [{transform_indices = @transform_0, window_bounds = array<i64: 64, 8>}, {transform_indices = @transform_1, window_bounds = array<i64: 128, 16>}, {pipeline_mode = #tpu.pipeline_mode<synchronous>, transform_indices = @transform_2, window_bounds = array<i64: 16, 8>}, {pipeline_mode = #tpu.pipeline_mode<synchronous>, transform_indices = @transform_3, window_bounds = array<i64: 8, 16>}, {pipeline_mode = #tpu.pipeline_mode<synchronous>, transform_indices = @transform_4, window_bounds = array<i64: 32, 16>}, {pipeline_mode = #tpu.pipeline_mode<synchronous>, transform_indices = @transform_5, window_bounds = array<i64: 16, 9>}, {pipeline_mode = #tpu.pipeline_mode<synchronous>, transform_indices = @transform_6, window_bounds = array<i64: 16, 9>}, {pipeline_mode = #tpu.pipeline_mode<synchronous>, transform_indices = @transform_7, window_bounds = array<i64: 32, 16>}, {pipeline_mode = #tpu.pipeline_mode<synchronous>, transform_indices = @transform_8, window_bounds = array<i64: 32, 16>}, {pipeline_mode = #tpu.pipeline_mode<synchronous>, transform_indices = @transform_9, window_bounds = array<i64: 9, 16>}, {pipeline_mode = #tpu.pipeline_mode<synchronous>, transform_indices = @transform_10, window_bounds = array<i64: 9, 16>}, {pipeline_mode = #tpu.pipeline_mode<synchronous>, transform_indices = @transform_11, window_bounds = array<i64: 16, 9>}, {transform_indices = @transform_12, window_bounds = array<i64: 128, 16>}]} {
    %c0 = arith.constant 0 : index
    %c0_0 = arith.constant 0 : index
    %0 = vector.load %arg1[%c0, %c0_0] : memref<64x8xbf16, #tpu.memory_space<vmem>>, vector<64x8xbf16>
    %c0_1 = arith.constant 0 : index
    %c0_2 = arith.constant 0 : index
    %1 = vector.load %arg4[%c0_1, %c0_2] : memref<8x16xbf16, #tpu.memory_space<vmem>>, vector<8x16xbf16>
    %cst = arith.constant dense<0.000000e+00> : vector<64x16xf32>
    %2 = tpu.matmul %0, %1, %cst {dimension_numbers = #tpu.dot_dimension_numbers<[1], [0], [0], [1], [0, 0, 1, 1], [], []>} : vector<64x8xbf16>, vector<8x16xbf16>, vector<64x16xf32> -> vector<64x16xf32>
    %3 = arith.truncf %2 : vector<64x16xf32> to vector<64x16xbf16>
    %c0_3 = arith.constant 0 : index
    %c0_4 = arith.constant 0 : index
    %4 = vector.load %arg14[%c0_3, %c0_4] : memref<64x16xbf16, #tpu.memory_space<vmem>>, vector<64x16xbf16>
    tpu.vector_store %arg14[%c0_3, %c0_4], %3 {strides = array<i32>} : memref<64x16xbf16, #tpu.memory_space<vmem>>, vector<64x16xbf16>,
    %c0_5 = arith.constant 0 : index
    %c0_6 = arith.constant 0 : index
    %5 = vector.load %arg3[%c0_5, %c0_6] : memref<16x8xbf16, #tpu.memory_space<vmem>>, vector<16x8xbf16>
    %c0_7 = arith.constant 0 : index
    %c0_8 = arith.constant 0 : index
    %6 = vector.load %arg14[%c0_7, %c0_8] : memref<64x16xbf16, #tpu.memory_space<vmem>>, vector<8x16xbf16>
    %cst_9 = arith.constant dense<0.000000e+00> : vector<16x16xf32>
    %7 = tpu.matmul %5, %6, %cst_9 {dimension_numbers = #tpu.dot_dimension_numbers<[1], [0], [0], [1], [0, 0, 1, 1], [], []>} : vector<16x8xbf16>, vector<8x16xbf16>, vector<16x16xf32> -> vector<16x16xf32>
    %c0_10 = arith.constant 0 : index
    %c0_11 = arith.constant 0 : index
    %8 = vector.load %arg2[%c0_10, %c0_11] : memref<128x16xf32, #tpu.memory_space<vmem>>, vector<16x16xf32>
    %9 = arith.subf %7, %8 : vector<16x16xf32>
    %c0_12 = arith.constant 0 : index
    %c0_13 = arith.constant 0 : index
    %10 = vector.load %arg5[%c0_12, %c0_13] : memref<32x16xbf16, #tpu.memory_space<vmem>>, vector<32x16xbf16>
    %11 = arith.truncf %9 : vector<16x16xf32> to vector<16x16xbf16>
    %cst_14 = arith.constant dense<0.000000e+00> : vector<32x16xf32>
    %12 = tpu.matmul %10, %11, %cst_14 {dimension_numbers = #tpu.dot_dimension_numbers<[1], [0], [0], [1], [0, 0, 1, 1], [], []>} : vector<32x16xbf16>, vector<16x16xbf16>, vector<32x16xf32> -> vector<32x16xf32>
    %13 = arith.truncf %12 : vector<32x16xf32> to vector<32x16xbf16>
    %c0_15 = arith.constant 0 : index
    %c0_16 = arith.constant 0 : index
    %14 = vector.load %arg15[%c0_15, %c0_16] : memref<256x16xbf16, #tpu.memory_space<vmem>>, vector<32x16xbf16>
    tpu.vector_store %arg15[%c0_15, %c0_16], %13 {strides = array<i32>} : memref<256x16xbf16, #tpu.memory_space<vmem>>, vector<32x16xbf16>,
    %c0_17 = arith.constant 0 : index
    %c0_18 = arith.constant 0 : index
    %15 = vector.load %arg3[%c0_17, %c0_18] : memref<16x8xbf16, #tpu.memory_space<vmem>>, vector<16x8xbf16>
    %c8 = arith.constant 8 : index
    %c0_19 = arith.constant 0 : index
    %16 = vector.load %arg14[%c8, %c0_19] : memref<64x16xbf16, #tpu.memory_space<vmem>>, vector<8x16xbf16>
    %cst_20 = arith.constant dense<0.000000e+00> : vector<16x16xf32>
    %17 = tpu.matmul %15, %16, %cst_20 {dimension_numbers = #tpu.dot_dimension_numbers<[1], [0], [0], [1], [0, 0, 1, 1], [], []>} : vector<16x8xbf16>, vector<8x16xbf16>, vector<16x16xf32> -> vector<16x16xf32>
    %c16 = arith.constant 16 : index
    %c0_21 = arith.constant 0 : index
    %18 = vector.load %arg2[%c16, %c0_21] : memref<128x16xf32, #tpu.memory_space<vmem>>, vector<16x16xf32>
    %19 = arith.subf %17, %18 : vector<16x16xf32>
    %c0_22 = arith.constant 0 : index
    %c0_23 = arith.constant 0 : index
    %20 = vector.load %arg5[%c0_22, %c0_23] : memref<32x16xbf16, #tpu.memory_space<vmem>>, vector<32x16xbf16>
    %21 = arith.truncf %19 : vector<16x16xf32> to vector<16x16xbf16>
    %cst_24 = arith.constant dense<0.000000e+00> : vector<32x16xf32>
    %22 = tpu.matmul %20, %21, %cst_24 {dimension_numbers = #tpu.dot_dimension_numbers<[1], [0], [0], [1], [0, 0, 1, 1], [], []>} : vector<32x16xbf16>, vector<16x16xbf16>, vector<32x16xf32> -> vector<32x16xf32>
    %23 = arith.truncf %22 : vector<32x16xf32> to vector<32x16xbf16>
    %c32 = arith.constant 32 : index
    %c0_25 = arith.constant 0 : index
    %24 = vector.load %arg15[%c32, %c0_25] : memref<256x16xbf16, #tpu.memory_space<vmem>>, vector<32x16xbf16>
    tpu.vector_store %arg15[%c32, %c0_25], %23 {strides = array<i32>} : memref<256x16xbf16, #tpu.memory_space<vmem>>, vector<32x16xbf16>,
    %c0_26 = arith.constant 0 : index
    %c0_27 = arith.constant 0 : index
    %25 = vector.load %arg3[%c0_26, %c0_27] : memref<16x8xbf16, #tpu.memory_space<vmem>>, vector<16x8xbf16>
    %c16_28 = arith.constant 16 : index
    %c0_29 = arith.constant 0 : index
    %26 = vector.load %arg14[%c16_28, %c0_29] : memref<64x16xbf16, #tpu.memory_space<vmem>>, vector<8x16xbf16>
    %cst_30 = arith.constant dense<0.000000e+00> : vector<16x16xf32>
    %27 = tpu.matmul %25, %26, %cst_30 {dimension_numbers = #tpu.dot_dimension_numbers<[1], [0], [0], [1], [0, 0, 1, 1], [], []>} : vector<16x8xbf16>, vector<8x16xbf16>, vector<16x16xf32> -> vector<16x16xf32>
    %c32_31 = arith.constant 32 : index
    %c0_32 = arith.constant 0 : index
    %28 = vector.load %arg2[%c32_31, %c0_32] : memref<128x16xf32, #tpu.memory_space<vmem>>, vector<16x16xf32>
    %29 = arith.subf %27, %28 : vector<16x16xf32>
    %c0_33 = arith.constant 0 : index
    %c0_34 = arith.constant 0 : index
    %30 = vector.load %arg5[%c0_33, %c0_34] : memref<32x16xbf16, #tpu.memory_space<vmem>>, vector<32x16xbf16>
    %31 = arith.truncf %29 : vector<16x16xf32> to vector<16x16xbf16>
    %cst_35 = arith.constant dense<0.000000e+00> : vector<32x16xf32>
    %32 = tpu.matmul %30, %31, %cst_35 {dimension_numbers = #tpu.dot_dimension_numbers<[1], [0], [0], [1], [0, 0, 1, 1], [], []>} : vector<32x16xbf16>, vector<16x16xbf16>, vector<32x16xf32> -> vector<32x16xf32>
    %33 = arith.truncf %32 : vector<32x16xf32> to vector<32x16xbf16>
    %c64 = arith.constant 64 : index
    %c0_36 = arith.constant 0 : index
    %34 = vector.load %arg15[%c64, %c0_36] : memref<256x16xbf16, #tpu.memory_space<vmem>>, vector<32x16xbf16>
    tpu.vector_store %arg15[%c64, %c0_36], %33 {strides = array<i32>} : memref<256x16xbf16, #tpu.memory_space<vmem>>, vector<32x16xbf16>,
    %c0_37 = arith.constant 0 : index
    %c0_38 = arith.constant 0 : index
    %35 = vector.load %arg3[%c0_37, %c0_38] : memref<16x8xbf16, #tpu.memory_space<vmem>>, vector<16x8xbf16>
    %c24 = arith.constant 24 : index
    %c0_39 = arith.constant 0 : index
    %36 = vector.load %arg14[%c24, %c0_39] : memref<64x16xbf16, #tpu.memory_space<vmem>>, vector<8x16xbf16>
    %cst_40 = arith.constant dense<0.000000e+00> : vector<16x16xf32>
    %37 = tpu.matmul %35, %36, %cst_40 {dimension_numbers = #tpu.dot_dimension_numbers<[1], [0], [0], [1], [0, 0, 1, 1], [], []>} : vector<16x8xbf16>, vector<8x16xbf16>, vector<16x16xf32> -> vector<16x16xf32>
    %c48 = arith.constant 48 : index
    %c0_41 = arith.constant 0 : index
    %38 = vector.load %arg2[%c48, %c0_41] : memref<128x16xf32, #tpu.memory_space<vmem>>, vector<16x16xf32>
    %39 = arith.subf %37, %38 : vector<16x16xf32>
    %c0_42 = arith.constant 0 : index
    %c0_43 = arith.constant 0 : index
    %40 = vector.load %arg5[%c0_42, %c0_43] : memref<32x16xbf16, #tpu.memory_space<vmem>>, vector<32x16xbf16>
    %41 = arith.truncf %39 : vector<16x16xf32> to vector<16x16xbf16>
    %cst_44 = arith.constant dense<0.000000e+00> : vector<32x16xf32>
    %42 = tpu.matmul %40, %41, %cst_44 {dimension_numbers = #tpu.dot_dimension_numbers<[1], [0], [0], [1], [0, 0, 1, 1], [], []>} : vector<32x16xbf16>, vector<16x16xbf16>, vector<32x16xf32> -> vector<32x16xf32>
    %43 = arith.truncf %42 : vector<32x16xf32> to vector<32x16xbf16>
    %c96 = arith.constant 96 : index
    %c0_45 = arith.constant 0 : index
    %44 = vector.load %arg15[%c96, %c0_45] : memref<256x16xbf16, #tpu.memory_space<vmem>>, vector<32x16xbf16>
    tpu.vector_store %arg15[%c96, %c0_45], %43 {strides = array<i32>} : memref<256x16xbf16, #tpu.memory_space<vmem>>, vector<32x16xbf16>,
    %c0_46 = arith.constant 0 : index
    %c0_47 = arith.constant 0 : index
    %45 = vector.load %arg3[%c0_46, %c0_47] : memref<16x8xbf16, #tpu.memory_space<vmem>>, vector<16x8xbf16>
    %c32_48 = arith.constant 32 : index
    %c0_49 = arith.constant 0 : index
    %46 = vector.load %arg14[%c32_48, %c0_49] : memref<64x16xbf16, #tpu.memory_space<vmem>>, vector<8x16xbf16>
    %cst_50 = arith.constant dense<0.000000e+00> : vector<16x16xf32>
    %47 = tpu.matmul %45, %46, %cst_50 {dimension_numbers = #tpu.dot_dimension_numbers<[1], [0], [0], [1], [0, 0, 1, 1], [], []>} : vector<16x8xbf16>, vector<8x16xbf16>, vector<16x16xf32> -> vector<16x16xf32>
    %c64_51 = arith.constant 64 : index
    %c0_52 = arith.constant 0 : index
    %48 = vector.load %arg2[%c64_51, %c0_52] : memref<128x16xf32, #tpu.memory_space<vmem>>, vector<16x16xf32>
    %49 = arith.subf %47, %48 : vector<16x16xf32>
    %c0_53 = arith.constant 0 : index
    %c0_54 = arith.constant 0 : index
    %50 = vector.load %arg5[%c0_53, %c0_54] : memref<32x16xbf16, #tpu.memory_space<vmem>>, vector<32x16xbf16>
    %51 = arith.truncf %49 : vector<16x16xf32> to vector<16x16xbf16>
    %cst_55 = arith.constant dense<0.000000e+00> : vector<32x16xf32>
    %52 = tpu.matmul %50, %51, %cst_55 {dimension_numbers = #tpu.dot_dimension_numbers<[1], [0], [0], [1], [0, 0, 1, 1], [], []>} : vector<32x16xbf16>, vector<16x16xbf16>, vector<32x16xf32> -> vector<32x16xf32>
    %53 = arith.truncf %52 : vector<32x16xf32> to vector<32x16xbf16>
    %c128 = arith.constant 128 : index
    %c0_56 = arith.constant 0 : index
    %54 = vector.load %arg15[%c128, %c0_56] : memref<256x16xbf16, #tpu.memory_space<vmem>>, vector<32x16xbf16>
    tpu.vector_store %arg15[%c128, %c0_56], %53 {strides = array<i32>} : memref<256x16xbf16, #tpu.memory_space<vmem>>, vector<32x16xbf16>,
    %c0_57 = arith.constant 0 : index
    %c0_58 = arith.constant 0 : index
    %55 = vector.load %arg3[%c0_57, %c0_58] : memref<16x8xbf16, #tpu.memory_space<vmem>>, vector<16x8xbf16>
    %c40 = arith.constant 40 : index
    %c0_59 = arith.constant 0 : index
    %56 = vector.load %arg14[%c40, %c0_59] : memref<64x16xbf16, #tpu.memory_space<vmem>>, vector<8x16xbf16>
    %cst_60 = arith.constant dense<0.000000e+00> : vector<16x16xf32>
    %57 = tpu.matmul %55, %56, %cst_60 {dimension_numbers = #tpu.dot_dimension_numbers<[1], [0], [0], [1], [0, 0, 1, 1], [], []>} : vector<16x8xbf16>, vector<8x16xbf16>, vector<16x16xf32> -> vector<16x16xf32>
    %c80 = arith.constant 80 : index
    %c0_61 = arith.constant 0 : index
    %58 = vector.load %arg2[%c80, %c0_61] : memref<128x16xf32, #tpu.memory_space<vmem>>, vector<16x16xf32>
    %59 = arith.subf %57, %58 : vector<16x16xf32>
    %c0_62 = arith.constant 0 : index
    %c0_63 = arith.constant 0 : index
    %60 = vector.load %arg5[%c0_62, %c0_63] : memref<32x16xbf16, #tpu.memory_space<vmem>>, vector<32x16xbf16>
    %61 = arith.truncf %59 : vector<16x16xf32> to vector<16x16xbf16>
    %cst_64 = arith.constant dense<0.000000e+00> : vector<32x16xf32>
    %62 = tpu.matmul %60, %61, %cst_64 {dimension_numbers = #tpu.dot_dimension_numbers<[1], [0], [0], [1], [0, 0, 1, 1], [], []>} : vector<32x16xbf16>, vector<16x16xbf16>, vector<32x16xf32> -> vector<32x16xf32>
    %63 = arith.truncf %62 : vector<32x16xf32> to vector<32x16xbf16>
    %c160 = arith.constant 160 : index
    %c0_65 = arith.constant 0 : index
    %64 = vector.load %arg15[%c160, %c0_65] : memref<256x16xbf16, #tpu.memory_space<vmem>>, vector<32x16xbf16>
    tpu.vector_store %arg15[%c160, %c0_65], %63 {strides = array<i32>} : memref<256x16xbf16, #tpu.memory_space<vmem>>, vector<32x16xbf16>,
    %c0_66 = arith.constant 0 : index
    %c0_67 = arith.constant 0 : index
    %65 = vector.load %arg3[%c0_66, %c0_67] : memref<16x8xbf16, #tpu.memory_space<vmem>>, vector<16x8xbf16>
    %c48_68 = arith.constant 48 : index
    %c0_69 = arith.constant 0 : index
    %66 = vector.load %arg14[%c48_68, %c0_69] : memref<64x16xbf16, #tpu.memory_space<vmem>>, vector<8x16xbf16>
    %cst_70 = arith.constant dense<0.000000e+00> : vector<16x16xf32>
    %67 = tpu.matmul %65, %66, %cst_70 {dimension_numbers = #tpu.dot_dimension_numbers<[1], [0], [0], [1], [0, 0, 1, 1], [], []>} : vector<16x8xbf16>, vector<8x16xbf16>, vector<16x16xf32> -> vector<16x16xf32>
    %c96_71 = arith.constant 96 : index
    %c0_72 = arith.constant 0 : index
    %68 = vector.load %arg2[%c96_71, %c0_72] : memref<128x16xf32, #tpu.memory_space<vmem>>, vector<16x16xf32>
    %69 = arith.subf %67, %68 : vector<16x16xf32>
    %c0_73 = arith.constant 0 : index
    %c0_74 = arith.constant 0 : index
    %70 = vector.load %arg5[%c0_73, %c0_74] : memref<32x16xbf16, #tpu.memory_space<vmem>>, vector<32x16xbf16>
    %71 = arith.truncf %69 : vector<16x16xf32> to vector<16x16xbf16>
    %cst_75 = arith.constant dense<0.000000e+00> : vector<32x16xf32>
    %72 = tpu.matmul %70, %71, %cst_75 {dimension_numbers = #tpu.dot_dimension_numbers<[1], [0], [0], [1], [0, 0, 1, 1], [], []>} : vector<32x16xbf16>, vector<16x16xbf16>, vector<32x16xf32> -> vector<32x16xf32>
    %73 = arith.truncf %72 : vector<32x16xf32> to vector<32x16xbf16>
    %c192 = arith.constant 192 : index
    %c0_76 = arith.constant 0 : index
    %74 = vector.load %arg15[%c192, %c0_76] : memref<256x16xbf16, #tpu.memory_space<vmem>>, vector<32x16xbf16>
    tpu.vector_store %arg15[%c192, %c0_76], %73 {strides = array<i32>} : memref<256x16xbf16, #tpu.memory_space<vmem>>, vector<32x16xbf16>,
    %c0_77 = arith.constant 0 : index
    %c0_78 = arith.constant 0 : index
    %75 = vector.load %arg3[%c0_77, %c0_78] : memref<16x8xbf16, #tpu.memory_space<vmem>>, vector<16x8xbf16>
    %c56 = arith.constant 56 : index
    %c0_79 = arith.constant 0 : index
    %76 = vector.load %arg14[%c56, %c0_79] : memref<64x16xbf16, #tpu.memory_space<vmem>>, vector<8x16xbf16>
    %cst_80 = arith.constant dense<0.000000e+00> : vector<16x16xf32>
    %77 = tpu.matmul %75, %76, %cst_80 {dimension_numbers = #tpu.dot_dimension_numbers<[1], [0], [0], [1], [0, 0, 1, 1], [], []>} : vector<16x8xbf16>, vector<8x16xbf16>, vector<16x16xf32> -> vector<16x16xf32>
    %c112 = arith.constant 112 : index
    %c0_81 = arith.constant 0 : index
    %78 = vector.load %arg2[%c112, %c0_81] : memref<128x16xf32, #tpu.memory_space<vmem>>, vector<16x16xf32>
    %79 = arith.subf %77, %78 : vector<16x16xf32>
    %c0_82 = arith.constant 0 : index
    %c0_83 = arith.constant 0 : index
    %80 = vector.load %arg5[%c0_82, %c0_83] : memref<32x16xbf16, #tpu.memory_space<vmem>>, vector<32x16xbf16>
    %81 = arith.truncf %79 : vector<16x16xf32> to vector<16x16xbf16>
    %cst_84 = arith.constant dense<0.000000e+00> : vector<32x16xf32>
    %82 = tpu.matmul %80, %81, %cst_84 {dimension_numbers = #tpu.dot_dimension_numbers<[1], [0], [0], [1], [0, 0, 1, 1], [], []>} : vector<32x16xbf16>, vector<16x16xbf16>, vector<32x16xf32> -> vector<32x16xf32>
    %83 = arith.truncf %82 : vector<32x16xf32> to vector<32x16xbf16>
    %c224 = arith.constant 224 : index
    %c0_85 = arith.constant 0 : index
    %84 = vector.load %arg15[%c224, %c0_85] : memref<256x16xbf16, #tpu.memory_space<vmem>>, vector<32x16xbf16>
    tpu.vector_store %arg15[%c224, %c0_85], %83 {strides = array<i32>} : memref<256x16xbf16, #tpu.memory_space<vmem>>, vector<32x16xbf16>,
    %c0_86 = arith.constant 0 : index
    %c0_87 = arith.constant 0 : index
    %85 = vector.load %arg15[%c0_86, %c0_87] : memref<256x16xbf16, #tpu.memory_space<vmem>>, vector<256x16xbf16>
    %c0_88 = arith.constant 0 : index
    %c0_89 = arith.constant 0 : index
    %86 = vector.load %arg6[%c0_88, %c0_89] : memref<16x9xbf16, #tpu.memory_space<vmem>>, vector<16x9xbf16>
    %cst_90 = arith.constant dense<0.000000e+00> : vector<256x9xf32>
    %87 = tpu.matmul %85, %86, %cst_90 {dimension_numbers = #tpu.dot_dimension_numbers<[1], [0], [0], [1], [0, 0, 1, 1], [], []>} : vector<256x16xbf16>, vector<16x9xbf16>, vector<256x9xf32> -> vector<256x9xf32>
    %c0_91 = arith.constant 0 : index
    %c0_92 = arith.constant 0 : index
    %88 = vector.load %arg16[%c0_91, %c0_92] : memref<256x9xf32, #tpu.memory_space<vmem>>, vector<256x9xf32>
    tpu.vector_store %arg16[%c0_91, %c0_92], %87 {strides = array<i32>} : memref<256x9xf32, #tpu.memory_space<vmem>>, vector<256x9xf32>,
    %c0_93 = arith.constant 0 : index
    %c0_94 = arith.constant 0 : index
    %89 = vector.load %arg15[%c0_93, %c0_94] : memref<256x16xbf16, #tpu.memory_space<vmem>>, vector<256x16xbf16>
    %c0_95 = arith.constant 0 : index
    %c0_96 = arith.constant 0 : index
    %90 = vector.load %arg7[%c0_95, %c0_96] : memref<16x9xbf16, #tpu.memory_space<vmem>>, vector<16x9xbf16>
    %cst_97 = arith.constant dense<0.000000e+00> : vector<256x9xf32>
    %91 = tpu.matmul %89, %90, %cst_97 {dimension_numbers = #tpu.dot_dimension_numbers<[1], [0], [0], [1], [0, 0, 1, 1], [], []>} : vector<256x16xbf16>, vector<16x9xbf16>, vector<256x9xf32> -> vector<256x9xf32>
    %c0_98 = arith.constant 0 : index
    %c0_99 = arith.constant 0 : index
    %92 = vector.load %arg17[%c0_98, %c0_99] : memref<256x9xf32, #tpu.memory_space<vmem>>, vector<256x9xf32>
    tpu.vector_store %arg17[%c0_98, %c0_99], %91 {strides = array<i32>} : memref<256x9xf32, #tpu.memory_space<vmem>>, vector<256x9xf32>,
    %c0_100 = arith.constant 0 : index
    %c0_101 = arith.constant 0 : index
    %93 = vector.load %arg12[%c0_100, %c0_101] : memref<16x9xf32, #tpu.memory_space<vmem>>, vector<16x9xf32>
    %c0_102 = arith.constant 0 : index
    %c0_103 = arith.constant 0 : index
    %94 = vector.load %arg16[%c0_102, %c0_103] : memref<256x9xf32, #tpu.memory_space<vmem>>, vector<16x9xf32>
    %c16_104 = arith.constant 16 : index
    %c0_105 = arith.constant 0 : index
    %95 = vector.load %arg17[%c16_104, %c0_105] : memref<256x9xf32, #tpu.memory_space<vmem>>, vector<16x9xf32>
    %96 = arith.subf %94, %95 : vector<16x9xf32>
    %97 = arith.mulf %96, %93 : vector<16x9xf32>
    %c0_106 = arith.constant 0 : index
    %c0_107 = arith.constant 0 : index
    %98 = vector.load %arg17[%c0_106, %c0_107] : memref<256x9xf32, #tpu.memory_space<vmem>>, vector<16x9xf32>
    %c16_108 = arith.constant 16 : index
    %c0_109 = arith.constant 0 : index
    %99 = vector.load %arg16[%c16_108, %c0_109] : memref<256x9xf32, #tpu.memory_space<vmem>>, vector<16x9xf32>
    %100 = arith.addf %98, %99 : vector<16x9xf32>
    %101 = arith.mulf %100, %93 : vector<16x9xf32>
    %c0_110 = arith.constant 0 : index
    %c0_111 = arith.constant 0 : index
    %102 = vector.load %arg8[%c0_110, %c0_111] : memref<32x16xbf16, #tpu.memory_space<vmem>>, vector<32x16xbf16>
    %103 = arith.truncf %97 : vector<16x9xf32> to vector<16x9xbf16>
    %cst_112 = arith.constant dense<0.000000e+00> : vector<32x9xf32>
    %104 = tpu.matmul %102, %103, %cst_112 {dimension_numbers = #tpu.dot_dimension_numbers<[1], [0], [0], [1], [0, 0, 1, 1], [], []>} : vector<32x16xbf16>, vector<16x9xbf16>, vector<32x9xf32> -> vector<32x9xf32>
    %c0_113 = arith.constant 0 : index
    %c0_114 = arith.constant 0 : index
    %105 = vector.load %arg9[%c0_113, %c0_114] : memref<32x16xbf16, #tpu.memory_space<vmem>>, vector<32x16xbf16>
    %106 = arith.truncf %101 : vector<16x9xf32> to vector<16x9xbf16>
    %cst_115 = arith.constant dense<0.000000e+00> : vector<32x9xf32>
    %107 = tpu.matmul %105, %106, %cst_115 {dimension_numbers = #tpu.dot_dimension_numbers<[1], [0], [0], [1], [0, 0, 1, 1], [], []>} : vector<32x16xbf16>, vector<16x9xbf16>, vector<32x9xf32> -> vector<32x9xf32>
    %108 = arith.addf %104, %107 : vector<32x9xf32>
    %109 = vector.extract_strided_slice %108 {offsets = [0, 0], sizes = [16, 9], strides = [1, 1]} : vector<32x9xf32> to vector<16x9xf32>
    %110 = arith.truncf %109 : vector<16x9xf32> to vector<16x9xbf16>
    %c0_116 = arith.constant 0 : index
    %c0_117 = arith.constant 0 : index
    %111 = vector.load %arg18[%c0_116, %c0_117] : memref<128x9xbf16, #tpu.memory_space<vmem>>, vector<16x9xbf16>
    tpu.vector_store %arg18[%c0_116, %c0_117], %110 {strides = array<i32>} : memref<128x9xbf16, #tpu.memory_space<vmem>>, vector<16x9xbf16>,
    %112 = vector.extract_strided_slice %108 {offsets = [16, 0], sizes = [16, 9], strides = [1, 1]} : vector<32x9xf32> to vector<16x9xf32>
    %113 = arith.truncf %112 : vector<16x9xf32> to vector<16x9xbf16>
    %c0_118 = arith.constant 0 : index
    %c0_119 = arith.constant 0 : index
    %114 = vector.load %arg19[%c0_118, %c0_119] : memref<128x9xbf16, #tpu.memory_space<vmem>>, vector<16x9xbf16>
    tpu.vector_store %arg19[%c0_118, %c0_119], %113 {strides = array<i32>} : memref<128x9xbf16, #tpu.memory_space<vmem>>, vector<16x9xbf16>,
    %c0_120 = arith.constant 0 : index
    %c0_121 = arith.constant 0 : index
    %115 = vector.load %arg12[%c0_120, %c0_121] : memref<16x9xf32, #tpu.memory_space<vmem>>, vector<16x9xf32>
    %c32_122 = arith.constant 32 : index
    %c0_123 = arith.constant 0 : index
    %116 = vector.load %arg16[%c32_122, %c0_123] : memref<256x9xf32, #tpu.memory_space<vmem>>, vector<16x9xf32>
    %c48_124 = arith.constant 48 : index
    %c0_125 = arith.constant 0 : index
    %117 = vector.load %arg17[%c48_124, %c0_125] : memref<256x9xf32, #tpu.memory_space<vmem>>, vector<16x9xf32>
    %118 = arith.subf %116, %117 : vector<16x9xf32>
    %119 = arith.mulf %118, %115 : vector<16x9xf32>
    %c32_126 = arith.constant 32 : index
    %c0_127 = arith.constant 0 : index
    %120 = vector.load %arg17[%c32_126, %c0_127] : memref<256x9xf32, #tpu.memory_space<vmem>>, vector<16x9xf32>
    %c48_128 = arith.constant 48 : index
    %c0_129 = arith.constant 0 : index
    %121 = vector.load %arg16[%c48_128, %c0_129] : memref<256x9xf32, #tpu.memory_space<vmem>>, vector<16x9xf32>
    %122 = arith.addf %120, %121 : vector<16x9xf32>
    %123 = arith.mulf %122, %115 : vector<16x9xf32>
    %c0_130 = arith.constant 0 : index
    %c0_131 = arith.constant 0 : index
    %124 = vector.load %arg8[%c0_130, %c0_131] : memref<32x16xbf16, #tpu.memory_space<vmem>>, vector<32x16xbf16>
    %125 = arith.truncf %119 : vector<16x9xf32> to vector<16x9xbf16>
    %cst_132 = arith.constant dense<0.000000e+00> : vector<32x9xf32>
    %126 = tpu.matmul %124, %125, %cst_132 {dimension_numbers = #tpu.dot_dimension_numbers<[1], [0], [0], [1], [0, 0, 1, 1], [], []>} : vector<32x16xbf16>, vector<16x9xbf16>, vector<32x9xf32> -> vector<32x9xf32>
    %c0_133 = arith.constant 0 : index
    %c0_134 = arith.constant 0 : index
    %127 = vector.load %arg9[%c0_133, %c0_134] : memref<32x16xbf16, #tpu.memory_space<vmem>>, vector<32x16xbf16>
    %128 = arith.truncf %123 : vector<16x9xf32> to vector<16x9xbf16>
    %cst_135 = arith.constant dense<0.000000e+00> : vector<32x9xf32>
    %129 = tpu.matmul %127, %128, %cst_135 {dimension_numbers = #tpu.dot_dimension_numbers<[1], [0], [0], [1], [0, 0, 1, 1], [], []>} : vector<32x16xbf16>, vector<16x9xbf16>, vector<32x9xf32> -> vector<32x9xf32>
    %130 = arith.addf %126, %129 : vector<32x9xf32>
    %131 = vector.extract_strided_slice %130 {offsets = [0, 0], sizes = [16, 9], strides = [1, 1]} : vector<32x9xf32> to vector<16x9xf32>
    %132 = arith.truncf %131 : vector<16x9xf32> to vector<16x9xbf16>
    %c16_136 = arith.constant 16 : index
    %c0_137 = arith.constant 0 : index
    %133 = vector.load %arg18[%c16_136, %c0_137] : memref<128x9xbf16, #tpu.memory_space<vmem>>, vector<16x9xbf16>
    tpu.vector_store %arg18[%c16_136, %c0_137], %132 {strides = array<i32>} : memref<128x9xbf16, #tpu.memory_space<vmem>>, vector<16x9xbf16>,
    %134 = vector.extract_strided_slice %130 {offsets = [16, 0], sizes = [16, 9], strides = [1, 1]} : vector<32x9xf32> to vector<16x9xf32>
    %135 = arith.truncf %134 : vector<16x9xf32> to vector<16x9xbf16>
    %c16_138 = arith.constant 16 : index
    %c0_139 = arith.constant 0 : index
    %136 = vector.load %arg19[%c16_138, %c0_139] : memref<128x9xbf16, #tpu.memory_space<vmem>>, vector<16x9xbf16>
    tpu.vector_store %arg19[%c16_138, %c0_139], %135 {strides = array<i32>} : memref<128x9xbf16, #tpu.memory_space<vmem>>, vector<16x9xbf16>,
    %c0_140 = arith.constant 0 : index
    %c0_141 = arith.constant 0 : index
    %137 = vector.load %arg12[%c0_140, %c0_141] : memref<16x9xf32, #tpu.memory_space<vmem>>, vector<16x9xf32>
    %c64_142 = arith.constant 64 : index
    %c0_143 = arith.constant 0 : index
    %138 = vector.load %arg16[%c64_142, %c0_143] : memref<256x9xf32, #tpu.memory_space<vmem>>, vector<16x9xf32>
    %c80_144 = arith.constant 80 : index
    %c0_145 = arith.constant 0 : index
    %139 = vector.load %arg17[%c80_144, %c0_145] : memref<256x9xf32, #tpu.memory_space<vmem>>, vector<16x9xf32>
    %140 = arith.subf %138, %139 : vector<16x9xf32>
    %141 = arith.mulf %140, %137 : vector<16x9xf32>
    %c64_146 = arith.constant 64 : index
    %c0_147 = arith.constant 0 : index
    %142 = vector.load %arg17[%c64_146, %c0_147] : memref<256x9xf32, #tpu.memory_space<vmem>>, vector<16x9xf32>
    %c80_148 = arith.constant 80 : index
    %c0_149 = arith.constant 0 : index
    %143 = vector.load %arg16[%c80_148, %c0_149] : memref<256x9xf32, #tpu.memory_space<vmem>>, vector<16x9xf32>
    %144 = arith.addf %142, %143 : vector<16x9xf32>
    %145 = arith.mulf %144, %137 : vector<16x9xf32>
    %c0_150 = arith.constant 0 : index
    %c0_151 = arith.constant 0 : index
    %146 = vector.load %arg8[%c0_150, %c0_151] : memref<32x16xbf16, #tpu.memory_space<vmem>>, vector<32x16xbf16>
    %147 = arith.truncf %141 : vector<16x9xf32> to vector<16x9xbf16>
    %cst_152 = arith.constant dense<0.000000e+00> : vector<32x9xf32>
    %148 = tpu.matmul %146, %147, %cst_152 {dimension_numbers = #tpu.dot_dimension_numbers<[1], [0], [0], [1], [0, 0, 1, 1], [], []>} : vector<32x16xbf16>, vector<16x9xbf16>, vector<32x9xf32> -> vector<32x9xf32>
    %c0_153 = arith.constant 0 : index
    %c0_154 = arith.constant 0 : index
    %149 = vector.load %arg9[%c0_153, %c0_154] : memref<32x16xbf16, #tpu.memory_space<vmem>>, vector<32x16xbf16>
    %150 = arith.truncf %145 : vector<16x9xf32> to vector<16x9xbf16>
    %cst_155 = arith.constant dense<0.000000e+00> : vector<32x9xf32>
    %151 = tpu.matmul %149, %150, %cst_155 {dimension_numbers = #tpu.dot_dimension_numbers<[1], [0], [0], [1], [0, 0, 1, 1], [], []>} : vector<32x16xbf16>, vector<16x9xbf16>, vector<32x9xf32> -> vector<32x9xf32>
    %152 = arith.addf %148, %151 : vector<32x9xf32>
    %153 = vector.extract_strided_slice %152 {offsets = [0, 0], sizes = [16, 9], strides = [1, 1]} : vector<32x9xf32> to vector<16x9xf32>
    %154 = arith.truncf %153 : vector<16x9xf32> to vector<16x9xbf16>
    %c32_156 = arith.constant 32 : index
    %c0_157 = arith.constant 0 : index
    %155 = vector.load %arg18[%c32_156, %c0_157] : memref<128x9xbf16, #tpu.memory_space<vmem>>, vector<16x9xbf16>
    tpu.vector_store %arg18[%c32_156, %c0_157], %154 {strides = array<i32>} : memref<128x9xbf16, #tpu.memory_space<vmem>>, vector<16x9xbf16>,
    %156 = vector.extract_strided_slice %152 {offsets = [16, 0], sizes = [16, 9], strides = [1, 1]} : vector<32x9xf32> to vector<16x9xf32>
    %157 = arith.truncf %156 : vector<16x9xf32> to vector<16x9xbf16>
    %c32_158 = arith.constant 32 : index
    %c0_159 = arith.constant 0 : index
    %158 = vector.load %arg19[%c32_158, %c0_159] : memref<128x9xbf16, #tpu.memory_space<vmem>>, vector<16x9xbf16>
    tpu.vector_store %arg19[%c32_158, %c0_159], %157 {strides = array<i32>} : memref<128x9xbf16, #tpu.memory_space<vmem>>, vector<16x9xbf16>,
    %c0_160 = arith.constant 0 : index
    %c0_161 = arith.constant 0 : index
    %159 = vector.load %arg12[%c0_160, %c0_161] : memref<16x9xf32, #tpu.memory_space<vmem>>, vector<16x9xf32>
    %c96_162 = arith.constant 96 : index
    %c0_163 = arith.constant 0 : index
    %160 = vector.load %arg16[%c96_162, %c0_163] : memref<256x9xf32, #tpu.memory_space<vmem>>, vector<16x9xf32>
    %c112_164 = arith.constant 112 : index
    %c0_165 = arith.constant 0 : index
    %161 = vector.load %arg17[%c112_164, %c0_165] : memref<256x9xf32, #tpu.memory_space<vmem>>, vector<16x9xf32>
    %162 = arith.subf %160, %161 : vector<16x9xf32>
    %163 = arith.mulf %162, %159 : vector<16x9xf32>
    %c96_166 = arith.constant 96 : index
    %c0_167 = arith.constant 0 : index
    %164 = vector.load %arg17[%c96_166, %c0_167] : memref<256x9xf32, #tpu.memory_space<vmem>>, vector<16x9xf32>
    %c112_168 = arith.constant 112 : index
    %c0_169 = arith.constant 0 : index
    %165 = vector.load %arg16[%c112_168, %c0_169] : memref<256x9xf32, #tpu.memory_space<vmem>>, vector<16x9xf32>
    %166 = arith.addf %164, %165 : vector<16x9xf32>
    %167 = arith.mulf %166, %159 : vector<16x9xf32>
    %c0_170 = arith.constant 0 : index
    %c0_171 = arith.constant 0 : index
    %168 = vector.load %arg8[%c0_170, %c0_171] : memref<32x16xbf16, #tpu.memory_space<vmem>>, vector<32x16xbf16>
    %169 = arith.truncf %163 : vector<16x9xf32> to vector<16x9xbf16>
    %cst_172 = arith.constant dense<0.000000e+00> : vector<32x9xf32>
    %170 = tpu.matmul %168, %169, %cst_172 {dimension_numbers = #tpu.dot_dimension_numbers<[1], [0], [0], [1], [0, 0, 1, 1], [], []>} : vector<32x16xbf16>, vector<16x9xbf16>, vector<32x9xf32> -> vector<32x9xf32>
    %c0_173 = arith.constant 0 : index
    %c0_174 = arith.constant 0 : index
    %171 = vector.load %arg9[%c0_173, %c0_174] : memref<32x16xbf16, #tpu.memory_space<vmem>>, vector<32x16xbf16>
    %172 = arith.truncf %167 : vector<16x9xf32> to vector<16x9xbf16>
    %cst_175 = arith.constant dense<0.000000e+00> : vector<32x9xf32>
    %173 = tpu.matmul %171, %172, %cst_175 {dimension_numbers = #tpu.dot_dimension_numbers<[1], [0], [0], [1], [0, 0, 1, 1], [], []>} : vector<32x16xbf16>, vector<16x9xbf16>, vector<32x9xf32> -> vector<32x9xf32>
    %174 = arith.addf %170, %173 : vector<32x9xf32>
    %175 = vector.extract_strided_slice %174 {offsets = [0, 0], sizes = [16, 9], strides = [1, 1]} : vector<32x9xf32> to vector<16x9xf32>
    %176 = arith.truncf %175 : vector<16x9xf32> to vector<16x9xbf16>
    %c48_176 = arith.constant 48 : index
    %c0_177 = arith.constant 0 : index
    %177 = vector.load %arg18[%c48_176, %c0_177] : memref<128x9xbf16, #tpu.memory_space<vmem>>, vector<16x9xbf16>
    tpu.vector_store %arg18[%c48_176, %c0_177], %176 {strides = array<i32>} : memref<128x9xbf16, #tpu.memory_space<vmem>>, vector<16x9xbf16>,
    %178 = vector.extract_strided_slice %174 {offsets = [16, 0], sizes = [16, 9], strides = [1, 1]} : vector<32x9xf32> to vector<16x9xf32>
    %179 = arith.truncf %178 : vector<16x9xf32> to vector<16x9xbf16>
    %c48_178 = arith.constant 48 : index
    %c0_179 = arith.constant 0 : index
    %180 = vector.load %arg19[%c48_178, %c0_179] : memref<128x9xbf16, #tpu.memory_space<vmem>>, vector<16x9xbf16>
    tpu.vector_store %arg19[%c48_178, %c0_179], %179 {strides = array<i32>} : memref<128x9xbf16, #tpu.memory_space<vmem>>, vector<16x9xbf16>,
    %c0_180 = arith.constant 0 : index
    %c0_181 = arith.constant 0 : index
    %181 = vector.load %arg12[%c0_180, %c0_181] : memref<16x9xf32, #tpu.memory_space<vmem>>, vector<16x9xf32>
    %c128_182 = arith.constant 128 : index
    %c0_183 = arith.constant 0 : index
    %182 = vector.load %arg16[%c128_182, %c0_183] : memref<256x9xf32, #tpu.memory_space<vmem>>, vector<16x9xf32>
    %c144 = arith.constant 144 : index
    %c0_184 = arith.constant 0 : index
    %183 = vector.load %arg17[%c144, %c0_184] : memref<256x9xf32, #tpu.memory_space<vmem>>, vector<16x9xf32>
    %184 = arith.subf %182, %183 : vector<16x9xf32>
    %185 = arith.mulf %184, %181 : vector<16x9xf32>
    %c128_185 = arith.constant 128 : index
    %c0_186 = arith.constant 0 : index
    %186 = vector.load %arg17[%c128_185, %c0_186] : memref<256x9xf32, #tpu.memory_space<vmem>>, vector<16x9xf32>
    %c144_187 = arith.constant 144 : index
    %c0_188 = arith.constant 0 : index
    %187 = vector.load %arg16[%c144_187, %c0_188] : memref<256x9xf32, #tpu.memory_space<vmem>>, vector<16x9xf32>
    %188 = arith.addf %186, %187 : vector<16x9xf32>
    %189 = arith.mulf %188, %181 : vector<16x9xf32>
    %c0_189 = arith.constant 0 : index
    %c0_190 = arith.constant 0 : index
    %190 = vector.load %arg8[%c0_189, %c0_190] : memref<32x16xbf16, #tpu.memory_space<vmem>>, vector<32x16xbf16>
    %191 = arith.truncf %185 : vector<16x9xf32> to vector<16x9xbf16>
    %cst_191 = arith.constant dense<0.000000e+00> : vector<32x9xf32>
    %192 = tpu.matmul %190, %191, %cst_191 {dimension_numbers = #tpu.dot_dimension_numbers<[1], [0], [0], [1], [0, 0, 1, 1], [], []>} : vector<32x16xbf16>, vector<16x9xbf16>, vector<32x9xf32> -> vector<32x9xf32>
    %c0_192 = arith.constant 0 : index
    %c0_193 = arith.constant 0 : index
    %193 = vector.load %arg9[%c0_192, %c0_193] : memref<32x16xbf16, #tpu.memory_space<vmem>>, vector<32x16xbf16>
    %194 = arith.truncf %189 : vector<16x9xf32> to vector<16x9xbf16>
    %cst_194 = arith.constant dense<0.000000e+00> : vector<32x9xf32>
    %195 = tpu.matmul %193, %194, %cst_194 {dimension_numbers = #tpu.dot_dimension_numbers<[1], [0], [0], [1], [0, 0, 1, 1], [], []>} : vector<32x16xbf16>, vector<16x9xbf16>, vector<32x9xf32> -> vector<32x9xf32>
    %196 = arith.addf %192, %195 : vector<32x9xf32>
    %197 = vector.extract_strided_slice %196 {offsets = [0, 0], sizes = [16, 9], strides = [1, 1]} : vector<32x9xf32> to vector<16x9xf32>
    %198 = arith.truncf %197 : vector<16x9xf32> to vector<16x9xbf16>
    %c64_195 = arith.constant 64 : index
    %c0_196 = arith.constant 0 : index
    %199 = vector.load %arg18[%c64_195, %c0_196] : memref<128x9xbf16, #tpu.memory_space<vmem>>, vector<16x9xbf16>
    tpu.vector_store %arg18[%c64_195, %c0_196], %198 {strides = array<i32>} : memref<128x9xbf16, #tpu.memory_space<vmem>>, vector<16x9xbf16>,
    %200 = vector.extract_strided_slice %196 {offsets = [16, 0], sizes = [16, 9], strides = [1, 1]} : vector<32x9xf32> to vector<16x9xf32>
    %201 = arith.truncf %200 : vector<16x9xf32> to vector<16x9xbf16>
    %c64_197 = arith.constant 64 : index
    %c0_198 = arith.constant 0 : index
    %202 = vector.load %arg19[%c64_197, %c0_198] : memref<128x9xbf16, #tpu.memory_space<vmem>>, vector<16x9xbf16>
    tpu.vector_store %arg19[%c64_197, %c0_198], %201 {strides = array<i32>} : memref<128x9xbf16, #tpu.memory_space<vmem>>, vector<16x9xbf16>,
    %c0_199 = arith.constant 0 : index
    %c0_200 = arith.constant 0 : index
    %203 = vector.load %arg12[%c0_199, %c0_200] : memref<16x9xf32, #tpu.memory_space<vmem>>, vector<16x9xf32>
    %c160_201 = arith.constant 160 : index
    %c0_202 = arith.constant 0 : index
    %204 = vector.load %arg16[%c160_201, %c0_202] : memref<256x9xf32, #tpu.memory_space<vmem>>, vector<16x9xf32>
    %c176 = arith.constant 176 : index
    %c0_203 = arith.constant 0 : index
    %205 = vector.load %arg17[%c176, %c0_203] : memref<256x9xf32, #tpu.memory_space<vmem>>, vector<16x9xf32>
    %206 = arith.subf %204, %205 : vector<16x9xf32>
    %207 = arith.mulf %206, %203 : vector<16x9xf32>
    %c160_204 = arith.constant 160 : index
    %c0_205 = arith.constant 0 : index
    %208 = vector.load %arg17[%c160_204, %c0_205] : memref<256x9xf32, #tpu.memory_space<vmem>>, vector<16x9xf32>
    %c176_206 = arith.constant 176 : index
    %c0_207 = arith.constant 0 : index
    %209 = vector.load %arg16[%c176_206, %c0_207] : memref<256x9xf32, #tpu.memory_space<vmem>>, vector<16x9xf32>
    %210 = arith.addf %208, %209 : vector<16x9xf32>
    %211 = arith.mulf %210, %203 : vector<16x9xf32>
    %c0_208 = arith.constant 0 : index
    %c0_209 = arith.constant 0 : index
    %212 = vector.load %arg8[%c0_208, %c0_209] : memref<32x16xbf16, #tpu.memory_space<vmem>>, vector<32x16xbf16>
    %213 = arith.truncf %207 : vector<16x9xf32> to vector<16x9xbf16>
    %cst_210 = arith.constant dense<0.000000e+00> : vector<32x9xf32>
    %214 = tpu.matmul %212, %213, %cst_210 {dimension_numbers = #tpu.dot_dimension_numbers<[1], [0], [0], [1], [0, 0, 1, 1], [], []>} : vector<32x16xbf16>, vector<16x9xbf16>, vector<32x9xf32> -> vector<32x9xf32>
    %c0_211 = arith.constant 0 : index
    %c0_212 = arith.constant 0 : index
    %215 = vector.load %arg9[%c0_211, %c0_212] : memref<32x16xbf16, #tpu.memory_space<vmem>>, vector<32x16xbf16>
    %216 = arith.truncf %211 : vector<16x9xf32> to vector<16x9xbf16>
    %cst_213 = arith.constant dense<0.000000e+00> : vector<32x9xf32>
    %217 = tpu.matmul %215, %216, %cst_213 {dimension_numbers = #tpu.dot_dimension_numbers<[1], [0], [0], [1], [0, 0, 1, 1], [], []>} : vector<32x16xbf16>, vector<16x9xbf16>, vector<32x9xf32> -> vector<32x9xf32>
    %218 = arith.addf %214, %217 : vector<32x9xf32>
    %219 = vector.extract_strided_slice %218 {offsets = [0, 0], sizes = [16, 9], strides = [1, 1]} : vector<32x9xf32> to vector<16x9xf32>
    %220 = arith.truncf %219 : vector<16x9xf32> to vector<16x9xbf16>
    %c80_214 = arith.constant 80 : index
    %c0_215 = arith.constant 0 : index
    %221 = vector.load %arg18[%c80_214, %c0_215] : memref<128x9xbf16, #tpu.memory_space<vmem>>, vector<16x9xbf16>
    tpu.vector_store %arg18[%c80_214, %c0_215], %220 {strides = array<i32>} : memref<128x9xbf16, #tpu.memory_space<vmem>>, vector<16x9xbf16>,
    %222 = vector.extract_strided_slice %218 {offsets = [16, 0], sizes = [16, 9], strides = [1, 1]} : vector<32x9xf32> to vector<16x9xf32>
    %223 = arith.truncf %222 : vector<16x9xf32> to vector<16x9xbf16>
    %c80_216 = arith.constant 80 : index
    %c0_217 = arith.constant 0 : index
    %224 = vector.load %arg19[%c80_216, %c0_217] : memref<128x9xbf16, #tpu.memory_space<vmem>>, vector<16x9xbf16>
    tpu.vector_store %arg19[%c80_216, %c0_217], %223 {strides = array<i32>} : memref<128x9xbf16, #tpu.memory_space<vmem>>, vector<16x9xbf16>,
    %c0_218 = arith.constant 0 : index
    %c0_219 = arith.constant 0 : index
    %225 = vector.load %arg12[%c0_218, %c0_219] : memref<16x9xf32, #tpu.memory_space<vmem>>, vector<16x9xf32>
    %c192_220 = arith.constant 192 : index
    %c0_221 = arith.constant 0 : index
    %226 = vector.load %arg16[%c192_220, %c0_221] : memref<256x9xf32, #tpu.memory_space<vmem>>, vector<16x9xf32>
    %c208 = arith.constant 208 : index
    %c0_222 = arith.constant 0 : index
    %227 = vector.load %arg17[%c208, %c0_222] : memref<256x9xf32, #tpu.memory_space<vmem>>, vector<16x9xf32>
    %228 = arith.subf %226, %227 : vector<16x9xf32>
    %229 = arith.mulf %228, %225 : vector<16x9xf32>
    %c192_223 = arith.constant 192 : index
    %c0_224 = arith.constant 0 : index
    %230 = vector.load %arg17[%c192_223, %c0_224] : memref<256x9xf32, #tpu.memory_space<vmem>>, vector<16x9xf32>
    %c208_225 = arith.constant 208 : index
    %c0_226 = arith.constant 0 : index
    %231 = vector.load %arg16[%c208_225, %c0_226] : memref<256x9xf32, #tpu.memory_space<vmem>>, vector<16x9xf32>
    %232 = arith.addf %230, %231 : vector<16x9xf32>
    %233 = arith.mulf %232, %225 : vector<16x9xf32>
    %c0_227 = arith.constant 0 : index
    %c0_228 = arith.constant 0 : index
    %234 = vector.load %arg8[%c0_227, %c0_228] : memref<32x16xbf16, #tpu.memory_space<vmem>>, vector<32x16xbf16>
    %235 = arith.truncf %229 : vector<16x9xf32> to vector<16x9xbf16>
    %cst_229 = arith.constant dense<0.000000e+00> : vector<32x9xf32>
    %236 = tpu.matmul %234, %235, %cst_229 {dimension_numbers = #tpu.dot_dimension_numbers<[1], [0], [0], [1], [0, 0, 1, 1], [], []>} : vector<32x16xbf16>, vector<16x9xbf16>, vector<32x9xf32> -> vector<32x9xf32>
    %c0_230 = arith.constant 0 : index
    %c0_231 = arith.constant 0 : index
    %237 = vector.load %arg9[%c0_230, %c0_231] : memref<32x16xbf16, #tpu.memory_space<vmem>>, vector<32x16xbf16>
    %238 = arith.truncf %233 : vector<16x9xf32> to vector<16x9xbf16>
    %cst_232 = arith.constant dense<0.000000e+00> : vector<32x9xf32>
    %239 = tpu.matmul %237, %238, %cst_232 {dimension_numbers = #tpu.dot_dimension_numbers<[1], [0], [0], [1], [0, 0, 1, 1], [], []>} : vector<32x16xbf16>, vector<16x9xbf16>, vector<32x9xf32> -> vector<32x9xf32>
    %240 = arith.addf %236, %239 : vector<32x9xf32>
    %241 = vector.extract_strided_slice %240 {offsets = [0, 0], sizes = [16, 9], strides = [1, 1]} : vector<32x9xf32> to vector<16x9xf32>
    %242 = arith.truncf %241 : vector<16x9xf32> to vector<16x9xbf16>
    %c96_233 = arith.constant 96 : index
    %c0_234 = arith.constant 0 : index
    %243 = vector.load %arg18[%c96_233, %c0_234] : memref<128x9xbf16, #tpu.memory_space<vmem>>, vector<16x9xbf16>
    tpu.vector_store %arg18[%c96_233, %c0_234], %242 {strides = array<i32>} : memref<128x9xbf16, #tpu.memory_space<vmem>>, vector<16x9xbf16>,
    %244 = vector.extract_strided_slice %240 {offsets = [16, 0], sizes = [16, 9], strides = [1, 1]} : vector<32x9xf32> to vector<16x9xf32>
    %245 = arith.truncf %244 : vector<16x9xf32> to vector<16x9xbf16>
    %c96_235 = arith.constant 96 : index
    %c0_236 = arith.constant 0 : index
    %246 = vector.load %arg19[%c96_235, %c0_236] : memref<128x9xbf16, #tpu.memory_space<vmem>>, vector<16x9xbf16>
    tpu.vector_store %arg19[%c96_235, %c0_236], %245 {strides = array<i32>} : memref<128x9xbf16, #tpu.memory_space<vmem>>, vector<16x9xbf16>,
    %c0_237 = arith.constant 0 : index
    %c0_238 = arith.constant 0 : index
    %247 = vector.load %arg12[%c0_237, %c0_238] : memref<16x9xf32, #tpu.memory_space<vmem>>, vector<16x9xf32>
    %c224_239 = arith.constant 224 : index
    %c0_240 = arith.constant 0 : index
    %248 = vector.load %arg16[%c224_239, %c0_240] : memref<256x9xf32, #tpu.memory_space<vmem>>, vector<16x9xf32>
    %c240 = arith.constant 240 : index
    %c0_241 = arith.constant 0 : index
    %249 = vector.load %arg17[%c240, %c0_241] : memref<256x9xf32, #tpu.memory_space<vmem>>, vector<16x9xf32>
    %250 = arith.subf %248, %249 : vector<16x9xf32>
    %251 = arith.mulf %250, %247 : vector<16x9xf32>
    %c224_242 = arith.constant 224 : index
    %c0_243 = arith.constant 0 : index
    %252 = vector.load %arg17[%c224_242, %c0_243] : memref<256x9xf32, #tpu.memory_space<vmem>>, vector<16x9xf32>
    %c240_244 = arith.constant 240 : index
    %c0_245 = arith.constant 0 : index
    %253 = vector.load %arg16[%c240_244, %c0_245] : memref<256x9xf32, #tpu.memory_space<vmem>>, vector<16x9xf32>
    %254 = arith.addf %252, %253 : vector<16x9xf32>
    %255 = arith.mulf %254, %247 : vector<16x9xf32>
    %c0_246 = arith.constant 0 : index
    %c0_247 = arith.constant 0 : index
    %256 = vector.load %arg8[%c0_246, %c0_247] : memref<32x16xbf16, #tpu.memory_space<vmem>>, vector<32x16xbf16>
    %257 = arith.truncf %251 : vector<16x9xf32> to vector<16x9xbf16>
    %cst_248 = arith.constant dense<0.000000e+00> : vector<32x9xf32>
    %258 = tpu.matmul %256, %257, %cst_248 {dimension_numbers = #tpu.dot_dimension_numbers<[1], [0], [0], [1], [0, 0, 1, 1], [], []>} : vector<32x16xbf16>, vector<16x9xbf16>, vector<32x9xf32> -> vector<32x9xf32>
    %c0_249 = arith.constant 0 : index
    %c0_250 = arith.constant 0 : index
    %259 = vector.load %arg9[%c0_249, %c0_250] : memref<32x16xbf16, #tpu.memory_space<vmem>>, vector<32x16xbf16>
    %260 = arith.truncf %255 : vector<16x9xf32> to vector<16x9xbf16>
    %cst_251 = arith.constant dense<0.000000e+00> : vector<32x9xf32>
    %261 = tpu.matmul %259, %260, %cst_251 {dimension_numbers = #tpu.dot_dimension_numbers<[1], [0], [0], [1], [0, 0, 1, 1], [], []>} : vector<32x16xbf16>, vector<16x9xbf16>, vector<32x9xf32> -> vector<32x9xf32>
    %262 = arith.addf %258, %261 : vector<32x9xf32>
    %263 = vector.extract_strided_slice %262 {offsets = [0, 0], sizes = [16, 9], strides = [1, 1]} : vector<32x9xf32> to vector<16x9xf32>
    %264 = arith.truncf %263 : vector<16x9xf32> to vector<16x9xbf16>
    %c112_252 = arith.constant 112 : index
    %c0_253 = arith.constant 0 : index
    %265 = vector.load %arg18[%c112_252, %c0_253] : memref<128x9xbf16, #tpu.memory_space<vmem>>, vector<16x9xbf16>
    tpu.vector_store %arg18[%c112_252, %c0_253], %264 {strides = array<i32>} : memref<128x9xbf16, #tpu.memory_space<vmem>>, vector<16x9xbf16>,
    %266 = vector.extract_strided_slice %262 {offsets = [16, 0], sizes = [16, 9], strides = [1, 1]} : vector<32x9xf32> to vector<16x9xf32>
    %267 = arith.truncf %266 : vector<16x9xf32> to vector<16x9xbf16>
    %c112_254 = arith.constant 112 : index
    %c0_255 = arith.constant 0 : index
    %268 = vector.load %arg19[%c112_254, %c0_255] : memref<128x9xbf16, #tpu.memory_space<vmem>>, vector<16x9xbf16>
    tpu.vector_store %arg19[%c112_254, %c0_255], %267 {strides = array<i32>} : memref<128x9xbf16, #tpu.memory_space<vmem>>, vector<16x9xbf16>,
    %c0_256 = arith.constant 0 : index
    %c0_257 = arith.constant 0 : index
    %269 = vector.load %arg18[%c0_256, %c0_257] : memref<128x9xbf16, #tpu.memory_space<vmem>>, vector<128x9xbf16>
    %c0_258 = arith.constant 0 : index
    %c0_259 = arith.constant 0 : index
    %270 = vector.load %arg10[%c0_258, %c0_259] : memref<9x16xbf16, #tpu.memory_space<vmem>>, vector<9x16xbf16>
    %cst_260 = arith.constant dense<0.000000e+00> : vector<128x16xf32>
    %271 = tpu.matmul %269, %270, %cst_260 {dimension_numbers = #tpu.dot_dimension_numbers<[1], [0], [0], [1], [0, 0, 1, 1], [], []>} : vector<128x9xbf16>, vector<9x16xbf16>, vector<128x16xf32> -> vector<128x16xf32>
    %c0_261 = arith.constant 0 : index
    %c0_262 = arith.constant 0 : index
    %272 = vector.load %arg13[%c0_261, %c0_262] : memref<128x16xf32, #tpu.memory_space<vmem>>, vector<128x16xf32>
    tpu.vector_store %arg13[%c0_261, %c0_262], %271 {strides = array<i32>} : memref<128x16xf32, #tpu.memory_space<vmem>>, vector<128x16xf32>,
    %c0_263 = arith.constant 0 : index
    %c0_264 = arith.constant 0 : index
    %273 = vector.load %arg13[%c0_263, %c0_264] : memref<128x16xf32, #tpu.memory_space<vmem>>, vector<128x16xf32>
    %c0_265 = arith.constant 0 : index
    %c0_266 = arith.constant 0 : index
    %274 = vector.load %arg19[%c0_265, %c0_266] : memref<128x9xbf16, #tpu.memory_space<vmem>>, vector<128x9xbf16>
    %c0_267 = arith.constant 0 : index
    %c0_268 = arith.constant 0 : index
    %275 = vector.load %arg11[%c0_267, %c0_268] : memref<9x16xbf16, #tpu.memory_space<vmem>>, vector<9x16xbf16>
    %cst_269 = arith.constant dense<0.000000e+00> : vector<128x16xf32>
    %276 = tpu.matmul %274, %275, %cst_269 {dimension_numbers = #tpu.dot_dimension_numbers<[1], [0], [0], [1], [0, 0, 1, 1], [], []>} : vector<128x9xbf16>, vector<9x16xbf16>, vector<128x16xf32> -> vector<128x16xf32>
    %277 = arith.subf %273, %276 : vector<128x16xf32>
    %c0_270 = arith.constant 0 : index
    %c0_271 = arith.constant 0 : index
    %278 = vector.load %arg13[%c0_270, %c0_271] : memref<128x16xf32, #tpu.memory_space<vmem>>, vector<128x16xf32>
    tpu.vector_store %arg13[%c0_270, %c0_271], %277 {strides = array<i32>} : memref<128x16xf32, #tpu.memory_space<vmem>>, vector<128x16xf32>,
    %c0_272 = arith.constant 0 : index
    %c0_273 = arith.constant 0 : index
    %279 = vector.load %arg13[%c0_272, %c0_273] : memref<128x16xf32, #tpu.memory_space<vmem>>, vector<128x16xf32>
    %c0_274 = arith.constant 0 : index
    %c0_275 = arith.constant 0 : index
    %280 = vector.load %arg2[%c0_274, %c0_275] : memref<128x16xf32, #tpu.memory_space<vmem>>, vector<128x16xf32>
    %281 = arith.addf %279, %280 : vector<128x16xf32>
    %c0_276 = arith.constant 0 : index
    %c0_277 = arith.constant 0 : index
    %282 = vector.load %arg13[%c0_276, %c0_277] : memref<128x16xf32, #tpu.memory_space<vmem>>, vector<128x16xf32>
    tpu.vector_store %arg13[%c0_276, %c0_277], %281 {strides = array<i32>} : memref<128x16xf32, #tpu.memory_space<vmem>>, vector<128x16xf32>,
    return
  }
  func.func @transform_0(%arg0: i32) -> (i32, i32) {
    %c0_i32 = arith.constant 0 : i32
    %c0_i32_0 = arith.constant 0 : i32
    return %arg0, %c0_i32 : i32, i32
  }
  func.func @transform_1(%arg0: i32) -> (i32, i32) {
    %c0_i32 = arith.constant 0 : i32
    %c0_i32_0 = arith.constant 0 : i32
    return %arg0, %c0_i32 : i32, i32
  }
  func.func @transform_2(%arg0: i32) -> (i32, i32) {
    %c0_i32 = arith.constant 0 : i32
    %c0_i32_0 = arith.constant 0 : i32
    %c0_i32_1 = arith.constant 0 : i32
    return %c0_i32, %c0_i32_0 : i32, i32
  }
  func.func @transform_3(%arg0: i32) -> (i32, i32) {
    %c0_i32 = arith.constant 0 : i32
    %c0_i32_0 = arith.constant 0 : i32
    %c0_i32_1 = arith.constant 0 : i32
    return %c0_i32, %c0_i32_0 : i32, i32
  }
  func.func @transform_4(%arg0: i32) -> (i32, i32) {
    %c0_i32 = arith.constant 0 : i32
    %c0_i32_0 = arith.constant 0 : i32
    %c0_i32_1 = arith.constant 0 : i32
    return %c0_i32, %c0_i32_0 : i32, i32
  }
  func.func @transform_5(%arg0: i32) -> (i32, i32) {
    %c0_i32 = arith.constant 0 : i32
    %c0_i32_0 = arith.constant 0 : i32
    %c0_i32_1 = arith.constant 0 : i32
    return %c0_i32, %c0_i32_0 : i32, i32
  }
  func.func @transform_6(%arg0: i32) -> (i32, i32) {
    %c0_i32 = arith.constant 0 : i32
    %c0_i32_0 = arith.constant 0 : i32
    %c0_i32_1 = arith.constant 0 : i32
    return %c0_i32, %c0_i32_0 : i32, i32
  }
  func.func @transform_7(%arg0: i32) -> (i32, i32) {
    %c0_i32 = arith.constant 0 : i32
    %c0_i32_0 = arith.constant 0 : i32
    %c0_i32_1 = arith.constant 0 : i32
    return %c0_i32, %c0_i32_0 : i32, i32
  }
  func.func @transform_8(%arg0: i32) -> (i32, i32) {
    %c0_i32 = arith.constant 0 : i32
    %c0_i32_0 = arith.constant 0 : i32
    %c0_i32_1 = arith.constant 0 : i32
    return %c0_i32, %c0_i32_0 : i32, i32
  }
  func.func @transform_9(%arg0: i32) -> (i32, i32) {
    %c0_i32 = arith.constant 0 : i32
    %c0_i32_0 = arith.constant 0 : i32
    %c0_i32_1 = arith.constant 0 : i32
    return %c0_i32, %c0_i32_0 : i32, i32
  }
  func.func @transform_10(%arg0: i32) -> (i32, i32) {
    %c0_i32 = arith.constant 0 : i32
    %c0_i32_0 = arith.constant 0 : i32
    %c0_i32_1 = arith.constant 0 : i32
    return %c0_i32, %c0_i32_0 : i32, i32
  }
  func.func @transform_11(%arg0: i32) -> (i32, i32) {
    %c0_i32 = arith.constant 0 : i32
    %c0_i32_0 = arith.constant 0 : i32
    %c0_i32_1 = arith.constant 0 : i32
    return %c0_i32, %c0_i32_0 : i32, i32
  }
  func.func @transform_12(%arg0: i32) -> (i32, i32) {
    %c0_i32 = arith.constant 0 : i32
    %c0_i32_0 = arith.constant 0 : i32
    return %arg0, %c0_i32 : i32, i32
  }
}

</mosaic_0001>

<bundles_post_ra>
// kernel: _forward_impl.1
= control target key start
LH: loop header
LB: loop body
LE: loop exit
PB: predicated region body
PF: predicated region fallthrough
CT: control target
= control target key end

     0   :  { %17 = vsyncpa [#allocation9], 0  ;;  %s5336_s0 = inlined_call_operand.hbm [shape: bf16[64,8], index: 0, kind: input, shape index: {}]   ;;  %s5337_s1 = inlined_call_operand.hbm [shape: f32[128,16], index: 1, kind: input, shape index: {}]   ;;  %s5338_s2 = inlined_call_operand.hbm [shape: bf16[16,8], index: 2, kind: input, shape index: {}]   ;;  %s5339_s3 = inlined_call_operand.hbm [shape: bf16[8,16], index: 3, kind: input, shape index: {}]   ;;  %s5340_s4 = inlined_call_operand.hbm [shape: bf16[32,16], index: 4, kind: input, shape index: {}]   ;;  %s5341_s5 = inlined_call_operand.hbm [shape: bf16[16,9], index: 5, kind: input, shape index: {}]   ;;  %s5342_s6 = inlined_call_operand.hbm [shape: bf16[16,9], index: 6, kind: input, shape index: {}]   ;;  %s5343_s7 = inlined_call_operand.hbm [shape: bf16[32,16], index: 7, kind: input, shape index: {}]   ;;  %s5344_s8 = inlined_call_operand.hbm [shape: bf16[32,16], index: 8, kind: input, shape index: {}]   ;;  %s5345_s9 = inlined_call_operand.hbm [shape: bf16[9,16], index: 9, kind: input, shape index: {}]   ;;  %s5346_s10 = inlined_call_operand.hbm [shape: bf16[9,16], index: 10, kind: input, shape index: {}]   ;;  %s5347_s11 = inlined_call_operand.hbm [shape: f32[16,9], index: 11, kind: input, shape index: {}]   ;;  %s5348_s12 = inlined_call_operand.hbm [shape: f32[128,16], index: 12, kind: output, shape index: {}]  }
   0x1   :  { %18 = vsyncpa [#allocation12], 0 }
   0x2   :  { %19 = vsyncpa [#allocation15], 0 }
   0x3   :  { %20 = vsyncpa [#allocation18], 0 }
   0x4   :  { %21 = vsyncpa [#allocation21], 0 }
   0x5   :  { %22 = vsyncpa [#allocation24], 0 }
   0x6   :  { %23 = vsyncpa [#allocation27], 0 }
   0x7   :  { %24 = vsyncpa [#allocation10], 0  ;;  %s4697_s21 = smov [#allocation11]   ;;  %s4395_s25 = scalar_lea.hbm %s5337_s1, 2048 }
   0x8   :  { %s42_s22 = sshll.u32 %s4697_s21, 4  ;;  %p4396_p0 = scmp.ne.s32.totalorder %s5337_s1, %s4395_s25  ;;  %s43_s22 = int_to_ptr.vmem [resolvable:$true] %s42_s22 }
   0x9   :  { %p4399_p1 = scmp.lt.u32.totalorder %s4395_s25, %s5337_s1 }
   0xb   :  { %p4401_p2 = pnand %p4399_p1, %p4396_p0 }
   0xd   :  { %4404 = shalt.err (!%p4401_p2)
}
   0xe   :  { %s4405_s30 = scalar_lea.vmem %s43_s22, 2048  ;;  %p4410_p4 = scmp.lt.s32.totalorder %s43_s22, %s43_s22 }
   0xf   :  { %p4406_p3 = scmp.ne.s32.totalorder %s43_s22, %s4405_s30  ;;  %p4411_p5 = scmp.lt.s32.totalorder %s4405_s30, %s4405_s30 }
  0x11   :  { %p4412_p6 = por %p4411_p5, %p4410_p4 }
  0x13   :  { %p4413_p7 = pnand %p4412_p6, %p4406_p3 }
  0x15   :  { %4416 = shalt.err (!%p4413_p7)
}
  0x16   :  { %s4698_s13 = smov 128   ;;  %s4699_s14 = smov 8  }
  0x17   :  { %48 = dma.hbm_to_vmem [thread:$0]  %s5337_s1, 2048, %s43_s22, [#allocation12], %s4698_s13, %s4698_s13, %s4699_s14  }
  0x18   :  { %s4700_s17 = smov [#allocation14]   ;;  %s4417_s21 = scalar_lea.hbm %s5339_s3, 64 }
  0x19   :  { %s67_s18 = sshll.u32 %s4700_s17, 4  ;;  %p4418_p8 = scmp.ne.s32.totalorder %s5339_s3, %s4417_s21  ;;  %s68_s18 = int_to_ptr.vmem [resolvable:$true] %s67_s18 }
  0x1a   :  { %p4421_p9 = scmp.lt.u32.totalorder %s4417_s21, %s5339_s3 }
  0x1c   :  { %p4423_p10 = pnand %p4421_p9, %p4418_p8 }
  0x1e   :  { %4426 = shalt.err (!%p4423_p10)
}
  0x1f   :  { %s4427_s27 = scalar_lea.vmem %s68_s18, 64  ;;  %p4432_p12 = scmp.lt.s32.totalorder %s68_s18, %s68_s18 }
  0x20   :  { %p4428_p11 = scmp.ne.s32.totalorder %s68_s18, %s4427_s27  ;;  %p4433_p13 = scmp.lt.s32.totalorder %s4427_s27, %s4427_s27 }
  0x22   :  { %p4434_p0 = por %p4433_p13, %p4432_p12 }
  0x24   :  { %p4435_p1 = pnand %p4434_p0, %p4428_p11 }
  0x26   :  { %4438 = shalt.err (!%p4435_p1)
}
  0x27   :  { %70 = dma.hbm_to_vmem [thread:$0]  %s5339_s3, 64, %s68_s18, [#allocation15]  }
  0x28   :  { %s4701_s28 = smov [#allocation17]   ;;  %s4702_s30 = smov [#allocation20]  }
  0x29   :  { %s88_s29 = sshll.u32 %s4701_s28, 4  ;;  %s112_s15 = sshll.u32 %s4702_s30, 4  ;;  %s89_s29 = int_to_ptr.vmem [resolvable:$true] %s88_s29  ;;  %s4809_s15 = int_to_ptr.vmem [resolvable:$true] %s112_s15 }
  0x2a   :  { %s4439_s19 = scalar_lea.hbm %s5341_s5, 128 }
  0x2b   :  { %p4440_p2 = scmp.ne.s32.totalorder %s5341_s5, %s4439_s19  ;;  %p4443_p3 = scmp.lt.u32.totalorder %s4439_s19, %s5341_s5 }
  0x2d   :  { %p4445_p4 = pnand %p4443_p3, %p4440_p2 }
  0x2f   :  { %4448 = shalt.err (!%p4445_p4)
}
  0x30   :  { %s4449_s3 = scalar_lea.vmem %s89_s29, 128  ;;  %p4454_p6 = scmp.lt.s32.totalorder %s89_s29, %s89_s29 }
  0x31   :  { %p4450_p5 = scmp.ne.s32.totalorder %s89_s29, %s4449_s3  ;;  %p4455_p7 = scmp.lt.s32.totalorder %s4449_s3, %s4449_s3 }
  0x33   :  { %p4456_p8 = por %p4455_p7, %p4454_p6 }
  0x35   :  { %p4457_p9 = pnand %p4456_p8, %p4450_p5 }
  0x37   :  { %4460 = shalt.err (!%p4457_p9)
}
  0x38   :  { %s4703_s18 = smov 64   ;;  %s4704_s25 = smov 4  }
  0x39   :  { %94 = dma.hbm_to_vmem [thread:$0]  %s5341_s5, 128, %s89_s29, [#allocation18], %s4703_s18, %s4703_s18, %s4704_s25  }
  0x3a   :  { %s4461_s28 = scalar_lea.hbm %s5343_s7, 256 }
  0x3b   :  { %p4462_p10 = scmp.ne.s32.totalorder %s5343_s7, %s4461_s28  ;;  %p4465_p11 = scmp.lt.u32.totalorder %s4461_s28, %s5343_s7 }
  0x3d   :  { %p4467_p12 = pnand %p4465_p11, %p4462_p10 }
  0x3f   :  { %4470 = shalt.err (!%p4467_p12)
}
  0x40   :  { %s4471_s20 = scalar_lea.vmem %s4809_s15, 256  ;;  %p4476_p0 = scmp.lt.s32.totalorder %s4809_s15, %s4809_s15 }
  0x41   :  { %p4472_p13 = scmp.ne.s32.totalorder %s4809_s15, %s4471_s20  ;;  %p4477_p1 = scmp.lt.s32.totalorder %s4471_s20, %s4471_s20 }
  0x43   :  { %p4478_p2 = por %p4477_p1, %p4476_p0 }
  0x45   :  { %p4479_p3 = pnand %p4478_p2, %p4472_p13 }
  0x47   :  { %4482 = shalt.err (!%p4479_p3)
}
  0x48   :  { %118 = dma.hbm_to_vmem [thread:$0]  %s5343_s7, 256, %s4809_s15, [#allocation21], %s4703_s18, %s4703_s18, %s4704_s25  }
  0x49   :  { %s4705_s21 = smov [#allocation23]   ;;  %s4706_s24 = smov [#allocation8]  }
  0x4a   :  { %s136_s23 = sshll.u32 %s4705_s21, 4  ;;  %s30_s3 = sshll.u32 %s4706_s24, 4  ;;  %s137_s23 = int_to_ptr.vmem [resolvable:$true] %s136_s23  ;;  %s4846_s3 = int_to_ptr.vmem [resolvable:$true] %s30_s3 }
  0x4b   :  { %s4483_s1 = scalar_lea.hbm %s5345_s9, 128 }
  0x4c   :  { %p4484_p4 = scmp.ne.s32.totalorder %s5345_s9, %s4483_s1  ;;  %p4487_p5 = scmp.lt.u32.totalorder %s4483_s1, %s5345_s9 }
  0x4e   :  { %p4489_p6 = pnand %p4487_p5, %p4484_p4 }
  0x50   :  { %4492 = shalt.err (!%p4489_p6)
}
  0x51   :  { %s4493_s7 = scalar_lea.vmem %s137_s23, 128  ;;  %p4498_p8 = scmp.lt.s32.totalorder %s137_s23, %s137_s23 }
  0x52   :  { %p4494_p7 = scmp.ne.s32.totalorder %s137_s23, %s4493_s7  ;;  %p4499_p9 = scmp.lt.s32.totalorder %s4493_s7, %s4493_s7 }
  0x54   :  { %p4500_p10 = por %p4499_p9, %p4498_p8 }
  0x56   :  { %p4501_p11 = pnand %p4500_p10, %p4494_p7 }
  0x58   :  { %4504 = shalt.err (!%p4501_p11)
}
  0x59   :  { %142 = dma.hbm_to_vmem [thread:$0]  %s5345_s9, 128, %s137_s23, [#allocation24], %s4703_s18, %s4703_s18, %s4704_s25  }
  0x5a   :  { %s4505_s5 = scalar_lea.hbm %s5336_s0, 512 }
  0x5b   :  { %p4506_p12 = scmp.ne.s32.totalorder %s5336_s0, %s4505_s5  ;;  %p4509_p13 = scmp.lt.u32.totalorder %s4505_s5, %s5336_s0 }
  0x5d   :  { %p4511_p0 = pnand %p4509_p13, %p4506_p12 }
  0x5f   :  { %4514 = shalt.err (!%p4511_p0)
}
  0x60   :  { %s4515_s27 = scalar_lea.vmem %s4846_s3, 512  ;;  %p4520_p2 = scmp.lt.s32.totalorder %s4846_s3, %s4846_s3 }
  0x61   :  { %p4516_p1 = scmp.ne.s32.totalorder %s4846_s3, %s4515_s27  ;;  %p4521_p3 = scmp.lt.s32.totalorder %s4515_s27, %s4515_s27 }
  0x63   :  { %p4522_p4 = por %p4521_p3, %p4520_p2 }
  0x65   :  { %p4523_p5 = pnand %p4522_p4, %p4516_p1 }
  0x67   :  { %4526 = shalt.err (!%p4523_p5)
}
  0x68   :  { %36 = dma.hbm_to_vmem [thread:$0]  %s5336_s0, 512, %s4846_s3, [#allocation9], %s4703_s18, %s4703_s18, %s4704_s25  }
  0x69   :  { %s4707_s1 = smov [#allocation13]   ;;  %s4708_s28 = smov [#allocation16]  }
  0x6a   :  { %s54_s22 = sshll.u32 %s4707_s1, 4  ;;  %s76_s30 = sshll.u32 %s4708_s28, 4  ;;  %s55_s22 = int_to_ptr.vmem [resolvable:$true] %s54_s22  ;;  %s4883_s30 = int_to_ptr.vmem [resolvable:$true] %s76_s30 }
  0x6b   :  { %s4527_s15 = scalar_lea.hbm %s5338_s2, 128 }
  0x6c   :  { %p4528_p6 = scmp.ne.s32.totalorder %s5338_s2, %s4527_s15  ;;  %p4531_p7 = scmp.lt.u32.totalorder %s4527_s15, %s5338_s2 }
  0x6e   :  { %p4533_p8 = pnand %p4531_p7, %p4528_p6 }
  0x70   :  { %4536 = shalt.err (!%p4533_p8)
}
  0x71   :  { %s4537_s0 = scalar_lea.vmem %s55_s22, 128  ;;  %p4542_p10 = scmp.lt.s32.totalorder %s55_s22, %s55_s22 }
  0x72   :  { %p4538_p9 = scmp.ne.s32.totalorder %s55_s22, %s4537_s0  ;;  %p4543_p11 = scmp.lt.s32.totalorder %s4537_s0, %s4537_s0 }
  0x74   :  { %p4544_p12 = por %p4543_p11, %p4542_p10 }
  0x76   :  { %p4545_p13 = pnand %p4544_p12, %p4538_p9 }
  0x78   :  { %4548 = shalt.err (!%p4545_p13)
}
  0x79   :  { %60 = dma.hbm_to_vmem [thread:$0]  %s5338_s2, 128, %s55_s22, [#allocation12], %s4703_s18, %s4703_s18, %s4704_s25  }
  0x7a   :  { %s4549_s26 = scalar_lea.hbm %s5340_s4, 256 }
  0x7b   :  { %p4550_p0 = scmp.ne.s32.totalorder %s5340_s4, %s4549_s26  ;;  %p4553_p1 = scmp.lt.u32.totalorder %s4549_s26, %s5340_s4 }
  0x7d   :  { %p4555_p2 = pnand %p4553_p1, %p4550_p0 }
  0x7f   :  { %4558 = shalt.err (!%p4555_p2)
}
  0x80   :  { %s4559_s28 = scalar_lea.vmem %s4883_s30, 256  ;;  %p4564_p4 = scmp.lt.s32.totalorder %s4883_s30, %s4883_s30 }
  0x81   :  { %p4560_p3 = scmp.ne.s32.totalorder %s4883_s30, %s4559_s28  ;;  %p4565_p5 = scmp.lt.s32.totalorder %s4559_s28, %s4559_s28 }
  0x83   :  { %p4566_p6 = por %p4565_p5, %p4564_p4 }
  0x85   :  { %p4567_p7 = pnand %p4566_p6, %p4560_p3 }
  0x87   :  { %4570 = shalt.err (!%p4567_p7)
}
  0x88   :  { %82 = dma.hbm_to_vmem [thread:$0]  %s5340_s4, 256, %s4883_s30, [#allocation15], %s4703_s18, %s4703_s18, %s4704_s25  }
  0x89   :  { %s4709_s16 = smov [#allocation19]   ;;  %s4710_s15 = smov [#allocation22]  }
  0x8a   :  { %s100_s7 = sshll.u32 %s4709_s16, 4  ;;  %s124_s17 = sshll.u32 %s4710_s15, 4  ;;  %s101_s7 = int_to_ptr.vmem [resolvable:$true] %s100_s7  ;;  %s4920_s17 = int_to_ptr.vmem [resolvable:$true] %s124_s17 }
  0x8b   :  { %s4571_s5 = scalar_lea.hbm %s5342_s6, 128 }
  0x8c   :  { %p4572_p8 = scmp.ne.s32.totalorder %s5342_s6, %s4571_s5  ;;  %p4575_p9 = scmp.lt.u32.totalorder %s4571_s5, %s5342_s6 }
  0x8e   :  { %p4577_p10 = pnand %p4575_p9, %p4572_p8 }
  0x90   :  { %4580 = shalt.err (!%p4577_p10)
}
  0x91   :  { %s4581_s4 = scalar_lea.vmem %s101_s7, 128  ;;  %p4586_p12 = scmp.lt.s32.totalorder %s101_s7, %s101_s7 }
  0x92   :  { %p4582_p11 = scmp.ne.s32.totalorder %s101_s7, %s4581_s4  ;;  %p4587_p13 = scmp.lt.s32.totalorder %s4581_s4, %s4581_s4 }
  0x94   :  { %p4588_p0 = por %p4587_p13, %p4586_p12 }
  0x96   :  { %p4589_p1 = pnand %p4588_p0, %p4582_p11 }
  0x98   :  { %4592 = shalt.err (!%p4589_p1)
}
  0x99   :  { %106 = dma.hbm_to_vmem [thread:$0]  %s5342_s6, 128, %s101_s7, [#allocation18], %s4703_s18, %s4703_s18, %s4704_s25  }
  0x9a   :  { %s4593_s9 = scalar_lea.hbm %s5344_s8, 256 }
  0x9b   :  { %p4594_p2 = scmp.ne.s32.totalorder %s5344_s8, %s4593_s9  ;;  %p4597_p3 = scmp.lt.u32.totalorder %s4593_s9, %s5344_s8 }
  0x9d   :  { %p4599_p4 = pnand %p4597_p3, %p4594_p2 }
  0x9f   :  { %4602 = shalt.err (!%p4599_p4)
}
  0xa0   :  { %s4603_s22 = scalar_lea.vmem %s4920_s17, 256  ;;  %p4608_p6 = scmp.lt.s32.totalorder %s4920_s17, %s4920_s17 }
  0xa1   :  { %p4604_p5 = scmp.ne.s32.totalorder %s4920_s17, %s4603_s22  ;;  %p4609_p7 = scmp.lt.s32.totalorder %s4603_s22, %s4603_s22 }
  0xa3   :  { %p4610_p8 = por %p4609_p7, %p4608_p6 }
  0xa5   :  { %p4611_p9 = pnand %p4610_p8, %p4604_p5 }
  0xa7   :  { %4614 = shalt.err (!%p4611_p9)
}
  0xa8   :  { %130 = dma.hbm_to_vmem [thread:$0]  %s5344_s8, 256, %s4920_s17, [#allocation21], %s4703_s18, %s4703_s18, %s4704_s25  }
  0xa9   :  { %s4711_s7 = smov [#allocation25]   ;;  %s4712_s19 = smov [#allocation26]  }
  0xaa   :  { %s148_s15 = sshll.u32 %s4711_s7, 4  ;;  %s160_s20 = sshll.u32 %s4712_s19, 4  ;;  %s149_s15 = int_to_ptr.vmem [resolvable:$true] %s148_s15  ;;  %s4957_s20 = int_to_ptr.vmem [resolvable:$true] %s160_s20 }
  0xab   :  { %s4615_s3 = scalar_lea.hbm %s5346_s10, 128 }
  0xac   :  { %p4616_p10 = scmp.ne.s32.totalorder %s5346_s10, %s4615_s3  ;;  %p4619_p11 = scmp.lt.u32.totalorder %s4615_s3, %s5346_s10 }
  0xae   :  { %p4621_p12 = pnand %p4619_p11, %p4616_p10 }
  0xb0   :  { %4624 = shalt.err (!%p4621_p12)
}
  0xb1   :  { %s4625_s8 = scalar_lea.vmem %s149_s15, 128  ;;  %p4630_p0 = scmp.lt.s32.totalorder %s149_s15, %s149_s15 }
  0xb2   :  { %p4626_p13 = scmp.ne.s32.totalorder %s149_s15, %s4625_s8  ;;  %p4631_p1 = scmp.lt.s32.totalorder %s4625_s8, %s4625_s8 }
  0xb4   :  { %p4632_p2 = por %p4631_p1, %p4630_p0 }
  0xb6   :  { %p4633_p3 = pnand %p4632_p2, %p4626_p13 }
  0xb8   :  { %4636 = shalt.err (!%p4633_p3)
}
  0xb9   :  { %154 = dma.hbm_to_vmem [thread:$0]  %s5346_s10, 128, %s149_s15, [#allocation24], %s4703_s18, %s4703_s18, %s4704_s25  }
  0xba   :  { %s4637_s9 = scalar_lea.hbm %s5347_s11, 256 }
  0xbb   :  { %p4638_p4 = scmp.ne.s32.totalorder %s5347_s11, %s4637_s9  ;;  %p4641_p5 = scmp.lt.u32.totalorder %s4637_s9, %s5347_s11 }
  0xbd   :  { %p4643_p6 = pnand %p4641_p5, %p4638_p4 }
  0xbf   :  { %4646 = shalt.err (!%p4643_p6)
}
  0xc0   :  { %s4647_s22 = scalar_lea.vmem %s4957_s20, 256  ;;  %p4652_p8 = scmp.lt.s32.totalorder %s4957_s20, %s4957_s20 }
  0xc1   :  { %p4648_p7 = scmp.ne.s32.totalorder %s4957_s20, %s4647_s22  ;;  %p4653_p9 = scmp.lt.s32.totalorder %s4647_s22, %s4647_s22 }
  0xc3   :  { %p4654_p10 = por %p4653_p9, %p4652_p8 }
  0xc5   :  { %p4655_p11 = pnand %p4654_p10, %p4648_p7 }
  0xc7   :  { %4658 = shalt.err (!%p4655_p11)
}
  0xc8   :  { %166 = dma.hbm_to_vmem [thread:$0]  %s5347_s11, 256, %s4957_s20, [#allocation27], %s4698_s13, %s4698_s13, %s4699_s14  }
  0xc9   :  { %4681 = dma.done.wait [#allocation9], 512  }
  0xca   :  { %4682 = vsyncadd [#allocation9], 4294966784 }
  0xcb   :  { %4683 = dma.done.wait [#allocation12], 2176  }
  0xcc   :  { %4684 = vsyncadd [#allocation12], 4294965120 }
  0xcd   :  { %4685 = dma.done.wait [#allocation15], 320  }
  0xce   :  { %4686 = vsyncadd [#allocation15], 4294966976 }
  0xcf   :  { %4687 = dma.done.wait [#allocation18], 256  }
  0xd0   :  { %4688 = vsyncadd [#allocation18], 4294967040 }
  0xd1   :  { %4689 = dma.done.wait [#allocation21], 512  }
  0xd2   :  { %4690 = vsyncadd [#allocation21], 4294966784 }
  0xd3   :  { %4691 = dma.done.wait [#allocation24], 256  }
  0xd4   :  { %4692 = vsyncadd [#allocation24], 4294967040 }
  0xd5   :  { %4693 = dma.done.wait [#allocation27], 256  }
  0xd6   :  { %4694 = vsyncadd [#allocation27], 4294967040  ;;  %vm246_vm0 = vcmask 1043456   ;;  %vm233_vm1 = vcmask 64512   ;;  %v212_v0 = vld [vmem:[#allocation14] sm:$0xf] }
  0xd7   :  { %4310 = vmatprep.subr.msk.bf16.mxu0 %vm246_vm0, %v212_v0  ;;  %v248_v1 = vsel %vm246_vm0, %v212_v0, 0  ;;  %v4331_v2 = vld [vmem:[#allocation8] sm:$0xff]   ;;  %v4332_v3 = vld [vmem:[#allocation8 + $0x8] sm:$0xff]   ;;  %v4333_v4 = vld [vmem:[#allocation8 + $0x10] sm:$0xff]   ;;  %v4713_v6 = vmov 0.0   ;;  %vm4714_vm2 = vmmov 0  }
  0xd8   :  { %3973 = vmatpush3.bf16.msra.mxu0 %v248_v1  ;;  %3974 = vmatprep.mubr.msk.bf16.mxu0 %vm233_vm1, %v4331_v2  ;;  %v4334_v5 = vld [vmem:[#allocation8 + $0x18] sm:$0xff]   ;;  %vm319_vm3 = vcmask 130048   ;;  %v4335_v23 = vld [vmem:[#allocation13] sm:$0xff]   ;;  %v4343_v47 = vld [vmem:[#allocation16] sm:$0xff]   ;;  %vm1629_vm4 = vcmask 72704   ;;  %vm3262_vm5 = vcmask 1044480  }
  0xd9   :  { %3982 = vmatprep.subr.bf16.mxu1 %v4713_v6  ;;  %3994 = vmatprep.subr.bf16.mxu0 %v4713_v6  ;;  %v4336_v25 = vld [vmem:[#allocation13] sm:$0xff]   ;;  %v380_v50 = vld [vmem:[#allocation11 + $0x8] sm:$0xff]  ;;  %v514_v51 = vld [vmem:[#allocation11 + $0x10] sm:$0xff]  ;;  %s4716_s11 = smov [#allocation28]  }
  0xda   :  { %3984 = vmatprep.mubr.msk.bf16.mxu1 %vm4714_vm2, %v4713_v6  ;;  %v4337_v29 = vld [vmem:[#allocation13] sm:$0xff]   ;;  %v515_v55 = vld [vmem:[#allocation11 + $0x18] sm:$0xff]  ;;  %s3637_s25 = sshll.u32 %s4716_s11, 4  ;;  %s3638_s25 = int_to_ptr.vmem [resolvable:$true] %s3637_s25 }
  0xdb   :  { %3975 = vmatmul.mubr.msk.bf16.vlgmr.msra.gmra.mrb[0].mxu0 %vm233_vm1, %v4332_v3  ;;  %v4338_v33 = vld [vmem:[#allocation13] sm:$0xff]   ;;  %v4344_v2 = vld [vmem:[#allocation16 + $0x8] sm:$0xff]   ;;  %v4345_v3 = vld [vmem:[#allocation16] sm:$0xff]   ;;  %s4659_s6 = scalar_lea.vmem %s3638_s25, 2048  ;;  %p4664_p13 = scmp.lt.s32.totalorder %s3638_s25, %s3638_s25 }
  0xdc   :  { %3978 = vmatprep.mubr.msk.bf16.mxu0 %vm233_vm1, %v4333_v4  ;;  %v4339_v37 = vld [vmem:[#allocation13] sm:$0xff]   ;;  %p4660_p12 = scmp.ne.s32.totalorder %s3638_s25, %s4659_s6  ;;  %p4665_p0 = scmp.lt.s32.totalorder %s4659_s6, %s4659_s6 }
  0xdd   :  { %v4340_v40 = vld [vmem:[#allocation13] sm:$0xff]  }
  0xde   :  { %v4341_v43 = vld [vmem:[#allocation13] sm:$0xff]   ;;  %p4666_p1 = por %p4665_p0, %p4664_p13 }
  0xdf   :  { %v4342_v46 = vld [vmem:[#allocation13] sm:$0xff]  }
  0xe0   :  { %v379_v49 = vld [vmem:[#allocation11] sm:$0xff]  ;;  %p4667_p2 = pnand %p4666_p1, %p4660_p12 }
  0xe1   :  { %v647_v4 = vld [vmem:[#allocation11 + $0x20] sm:$0xff] }
  0xe3   :  { %3979 = vmatmul.mubr.msk.bf16.gmra.mrb[4].mxu0 %vm233_vm1, %v4334_v5 }
  0xe4   :  { %3996 = vmatprep.mubr.msk.bf16.mxu0 %vm4714_vm2, %v4713_v6 }
 0x1ae   :  { %v3976_v7 = vpop.f32.mrb[0].mxu0 }
 0x1af   :  { %v284_v8 = vpop.f32.mrb[1].mxu0 }
 0x1b0   :  { %v3977_v9 = vpop.f32.mrb[2].mxu0 }
 0x1b1   :  { %v316_v10 = vpack.c.bf16 %v3977_v9, %v3976_v7  ;;  %v287_v11 = vpop.f32.mrb[3].mxu0 }
 0x1b2   :  { %v315_v12 = vpack.c.bf16 %v287_v11, %v284_v8 }
 0x1b3   :  { %321 = vst.msk [vmem:[#allocation2 + $0x8] sm:$0xff] %vm319_vm3, %v316_v10 }
 0x1b4   :  { %320 = vst.msk [vmem:[#allocation2] sm:$0xff] %vm319_vm3, %v315_v12  ;;  %v4346_v12 = vld [vmem:[#allocation16 + $0x8] sm:$0xff]  }
 0x1b6   :  { %v3980_v13 = vpop.f32.mrb[4].mxu0 }
 0x1b7   :  { %v300_v14 = vpop.f32.mrb[5].mxu0 }
 0x1b8   :  { %v3981_v15 = vpop.f32.mrb[6].mxu0 }
 0x1b9   :  { %v318_v16 = vpack.c.bf16 %v3981_v15, %v3980_v13  ;;  %v303_v17 = vpop.f32.mrb[7].mxu0  ;;  %v4347_v15 = vld [vmem:[#allocation16] sm:$0xff]  }
 0x1ba   :  { %v317_v18 = vpack.c.bf16 %v303_v17, %v300_v14  ;;  %v594_v26 = vld [vmem:[#allocation2 + $0x8] sm:$0xf]  ;;  %v727_v28 = vld [vmem:[#allocation2 + $0x8] sm:$0xf0]  ;;  %v782_v14 = vld [vmem:[#allocation11 + $0x30] sm:$0xff] }
 0x1bb   :  { %v326_v19 = vld [vmem:[#allocation2] sm:$0xf]  ;;  %v459_v20 = vld [vmem:[#allocation2] sm:$0xf0]  ;;  %323 = vst.msk [vmem:[#allocation2 + $0x18] sm:$0xff] %vm319_vm3, %v318_v16  ;;  %v604_v27 = vsel %vm246_vm0, %v594_v26, 0 }
 0x1bc   :  { %v336_v21 = vsel %vm246_vm0, %v326_v19, 0  ;;  %v466_v22 = vrot.slane %v459_v20, 4  ;;  %322 = vst.msk [vmem:[#allocation2 + $0x10] sm:$0xff] %vm319_vm3, %v317_v18  ;;  %v734_v30 = vrot.slane %v727_v28, 4  ;;  %v783_v17 = vld [vmem:[#allocation11 + $0x38] sm:$0xff]  ;;  %v915_v26 = vld [vmem:[#allocation11 + $0x40] sm:$0xff] }
 0x1bd   :  { %3983 = vmatpush3.bf16.msra.mxu1 %v336_v21  ;;  %v916_v28 = vld [vmem:[#allocation11 + $0x48] sm:$0xff] }
 0x1be   :  { %v471_v24 = vsel %vm246_vm0, %v466_v22, 0  ;;  %v739_v31 = vsel %vm246_vm0, %v734_v30, 0 }
 0x1bf   :  { %3995 = vmatpush3.bf16.msra.mxu0 %v471_v24  ;;  %v4348_v24 = vld [vmem:[#allocation16 + $0x8] sm:$0xff]  }
 0x1c0   :  { %3985 = vmatmul.mubr.msk.bf16.vlgmr.msra.gmra.mrb[0].mxu1 %vm233_vm1, %v4335_v23  ;;  %4006 = vmatprep.subr.bf16.mxu0 %v4713_v6 }
 0x1c1   :  { %3990 = vmatprep.mubr.msk.bf16.mxu1 %vm319_vm3, %v4343_v47  ;;  %v4353_v47 = vld [vmem:[#allocation16] sm:$0xff]  }
 0x1c2   :  { %3997 = vmatmul.mubr.msk.bf16.vlgmr.msra.gmra.mrb[8].mxu0 %vm233_vm1, %v4336_v25  ;;  %v1130_v39 = vld [vmem:[#allocation2 + $0x18] sm:$0xf]  ;;  %v1263_v42 = vld [vmem:[#allocation2 + $0x18] sm:$0xf0]  ;;  %v4349_v25 = vld [vmem:[#allocation16] sm:$0xff]  }
 0x1c3   :  { %4007 = vmatpush3.bf16.msra.mxu0 %v604_v27  ;;  %4008 = vmatprep.mubr.msk.bf16.mxu0 %vm4714_vm2, %v4713_v6  ;;  %v862_v32 = vld [vmem:[#allocation2 + $0x10] sm:$0xf]  ;;  %v995_v35 = vld [vmem:[#allocation2 + $0x10] sm:$0xf0]  ;;  %v1140_v41 = vsel %vm246_vm0, %v1130_v39, 0  ;;  %v1270_v44 = vrot.slane %v1263_v42, 4 }
 0x1c4   :  { %4018 = vmatprep.subr.bf16.mxu0 %v4713_v6  ;;  %v872_v34 = vsel %vm246_vm0, %v862_v32, 0  ;;  %v1002_v36 = vrot.slane %v995_v35, 4  ;;  %v1051_v39 = vld [vmem:[#allocation11 + $0x58] sm:$0xff] }
 0x1c5   :  { %v1275_v45 = vsel %vm246_vm0, %v1270_v44, 0 }
 0x1c6   :  { %v1007_v38 = vsel %vm246_vm0, %v1002_v36, 0  ;;  %v1050_v36 = vld [vmem:[#allocation11 + $0x50] sm:$0xff] }
 0x1ca   :  { %4009 = vmatmul.mubr.msk.bf16.vlgmr.msra.gmra.mrb[12].mxu0 %vm233_vm1, %v4337_v29 }
 0x1cb   :  { %4019 = vmatpush3.bf16.msra.mxu0 %v739_v31  ;;  %4020 = vmatprep.mubr.msk.bf16.mxu0 %vm4714_vm2, %v4713_v6 }
 0x1cc   :  { %4030 = vmatprep.subr.bf16.mxu0 %v4713_v6 }
 0x1d2   :  { %4021 = vmatmul.mubr.msk.bf16.vlgmr.msra.gmra.mrb[16].mxu0 %vm233_vm1, %v4338_v33 }
 0x1d3   :  { %4031 = vmatpush3.bf16.msra.mxu0 %v872_v34  ;;  %4032 = vmatprep.mubr.msk.bf16.mxu0 %vm4714_vm2, %v4713_v6  ;;  %v4350_v34 = vld [vmem:[#allocation16 + $0x8] sm:$0xff]  }
 0x1d4   :  { %4042 = vmatprep.subr.bf16.mxu0 %v4713_v6 }
 0x1da   :  { %4033 = vmatmul.mubr.msk.bf16.vlgmr.msra.gmra.mrb[20].mxu0 %vm233_vm1, %v4339_v37  ;;  %v4351_v37 = vld [vmem:[#allocation16] sm:$0xff]  }
 0x1db   :  { %4043 = vmatpush3.bf16.msra.mxu0 %v1007_v38  ;;  %4044 = vmatprep.mubr.msk.bf16.mxu0 %vm4714_vm2, %v4713_v6 }
 0x1dc   :  { %4054 = vmatprep.subr.bf16.mxu0 %v4713_v6 }
 0x1e2   :  { %4045 = vmatmul.mubr.msk.bf16.vlgmr.msra.gmra.mrb[24].mxu0 %vm233_vm1, %v4340_v40 }
 0x1e3   :  { %4055 = vmatpush3.bf16.msra.mxu0 %v1140_v41  ;;  %4056 = vmatprep.mubr.msk.bf16.mxu0 %vm4714_vm2, %v4713_v6 }
 0x1e4   :  { %4066 = vmatprep.subr.bf16.mxu0 %v4713_v6 }
 0x1ea   :  { %4057 = vmatmul.mubr.msk.bf16.vlgmr.msra.gmra.mrb[28].mxu0 %vm233_vm1, %v4341_v43 }
 0x1eb   :  { %4067 = vmatpush3.bf16.msra.mxu0 %v1275_v45  ;;  %4068 = vmatprep.mubr.msk.bf16.mxu0 %vm4714_vm2, %v4713_v6  ;;  %v648_v6 = vld [vmem:[#allocation11 + $0x28] sm:$0xff] }
 0x1f2   :  { %4069 = vmatmul.mubr.msk.bf16.vlgmr.msra.gmra.mrb[32].mxu0 %vm233_vm1, %v4342_v46  ;;  %v4352_v46 = vld [vmem:[#allocation16 + $0x8] sm:$0xff]  }
 0x293   :  { %v372_v48 = vpop.f32.mrb[0].mxu1 }
 0x294   :  { %v3986_v52 = vpop.f32.mrb[1].mxu1  ;;  %v381_v56 = vsub.f32 %v372_v48, %v379_v49  ;;  %v1183_v48 = vld [vmem:[#allocation11 + $0x60] sm:$0xff] }
 0x295   :  { %v375_v53 = vpop.f32.mrb[2].mxu1  ;;  %v507_v54 = vpop.f32.mrb[8].mxu0 }
 0x296   :  { %v382_v57 = vsub.f32 %v375_v53, %v380_v50  ;;  %v3987_v58 = vpop.f32.mrb[3].mxu1  ;;  %v516_v59 = vsub.f32 %v507_v54, %v514_v51  ;;  %v3998_v60 = vpop.f32.mrb[9].mxu0  ;;  %v1184_v50 = vld [vmem:[#allocation11 + $0x68] sm:$0xff] }
 0x297   :  { %v510_v61 = vpop.f32.mrb[10].mxu0  ;;  %v1318_v58 = vld [vmem:[#allocation11 + $0x70] sm:$0xff] }
 0x298   :  { %v387_v62 = vpack.c.bf16 %v382_v57, %v381_v56  ;;  %v517_v63 = vsub.f32 %v510_v61, %v515_v55  ;;  %v3999_v0 = vpop.f32.mrb[11].mxu0  ;;  %v4354_v56 = vld [vmem:[#allocation16 + $0x8] sm:$0xff]  }
 0x299   :  { %v1319_v61 = vld [vmem:[#allocation11 + $0x78] sm:$0xff] }
 0x29a   :  { %3988 = vmatprep.subr.bf16.mxu1 %v387_v62  ;;  %v522_v1 = vpack.c.bf16 %v517_v63, %v516_v59  ;;  %v4355_v59 = vld [vmem:[#allocation16] sm:$0xff]  }
 0x29b   :  { %3989 = vmatpush3.bf16.msra.mxu1 %v387_v62 }
 0x29c   :  { %4000 = vmatprep.subr.bf16.mxu1 %v522_v1 }
 0x29d   :  { %v640_v5 = vpop.f32.mrb[12].mxu0 }
 0x29e   :  { %3991 = vmatmul.mubr.msk.bf16.vlgmr.msra.gmra.mrb[4].mxu1 %vm319_vm3, %v4344_v2  ;;  %v649_v7 = vsub.f32 %v640_v5, %v647_v4  ;;  %v4010_v8 = vpop.f32.mrb[13].mxu0  ;;  %v4356_v4 = vld [vmem:[#allocation16 + $0x8] sm:$0xff]   ;;  %v4357_v5 = vld [vmem:[#allocation16] sm:$0xff]  }
 0x29f   :  { %4001 = vmatpush3.bf16.msra.mxu1 %v522_v1  ;;  %4002 = vmatprep.mubr.msk.bf16.mxu1 %vm319_vm3, %v4345_v3  ;;  %v643_v9 = vpop.f32.mrb[14].mxu0  ;;  %v4360_v8 = vld [vmem:[#allocation19] sm:$0xff]  }
 0x2a0   :  { %v650_v10 = vsub.f32 %v643_v9, %v648_v6  ;;  %v4011_v11 = vpop.f32.mrb[15].mxu0  ;;  %v4358_v6 = vld [vmem:[#allocation16 + $0x8] sm:$0xff]  }
 0x2a2   :  { %v655_v13 = vpack.c.bf16 %v650_v10, %v649_v7  ;;  %v4359_v7 = vld [vmem:[#allocation17] sm:$0xff]  }
 0x2a3   :  { %4078 = vmatprep.subr.bf16.mxu0 %v4359_v7 }
 0x2a4   :  { %4012 = vmatprep.subr.bf16.mxu1 %v655_v13  ;;  %4079 = vmatpush3.bf16.msra.mxu0 %v4359_v7 }
 0x2a5   :  { %v775_v16 = vpop.f32.mrb[16].mxu0 }
 0x2a6   :  { %4003 = vmatmul.mubr.msk.bf16.vlgmr.msra.gmra.mrb[8].mxu1 %vm319_vm3, %v4346_v12  ;;  %v784_v18 = vsub.f32 %v775_v16, %v782_v14  ;;  %v4022_v19 = vpop.f32.mrb[17].mxu0 }
 0x2a7   :  { %4013 = vmatpush3.bf16.msra.mxu1 %v655_v13  ;;  %4014 = vmatprep.mubr.msk.bf16.mxu1 %vm319_vm3, %v4347_v15  ;;  %v778_v20 = vpop.f32.mrb[18].mxu0 }
 0x2a8   :  { %v785_v21 = vsub.f32 %v778_v20, %v783_v17  ;;  %v4023_v22 = vpop.f32.mrb[19].mxu0 }
 0x2aa   :  { %v790_v23 = vpack.c.bf16 %v785_v21, %v784_v18 }
 0x2ac   :  { %4024 = vmatprep.subr.bf16.mxu1 %v790_v23 }
 0x2ad   :  { %v908_v27 = vpop.f32.mrb[20].mxu0 }
 0x2ae   :  { %4015 = vmatmul.mubr.msk.bf16.vlgmr.msra.gmra.mrb[12].mxu1 %vm319_vm3, %v4348_v24  ;;  %v917_v29 = vsub.f32 %v908_v27, %v915_v26  ;;  %v4034_v30 = vpop.f32.mrb[21].mxu0 }
 0x2af   :  { %4025 = vmatpush3.bf16.msra.mxu1 %v790_v23  ;;  %4026 = vmatprep.mubr.msk.bf16.mxu1 %vm319_vm3, %v4349_v25  ;;  %v911_v31 = vpop.f32.mrb[22].mxu0 }
 0x2b0   :  { %v918_v32 = vsub.f32 %v911_v31, %v916_v28  ;;  %v4035_v33 = vpop.f32.mrb[23].mxu0 }
 0x2b2   :  { %v923_v35 = vpack.c.bf16 %v918_v32, %v917_v29 }
 0x2b4   :  { %4036 = vmatprep.subr.bf16.mxu1 %v923_v35 }
 0x2b5   :  { %v1043_v38 = vpop.f32.mrb[24].mxu0 }
 0x2b6   :  { %4027 = vmatmul.mubr.msk.bf16.vlgmr.msra.gmra.mrb[16].mxu1 %vm319_vm3, %v4350_v34  ;;  %v1052_v40 = vsub.f32 %v1043_v38, %v1050_v36  ;;  %v4046_v41 = vpop.f32.mrb[25].mxu0 }
 0x2b7   :  { %4037 = vmatpush3.bf16.msra.mxu1 %v923_v35  ;;  %4038 = vmatprep.mubr.msk.bf16.mxu1 %vm319_vm3, %v4351_v37  ;;  %v1046_v42 = vpop.f32.mrb[26].mxu0 }
 0x2b8   :  { %v1053_v43 = vsub.f32 %v1046_v42, %v1051_v39  ;;  %v4047_v44 = vpop.f32.mrb[27].mxu0 }
 0x2ba   :  { %v1058_v45 = vpack.c.bf16 %v1053_v43, %v1052_v40 }
 0x2bc   :  { %4048 = vmatprep.subr.bf16.mxu1 %v1058_v45 }
 0x2bd   :  { %v1176_v49 = vpop.f32.mrb[28].mxu0 }
 0x2be   :  { %4039 = vmatmul.mubr.msk.bf16.vlgmr.msra.gmra.mrb[20].mxu1 %vm319_vm3, %v4352_v46  ;;  %v1185_v51 = vsub.f32 %v1176_v49, %v1183_v48  ;;  %v4058_v52 = vpop.f32.mrb[29].mxu0 }
 0x2bf   :  { %4049 = vmatpush3.bf16.msra.mxu1 %v1058_v45  ;;  %4050 = vmatprep.mubr.msk.bf16.mxu1 %vm319_vm3, %v4353_v47  ;;  %v1179_v53 = vpop.f32.mrb[30].mxu0 }
 0x2c0   :  { %v1186_v54 = vsub.f32 %v1179_v53, %v1184_v50  ;;  %v4059_v55 = vpop.f32.mrb[31].mxu0 }
 0x2c2   :  { %v1191_v57 = vpack.c.bf16 %v1186_v54, %v1185_v51 }
 0x2c4   :  { %4060 = vmatprep.subr.bf16.mxu1 %v1191_v57 }
 0x2c5   :  { %v1311_v60 = vpop.f32.mrb[32].mxu0 }
 0x2c6   :  { %4051 = vmatmul.mubr.msk.bf16.vlgmr.msra.gmra.mrb[24].mxu1 %vm319_vm3, %v4354_v56  ;;  %v1320_v62 = vsub.f32 %v1311_v60, %v1318_v58  ;;  %v4070_v63 = vpop.f32.mrb[33].mxu0 }
 0x2c7   :  { %4061 = vmatpush3.bf16.msra.mxu1 %v1191_v57  ;;  %4062 = vmatprep.mubr.msk.bf16.mxu1 %vm319_vm3, %v4355_v59  ;;  %v1314_v0 = vpop.f32.mrb[34].mxu0 }
 0x2c8   :  { %v1321_v1 = vsub.f32 %v1314_v0, %v1319_v61  ;;  %v4071_v2 = vpop.f32.mrb[35].mxu0 }
 0x2ca   :  { %v1326_v3 = vpack.c.bf16 %v1321_v1, %v1320_v62 }
 0x2cc   :  { %4072 = vmatprep.subr.bf16.mxu1 %v1326_v3 }
 0x2ce   :  { %4063 = vmatmul.mubr.msk.bf16.vlgmr.msra.gmra.mrb[28].mxu1 %vm319_vm3, %v4356_v4 }
 0x2cf   :  { %4073 = vmatpush3.bf16.msra.mxu1 %v1326_v3  ;;  %4074 = vmatprep.mubr.msk.bf16.mxu1 %vm319_vm3, %v4357_v5 }
 0x2d0   :  { %4112 = vmatprep.subr.bf16.mxu1 %v4360_v8 }
 0x2d6   :  { %4075 = vmatmul.mubr.msk.bf16.vlgmr.msra.gmra.mrb[32].mxu1 %vm319_vm3, %v4358_v6 }
 0x2d7   :  { %4113 = vmatpush3.bf16.msra.mxu1 %v4360_v8 }
 0x371   :  { %v3992_v9 = vpop.f32.mrb[4].mxu1 }
 0x372   :  { %v438_v10 = vpop.f32.mrb[5].mxu1 }
 0x373   :  { %v3993_v11 = vpop.f32.mrb[6].mxu1 }
 0x374   :  { %v454_v12 = vpack.c.bf16 %v3993_v11, %v3992_v9  ;;  %v441_v13 = vpop.f32.mrb[7].mxu1  ;;  %v4361_v9 = vld [vmem:[#allocation22] sm:$0xff]  }
 0x375   :  { %v453_v14 = vpack.c.bf16 %v441_v13, %v438_v10  ;;  %v4363_v10 = vld [vmem:[#allocation22] sm:$0xff]  }
 0x376   :  { %456 = vst.msk [vmem:[#allocation3 + $0x8] sm:$0xff] %vm319_vm3, %v454_v12 }
 0x377   :  { %455 = vst.msk [vmem:[#allocation3] sm:$0xff] %vm319_vm3, %v453_v14 }
 0x379   :  { %v4004_v15 = vpop.f32.mrb[8].mxu1 }
 0x37a   :  { %v573_v16 = vpop.f32.mrb[9].mxu1 }
 0x37b   :  { %v4005_v17 = vpop.f32.mrb[10].mxu1 }
 0x37c   :  { %v589_v18 = vpack.c.bf16 %v4005_v17, %v4004_v15  ;;  %v576_v19 = vpop.f32.mrb[11].mxu1 }
 0x37d   :  { %v588_v20 = vpack.c.bf16 %v576_v19, %v573_v16  ;;  %v1397_v22 = vld [vmem:[#allocation3 + $0x8] sm:$0xff] }
 0x37e   :  { %591 = vst.msk [vmem:[#allocation3 + $0x18] sm:$0xff] %vm319_vm3, %v589_v18  ;;  %v1396_v21 = vld [vmem:[#allocation3] sm:$0xff] }
 0x37f   :  { %590 = vst.msk [vmem:[#allocation3 + $0x10] sm:$0xff] %vm319_vm3, %v588_v20  ;;  %4080 = vmatprep.mubr.msk.bf16.mxu0 %vm319_vm3, %v1396_v21  ;;  %4114 = vmatprep.mubr.msk.bf16.mxu1 %vm319_vm3, %v1396_v21 }
 0x380   :  { %4081 = vmatmul.mubr.msk.bf16.vlgmr.msra.gmra.mrb[36].mxu0 %vm319_vm3, %v1397_v22  ;;  %4115 = vmatmul.mubr.msk.bf16.vlgmr.msra.gmra.mrb[36].mxu1 %vm319_vm3, %v1397_v22 }
 0x381   :  { %v4016_v23 = vpop.f32.mrb[12].mxu1 }
 0x382   :  { %v706_v24 = vpop.f32.mrb[13].mxu1 }
 0x383   :  { %v4017_v25 = vpop.f32.mrb[14].mxu1 }
 0x384   :  { %v722_v26 = vpack.c.bf16 %v4017_v25, %v4016_v23  ;;  %v709_v27 = vpop.f32.mrb[15].mxu1 }
 0x385   :  { %v721_v28 = vpack.c.bf16 %v709_v27, %v706_v24  ;;  %v1399_v30 = vld [vmem:[#allocation3 + $0x18] sm:$0xff] }
 0x386   :  { %v1398_v29 = vld [vmem:[#allocation3 + $0x10] sm:$0xff]  ;;  %724 = vst.msk [vmem:[#allocation3 + $0x28] sm:$0xff] %vm319_vm3, %v722_v26 }
 0x387   :  { %4084 = vmatprep.mubr.msk.bf16.mxu0 %vm319_vm3, %v1398_v29  ;;  %4118 = vmatprep.mubr.msk.bf16.mxu1 %vm319_vm3, %v1398_v29  ;;  %723 = vst.msk [vmem:[#allocation3 + $0x20] sm:$0xff] %vm319_vm3, %v721_v28  ;;  %v5122_v29 = vld [vmem:[#allocation26] sm:$0xff] }
 0x388   :  { %4085 = vmatmul.mubr.msk.bf16.gmra.mrb[40].mxu0 %vm319_vm3, %v1399_v30  ;;  %4119 = vmatmul.mubr.msk.bf16.gmra.mrb[40].mxu1 %vm319_vm3, %v1399_v30 }
 0x389   :  { %v4028_v31 = vpop.f32.mrb[16].mxu1 }
 0x38a   :  { %v841_v32 = vpop.f32.mrb[17].mxu1 }
 0x38b   :  { %v4029_v33 = vpop.f32.mrb[18].mxu1 }
 0x38c   :  { %v857_v34 = vpack.c.bf16 %v4029_v33, %v4028_v31  ;;  %v844_v35 = vpop.f32.mrb[19].mxu1 }
 0x38d   :  { %v856_v36 = vpack.c.bf16 %v844_v35, %v841_v32  ;;  %v1667_v37 = vld [vmem:[#allocation3 + $0x28] sm:$0xff] }
 0x38e   :  { %859 = vst.msk [vmem:[#allocation3 + $0x38] sm:$0xff] %vm319_vm3, %v857_v34  ;;  %v1666_v38 = vld [vmem:[#allocation3 + $0x20] sm:$0xff] }
 0x38f   :  { %858 = vst.msk [vmem:[#allocation3 + $0x30] sm:$0xff] %vm319_vm3, %v856_v36  ;;  %4122 = vmatprep.mubr.msk.bf16.mxu1 %vm319_vm3, %v1666_v38  ;;  %4088 = vmatprep.mubr.msk.bf16.mxu0 %vm319_vm3, %v1666_v38  ;;  %v5126_v35 = vld [vmem:[#allocation26 + $0x8] sm:$0xff] }
 0x390   :  { %4123 = vmatmul.mubr.msk.bf16.gmra.mrb[44].mxu1 %vm319_vm3, %v1667_v37  ;;  %4089 = vmatmul.mubr.msk.bf16.gmra.mrb[44].mxu0 %vm319_vm3, %v1667_v37 }
 0x391   :  { %v4040_v39 = vpop.f32.mrb[20].mxu1 }
 0x392   :  { %v974_v40 = vpop.f32.mrb[21].mxu1 }
 0x393   :  { %v4041_v41 = vpop.f32.mrb[22].mxu1 }
 0x394   :  { %v990_v42 = vpack.c.bf16 %v4041_v41, %v4040_v39  ;;  %v977_v43 = vpop.f32.mrb[23].mxu1 }
 0x395   :  { %v989_v44 = vpack.c.bf16 %v977_v43, %v974_v40  ;;  %v1669_v45 = vld [vmem:[#allocation3 + $0x38] sm:$0xff] }
 0x396   :  { %992 = vst.msk [vmem:[#allocation3 + $0x48] sm:$0xff] %vm319_vm3, %v990_v42  ;;  %v1668_v46 = vld [vmem:[#allocation3 + $0x30] sm:$0xff] }
 0x397   :  { %4126 = vmatprep.mubr.msk.bf16.mxu1 %vm319_vm3, %v1668_v46  ;;  %991 = vst.msk [vmem:[#allocation3 + $0x40] sm:$0xff] %vm319_vm3, %v989_v44  ;;  %4092 = vmatprep.mubr.msk.bf16.mxu0 %vm319_vm3, %v1668_v46 }
 0x398   :  { %4127 = vmatmul.mubr.msk.bf16.gmra.mrb[48].mxu1 %vm319_vm3, %v1669_v45  ;;  %4093 = vmatmul.mubr.msk.bf16.gmra.mrb[48].mxu0 %vm319_vm3, %v1669_v45 }
 0x399   :  { %v4052_v47 = vpop.f32.mrb[24].mxu1 }
 0x39a   :  { %v1109_v48 = vpop.f32.mrb[25].mxu1 }
 0x39b   :  { %v4053_v49 = vpop.f32.mrb[26].mxu1 }
 0x39c   :  { %v1125_v50 = vpack.c.bf16 %v4053_v49, %v4052_v47  ;;  %v1112_v51 = vpop.f32.mrb[27].mxu1 }
 0x39d   :  { %v1124_v52 = vpack.c.bf16 %v1112_v51, %v1109_v48  ;;  %v1671_v53 = vld [vmem:[#allocation3 + $0x48] sm:$0xff] }
 0x39e   :  { %1127 = vst.msk [vmem:[#allocation3 + $0x58] sm:$0xff] %vm319_vm3, %v1125_v50  ;;  %v1670_v54 = vld [vmem:[#allocation3 + $0x40] sm:$0xff] }
 0x39f   :  { %1126 = vst.msk [vmem:[#allocation3 + $0x50] sm:$0xff] %vm319_vm3, %v1124_v52  ;;  %4130 = vmatprep.mubr.msk.bf16.mxu1 %vm319_vm3, %v1670_v54  ;;  %4096 = vmatprep.mubr.msk.bf16.mxu0 %vm319_vm3, %v1670_v54 }
 0x3a0   :  { %4131 = vmatmul.mubr.msk.bf16.gmra.mrb[52].mxu1 %vm319_vm3, %v1671_v53  ;;  %4097 = vmatmul.mubr.msk.bf16.gmra.mrb[52].mxu0 %vm319_vm3, %v1671_v53 }
 0x3a1   :  { %v4064_v55 = vpop.f32.mrb[28].mxu1 }
 0x3a2   :  { %v1242_v56 = vpop.f32.mrb[29].mxu1 }
 0x3a3   :  { %v4065_v57 = vpop.f32.mrb[30].mxu1 }
 0x3a4   :  { %v1258_v58 = vpack.c.bf16 %v4065_v57, %v4064_v55  ;;  %v1245_v59 = vpop.f32.mrb[31].mxu1  ;;  %v4362_v55 = vld [vmem:[#allocation22 + $0x8] sm:$0xff]  }
 0x3a5   :  { %v1257_v60 = vpack.c.bf16 %v1245_v59, %v1242_v56  ;;  %v1673_v61 = vld [vmem:[#allocation3 + $0x58] sm:$0xff] }
 0x3a6   :  { %1260 = vst.msk [vmem:[#allocation3 + $0x68] sm:$0xff] %vm319_vm3, %v1258_v58  ;;  %v1672_v62 = vld [vmem:[#allocation3 + $0x50] sm:$0xff] }
 0x3a7   :  { %4134 = vmatprep.mubr.msk.bf16.mxu1 %vm319_vm3, %v1672_v62  ;;  %1259 = vst.msk [vmem:[#allocation3 + $0x60] sm:$0xff] %vm319_vm3, %v1257_v60  ;;  %4100 = vmatprep.mubr.msk.bf16.mxu0 %vm319_vm3, %v1672_v62 }
 0x3a8   :  { %4135 = vmatmul.mubr.msk.bf16.gmra.mrb[56].mxu1 %vm319_vm3, %v1673_v61  ;;  %4101 = vmatmul.mubr.msk.bf16.gmra.mrb[56].mxu0 %vm319_vm3, %v1673_v61 }
 0x3a9   :  { %v4076_v63 = vpop.f32.mrb[32].mxu1 }
 0x3aa   :  { %v1377_v0 = vpop.f32.mrb[33].mxu1 }
 0x3ab   :  { %v4077_v1 = vpop.f32.mrb[34].mxu1 }
 0x3ac   :  { %v1393_v2 = vpack.c.bf16 %v4077_v1, %v4076_v63  ;;  %v1380_v3 = vpop.f32.mrb[35].mxu1  ;;  %v4365_v1 = vld [vmem:[#allocation20] sm:$0xff]  }
 0x3ad   :  { %v1392_v4 = vpack.c.bf16 %v1380_v3, %v1377_v0  ;;  %v1675_v5 = vld [vmem:[#allocation3 + $0x68] sm:$0xff] }
 0x3ae   :  { %1395 = vst.msk [vmem:[#allocation3 + $0x78] sm:$0xff] %vm319_vm3, %v1393_v2  ;;  %v1674_v6 = vld [vmem:[#allocation3 + $0x60] sm:$0xff] }
 0x3af   :  { %1394 = vst.msk [vmem:[#allocation3 + $0x70] sm:$0xff] %vm319_vm3, %v1392_v4  ;;  %4138 = vmatprep.mubr.msk.bf16.mxu1 %vm319_vm3, %v1674_v6  ;;  %4104 = vmatprep.mubr.msk.bf16.mxu0 %vm319_vm3, %v1674_v6 }
 0x3b0   :  { %4139 = vmatmul.mubr.msk.bf16.gmra.mrb[60].mxu1 %vm319_vm3, %v1675_v5  ;;  %4105 = vmatmul.mubr.msk.bf16.gmra.mrb[60].mxu0 %vm319_vm3, %v1675_v5 }
 0x3b5   :  { %v1677_v7 = vld [vmem:[#allocation3 + $0x78] sm:$0xff] }
 0x3b6   :  { %v1676_v8 = vld [vmem:[#allocation3 + $0x70] sm:$0xff] }
 0x3b7   :  { %4142 = vmatprep.mubr.msk.bf16.mxu1 %vm319_vm3, %v1676_v8  ;;  %4108 = vmatprep.mubr.msk.bf16.mxu0 %vm319_vm3, %v1676_v8 }
 0x3b8   :  { %4143 = vmatmul.mubr.msk.bf16.gmra.mrb[64].mxu1 %vm319_vm3, %v1677_v7  ;;  %4109 = vmatmul.mubr.msk.bf16.gmra.mrb[64].mxu0 %vm319_vm3, %v1677_v7 }
 0x3b9   :  { %4148 = vmatprep.mubr.msk.bf16.mxu0 %vm319_vm3, %v4361_v9  ;;  %4160 = vmatprep.mubr.msk.bf16.mxu1 %vm319_vm3, %v4363_v10 }
 0x453   :  { %v4082_v11 = vpop.f32.mrb[36].mxu0  ;;  %v4116_v12 = vpop.f32.mrb[36].mxu1 }
 0x454   :  { %1632 = vst.msk [vmem:[#allocation4 + $0x10] sm:$0xff] %vm1629_vm4, %v4082_v11  ;;  %1897 = vst.msk [vmem:[#allocation5 + $0x10] sm:$0xff] %vm1629_vm4, %v4116_v12  ;;  %v1502_v13 = vpop.f32.mrb[37].mxu0  ;;  %v1768_v14 = vpop.f32.mrb[37].mxu1 }
 0x455   :  { %1630 = vst.msk [vmem:[#allocation4] sm:$0xff] %vm1629_vm4, %v1502_v13  ;;  %1895 = vst.msk [vmem:[#allocation5] sm:$0xff] %vm1629_vm4, %v1768_v14  ;;  %v4083_v15 = vpop.f32.mrb[38].mxu0  ;;  %v4117_v16 = vpop.f32.mrb[38].mxu1 }
 0x456   :  { %1633 = vst.msk [vmem:[#allocation4 + $0x18] sm:$0xff] %vm1629_vm4, %v4083_v15  ;;  %1898 = vst.msk [vmem:[#allocation5 + $0x18] sm:$0xff] %vm1629_vm4, %v4117_v16  ;;  %v1505_v17 = vpop.f32.mrb[39].mxu0  ;;  %v1771_v18 = vpop.f32.mrb[39].mxu1 }
 0x457   :  { %1631 = vst.msk [vmem:[#allocation4 + $0x8] sm:$0xff] %vm1629_vm4, %v1505_v17  ;;  %1896 = vst.msk [vmem:[#allocation5 + $0x8] sm:$0xff] %vm1629_vm4, %v1771_v18 }
 0x45b   :  { %v4086_v19 = vpop.f32.mrb[40].mxu0  ;;  %v4120_v20 = vpop.f32.mrb[40].mxu1  ;;  %v1939_v21 = vld [vmem:[#allocation4 + $0x10] sm:$0xff] }
 0x45c   :  { %1636 = vst.msk [vmem:[#allocation4 + $0x30] sm:$0xff] %vm1629_vm4, %v4086_v19  ;;  %1901 = vst.msk [vmem:[#allocation5 + $0x30] sm:$0xff] %vm1629_vm4, %v4120_v20  ;;  %v1518_v22 = vpop.f32.mrb[41].mxu0  ;;  %v1784_v23 = vpop.f32.mrb[41].mxu1  ;;  %v1937_v24 = vld [vmem:[#allocation5] sm:$0xff]  ;;  %v1931_v26 = vld [vmem:[#allocation5 + $0x10] sm:$0xff] }
 0x45d   :  { %v1929_v25 = vld [vmem:[#allocation4] sm:$0xff]  ;;  %1634 = vst.msk [vmem:[#allocation4 + $0x20] sm:$0xff] %vm1629_vm4, %v1518_v22  ;;  %1899 = vst.msk [vmem:[#allocation5 + $0x20] sm:$0xff] %vm1629_vm4, %v1784_v23  ;;  %v4087_v27 = vpop.f32.mrb[42].mxu0  ;;  %v4121_v28 = vpop.f32.mrb[42].mxu1  ;;  %v1940_v30 = vld [vmem:[#allocation4 + $0x18] sm:$0xff]  ;;  %v1941_v31 = vadd.f32 %v1939_v21, %v1937_v24 }
 0x45e   :  { %v1932_v32 = vld [vmem:[#allocation5 + $0x18] sm:$0xff]  ;;  %1637 = vst.msk [vmem:[#allocation4 + $0x38] sm:$0xff] %vm1629_vm4, %v4087_v27  ;;  %1902 = vst.msk [vmem:[#allocation5 + $0x38] sm:$0xff] %vm1629_vm4, %v4121_v28  ;;  %v1521_v33 = vpop.f32.mrb[43].mxu0  ;;  %v1787_v34 = vpop.f32.mrb[43].mxu1  ;;  %v1938_v36 = vld [vmem:[#allocation5 + $0x8] sm:$0xff]  ;;  %v1933_v39 = vsub.f32 %v1929_v25, %v1931_v26 }
 0x45f   :  { %v1930_v37 = vld [vmem:[#allocation4 + $0x8] sm:$0xff]  ;;  %1635 = vst.msk [vmem:[#allocation4 + $0x28] sm:$0xff] %vm1629_vm4, %v1521_v33  ;;  %1900 = vst.msk [vmem:[#allocation5 + $0x28] sm:$0xff] %vm1629_vm4, %v1787_v34  ;;  %v1942_v38 = vadd.f32 %v1940_v30, %v1938_v36  ;;  %v1943_v41 = vmul.f32 %v1941_v31, %v5122_v29  ;;  %v4366_v34 = vld [vmem:[#allocation20 + $0x8] sm:$0xff]  }
 0x460   :  { %v1934_v40 = vsub.f32 %v1930_v37, %v1932_v32  ;;  %v1935_v45 = vmul.f32 %v1933_v39, %v5122_v29  ;;  %v4364_v19 = vld [vmem:[#allocation22 + $0x8] sm:$0xff]   ;;  %v4367_v26 = vld [vmem:[#allocation20] sm:$0xff]   ;;  %v4369_v39 = vld [vmem:[#allocation22] sm:$0xff]  }
 0x461   :  { %v1944_v42 = vmul.f32 %v1942_v38, %v5126_v35 }
 0x462   :  { %v1936_v43 = vmul.f32 %v1934_v40, %v5126_v35 }
 0x463   :  { %v1954_v44 = vpack.c.bf16 %v1944_v42, %v1943_v41  ;;  %v2101_v46 = vld [vmem:[#allocation4 + $0x30] sm:$0xff]  ;;  %v4124_v47 = vpop.f32.mrb[44].mxu1  ;;  %v4090_v48 = vpop.f32.mrb[44].mxu0 }
 0x464   :  { %v2099_v49 = vld [vmem:[#allocation5 + $0x20] sm:$0xff]  ;;  %v2093_v51 = vld [vmem:[#allocation5 + $0x30] sm:$0xff]  ;;  %1905 = vst.msk [vmem:[#allocation5 + $0x50] sm:$0xff] %vm1629_vm4, %v4124_v47  ;;  %1640 = vst.msk [vmem:[#allocation4 + $0x50] sm:$0xff] %vm1629_vm4, %v4090_v48  ;;  %v1800_v52 = vpop.f32.mrb[45].mxu1  ;;  %v1534_v53 = vpop.f32.mrb[45].mxu0  ;;  %v1949_v54 = vpack.c.bf16 %v1936_v43, %v1935_v45 }
 0x465   :  { %v2091_v50 = vld [vmem:[#allocation4 + $0x20] sm:$0xff]  ;;  %4146 = vmatprep.subr.bf16.mxu0 %v1954_v44  ;;  %v2102_v56 = vld [vmem:[#allocation4 + $0x38] sm:$0xff]  ;;  %v2103_v57 = vadd.f32 %v2101_v46, %v2099_v49  ;;  %1903 = vst.msk [vmem:[#allocation5 + $0x40] sm:$0xff] %vm1629_vm4, %v1800_v52  ;;  %1638 = vst.msk [vmem:[#allocation4 + $0x40] sm:$0xff] %vm1629_vm4, %v1534_v53  ;;  %v4125_v59 = vpop.f32.mrb[46].mxu1  ;;  %v4091_v60 = vpop.f32.mrb[46].mxu0 }
 0x466   :  { %v2094_v58 = vld [vmem:[#allocation5 + $0x38] sm:$0xff]  ;;  %4147 = vmatpush3.bf16.msra.mxu0 %v1954_v44  ;;  %v2100_v61 = vld [vmem:[#allocation5 + $0x28] sm:$0xff]  ;;  %1906 = vst.msk [vmem:[#allocation5 + $0x58] sm:$0xff] %vm1629_vm4, %v4125_v59  ;;  %1641 = vst.msk [vmem:[#allocation4 + $0x58] sm:$0xff] %vm1629_vm4, %v4091_v60  ;;  %v1803_v63 = vpop.f32.mrb[47].mxu1  ;;  %v1537_v0 = vpop.f32.mrb[47].mxu0  ;;  %v2095_v3 = vsub.f32 %v2091_v50, %v2093_v51 }
 0x467   :  { %v2092_v62 = vld [vmem:[#allocation4 + $0x28] sm:$0xff]  ;;  %4152 = vmatprep.subr.bf16.mxu0 %v1949_v54  ;;  %v2104_v2 = vadd.f32 %v2102_v56, %v2100_v61  ;;  %1904 = vst.msk [vmem:[#allocation5 + $0x48] sm:$0xff] %vm1629_vm4, %v1803_v63  ;;  %1639 = vst.msk [vmem:[#allocation4 + $0x48] sm:$0xff] %vm1629_vm4, %v1537_v0  ;;  %v2105_v5 = vmul.f32 %v2103_v57, %v5122_v29  ;;  %v4368_v63 = vld [vmem:[#allocation20 + $0x8] sm:$0xff]  }
 0x468   :  { %v2096_v4 = vsub.f32 %v2092_v62, %v2094_v58  ;;  %v2097_v9 = vmul.f32 %v2095_v3, %v5122_v29 }
 0x469   :  { %4149 = vmatmul.mubr.msk.bf16.vlgmr.msra.gmra.mrb[68].mxu0 %vm319_vm3, %v4362_v55  ;;  %v2106_v6 = vmul.f32 %v2104_v2, %v5126_v35  ;;  %v4370_v2 = vld [vmem:[#allocation22 + $0x8] sm:$0xff]  }
 0x46a   :  { %v2098_v7 = vmul.f32 %v2096_v4, %v5126_v35  ;;  %4153 = vmatpush3.bf16.msra.mxu0 %v1949_v54  ;;  %4154 = vmatprep.mubr.msk.bf16.mxu0 %vm319_vm3, %v4365_v1 }
 0x46b   :  { %v2116_v8 = vpack.c.bf16 %v2106_v6, %v2105_v5  ;;  %v4128_v10 = vpop.f32.mrb[48].mxu1  ;;  %v4094_v11 = vpop.f32.mrb[48].mxu0  ;;  %v2263_v12 = vld [vmem:[#allocation4 + $0x50] sm:$0xff] }
 0x46c   :  { %1909 = vst.msk [vmem:[#allocation5 + $0x70] sm:$0xff] %vm1629_vm4, %v4128_v10  ;;  %1644 = vst.msk [vmem:[#allocation4 + $0x70] sm:$0xff] %vm1629_vm4, %v4094_v11  ;;  %v1816_v13 = vpop.f32.mrb[49].mxu1  ;;  %v1550_v14 = vpop.f32.mrb[49].mxu0  ;;  %v2261_v15 = vld [vmem:[#allocation5 + $0x40] sm:$0xff]  ;;  %v2255_v17 = vld [vmem:[#allocation5 + $0x50] sm:$0xff]  ;;  %v2111_v18 = vpack.c.bf16 %v2098_v7, %v2097_v9 }
 0x46d   :  { %v2253_v16 = vld [vmem:[#allocation4 + $0x40] sm:$0xff]  ;;  %4158 = vmatprep.subr.bf16.mxu1 %v2116_v8  ;;  %1907 = vst.msk [vmem:[#allocation5 + $0x60] sm:$0xff] %vm1629_vm4, %v1816_v13  ;;  %1642 = vst.msk [vmem:[#allocation4 + $0x60] sm:$0xff] %vm1629_vm4, %v1550_v14  ;;  %v4129_v20 = vpop.f32.mrb[50].mxu1  ;;  %v4095_v21 = vpop.f32.mrb[50].mxu0  ;;  %v2264_v22 = vld [vmem:[#allocation4 + $0x58] sm:$0xff]  ;;  %v2265_v23 = vadd.f32 %v2263_v12, %v2261_v15 }
 0x46e   :  { %v2256_v24 = vld [vmem:[#allocation5 + $0x58] sm:$0xff]  ;;  %4159 = vmatpush3.bf16.msra.mxu1 %v2116_v8  ;;  %1910 = vst.msk [vmem:[#allocation5 + $0x78] sm:$0xff] %vm1629_vm4, %v4129_v20  ;;  %1645 = vst.msk [vmem:[#allocation4 + $0x78] sm:$0xff] %vm1629_vm4, %v4095_v21  ;;  %v1819_v25 = vpop.f32.mrb[51].mxu1  ;;  %v1553_v27 = vpop.f32.mrb[51].mxu0  ;;  %v2262_v28 = vld [vmem:[#allocation5 + $0x48] sm:$0xff]  ;;  %v2257_v32 = vsub.f32 %v2253_v16, %v2255_v17 }
 0x46f   :  { %v2254_v30 = vld [vmem:[#allocation4 + $0x48] sm:$0xff]  ;;  %4164 = vmatprep.subr.bf16.mxu1 %v2111_v18  ;;  %1908 = vst.msk [vmem:[#allocation5 + $0x68] sm:$0xff] %vm1629_vm4, %v1819_v25  ;;  %1643 = vst.msk [vmem:[#allocation4 + $0x68] sm:$0xff] %vm1629_vm4, %v1553_v27  ;;  %v2266_v31 = vadd.f32 %v2264_v22, %v2262_v28  ;;  %v2267_v36 = vmul.f32 %v2265_v23, %v5122_v29  ;;  %v4371_v7 = vld [vmem:[#allocation22] sm:$0xff]  }
 0x470   :  { %v2258_v33 = vsub.f32 %v2254_v30, %v2256_v24  ;;  %v2259_v44 = vmul.f32 %v2257_v32, %v5122_v29  ;;  %v4373_v12 = vld [vmem:[#allocation20] sm:$0xff]   ;;  %v4372_v28 = vld [vmem:[#allocation22 + $0x8] sm:$0xff]  }
 0x471   :  { %4161 = vmatmul.mubr.msk.bf16.vlgmr.msra.gmra.mrb[68].mxu1 %vm319_vm3, %v4364_v19  ;;  %v2268_v37 = vmul.f32 %v2266_v31, %v5126_v35  ;;  %v4375_v31 = vld [vmem:[#allocation20] sm:$0xff]  }
 0x472   :  { %v2260_v38 = vmul.f32 %v2258_v33, %v5126_v35  ;;  %4165 = vmatpush3.bf16.msra.mxu1 %v2111_v18  ;;  %4166 = vmatprep.mubr.msk.bf16.mxu1 %vm319_vm3, %v4367_v26 }
 0x473   :  { %v4132_v40 = vpop.f32.mrb[52].mxu1  ;;  %v4098_v41 = vpop.f32.mrb[52].mxu0  ;;  %v2278_v42 = vpack.c.bf16 %v2268_v37, %v2267_v36  ;;  %v2425_v43 = vld [vmem:[#allocation4 + $0x70] sm:$0xff] }
 0x474   :  { %1913 = vst.msk [vmem:[#allocation5 + $0x90] sm:$0xff] %vm1629_vm4, %v4132_v40  ;;  %1648 = vst.msk [vmem:[#allocation4 + $0x90] sm:$0xff] %vm1629_vm4, %v4098_v41  ;;  %v1832_v45 = vpop.f32.mrb[53].mxu1  ;;  %v1566_v46 = vpop.f32.mrb[53].mxu0  ;;  %v2423_v47 = vld [vmem:[#allocation5 + $0x60] sm:$0xff]  ;;  %v2417_v48 = vld [vmem:[#allocation5 + $0x70] sm:$0xff]  ;;  %v2273_v53 = vpack.c.bf16 %v2260_v38, %v2259_v44 }
 0x475   :  { %4155 = vmatmul.mubr.msk.bf16.vlgmr.msra.gmra.mrb[68].mxu0 %vm319_vm3, %v4366_v34  ;;  %1911 = vst.msk [vmem:[#allocation5 + $0x80] sm:$0xff] %vm1629_vm4, %v1832_v45  ;;  %4170 = vmatprep.subr.bf16.mxu0 %v2278_v42  ;;  %1646 = vst.msk [vmem:[#allocation4 + $0x80] sm:$0xff] %vm1629_vm4, %v1566_v46  ;;  %v4133_v49 = vpop.f32.mrb[54].mxu1  ;;  %v2426_v50 = vld [vmem:[#allocation4 + $0x78] sm:$0xff]  ;;  %v2427_v51 = vadd.f32 %v2425_v43, %v2423_v47  ;;  %v4099_v52 = vpop.f32.mrb[54].mxu0  ;;  %v2415_v54 = vld [vmem:[#allocation4 + $0x60] sm:$0xff] }
 0x476   :  { %v2418_v55 = vld [vmem:[#allocation5 + $0x78] sm:$0xff]  ;;  %1914 = vst.msk [vmem:[#allocation5 + $0x98] sm:$0xff] %vm1629_vm4, %v4133_v49  ;;  %4171 = vmatpush3.bf16.msra.mxu0 %v2278_v42  ;;  %v2424_v56 = vld [vmem:[#allocation5 + $0x68] sm:$0xff]  ;;  %1649 = vst.msk [vmem:[#allocation4 + $0x98] sm:$0xff] %vm1629_vm4, %v4099_v52  ;;  %v1835_v57 = vpop.f32.mrb[55].mxu1  ;;  %v1569_v58 = vpop.f32.mrb[55].mxu0  ;;  %4172 = vmatprep.mubr.msk.bf16.mxu0 %vm319_vm3, %v4369_v39  ;;  %v2419_v62 = vsub.f32 %v2415_v54, %v2417_v48 }
 0x477   :  { %v2416_v59 = vld [vmem:[#allocation4 + $0x68] sm:$0xff]  ;;  %v2428_v60 = vadd.f32 %v2426_v50, %v2424_v56  ;;  %1912 = vst.msk [vmem:[#allocation5 + $0x88] sm:$0xff] %vm1629_vm4, %v1835_v57  ;;  %1647 = vst.msk [vmem:[#allocation4 + $0x88] sm:$0xff] %vm1629_vm4, %v1569_v58  ;;  %4176 = vmatprep.subr.bf16.mxu0 %v2273_v53  ;;  %v2429_v0 = vmul.f32 %v2427_v51, %v5122_v29  ;;  %v4374_v42 = vld [vmem:[#allocation20 + $0x8] sm:$0xff]  }
 0x478   :  { %v2420_v61 = vsub.f32 %v2416_v59, %v2418_v55  ;;  %v2421_v11 = vmul.f32 %v2419_v62, %v5122_v29  ;;  %v4377_v50 = vld [vmem:[#allocation22] sm:$0xff]  }
 0x479   :  { %v2430_v1 = vmul.f32 %v2428_v60, %v5126_v35 }
 0x47a   :  { %v2422_v3 = vmul.f32 %v2420_v61, %v5126_v35 }
 0x47b   :  { %v2440_v4 = vpack.c.bf16 %v2430_v1, %v2429_v0  ;;  %v4136_v5 = vpop.f32.mrb[56].mxu1  ;;  %v4102_v6 = vpop.f32.mrb[56].mxu0  ;;  %v2587_v8 = vld [vmem:[#allocation4 + $0x90] sm:$0xff] }
 0x47c   :  { %1917 = vst.msk [vmem:[#allocation5 + $0xb0] sm:$0xff] %vm1629_vm4, %v4136_v5  ;;  %1652 = vst.msk [vmem:[#allocation4 + $0xb0] sm:$0xff] %vm1629_vm4, %v4102_v6  ;;  %v1848_v9 = vpop.f32.mrb[57].mxu1  ;;  %v1582_v10 = vpop.f32.mrb[57].mxu0  ;;  %v2585_v13 = vld [vmem:[#allocation5 + $0x80] sm:$0xff]  ;;  %v2435_v19 = vpack.c.bf16 %v2422_v3, %v2421_v11  ;;  %v2579_v22 = vld [vmem:[#allocation5 + $0x90] sm:$0xff] }
 0x47d   :  { %4167 = vmatmul.mubr.msk.bf16.vlgmr.msra.gmra.mrb[68].mxu1 %vm319_vm3, %v4368_v63  ;;  %4182 = vmatprep.subr.bf16.mxu1 %v2440_v4  ;;  %1915 = vst.msk [vmem:[#allocation5 + $0xa0] sm:$0xff] %vm1629_vm4, %v1848_v9  ;;  %1650 = vst.msk [vmem:[#allocation4 + $0xa0] sm:$0xff] %vm1629_vm4, %v1582_v10  ;;  %v4137_v14 = vpop.f32.mrb[58].mxu1  ;;  %v4103_v15 = vpop.f32.mrb[58].mxu0  ;;  %v2588_v16 = vld [vmem:[#allocation4 + $0x98] sm:$0xff]  ;;  %v2589_v17 = vadd.f32 %v2587_v8, %v2585_v13  ;;  %v2577_v25 = vld [vmem:[#allocation4 + $0x80] sm:$0xff] }
 0x47e   :  { %4183 = vmatpush3.bf16.msra.mxu1 %v2440_v4  ;;  %4173 = vmatmul.mubr.msk.bf16.vlgmr.msra.gmra.mrb[72].mxu0 %vm319_vm3, %v4370_v2  ;;  %1918 = vst.msk [vmem:[#allocation5 + $0xb8] sm:$0xff] %vm1629_vm4, %v4137_v14  ;;  %1653 = vst.msk [vmem:[#allocation4 + $0xb8] sm:$0xff] %vm1629_vm4, %v4103_v15  ;;  %v1851_v18 = vpop.f32.mrb[59].mxu1  ;;  %v1585_v20 = vpop.f32.mrb[59].mxu0  ;;  %v2586_v21 = vld [vmem:[#allocation5 + $0x88] sm:$0xff]  ;;  %v2580_v27 = vld [vmem:[#allocation5 + $0x98] sm:$0xff]  ;;  %v2581_v32 = vsub.f32 %v2577_v25, %v2579_v22 }
 0x47f   :  { %4184 = vmatprep.mubr.msk.bf16.mxu1 %vm319_vm3, %v4371_v7  ;;  %1916 = vst.msk [vmem:[#allocation5 + $0xa8] sm:$0xff] %vm1629_vm4, %v1851_v18  ;;  %4177 = vmatpush3.bf16.msra.mxu0 %v2273_v53  ;;  %1651 = vst.msk [vmem:[#allocation4 + $0xa8] sm:$0xff] %vm1629_vm4, %v1585_v20  ;;  %v2590_v23 = vadd.f32 %v2588_v16, %v2586_v21  ;;  %v2591_v24 = vmul.f32 %v2589_v17, %v5122_v29  ;;  %v2578_v26 = vld [vmem:[#allocation4 + $0x88] sm:$0xff]  ;;  %v4376_v6 = vld [vmem:[#allocation20 + $0x8] sm:$0xff]  }
 0x480   :  { %4188 = vmatprep.subr.bf16.mxu1 %v2435_v19  ;;  %4178 = vmatprep.mubr.msk.bf16.mxu0 %vm319_vm3, %v4373_v12  ;;  %v2582_v33 = vsub.f32 %v2578_v26, %v2580_v27  ;;  %v2583_v51 = vmul.f32 %v2581_v32, %v5122_v29  ;;  %v4378_v11 = vld [vmem:[#allocation22 + $0x8] sm:$0xff]   ;;  %v4379_v17 = vld [vmem:[#allocation22] sm:$0xff]   ;;  %v4381_v20 = vld [vmem:[#allocation20] sm:$0xff]  }
 0x481   :  { %v2592_v30 = vmul.f32 %v2590_v23, %v5126_v35 }
 0x482   :  { %v2584_v52 = vmul.f32 %v2582_v33, %v5126_v35  ;;  %v4380_v33 = vld [vmem:[#allocation22 + $0x8] sm:$0xff]  }
 0x483   :  { %v4140_v34 = vpop.f32.mrb[60].mxu1  ;;  %v4106_v36 = vpop.f32.mrb[60].mxu0  ;;  %v2602_v37 = vpack.c.bf16 %v2592_v30, %v2591_v24  ;;  %v2749_v38 = vld [vmem:[#allocation4 + $0xb0] sm:$0xff] }
 0x484   :  { %1921 = vst.msk [vmem:[#allocation5 + $0xd0] sm:$0xff] %vm1629_vm4, %v4140_v34  ;;  %1656 = vst.msk [vmem:[#allocation4 + $0xd0] sm:$0xff] %vm1629_vm4, %v4106_v36  ;;  %v1864_v39 = vpop.f32.mrb[61].mxu1  ;;  %v1598_v40 = vpop.f32.mrb[61].mxu0  ;;  %v2747_v41 = vld [vmem:[#allocation5 + $0xa0] sm:$0xff]  ;;  %v2741_v53 = vld [vmem:[#allocation5 + $0xb0] sm:$0xff]  ;;  %v2597_v60 = vpack.c.bf16 %v2584_v52, %v2583_v51 }
 0x485   :  { %4185 = vmatmul.mubr.msk.bf16.vlgmr.msra.gmra.mrb[72].mxu1 %vm319_vm3, %v4372_v28  ;;  %1919 = vst.msk [vmem:[#allocation5 + $0xc0] sm:$0xff] %vm1629_vm4, %v1864_v39  ;;  %4194 = vmatprep.subr.bf16.mxu0 %v2602_v37  ;;  %1654 = vst.msk [vmem:[#allocation4 + $0xc0] sm:$0xff] %vm1629_vm4, %v1598_v40  ;;  %v4141_v43 = vpop.f32.mrb[62].mxu1  ;;  %v2750_v44 = vld [vmem:[#allocation4 + $0xb8] sm:$0xff]  ;;  %v2751_v45 = vadd.f32 %v2749_v38, %v2747_v41  ;;  %v4107_v46 = vpop.f32.mrb[62].mxu0  ;;  %v2739_v56 = vld [vmem:[#allocation4 + $0xa0] sm:$0xff] }
 0x486   :  { %4189 = vmatpush3.bf16.msra.mxu1 %v2435_v19  ;;  %4190 = vmatprep.mubr.msk.bf16.mxu1 %vm319_vm3, %v4375_v31  ;;  %1922 = vst.msk [vmem:[#allocation5 + $0xd8] sm:$0xff] %vm1629_vm4, %v4141_v43  ;;  %v2748_v47 = vld [vmem:[#allocation5 + $0xa8] sm:$0xff]  ;;  %1657 = vst.msk [vmem:[#allocation4 + $0xd8] sm:$0xff] %vm1629_vm4, %v4107_v46  ;;  %v1867_v48 = vpop.f32.mrb[63].mxu1  ;;  %v1601_v49 = vpop.f32.mrb[63].mxu0  ;;  %v2742_v58 = vld [vmem:[#allocation5 + $0xb8] sm:$0xff]  ;;  %v2743_v61 = vsub.f32 %v2739_v56, %v2741_v53 }
 0x487   :  { %v2752_v54 = vadd.f32 %v2750_v44, %v2748_v47  ;;  %v2753_v55 = vmul.f32 %v2751_v45, %v5122_v29  ;;  %1920 = vst.msk [vmem:[#allocation5 + $0xc8] sm:$0xff] %vm1629_vm4, %v1867_v48  ;;  %1655 = vst.msk [vmem:[#allocation4 + $0xc8] sm:$0xff] %vm1629_vm4, %v1601_v49  ;;  %v2740_v57 = vld [vmem:[#allocation4 + $0xa8] sm:$0xff] }
 0x488   :  { %v2744_v62 = vsub.f32 %v2740_v57, %v2742_v58  ;;  %v2745_v13 = vmul.f32 %v2743_v61, %v5122_v29  ;;  %v4383_v39 = vld [vmem:[#allocation20] sm:$0xff]   ;;  %v4384_v57 = vld [vmem:[#allocation20 + $0x8] sm:$0xff]   ;;  %v4386_v58 = vld [vmem:[#allocation22 + $0x8] sm:$0xff]  }
 0x489   :  { %v2754_v59 = vmul.f32 %v2752_v54, %v5126_v35  ;;  %v4385_v54 = vld [vmem:[#allocation22] sm:$0xff]   ;;  %v4390_v61 = vld [vmem:[#allocation20 + $0x8] sm:$0xff]  }
 0x48a   :  { %4179 = vmatmul.mubr.msk.bf16.vlgmr.msra.gmra.mrb[72].mxu0 %vm319_vm3, %v4374_v42  ;;  %v2746_v14 = vmul.f32 %v2744_v62, %v5126_v35  ;;  %v4392_v62 = vld [vmem:[#allocation20 + $0x8] sm:$0xff]  }
 0x48b   :  { %4195 = vmatpush3.bf16.msra.mxu0 %v2602_v37  ;;  %v2764_v63 = vpack.c.bf16 %v2754_v59, %v2753_v55  ;;  %v4144_v0 = vpop.f32.mrb[64].mxu1  ;;  %4196 = vmatprep.mubr.msk.bf16.mxu0 %vm319_vm3, %v4377_v50  ;;  %v4110_v1 = vpop.f32.mrb[64].mxu0  ;;  %v2911_v2 = vld [vmem:[#allocation4 + $0xd0] sm:$0xff]  ;;  %v4387_v59 = vld [vmem:[#allocation22] sm:$0xff]  }
 0x48c   :  { %1925 = vst.msk [vmem:[#allocation5 + $0xf0] sm:$0xff] %vm1629_vm4, %v4144_v0  ;;  %1660 = vst.msk [vmem:[#allocation4 + $0xf0] sm:$0xff] %vm1629_vm4, %v4110_v1  ;;  %v1880_v3 = vpop.f32.mrb[65].mxu1  ;;  %v1614_v4 = vpop.f32.mrb[65].mxu0  ;;  %4200 = vmatprep.subr.bf16.mxu0 %v2597_v60  ;;  %v2909_v5 = vld [vmem:[#allocation5 + $0xc0] sm:$0xff]  ;;  %v2759_v22 = vpack.c.bf16 %v2746_v14, %v2745_v13  ;;  %v2903_v24 = vld [vmem:[#allocation5 + $0xd0] sm:$0xff] }
 0x48d   :  { %4206 = vmatprep.subr.bf16.mxu1 %v2764_v63  ;;  %1923 = vst.msk [vmem:[#allocation5 + $0xe0] sm:$0xff] %vm1629_vm4, %v1880_v3  ;;  %1658 = vst.msk [vmem:[#allocation4 + $0xe0] sm:$0xff] %vm1629_vm4, %v1614_v4  ;;  %v4145_v7 = vpop.f32.mrb[66].mxu1  ;;  %v4111_v8 = vpop.f32.mrb[66].mxu0  ;;  %v2912_v9 = vld [vmem:[#allocation4 + $0xd8] sm:$0xff]  ;;  %v2913_v10 = vadd.f32 %v2911_v2, %v2909_v5  ;;  %v2901_v23 = vld [vmem:[#allocation4 + $0xc0] sm:$0xff] }
 0x48e   :  { %1926 = vst.msk [vmem:[#allocation5 + $0xf8] sm:$0xff] %vm1629_vm4, %v4145_v7  ;;  %1661 = vst.msk [vmem:[#allocation4 + $0xf8] sm:$0xff] %vm1629_vm4, %v4111_v8  ;;  %v1883_v12 = vpop.f32.mrb[67].mxu1  ;;  %v1617_v15 = vpop.f32.mrb[67].mxu0  ;;  %v2910_v16 = vld [vmem:[#allocation5 + $0xc8] sm:$0xff]  ;;  %v2904_v25 = vld [vmem:[#allocation5 + $0xd8] sm:$0xff]  ;;  %v2905_v41 = vsub.f32 %v2901_v23, %v2903_v24 }
 0x48f   :  { %1924 = vst.msk [vmem:[#allocation5 + $0xe8] sm:$0xff] %vm1629_vm4, %v1883_v12  ;;  %1659 = vst.msk [vmem:[#allocation4 + $0xe8] sm:$0xff] %vm1629_vm4, %v1617_v15  ;;  %v2914_v18 = vadd.f32 %v2912_v9, %v2910_v16  ;;  %v2915_v19 = vmul.f32 %v2913_v10, %v5122_v29  ;;  %v2902_v28 = vld [vmem:[#allocation4 + $0xc8] sm:$0xff]  ;;  %v4382_v50 = vld [vmem:[#allocation20 + $0x8] sm:$0xff]   ;;  %v4715_v0 = vmov 65535  }
 0x490   :  { %v2906_v42 = vsub.f32 %v2902_v28, %v2904_v25  ;;  %v2907_v51 = vmul.f32 %v2905_v41, %v5122_v29  ;;  %v3263_v1 = vsel %vm246_vm0, 4294967295, %v4715_v0  ;;  %v4394_v2 = vld [vmem:[#allocation25] sm:$0x1f]  }
 0x491   :  { %4191 = vmatmul.mubr.msk.bf16.vlgmr.msra.gmra.mrb[72].mxu1 %vm319_vm3, %v4376_v6  ;;  %v2916_v21 = vmul.f32 %v2914_v18, %v5126_v35  ;;  %v3264_v3 = vsel %vm3262_vm5, %v3263_v1, 0 }
 0x492   :  { %4207 = vmatpush3.bf16.msra.mxu1 %v2764_v63  ;;  %4197 = vmatmul.mubr.msk.bf16.vlgmr.msra.gmra.mrb[76].mxu0 %vm319_vm3, %v4378_v11  ;;  %v2908_v52 = vmul.f32 %v2906_v42, %v5126_v35  ;;  %v4393_v63 = vld [vmem:[#allocation23] sm:$0x1f]   ;;  %v3437_v5 = vand.u32 %v4394_v2, %v3264_v3 }
 0x493   :  { %4208 = vmatprep.mubr.msk.bf16.mxu1 %vm319_vm3, %v4379_v17  ;;  %4201 = vmatpush3.bf16.msra.mxu0 %v2597_v60  ;;  %v2926_v26 = vpack.c.bf16 %v2916_v21, %v2915_v19  ;;  %v3073_v27 = vld [vmem:[#allocation4 + $0xf0] sm:$0xff]  ;;  %v3266_v4 = vand.u32 %v4393_v63, %v3264_v3 }
 0x494   :  { %v3065_v30 = vld [vmem:[#allocation5 + $0xf0] sm:$0xff]  ;;  %4212 = vmatprep.subr.bf16.mxu1 %v2759_v22  ;;  %4202 = vmatprep.mubr.msk.bf16.mxu0 %vm319_vm3, %v4381_v20  ;;  %v3071_v31 = vld [vmem:[#allocation5 + $0xe0] sm:$0xff]  ;;  %v2921_v56 = vpack.c.bf16 %v2908_v52, %v2907_v51 }
 0x495   :  { %v3063_v32 = vld [vmem:[#allocation4 + $0xe0] sm:$0xff]  ;;  %4218 = vmatprep.subr.bf16.mxu0 %v2926_v26  ;;  %v3074_v34 = vld [vmem:[#allocation4 + $0xf8] sm:$0xff]  ;;  %v3075_v36 = vadd.f32 %v3073_v27, %v3071_v31  ;;  %v4389_v60 = vld [vmem:[#allocation20] sm:$0xff]  }
 0x496   :  { %v3066_v37 = vld [vmem:[#allocation5 + $0xf8] sm:$0xff]  ;;  %v3067_v38 = vsub.f32 %v3063_v32, %v3065_v30  ;;  %v3072_v40 = vld [vmem:[#allocation5 + $0xe8] sm:$0xff] }
 0x497   :  { %v3064_v43 = vld [vmem:[#allocation4 + $0xe8] sm:$0xff]  ;;  %v3076_v44 = vadd.f32 %v3074_v34, %v3072_v40  ;;  %v3077_v45 = vmul.f32 %v3075_v36, %v5122_v29 }
 0x498   :  { %v3068_v46 = vsub.f32 %v3064_v43, %v3066_v37  ;;  %v3069_v47 = vmul.f32 %v3067_v38, %v5122_v29  ;;  %v4388_v29 = vld [vmem:[#allocation22 + $0x8] sm:$0xff]  }
 0x499   :  { %4209 = vmatmul.mubr.msk.bf16.vlgmr.msra.gmra.mrb[76].mxu1 %vm319_vm3, %v4380_v33  ;;  %v3078_v48 = vmul.f32 %v3076_v44, %v5126_v35 }
 0x49a   :  { %v3070_v49 = vmul.f32 %v3068_v46, %v5126_v35  ;;  %4213 = vmatpush3.bf16.msra.mxu1 %v2759_v22  ;;  %4214 = vmatprep.mubr.msk.bf16.mxu1 %vm319_vm3, %v4383_v39  ;;  %v4391_v35 = vld [vmem:[#allocation20] sm:$0xff]  }
 0x49b   :  { %v3088_v53 = vpack.c.bf16 %v3078_v48, %v3077_v45 }
 0x49c   :  { %v3083_v55 = vpack.c.bf16 %v3070_v49, %v3069_v47 }
 0x49d   :  { %4230 = vmatprep.subr.bf16.mxu1 %v3088_v53 }
 0x49e   :  { %4203 = vmatmul.mubr.msk.bf16.vlgmr.msra.gmra.mrb[76].mxu0 %vm319_vm3, %v4382_v50 }
 0x49f   :  { %4219 = vmatpush3.bf16.msra.mxu0 %v2926_v26  ;;  %4220 = vmatprep.mubr.msk.bf16.mxu0 %vm319_vm3, %v4385_v54 }
 0x4a0   :  { %4224 = vmatprep.subr.bf16.mxu0 %v2921_v56 }
 0x4a5   :  { %4215 = vmatmul.mubr.msk.bf16.vlgmr.msra.gmra.mrb[76].mxu1 %vm319_vm3, %v4384_v57 }
 0x4a6   :  { %4231 = vmatpush3.bf16.msra.mxu1 %v3088_v53  ;;  %4221 = vmatmul.mubr.msk.bf16.vlgmr.msra.gmra.mrb[80].mxu0 %vm319_vm3, %v4386_v58 }
 0x4a7   :  { %4232 = vmatprep.mubr.msk.bf16.mxu1 %vm319_vm3, %v4387_v59  ;;  %4225 = vmatpush3.bf16.msra.mxu0 %v2921_v56 }
 0x4a8   :  { %4236 = vmatprep.subr.bf16.mxu1 %v3083_v55  ;;  %4226 = vmatprep.mubr.msk.bf16.mxu0 %vm319_vm3, %v4389_v60 }
 0x4a9   :  { %4242 = vmatprep.subr.bf16.mxu0 %v3266_v4 }
 0x4ad   :  { %4233 = vmatmul.mubr.msk.bf16.vlgmr.msra.gmra.mrb[80].mxu1 %vm319_vm3, %v4388_v29 }
 0x4ae   :  { %4237 = vmatpush3.bf16.msra.mxu1 %v3083_v55  ;;  %4238 = vmatprep.mubr.msk.bf16.mxu1 %vm319_vm3, %v4391_v35 }
 0x4af   :  { %4260 = vmatprep.subr.bf16.mxu1 %v3437_v5 }
 0x4b2   :  { %4227 = vmatmul.mubr.msk.bf16.vlgmr.msra.gmra.mrb[80].mxu0 %vm319_vm3, %v4390_v61 }
 0x4b3   :  { %4243 = vmatpush3.bf16.msra.mxu0 %v3266_v4 }
 0x4b9   :  { %4239 = vmatmul.mubr.msk.bf16.vlgmr.msra.gmra.mrb[80].mxu1 %vm319_vm3, %v4392_v62 }
 0x4ba   :  { %4261 = vmatpush3.bf16.msra.mxu1 %v3437_v5 }
 0x548   :  { %v4156_v6 = vpop.f32.mrb[68].mxu0 }
 0x549   :  { %v2070_v7 = vpop.f32.mrb[69].mxu0 }
 0x54a   :  { %v4157_v8 = vpop.f32.mrb[70].mxu0 }
 0x54b   :  { %v2087_v9 = vpack.c.bf16 %v4157_v8, %v4156_v6  ;;  %v2073_v10 = vpop.f32.mrb[71].mxu0 }
 0x54c   :  { %v2085_v11 = vpack.c.bf16 %v2073_v10, %v2070_v7 }
 0x54d   :  { %2088 = vst.msk [vmem:[#allocation7] sm:$0xff] %vm1629_vm4, %v2087_v9 }
 0x54e   :  { %2086 = vst.msk [vmem:[#allocation6] sm:$0xff] %vm1629_vm4, %v2085_v11 }
 0x550   :  { %v4168_v12 = vpop.f32.mrb[68].mxu1 }
 0x551   :  { %v2232_v13 = vpop.f32.mrb[69].mxu1 }
 0x552   :  { %v4169_v14 = vpop.f32.mrb[70].mxu1 }
 0x553   :  { %v2249_v15 = vpack.c.bf16 %v4169_v14, %v4168_v12  ;;  %v2235_v16 = vpop.f32.mrb[71].mxu1 }
 0x554   :  { %v2247_v17 = vpack.c.bf16 %v2235_v16, %v2232_v13  ;;  %v3397_v18 = vld [vmem:[#allocation7] sm:$0xff] }
 0x555   :  { %2250 = vst.msk [vmem:[#allocation7 + $0x8] sm:$0xff] %vm1629_vm4, %v2249_v15  ;;  %v3223_v19 = vld [vmem:[#allocation6] sm:$0xff]  ;;  %4262 = vmatprep.mubr.msk.bf16.mxu1 %vm1629_vm4, %v3397_v18 }
 0x556   :  { %2248 = vst.msk [vmem:[#allocation6 + $0x8] sm:$0xff] %vm1629_vm4, %v2247_v17  ;;  %4244 = vmatprep.mubr.msk.bf16.mxu0 %vm1629_vm4, %v3223_v19 }
 0x55c   :  { %v3398_v20 = vld [vmem:[#allocation7 + $0x8] sm:$0xff] }
 0x55d   :  { %v3224_v21 = vld [vmem:[#allocation6 + $0x8] sm:$0xff]  ;;  %v4180_v22 = vpop.f32.mrb[72].mxu0  ;;  %4263 = vmatmul.mubr.msk.bf16.vlgmr.msra.gmra.mrb[84].mxu1 %vm1629_vm4, %v3398_v20 }
 0x55e   :  { %4245 = vmatmul.mubr.msk.bf16.vlgmr.msra.gmra.mrb[84].mxu0 %vm1629_vm4, %v3224_v21  ;;  %v2394_v23 = vpop.f32.mrb[73].mxu0 }
 0x55f   :  { %v4181_v24 = vpop.f32.mrb[74].mxu0 }
 0x560   :  { %v2411_v25 = vpack.c.bf16 %v4181_v24, %v4180_v22  ;;  %v2397_v26 = vpop.f32.mrb[75].mxu0  ;;  %v3586_v22 = vld [vmem:[#allocation11 + $0x10] sm:$0xff] }
 0x561   :  { %v2409_v27 = vpack.c.bf16 %v2397_v26, %v2394_v23  ;;  %v3584_v23 = vld [vmem:[#allocation11] sm:$0xff] }
 0x562   :  { %2412 = vst.msk [vmem:[#allocation7 + $0x10] sm:$0xff] %vm1629_vm4, %v2411_v25  ;;  %v3587_v25 = vld [vmem:[#allocation11 + $0x18] sm:$0xff] }
 0x563   :  { %2410 = vst.msk [vmem:[#allocation6 + $0x10] sm:$0xff] %vm1629_vm4, %v2409_v27 }
 0x564   :  { %v4192_v28 = vpop.f32.mrb[72].mxu1 }
 0x565   :  { %v2556_v30 = vpop.f32.mrb[73].mxu1 }
 0x566   :  { %v4193_v31 = vpop.f32.mrb[74].mxu1 }
 0x567   :  { %v2573_v32 = vpack.c.bf16 %v4193_v31, %v4192_v28  ;;  %v2559_v33 = vpop.f32.mrb[75].mxu1  ;;  %v3585_v28 = vld [vmem:[#allocation11 + $0x8] sm:$0xff] }
 0x568   :  { %v2571_v34 = vpack.c.bf16 %v2559_v33, %v2556_v30 }
 0x569   :  { %2574 = vst.msk [vmem:[#allocation7 + $0x18] sm:$0xff] %vm1629_vm4, %v2573_v32  ;;  %v3399_v36 = vld [vmem:[#allocation7 + $0x10] sm:$0xff] }
 0x56a   :  { %2572 = vst.msk [vmem:[#allocation6 + $0x18] sm:$0xff] %vm1629_vm4, %v2571_v34  ;;  %v3225_v37 = vld [vmem:[#allocation6 + $0x10] sm:$0xff]  ;;  %4266 = vmatprep.mubr.msk.bf16.mxu1 %vm1629_vm4, %v3399_v36 }
 0x56b   :  { %4248 = vmatprep.mubr.msk.bf16.mxu0 %vm1629_vm4, %v3225_v37 }
 0x570   :  { %v3400_v38 = vld [vmem:[#allocation7 + $0x18] sm:$0xff] }
 0x571   :  { %v3226_v39 = vld [vmem:[#allocation6 + $0x18] sm:$0xff]  ;;  %v4204_v40 = vpop.f32.mrb[76].mxu0  ;;  %4267 = vmatmul.mubr.msk.bf16.gmra.mrb[88].mxu1 %vm1629_vm4, %v3400_v38 }
 0x572   :  { %4249 = vmatmul.mubr.msk.bf16.gmra.mrb[88].mxu0 %vm1629_vm4, %v3226_v39  ;;  %v2718_v41 = vpop.f32.mrb[77].mxu0 }
 0x573   :  { %v4205_v42 = vpop.f32.mrb[78].mxu0 }
 0x574   :  { %v2735_v43 = vpack.c.bf16 %v4205_v42, %v4204_v40  ;;  %v2721_v44 = vpop.f32.mrb[79].mxu0 }
 0x575   :  { %v2733_v45 = vpack.c.bf16 %v2721_v44, %v2718_v41 }
 0x576   :  { %2736 = vst.msk [vmem:[#allocation7 + $0x20] sm:$0xff] %vm1629_vm4, %v2735_v43 }
 0x577   :  { %2734 = vst.msk [vmem:[#allocation6 + $0x20] sm:$0xff] %vm1629_vm4, %v2733_v45 }
 0x578   :  { %v4216_v46 = vpop.f32.mrb[76].mxu1 }
 0x579   :  { %v2880_v47 = vpop.f32.mrb[77].mxu1 }
 0x57a   :  { %v4217_v48 = vpop.f32.mrb[78].mxu1 }
 0x57b   :  { %v2897_v49 = vpack.c.bf16 %v4217_v48, %v4216_v46  ;;  %v2883_v50 = vpop.f32.mrb[79].mxu1 }
 0x57c   :  { %v2895_v51 = vpack.c.bf16 %v2883_v50, %v2880_v47 }
 0x57d   :  { %2898 = vst.msk [vmem:[#allocation7 + $0x28] sm:$0xff] %vm1629_vm4, %v2897_v49  ;;  %v3401_v52 = vld [vmem:[#allocation7 + $0x20] sm:$0xff] }
 0x57e   :  { %2896 = vst.msk [vmem:[#allocation6 + $0x28] sm:$0xff] %vm1629_vm4, %v2895_v51  ;;  %v3227_v53 = vld [vmem:[#allocation6 + $0x20] sm:$0xff]  ;;  %4270 = vmatprep.mubr.msk.bf16.mxu1 %vm1629_vm4, %v3401_v52  ;;  %v3590_v52 = vld [vmem:[#allocation11 + $0x30] sm:$0xff] }
 0x57f   :  { %4252 = vmatprep.mubr.msk.bf16.mxu0 %vm1629_vm4, %v3227_v53  ;;  %v3588_v53 = vld [vmem:[#allocation11 + $0x20] sm:$0xff] }
 0x584   :  { %v3402_v54 = vld [vmem:[#allocation7 + $0x28] sm:$0xff] }
 0x585   :  { %v3228_v55 = vld [vmem:[#allocation6 + $0x28] sm:$0xff]  ;;  %v4228_v56 = vpop.f32.mrb[80].mxu0  ;;  %4271 = vmatmul.mubr.msk.bf16.gmra.mrb[92].mxu1 %vm1629_vm4, %v3402_v54 }
 0x586   :  { %4253 = vmatmul.mubr.msk.bf16.gmra.mrb[92].mxu0 %vm1629_vm4, %v3228_v55  ;;  %v3042_v57 = vpop.f32.mrb[81].mxu0  ;;  %v3591_v55 = vld [vmem:[#allocation11 + $0x38] sm:$0xff] }
 0x587   :  { %v4229_v58 = vpop.f32.mrb[82].mxu0 }
 0x588   :  { %v3059_v59 = vpack.c.bf16 %v4229_v58, %v4228_v56  ;;  %v3045_v60 = vpop.f32.mrb[83].mxu0  ;;  %v3589_v58 = vld [vmem:[#allocation11 + $0x28] sm:$0xff] }
 0x589   :  { %v3057_v29 = vpack.c.bf16 %v3045_v60, %v3042_v57 }
 0x58a   :  { %3060 = vst.msk [vmem:[#allocation7 + $0x30] sm:$0xff] %vm1629_vm4, %v3059_v59 }
 0x58b   :  { %3058 = vst.msk [vmem:[#allocation6 + $0x30] sm:$0xff] %vm1629_vm4, %v3057_v29 }
 0x58c   :  { %v4240_v35 = vpop.f32.mrb[80].mxu1 }
 0x58d   :  { %v3204_v61 = vpop.f32.mrb[81].mxu1 }
 0x58e   :  { %v4241_v62 = vpop.f32.mrb[82].mxu1 }
 0x58f   :  { %v3221_v63 = vpack.c.bf16 %v4241_v62, %v4240_v35  ;;  %v3207_v0 = vpop.f32.mrb[83].mxu1 }
 0x590   :  { %v3219_v1 = vpack.c.bf16 %v3207_v0, %v3204_v61 }
 0x591   :  { %3222 = vst.msk [vmem:[#allocation7 + $0x38] sm:$0xff] %vm1629_vm4, %v3221_v63  ;;  %v3403_v2 = vld [vmem:[#allocation7 + $0x30] sm:$0xff] }
 0x592   :  { %3220 = vst.msk [vmem:[#allocation6 + $0x38] sm:$0xff] %vm1629_vm4, %v3219_v1  ;;  %v3229_v3 = vld [vmem:[#allocation6 + $0x30] sm:$0xff]  ;;  %4274 = vmatprep.mubr.msk.bf16.mxu1 %vm1629_vm4, %v3403_v2 }
 0x593   :  { %4256 = vmatprep.mubr.msk.bf16.mxu0 %vm1629_vm4, %v3229_v3 }
 0x598   :  { %v3404_v4 = vld [vmem:[#allocation7 + $0x38] sm:$0xff] }
 0x599   :  { %v3230_v5 = vld [vmem:[#allocation6 + $0x38] sm:$0xff]  ;;  %4275 = vmatmul.mubr.msk.bf16.gmra.mrb[96].mxu1 %vm1629_vm4, %v3404_v4 }
 0x59a   :  { %4257 = vmatmul.mubr.msk.bf16.gmra.mrb[96].mxu0 %vm1629_vm4, %v3230_v5 }
 0x630   :  { %v4264_v6 = vpop.f32.mrb[84].mxu1 }
 0x631   :  { %v4246_v7 = vpop.f32.mrb[84].mxu0  ;;  %v3473_v8 = vpop.f32.mrb[85].mxu1 }
 0x632   :  { %3367 = vst.msk [vmem:[#allocation28 + $0x10] sm:$0xff] %vm319_vm3, %v4246_v7  ;;  %v3302_v9 = vpop.f32.mrb[85].mxu0  ;;  %v4265_v10 = vpop.f32.mrb[86].mxu1 }
 0x633   :  { %3365 = vst.msk [vmem:[#allocation28] sm:$0xff] %vm319_vm3, %v3302_v9  ;;  %v4247_v11 = vpop.f32.mrb[86].mxu0  ;;  %v3476_v12 = vpop.f32.mrb[87].mxu1 }
 0x634   :  { %3368 = vst.msk [vmem:[#allocation28 + $0x18] sm:$0xff] %vm319_vm3, %v4247_v11  ;;  %v3305_v13 = vpop.f32.mrb[87].mxu0 }
 0x635   :  { %3366 = vst.msk [vmem:[#allocation28 + $0x8] sm:$0xff] %vm319_vm3, %v3305_v13 }
 0x639   :  { %v3383_v14 = vld [vmem:[#allocation28 + $0x10] sm:$0xff] }
 0x63a   :  { %v3538_v15 = vsub.f32 %v3383_v14, %v4264_v6  ;;  %v3381_v16 = vld [vmem:[#allocation28] sm:$0xff] }
 0x63b   :  { %v3536_v17 = vsub.f32 %v3381_v16, %v3473_v8  ;;  %v3384_v18 = vld [vmem:[#allocation28 + $0x18] sm:$0xff]  ;;  %v3594_v14 = vld [vmem:[#allocation11 + $0x50] sm:$0xff] }
 0x63c   :  { %3554 = vst.msk [vmem:[#allocation28 + $0x10] sm:$0xff] %vm319_vm3, %v3538_v15  ;;  %v3539_v19 = vsub.f32 %v3384_v18, %v4265_v10  ;;  %v3382_v20 = vld [vmem:[#allocation28 + $0x8] sm:$0xff]  ;;  %v3592_v15 = vld [vmem:[#allocation11 + $0x40] sm:$0xff] }
 0x63d   :  { %3552 = vst.msk [vmem:[#allocation28] sm:$0xff] %vm319_vm3, %v3536_v17  ;;  %v3537_v21 = vsub.f32 %v3382_v20, %v3476_v12  ;;  %v3595_v17 = vld [vmem:[#allocation11 + $0x58] sm:$0xff]  ;;  %v3593_v20 = vld [vmem:[#allocation11 + $0x48] sm:$0xff] }
 0x63e   :  { %3555 = vst.msk [vmem:[#allocation28 + $0x18] sm:$0xff] %vm319_vm3, %v3539_v19 }
 0x63f   :  { %3553 = vst.msk [vmem:[#allocation28 + $0x8] sm:$0xff] %vm319_vm3, %v3537_v21 }
 0x643   :  { %v3570_v24 = vld [vmem:[#allocation28 + $0x10] sm:$0xff] }
 0x644   :  { %v3602_v26 = vadd.f32 %v3586_v22, %v3570_v24  ;;  %v3568_v27 = vld [vmem:[#allocation28] sm:$0xff]  ;;  %v4268_v30 = vpop.f32.mrb[88].mxu1 }
 0x645   :  { %v3600_v31 = vadd.f32 %v3584_v23, %v3568_v27  ;;  %v3571_v32 = vld [vmem:[#allocation28 + $0x18] sm:$0xff]  ;;  %v4250_v33 = vpop.f32.mrb[88].mxu0  ;;  %v3489_v34 = vpop.f32.mrb[89].mxu1 }
 0x646   :  { %3618 = vst.msk [vmem:[#allocation28 + $0x10] sm:$0xff] %vm319_vm3, %v3602_v26  ;;  %v3603_v36 = vadd.f32 %v3587_v25, %v3571_v32  ;;  %v3569_v37 = vld [vmem:[#allocation28 + $0x8] sm:$0xff]  ;;  %3371 = vst.msk [vmem:[#allocation28 + $0x30] sm:$0xff] %vm319_vm3, %v4250_v33  ;;  %v3318_v38 = vpop.f32.mrb[89].mxu0  ;;  %v4269_v39 = vpop.f32.mrb[90].mxu1 }
 0x647   :  { %3616 = vst.msk [vmem:[#allocation28] sm:$0xff] %vm319_vm3, %v3600_v31  ;;  %v3601_v40 = vadd.f32 %v3585_v28, %v3569_v37  ;;  %3369 = vst.msk [vmem:[#allocation28 + $0x20] sm:$0xff] %vm319_vm3, %v3318_v38  ;;  %v4251_v41 = vpop.f32.mrb[90].mxu0  ;;  %v3492_v42 = vpop.f32.mrb[91].mxu1 }
 0x648   :  { %3619 = vst.msk [vmem:[#allocation28 + $0x18] sm:$0xff] %vm319_vm3, %v3603_v36  ;;  %3372 = vst.msk [vmem:[#allocation28 + $0x38] sm:$0xff] %vm319_vm3, %v4251_v41  ;;  %v3321_v43 = vpop.f32.mrb[91].mxu0 }
 0x649   :  { %3617 = vst.msk [vmem:[#allocation28 + $0x8] sm:$0xff] %vm319_vm3, %v3601_v40  ;;  %3370 = vst.msk [vmem:[#allocation28 + $0x28] sm:$0xff] %vm319_vm3, %v3321_v43 }
 0x64d   :  { %v3387_v44 = vld [vmem:[#allocation28 + $0x30] sm:$0xff] }
 0x64e   :  { %v3542_v45 = vsub.f32 %v3387_v44, %v4268_v30  ;;  %v3385_v46 = vld [vmem:[#allocation28 + $0x20] sm:$0xff] }
 0x64f   :  { %v3540_v47 = vsub.f32 %v3385_v46, %v3489_v34  ;;  %v3388_v48 = vld [vmem:[#allocation28 + $0x38] sm:$0xff]  ;;  %v3598_v44 = vld [vmem:[#allocation11 + $0x70] sm:$0xff] }
 0x650   :  { %3558 = vst.msk [vmem:[#allocation28 + $0x30] sm:$0xff] %vm319_vm3, %v3542_v45  ;;  %v3543_v49 = vsub.f32 %v3388_v48, %v4269_v39  ;;  %v3386_v50 = vld [vmem:[#allocation28 + $0x28] sm:$0xff]  ;;  %v3596_v45 = vld [vmem:[#allocation11 + $0x60] sm:$0xff] }
 0x651   :  { %3556 = vst.msk [vmem:[#allocation28 + $0x20] sm:$0xff] %vm319_vm3, %v3540_v47  ;;  %v3541_v51 = vsub.f32 %v3386_v50, %v3492_v42  ;;  %v3599_v47 = vld [vmem:[#allocation11 + $0x78] sm:$0xff]  ;;  %v3597_v50 = vld [vmem:[#allocation11 + $0x68] sm:$0xff] }
 0x652   :  { %3559 = vst.msk [vmem:[#allocation28 + $0x38] sm:$0xff] %vm319_vm3, %v3543_v49 }
 0x653   :  { %3557 = vst.msk [vmem:[#allocation28 + $0x28] sm:$0xff] %vm319_vm3, %v3541_v51 }
 0x657   :  { %v3574_v54 = vld [vmem:[#allocation28 + $0x30] sm:$0xff] }
 0x658   :  { %v3606_v56 = vadd.f32 %v3590_v52, %v3574_v54  ;;  %v3572_v57 = vld [vmem:[#allocation28 + $0x20] sm:$0xff]  ;;  %v4272_v59 = vpop.f32.mrb[92].mxu1 }
 0x659   :  { %v3604_v60 = vadd.f32 %v3588_v53, %v3572_v57  ;;  %v3575_v29 = vld [vmem:[#allocation28 + $0x38] sm:$0xff]  ;;  %v4254_v35 = vpop.f32.mrb[92].mxu0  ;;  %v3505_v61 = vpop.f32.mrb[93].mxu1 }
 0x65a   :  { %3622 = vst.msk [vmem:[#allocation28 + $0x30] sm:$0xff] %vm319_vm3, %v3606_v56  ;;  %v3607_v62 = vadd.f32 %v3591_v55, %v3575_v29  ;;  %v3573_v63 = vld [vmem:[#allocation28 + $0x28] sm:$0xff]  ;;  %3375 = vst.msk [vmem:[#allocation28 + $0x50] sm:$0xff] %vm319_vm3, %v4254_v35  ;;  %v3334_v0 = vpop.f32.mrb[93].mxu0  ;;  %v4273_v1 = vpop.f32.mrb[94].mxu1 }
 0x65b   :  { %3620 = vst.msk [vmem:[#allocation28 + $0x20] sm:$0xff] %vm319_vm3, %v3604_v60  ;;  %v3605_v2 = vadd.f32 %v3589_v58, %v3573_v63  ;;  %3373 = vst.msk [vmem:[#allocation28 + $0x40] sm:$0xff] %vm319_vm3, %v3334_v0  ;;  %v4255_v3 = vpop.f32.mrb[94].mxu0  ;;  %v3508_v4 = vpop.f32.mrb[95].mxu1 }
 0x65c   :  { %3623 = vst.msk [vmem:[#allocation28 + $0x38] sm:$0xff] %vm319_vm3, %v3607_v62  ;;  %3376 = vst.msk [vmem:[#allocation28 + $0x58] sm:$0xff] %vm319_vm3, %v4255_v3  ;;  %v3337_v5 = vpop.f32.mrb[95].mxu0 }
 0x65d   :  { %3621 = vst.msk [vmem:[#allocation28 + $0x28] sm:$0xff] %vm319_vm3, %v3605_v2  ;;  %3374 = vst.msk [vmem:[#allocation28 + $0x48] sm:$0xff] %vm319_vm3, %v3337_v5 }
 0x661   :  { %v3391_v6 = vld [vmem:[#allocation28 + $0x50] sm:$0xff] }
 0x662   :  { %v3546_v7 = vsub.f32 %v3391_v6, %v4272_v59  ;;  %v3389_v8 = vld [vmem:[#allocation28 + $0x40] sm:$0xff] }
 0x663   :  { %v3544_v9 = vsub.f32 %v3389_v8, %v3505_v61  ;;  %v3392_v10 = vld [vmem:[#allocation28 + $0x58] sm:$0xff] }
 0x664   :  { %3562 = vst.msk [vmem:[#allocation28 + $0x50] sm:$0xff] %vm319_vm3, %v3546_v7  ;;  %v3547_v11 = vsub.f32 %v3392_v10, %v4273_v1  ;;  %v3390_v12 = vld [vmem:[#allocation28 + $0x48] sm:$0xff] }
 0x665   :  { %3560 = vst.msk [vmem:[#allocation28 + $0x40] sm:$0xff] %vm319_vm3, %v3544_v9  ;;  %v3545_v13 = vsub.f32 %v3390_v12, %v3508_v4 }
 0x666   :  { %3563 = vst.msk [vmem:[#allocation28 + $0x58] sm:$0xff] %vm319_vm3, %v3547_v11 }
 0x667   :  { %3561 = vst.msk [vmem:[#allocation28 + $0x48] sm:$0xff] %vm319_vm3, %v3545_v13 }
 0x66b   :  { %v3578_v16 = vld [vmem:[#allocation28 + $0x50] sm:$0xff] }
 0x66c   :  { %v3610_v18 = vadd.f32 %v3594_v14, %v3578_v16  ;;  %v3576_v19 = vld [vmem:[#allocation28 + $0x40] sm:$0xff]  ;;  %v4276_v21 = vpop.f32.mrb[96].mxu1 }
 0x66d   :  { %v3608_v22 = vadd.f32 %v3592_v15, %v3576_v19  ;;  %v3579_v23 = vld [vmem:[#allocation28 + $0x58] sm:$0xff]  ;;  %v4258_v24 = vpop.f32.mrb[96].mxu0  ;;  %v3521_v25 = vpop.f32.mrb[97].mxu1 }
 0x66e   :  { %3626 = vst.msk [vmem:[#allocation28 + $0x50] sm:$0xff] %vm319_vm3, %v3610_v18  ;;  %v3611_v26 = vadd.f32 %v3595_v17, %v3579_v23  ;;  %v3577_v27 = vld [vmem:[#allocation28 + $0x48] sm:$0xff]  ;;  %3379 = vst.msk [vmem:[#allocation28 + $0x70] sm:$0xff] %vm319_vm3, %v4258_v24  ;;  %v3350_v28 = vpop.f32.mrb[97].mxu0  ;;  %v4277_v30 = vpop.f32.mrb[98].mxu1 }
 0x66f   :  { %3624 = vst.msk [vmem:[#allocation28 + $0x40] sm:$0xff] %vm319_vm3, %v3608_v22  ;;  %v3609_v31 = vadd.f32 %v3593_v20, %v3577_v27  ;;  %3377 = vst.msk [vmem:[#allocation28 + $0x60] sm:$0xff] %vm319_vm3, %v3350_v28  ;;  %v4259_v32 = vpop.f32.mrb[98].mxu0  ;;  %v3524_v33 = vpop.f32.mrb[99].mxu1 }
 0x670   :  { %3627 = vst.msk [vmem:[#allocation28 + $0x58] sm:$0xff] %vm319_vm3, %v3611_v26  ;;  %3380 = vst.msk [vmem:[#allocation28 + $0x78] sm:$0xff] %vm319_vm3, %v4259_v32  ;;  %v3353_v34 = vpop.f32.mrb[99].mxu0 }
 0x671   :  { %3625 = vst.msk [vmem:[#allocation28 + $0x48] sm:$0xff] %vm319_vm3, %v3609_v31  ;;  %3378 = vst.msk [vmem:[#allocation28 + $0x68] sm:$0xff] %vm319_vm3, %v3353_v34 }
 0x675   :  { %v3395_v36 = vld [vmem:[#allocation28 + $0x70] sm:$0xff] }
 0x676   :  { %v3550_v37 = vsub.f32 %v3395_v36, %v4276_v21  ;;  %v3393_v38 = vld [vmem:[#allocation28 + $0x60] sm:$0xff] }
 0x677   :  { %v3548_v39 = vsub.f32 %v3393_v38, %v3521_v25  ;;  %v3396_v40 = vld [vmem:[#allocation28 + $0x78] sm:$0xff] }
 0x678   :  { %3566 = vst.msk [vmem:[#allocation28 + $0x70] sm:$0xff] %vm319_vm3, %v3550_v37  ;;  %v3551_v41 = vsub.f32 %v3396_v40, %v4277_v30  ;;  %v3394_v42 = vld [vmem:[#allocation28 + $0x68] sm:$0xff] }
 0x679   :  { %3564 = vst.msk [vmem:[#allocation28 + $0x60] sm:$0xff] %vm319_vm3, %v3548_v39  ;;  %v3549_v43 = vsub.f32 %v3394_v42, %v3524_v33 }
 0x67a   :  { %3567 = vst.msk [vmem:[#allocation28 + $0x78] sm:$0xff] %vm319_vm3, %v3551_v41 }
 0x67b   :  { %3565 = vst.msk [vmem:[#allocation28 + $0x68] sm:$0xff] %vm319_vm3, %v3549_v43 }
 0x67f   :  { %v3582_v46 = vld [vmem:[#allocation28 + $0x70] sm:$0xff] }
 0x680   :  { %v3614_v48 = vadd.f32 %v3598_v44, %v3582_v46  ;;  %v3580_v49 = vld [vmem:[#allocation28 + $0x60] sm:$0xff] }
 0x681   :  { %v3612_v51 = vadd.f32 %v3596_v45, %v3580_v49  ;;  %v3583_v52 = vld [vmem:[#allocation28 + $0x78] sm:$0xff] }
 0x682   :  { %3630 = vst.msk [vmem:[#allocation28 + $0x70] sm:$0xff] %vm319_vm3, %v3614_v48  ;;  %v3615_v53 = vadd.f32 %v3599_v47, %v3583_v52  ;;  %v3581_v54 = vld [vmem:[#allocation28 + $0x68] sm:$0xff] }
 0x683   :  { %3628 = vst.msk [vmem:[#allocation28 + $0x60] sm:$0xff] %vm319_vm3, %v3612_v51  ;;  %v3613_v55 = vadd.f32 %v3597_v50, %v3581_v54 }
 0x684   :  { %3631 = vst.msk [vmem:[#allocation28 + $0x78] sm:$0xff] %vm319_vm3, %v3615_v53 }
 0x685   :  { %3629 = vst.msk [vmem:[#allocation28 + $0x68] sm:$0xff] %vm319_vm3, %v3613_v55 }
 0x686   :  { %4670 = shalt.err (!%p4667_p2)
}
 0x687   :  { %s4671_s15 = scalar_lea.hbm %s5348_s12, 2048 }
 0x688   :  { %p4672_p3 = scmp.ne.s32.totalorder %s5348_s12, %s4671_s15  ;;  %p4675_p4 = scmp.lt.u32.totalorder %s4671_s15, %s5348_s12 }
 0x68a   :  { %p4677_p5 = pnand %p4675_p4, %p4672_p3 }
 0x68c   :  { %4680 = shalt.err (!%p4677_p5)
}
 0x68d   :  { %3643 = dma.vmem_to_hbm [thread:$0]  %s3638_s25, 2048, %s5348_s12, [#allocation10], %s4698_s13, %s4698_s13, %s4699_s14  }
 0x68e   :  { %4695 = dma.done.wait [#allocation10], 2048  }
 0x68f   :  { %4696 = vsyncadd [#allocation10], 4294965248 }
 0x690   :  { %3647 = vsyncpa [#allocation9], 1 }
 0x691   :  { %3648 = vsyncpa [#allocation12], 1 }
 0x692   :  { %3649 = vsyncpa [#allocation15], 1 }
 0x693   :  { %3650 = vsyncpa [#allocation18], 1 }
 0x694   :  { %3651 = vsyncpa [#allocation21], 1 }
 0x695   :  { %3652 = vsyncpa [#allocation24], 1 }
 0x696   :  { %3653 = vsyncpa [#allocation27], 1 }
 0x697   :  { %3654 = vsyncpa [#allocation10], 1 }

// kernel: _forward_impl.1
= control target key start
LH: loop header
LB: loop body
LE: loop exit
PB: predicated region body
PF: predicated region fallthrough
CT: control target
= control target key end

     0   :  { %17 = vsyncpa [#allocation9], 0  ;;  %s5336_s0 = inlined_call_operand.hbm [shape: bf16[64,8], index: 0, kind: input, shape index: {}]   ;;  %s5337_s1 = inlined_call_operand.hbm [shape: f32[128,16], index: 1, kind: input, shape index: {}]   ;;  %s5338_s2 = inlined_call_operand.hbm [shape: bf16[16,8], index: 2, kind: input, shape index: {}]   ;;  %s5339_s3 = inlined_call_operand.hbm [shape: bf16[8,16], index: 3, kind: input, shape index: {}]   ;;  %s5340_s4 = inlined_call_operand.hbm [shape: bf16[32,16], index: 4, kind: input, shape index: {}]   ;;  %s5341_s5 = inlined_call_operand.hbm [shape: bf16[16,9], index: 5, kind: input, shape index: {}]   ;;  %s5342_s6 = inlined_call_operand.hbm [shape: bf16[16,9], index: 6, kind: input, shape index: {}]   ;;  %s5343_s7 = inlined_call_operand.hbm [shape: bf16[32,16], index: 7, kind: input, shape index: {}]   ;;  %s5344_s8 = inlined_call_operand.hbm [shape: bf16[32,16], index: 8, kind: input, shape index: {}]   ;;  %s5345_s9 = inlined_call_operand.hbm [shape: bf16[9,16], index: 9, kind: input, shape index: {}]   ;;  %s5346_s10 = inlined_call_operand.hbm [shape: bf16[9,16], index: 10, kind: input, shape index: {}]   ;;  %s5347_s11 = inlined_call_operand.hbm [shape: f32[16,9], index: 11, kind: input, shape index: {}]   ;;  %s5348_s12 = inlined_call_operand.hbm [shape: f32[128,16], index: 12, kind: output, shape index: {}]  }
   0x1   :  { %18 = vsyncpa [#allocation12], 0 }
   0x2   :  { %19 = vsyncpa [#allocation15], 0 }
   0x3   :  { %20 = vsyncpa [#allocation18], 0 }
   0x4   :  { %21 = vsyncpa [#allocation21], 0 }
   0x5   :  { %22 = vsyncpa [#allocation24], 0 }
   0x6   :  { %23 = vsyncpa [#allocation27], 0 }
   0x7   :  { %24 = vsyncpa [#allocation10], 0  ;;  %s4697_s21 = smov [#allocation11]   ;;  %s4395_s25 = scalar_lea.hbm %s5337_s1, 2048 }
   0x8   :  { %s42_s22 = sshll.u32 %s4697_s21, 4  ;;  %p4396_p0 = scmp.ne.s32.totalorder %s5337_s1, %s4395_s25  ;;  %s43_s22 = int_to_ptr.vmem [resolvable:$true] %s42_s22 }
   0x9   :  { %p4399_p1 = scmp.lt.u32.totalorder %s4395_s25, %s5337_s1 }
   0xb   :  { %p4401_p2 = pnand %p4399_p1, %p4396_p0 }
   0xd   :  { %4404 = shalt.err (!%p4401_p2)
}
   0xe   :  { %s4405_s30 = scalar_lea.vmem %s43_s22, 2048  ;;  %p4410_p4 = scmp.lt.s32.totalorder %s43_s22, %s43_s22 }
   0xf   :  { %p4406_p3 = scmp.ne.s32.totalorder %s43_s22, %s4405_s30  ;;  %p4411_p5 = scmp.lt.s32.totalorder %s4405_s30, %s4405_s30 }
  0x11   :  { %p4412_p6 = por %p4411_p5, %p4410_p4 }
  0x13   :  { %p4413_p7 = pnand %p4412_p6, %p4406_p3 }
  0x15   :  { %4416 = shalt.err (!%p4413_p7)
}
  0x16   :  { %s4698_s13 = smov 128   ;;  %s4699_s14 = smov 8  }
  0x17   :  { %48 = dma.hbm_to_vmem [thread:$0]  %s5337_s1, 2048, %s43_s22, [#allocation12], %s4698_s13, %s4698_s13, %s4699_s14  }
  0x18   :  { %s4700_s17 = smov [#allocation14]   ;;  %s4417_s21 = scalar_lea.hbm %s5339_s3, 64 }
  0x19   :  { %s67_s18 = sshll.u32 %s4700_s17, 4  ;;  %p4418_p8 = scmp.ne.s32.totalorder %s5339_s3, %s4417_s21  ;;  %s68_s18 = int_to_ptr.vmem [resolvable:$true] %s67_s18 }
  0x1a   :  { %p4421_p9 = scmp.lt.u32.totalorder %s4417_s21, %s5339_s3 }
  0x1c   :  { %p4423_p10 = pnand %p4421_p9, %p4418_p8 }
  0x1e   :  { %4426 = shalt.err (!%p4423_p10)
}
  0x1f   :  { %s4427_s27 = scalar_lea.vmem %s68_s18, 64  ;;  %p4432_p12 = scmp.lt.s32.totalorder %s68_s18, %s68_s18 }
  0x20   :  { %p4428_p11 = scmp.ne.s32.totalorder %s68_s18, %s4427_s27  ;;  %p4433_p13 = scmp.lt.s32.totalorder %s4427_s27, %s4427_s27 }
  0x22   :  { %p4434_p0 = por %p4433_p13, %p4432_p12 }
  0x24   :  { %p4435_p1 = pnand %p4434_p0, %p4428_p11 }
  0x26   :  { %4438 = shalt.err (!%p4435_p1)
}
  0x27   :  { %70 = dma.hbm_to_vmem [thread:$0]  %s5339_s3, 64, %s68_s18, [#allocation15]  }
  0x28   :  { %s4701_s28 = smov [#allocation17]   ;;  %s4702_s30 = smov [#allocation20]  }
  0x29   :  { %s88_s29 = sshll.u32 %s4701_s28, 4  ;;  %s112_s15 = sshll.u32 %s4702_s30, 4  ;;  %s89_s29 = int_to_ptr.vmem [resolvable:$true] %s88_s29  ;;  %s4809_s15 = int_to_ptr.vmem [resolvable:$true] %s112_s15 }
  0x2a   :  { %s4439_s19 = scalar_lea.hbm %s5341_s5, 128 }
  0x2b   :  { %p4440_p2 = scmp.ne.s32.totalorder %s5341_s5, %s4439_s19  ;;  %p4443_p3 = scmp.lt.u32.totalorder %s4439_s19, %s5341_s5 }
  0x2d   :  { %p4445_p4 = pnand %p4443_p3, %p4440_p2 }
  0x2f   :  { %4448 = shalt.err (!%p4445_p4)
}
  0x30   :  { %s4449_s3 = scalar_lea.vmem %s89_s29, 128  ;;  %p4454_p6 = scmp.lt.s32.totalorder %s89_s29, %s89_s29 }
  0x31   :  { %p4450_p5 = scmp.ne.s32.totalorder %s89_s29, %s4449_s3  ;;  %p4455_p7 = scmp.lt.s32.totalorder %s4449_s3, %s4449_s3 }
  0x33   :  { %p4456_p8 = por %p4455_p7, %p4454_p6 }
  0x35   :  { %p4457_p9 = pnand %p4456_p8, %p4450_p5 }
  0x37   :  { %4460 = shalt.err (!%p4457_p9)
}
  0x38   :  { %s4703_s18 = smov 64   ;;  %s4704_s25 = smov 4  }
  0x39   :  { %94 = dma.hbm_to_vmem [thread:$0]  %s5341_s5, 128, %s89_s29, [#allocation18], %s4703_s18, %s4703_s18, %s4704_s25  }
  0x3a   :  { %s4461_s28 = scalar_lea.hbm %s5343_s7, 256 }
  0x3b   :  { %p4462_p10 = scmp.ne.s32.totalorder %s5343_s7, %s4461_s28  ;;  %p4465_p11 = scmp.lt.u32.totalorder %s4461_s28, %s5343_s7 }
  0x3d   :  { %p4467_p12 = pnand %p4465_p11, %p4462_p10 }
  0x3f   :  { %4470 = shalt.err (!%p4467_p12)
}
  0x40   :  { %s4471_s20 = scalar_lea.vmem %s4809_s15, 256  ;;  %p4476_p0 = scmp.lt.s32.totalorder %s4809_s15, %s4809_s15 }
  0x41   :  { %p4472_p13 = scmp.ne.s32.totalorder %s4809_s15, %s4471_s20  ;;  %p4477_p1 = scmp.lt.s32.totalorder %s4471_s20, %s4471_s20 }
  0x43   :  { %p4478_p2 = por %p4477_p1, %p4476_p0 }
  0x45   :  { %p4479_p3 = pnand %p4478_p2, %p4472_p13 }
  0x47   :  { %4482 = shalt.err (!%p4479_p3)
}
  0x48   :  { %118 = dma.hbm_to_vmem [thread:$0]  %s5343_s7, 256, %s4809_s15, [#allocation21], %s4703_s18, %s4703_s18, %s4704_s25  }
  0x49   :  { %s4705_s21 = smov [#allocation23]   ;;  %s4706_s24 = smov [#allocation8]  }
  0x4a   :  { %s136_s23 = sshll.u32 %s4705_s21, 4  ;;  %s30_s3 = sshll.u32 %s4706_s24, 4  ;;  %s137_s23 = int_to_ptr.vmem [resolvable:$true] %s136_s23  ;;  %s4846_s3 = int_to_ptr.vmem [resolvable:$true] %s30_s3 }
  0x4b   :  { %s4483_s1 = scalar_lea.hbm %s5345_s9, 128 }
  0x4c   :  { %p4484_p4 = scmp.ne.s32.totalorder %s5345_s9, %s4483_s1  ;;  %p4487_p5 = scmp.lt.u32.totalorder %s4483_s1, %s5345_s9 }
  0x4e   :  { %p4489_p6 = pnand %p4487_p5, %p4484_p4 }
  0x50   :  { %4492 = shalt.err (!%p4489_p6)
}
  0x51   :  { %s4493_s7 = scalar_lea.vmem %s137_s23, 128  ;;  %p4498_p8 = scmp.lt.s32.totalorder %s137_s23, %s137_s23 }
  0x52   :  { %p4494_p7 = scmp.ne.s32.totalorder %s137_s23, %s4493_s7  ;;  %p4499_p9 = scmp.lt.s32.totalorder %s4493_s7, %s4493_s7 }
  0x54   :  { %p4500_p10 = por %p4499_p9, %p4498_p8 }
  0x56   :  { %p4501_p11 = pnand %p4500_p10, %p4494_p7 }
  0x58   :  { %4504 = shalt.err (!%p4501_p11)
}
  0x59   :  { %142 = dma.hbm_to_vmem [thread:$0]  %s5345_s9, 128, %s137_s23, [#allocation24], %s4703_s18, %s4703_s18, %s4704_s25  }
  0x5a   :  { %s4505_s5 = scalar_lea.hbm %s5336_s0, 512 }
  0x5b   :  { %p4506_p12 = scmp.ne.s32.totalorder %s5336_s0, %s4505_s5  ;;  %p4509_p13 = scmp.lt.u32.totalorder %s4505_s5, %s5336_s0 }
  0x5d   :  { %p4511_p0 = pnand %p4509_p13, %p4506_p12 }
  0x5f   :  { %4514 = shalt.err (!%p4511_p0)
}
  0x60   :  { %s4515_s27 = scalar_lea.vmem %s4846_s3, 512  ;;  %p4520_p2 = scmp.lt.s32.totalorder %s4846_s3, %s4846_s3 }
  0x61   :  { %p4516_p1 = scmp.ne.s32.totalorder %s4846_s3, %s4515_s27  ;;  %p4521_p3 = scmp.lt.s32.totalorder %s4515_s27, %s4515_s27 }
  0x63   :  { %p4522_p4 = por %p4521_p3, %p4520_p2 }
  0x65   :  { %p4523_p5 = pnand %p4522_p4, %p4516_p1 }
  0x67   :  { %4526 = shalt.err (!%p4523_p5)
}
  0x68   :  { %36 = dma.hbm_to_vmem [thread:$0]  %s5336_s0, 512, %s4846_s3, [#allocation9], %s4703_s18, %s4703_s18, %s4704_s25  }
  0x69   :  { %s4707_s1 = smov [#allocation13]   ;;  %s4708_s28 = smov [#allocation16]  }
  0x6a   :  { %s54_s22 = sshll.u32 %s4707_s1, 4  ;;  %s76_s30 = sshll.u32 %s4708_s28, 4  ;;  %s55_s22 = int_to_ptr.vmem [resolvable:$true] %s54_s22  ;;  %s4883_s30 = int_to_ptr.vmem [resolvable:$true] %s76_s30 }
  0x6b   :  { %s4527_s15 = scalar_lea.hbm %s5338_s2, 128 }
  0x6c   :  { %p4528_p6 = scmp.ne.s32.totalorder %s5338_s2, %s4527_s15  ;;  %p4531_p7 = scmp.lt.u32.totalorder %s4527_s15, %s5338_s2 }
  0x6e   :  { %p4533_p8 = pnand %p4531_p7, %p4528_p6 }
  0x70   :  { %4536 = shalt.err (!%p4533_p8)
}
  0x71   :  { %s4537_s0 = scalar_lea.vmem %s55_s22, 128  ;;  %p4542_p10 = scmp.lt.s32.totalorder %s55_s22, %s55_s22 }
  0x72   :  { %p4538_p9 = scmp.ne.s32.totalorder %s55_s22, %s4537_s0  ;;  %p4543_p11 = scmp.lt.s32.totalorder %s4537_s0, %s4537_s0 }
  0x74   :  { %p4544_p12 = por %p4543_p11, %p4542_p10 }
  0x76   :  { %p4545_p13 = pnand %p4544_p12, %p4538_p9 }
  0x78   :  { %4548 = shalt.err (!%p4545_p13)
}
  0x79   :  { %60 = dma.hbm_to_vmem [thread:$0]  %s5338_s2, 128, %s55_s22, [#allocation12], %s4703_s18, %s4703_s18, %s4704_s25  }
  0x7a   :  { %s4549_s26 = scalar_lea.hbm %s5340_s4, 256 }
  0x7b   :  { %p4550_p0 = scmp.ne.s32.totalorder %s5340_s4, %s4549_s26  ;;  %p4553_p1 = scmp.lt.u32.totalorder %s4549_s26, %s5340_s4 }
  0x7d   :  { %p4555_p2 = pnand %p4553_p1, %p4550_p0 }
  0x7f   :  { %4558 = shalt.err (!%p4555_p2)
}
  0x80   :  { %s4559_s28 = scalar_lea.vmem %s4883_s30, 256  ;;  %p4564_p4 = scmp.lt.s32.totalorder %s4883_s30, %s4883_s30 }
  0x81   :  { %p4560_p3 = scmp.ne.s32.totalorder %s4883_s30, %s4559_s28  ;;  %p4565_p5 = scmp.lt.s32.totalorder %s4559_s28, %s4559_s28 }
  0x83   :  { %p4566_p6 = por %p4565_p5, %p4564_p4 }
  0x85   :  { %p4567_p7 = pnand %p4566_p6, %p4560_p3 }
  0x87   :  { %4570 = shalt.err (!%p4567_p7)
}
  0x88   :  { %82 = dma.hbm_to_vmem [thread:$0]  %s5340_s4, 256, %s4883_s30, [#allocation15], %s4703_s18, %s4703_s18, %s4704_s25  }
  0x89   :  { %s4709_s16 = smov [#allocation19]   ;;  %s4710_s15 = smov [#allocation22]  }
  0x8a   :  { %s100_s7 = sshll.u32 %s4709_s16, 4  ;;  %s124_s17 = sshll.u32 %s4710_s15, 4  ;;  %s101_s7 = int_to_ptr.vmem [resolvable:$true] %s100_s7  ;;  %s4920_s17 = int_to_ptr.vmem [resolvable:$true] %s124_s17 }
  0x8b   :  { %s4571_s5 = scalar_lea.hbm %s5342_s6, 128 }
  0x8c   :  { %p4572_p8 = scmp.ne.s32.totalorder %s5342_s6, %s4571_s5  ;;  %p4575_p9 = scmp.lt.u32.totalorder %s4571_s5, %s5342_s6 }
  0x8e   :  { %p4577_p10 = pnand %p4575_p9, %p4572_p8 }
  0x90   :  { %4580 = shalt.err (!%p4577_p10)
}
  0x91   :  { %s4581_s4 = scalar_lea.vmem %s101_s7, 128  ;;  %p4586_p12 = scmp.lt.s32.totalorder %s101_s7, %s101_s7 }
  0x92   :  { %p4582_p11 = scmp.ne.s32.totalorder %s101_s7, %s4581_s4  ;;  %p4587_p13 = scmp.lt.s32.totalorder %s4581_s4, %s4581_s4 }
  0x94   :  { %p4588_p0 = por %p4587_p13, %p4586_p12 }
  0x96   :  { %p4589_p1 = pnand %p4588_p0, %p4582_p11 }
  0x98   :  { %4592 = shalt.err (!%p4589_p1)
}
  0x99   :  { %106 = dma.hbm_to_vmem [thread:$0]  %s5342_s6, 128, %s101_s7, [#allocation18], %s4703_s18, %s4703_s18, %s4704_s25  }
  0x9a   :  { %s4593_s9 = scalar_lea.hbm %s5344_s8, 256 }
  0x9b   :  { %p4594_p2 = scmp.ne.s32.totalorder %s5344_s8, %s4593_s9  ;;  %p4597_p3 = scmp.lt.u32.totalorder %s4593_s9, %s5344_s8 }
  0x9d   :  { %p4599_p4 = pnand %p4597_p3, %p4594_p2 }
  0x9f   :  { %4602 = shalt.err (!%p4599_p4)
}
  0xa0   :  { %s4603_s22 = scalar_lea.vmem %s4920_s17, 256  ;;  %p4608_p6 = scmp.lt.s32.totalorder %s4920_s17, %s4920_s17 }
  0xa1   :  { %p4604_p5 = scmp.ne.s32.totalorder %s4920_s17, %s4603_s22  ;;  %p4609_p7 = scmp.lt.s32.totalorder %s4603_s22, %s4603_s22 }
  0xa3   :  { %p4610_p8 = por %p4609_p7, %p4608_p6 }
  0xa5   :  { %p4611_p9 = pnand %p4610_p8, %p4604_p5 }
  0xa7   :  { %4614 = shalt.err (!%p4611_p9)
}
  0xa8   :  { %130 = dma.hbm_to_vmem [thread:$0]  %s5344_s8, 256, %s4920_s17, [#allocation21], %s4703_s18, %s4703_s18, %s4704_s25  }
  0xa9   :  { %s4711_s7 = smov [#allocation25]   ;;  %s4712_s19 = smov [#allocation26]  }
  0xaa   :  { %s148_s15 = sshll.u32 %s4711_s7, 4  ;;  %s160_s20 = sshll.u32 %s4712_s19, 4  ;;  %s149_s15 = int_to_ptr.vmem [resolvable:$true] %s148_s15  ;;  %s4957_s20 = int_to_ptr.vmem [resolvable:$true] %s160_s20 }
  0xab   :  { %s4615_s3 = scalar_lea.hbm %s5346_s10, 128 }
  0xac   :  { %p4616_p10 = scmp.ne.s32.totalorder %s5346_s10, %s4615_s3  ;;  %p4619_p11 = scmp.lt.u32.totalorder %s4615_s3, %s5346_s10 }
  0xae   :  { %p4621_p12 = pnand %p4619_p11, %p4616_p10 }
  0xb0   :  { %4624 = shalt.err (!%p4621_p12)
}
  0xb1   :  { %s4625_s8 = scalar_lea.vmem %s149_s15, 128  ;;  %p4630_p0 = scmp.lt.s32.totalorder %s149_s15, %s149_s15 }
  0xb2   :  { %p4626_p13 = scmp.ne.s32.totalorder %s149_s15, %s4625_s8  ;;  %p4631_p1 = scmp.lt.s32.totalorder %s4625_s8, %s4625_s8 }
  0xb4   :  { %p4632_p2 = por %p4631_p1, %p4630_p0 }
  0xb6   :  { %p4633_p3 = pnand %p4632_p2, %p4626_p13 }
  0xb8   :  { %4636 = shalt.err (!%p4633_p3)
}
  0xb9   :  { %154 = dma.hbm_to_vmem [thread:$0]  %s5346_s10, 128, %s149_s15, [#allocation24], %s4703_s18, %s4703_s18, %s4704_s25  }
  0xba   :  { %s4637_s9 = scalar_lea.hbm %s5347_s11, 256 }
  0xbb   :  { %p4638_p4 = scmp.ne.s32.totalorder %s5347_s11, %s4637_s9  ;;  %p4641_p5 = scmp.lt.u32.totalorder %s4637_s9, %s5347_s11 }
  0xbd   :  { %p4643_p6 = pnand %p4641_p5, %p4638_p4 }
  0xbf   :  { %4646 = shalt.err (!%p4643_p6)
}
  0xc0   :  { %s4647_s22 = scalar_lea.vmem %s4957_s20, 256  ;;  %p4652_p8 = scmp.lt.s32.totalorder %s4957_s20, %s4957_s20 }
  0xc1   :  { %p4648_p7 = scmp.ne.s32.totalorder %s4957_s20, %s4647_s22  ;;  %p4653_p9 = scmp.lt.s32.totalorder %s4647_s22, %s4647_s22 }
  0xc3   :  { %p4654_p10 = por %p4653_p9, %p4652_p8 }
  0xc5   :  { %p4655_p11 = pnand %p4654_p10, %p4648_p7 }
  0xc7   :  { %4658 = shalt.err (!%p4655_p11)
}
  0xc8   :  { %166 = dma.hbm_to_vmem [thread:$0]  %s5347_s11, 256, %s4957_s20, [#allocation27], %s4698_s13, %s4698_s13, %s4699_s14  }
  0xc9   :  { %4681 = dma.done.wait [#allocation9], 512  }
  0xca   :  { %4682 = vsyncadd [#allocation9], 4294966784 }
  0xcb   :  { %4683 = dma.done.wait [#allocation12], 2176  }
  0xcc   :  { %4684 = vsyncadd [#allocation12], 4294965120 }
  0xcd   :  { %4685 = dma.done.wait [#allocation15], 320  }
  0xce   :  { %4686 = vsyncadd [#allocation15], 4294966976 }
  0xcf   :  { %4687 = dma.done.wait [#allocation18], 256  }
  0xd0   :  { %4688 = vsyncadd [#allocation18], 4294967040 }
  0xd1   :  { %4689 = dma.done.wait [#allocation21], 512  }
  0xd2   :  { %4690 = vsyncadd [#allocation21], 4294966784 }
  0xd3   :  { %4691 = dma.done.wait [#allocation24], 256  }
  0xd4   :  { %4692 = vsyncadd [#allocation24], 4294967040 }
  0xd5   :  { %4693 = dma.done.wait [#allocation27], 256  }
  0xd6   :  { %4694 = vsyncadd [#allocation27], 4294967040  ;;  %vm246_vm0 = vcmask 1043456   ;;  %vm233_vm1 = vcmask 64512   ;;  %v212_v0 = vld [vmem:[#allocation14] sm:$0xf] }
  0xd7   :  { %4310 = vmatprep.subr.msk.bf16.mxu0 %vm246_vm0, %v212_v0  ;;  %v248_v1 = vsel %vm246_vm0, %v212_v0, 0  ;;  %v4331_v2 = vld [vmem:[#allocation8] sm:$0xff]   ;;  %v4332_v3 = vld [vmem:[#allocation8 + $0x8] sm:$0xff]   ;;  %v4333_v4 = vld [vmem:[#allocation8 + $0x10] sm:$0xff]   ;;  %v4713_v6 = vmov 0.0   ;;  %vm4714_vm2 = vmmov 0  }
  0xd8   :  { %3973 = vmatpush3.bf16.msra.mxu0 %v248_v1  ;;  %3974 = vmatprep.mubr.msk.bf16.mxu0 %vm233_vm1, %v4331_v2  ;;  %v4334_v5 = vld [vmem:[#allocation8 + $0x18] sm:$0xff]   ;;  %vm319_vm3 = vcmask 130048   ;;  %v4335_v23 = vld [vmem:[#allocation13] sm:$0xff]   ;;  %v4343_v47 = vld [vmem:[#allocation16] sm:$0xff]   ;;  %vm1629_vm4 = vcmask 72704   ;;  %vm3262_vm5 = vcmask 1044480  }
  0xd9   :  { %3982 = vmatprep.subr.bf16.mxu1 %v4713_v6  ;;  %3994 = vmatprep.subr.bf16.mxu0 %v4713_v6  ;;  %v4336_v25 = vld [vmem:[#allocation13] sm:$0xff]   ;;  %v380_v50 = vld [vmem:[#allocation11 + $0x8] sm:$0xff]  ;;  %v514_v51 = vld [vmem:[#allocation11 + $0x10] sm:$0xff]  ;;  %s4716_s11 = smov [#allocation28]  }
  0xda   :  { %3984 = vmatprep.mubr.msk.bf16.mxu1 %vm4714_vm2, %v4713_v6  ;;  %v4337_v29 = vld [vmem:[#allocation13] sm:$0xff]   ;;  %v515_v55 = vld [vmem:[#allocation11 + $0x18] sm:$0xff]  ;;  %s3637_s25 = sshll.u32 %s4716_s11, 4  ;;  %s3638_s25 = int_to_ptr.vmem [resolvable:$true] %s3637_s25 }
  0xdb   :  { %3975 = vmatmul.mubr.msk.bf16.vlgmr.msra.gmra.mrb[0].mxu0 %vm233_vm1, %v4332_v3  ;;  %v4338_v33 = vld [vmem:[#allocation13] sm:$0xff]   ;;  %v4344_v2 = vld [vmem:[#allocation16 + $0x8] sm:$0xff]   ;;  %v4345_v3 = vld [vmem:[#allocation16] sm:$0xff]   ;;  %s4659_s6 = scalar_lea.vmem %s3638_s25, 2048  ;;  %p4664_p13 = scmp.lt.s32.totalorder %s3638_s25, %s3638_s25 }
  0xdc   :  { %3978 = vmatprep.mubr.msk.bf16.mxu0 %vm233_vm1, %v4333_v4  ;;  %v4339_v37 = vld [vmem:[#allocation13] sm:$0xff]   ;;  %p4660_p12 = scmp.ne.s32.totalorder %s3638_s25, %s4659_s6  ;;  %p4665_p0 = scmp.lt.s32.totalorder %s4659_s6, %s4659_s6 }
  0xdd   :  { %v4340_v40 = vld [vmem:[#allocation13] sm:$0xff]  }
  0xde   :  { %v4341_v43 = vld [vmem:[#allocation13] sm:$0xff]   ;;  %p4666_p1 = por %p4665_p0, %p4664_p13 }
  0xdf   :  { %v4342_v46 = vld [vmem:[#allocation13] sm:$0xff]  }
  0xe0   :  { %v379_v49 = vld [vmem:[#allocation11] sm:$0xff]  ;;  %p4667_p2 = pnand %p4666_p1, %p4660_p12 }
  0xe1   :  { %v647_v4 = vld [vmem:[#allocation11 + $0x20] sm:$0xff] }
  0xe3   :  { %3979 = vmatmul.mubr.msk.bf16.gmra.mrb[4].mxu0 %vm233_vm1, %v4334_v5 }
  0xe4   :  { %3996 = vmatprep.mubr.msk.bf16.mxu0 %vm4714_vm2, %v4713_v6 }
 0x1ae   :  { %v3976_v7 = vpop.f32.mrb[0].mxu0 }
 0x1af   :  { %v284_v8 = vpop.f32.mrb[1].mxu0 }
 0x1b0   :  { %v3977_v9 = vpop.f32.mrb[2].mxu0 }
 0x1b1   :  { %v316_v10 = vpack.c.bf16 %v3977_v9, %v3976_v7  ;;  %v287_v11 = vpop.f32.mrb[3].mxu0 }
 0x1b2   :  { %v315_v12 = vpack.c.bf16 %v287_v11, %v284_v8 }
 0x1b3   :  { %321 = vst.msk [vmem:[#allocation2 + $0x8] sm:$0xff] %vm319_vm3, %v316_v10 }
 0x1b4   :  { %320 = vst.msk [vmem:[#allocation2] sm:$0xff] %vm319_vm3, %v315_v12  ;;  %v4346_v12 = vld [vmem:[#allocation16 + $0x8] sm:$0xff]  }
 0x1b6   :  { %v3980_v13 = vpop.f32.mrb[4].mxu0 }
 0x1b7   :  { %v300_v14 = vpop.f32.mrb[5].mxu0 }
 0x1b8   :  { %v3981_v15 = vpop.f32.mrb[6].mxu0 }
 0x1b9   :  { %v318_v16 = vpack.c.bf16 %v3981_v15, %v3980_v13  ;;  %v303_v17 = vpop.f32.mrb[7].mxu0  ;;  %v4347_v15 = vld [vmem:[#allocation16] sm:$0xff]  }
 0x1ba   :  { %v317_v18 = vpack.c.bf16 %v303_v17, %v300_v14  ;;  %v594_v26 = vld [vmem:[#allocation2 + $0x8] sm:$0xf]  ;;  %v727_v28 = vld [vmem:[#allocation2 + $0x8] sm:$0xf0]  ;;  %v782_v14 = vld [vmem:[#allocation11 + $0x30] sm:$0xff] }
 0x1bb   :  { %v326_v19 = vld [vmem:[#allocation2] sm:$0xf]  ;;  %v459_v20 = vld [vmem:[#allocation2] sm:$0xf0]  ;;  %323 = vst.msk [vmem:[#allocation2 + $0x18] sm:$0xff] %vm319_vm3, %v318_v16  ;;  %v604_v27 = vsel %vm246_vm0, %v594_v26, 0 }
 0x1bc   :  { %v336_v21 = vsel %vm246_vm0, %v326_v19, 0  ;;  %v466_v22 = vrot.slane %v459_v20, 4  ;;  %322 = vst.msk [vmem:[#allocation2 + $0x10] sm:$0xff] %vm319_vm3, %v317_v18  ;;  %v734_v30 = vrot.slane %v727_v28, 4  ;;  %v783_v17 = vld [vmem:[#allocation11 + $0x38] sm:$0xff]  ;;  %v915_v26 = vld [vmem:[#allocation11 + $0x40] sm:$0xff] }
 0x1bd   :  { %3983 = vmatpush3.bf16.msra.mxu1 %v336_v21  ;;  %v916_v28 = vld [vmem:[#allocation11 + $0x48] sm:$0xff] }
 0x1be   :  { %v471_v24 = vsel %vm246_vm0, %v466_v22, 0  ;;  %v739_v31 = vsel %vm246_vm0, %v734_v30, 0 }
 0x1bf   :  { %3995 = vmatpush3.bf16.msra.mxu0 %v471_v24  ;;  %v4348_v24 = vld [vmem:[#allocation16 + $0x8] sm:$0xff]  }
 0x1c0   :  { %3985 = vmatmul.mubr.msk.bf16.vlgmr.msra.gmra.mrb[0].mxu1 %vm233_vm1, %v4335_v23  ;;  %4006 = vmatprep.subr.bf16.mxu0 %v4713_v6 }
 0x1c1   :  { %3990 = vmatprep.mubr.msk.bf16.mxu1 %vm319_vm3, %v4343_v47  ;;  %v4353_v47 = vld [vmem:[#allocation16] sm:$0xff]  }
 0x1c2   :  { %3997 = vmatmul.mubr.msk.bf16.vlgmr.msra.gmra.mrb[8].mxu0 %vm233_vm1, %v4336_v25  ;;  %v1130_v39 = vld [vmem:[#allocation2 + $0x18] sm:$0xf]  ;;  %v1263_v42 = vld [vmem:[#allocation2 + $0x18] sm:$0xf0]  ;;  %v4349_v25 = vld [vmem:[#allocation16] sm:$0xff]  }
 0x1c3   :  { %4007 = vmatpush3.bf16.msra.mxu0 %v604_v27  ;;  %4008 = vmatprep.mubr.msk.bf16.mxu0 %vm4714_vm2, %v4713_v6  ;;  %v862_v32 = vld [vmem:[#allocation2 + $0x10] sm:$0xf]  ;;  %v995_v35 = vld [vmem:[#allocation2 + $0x10] sm:$0xf0]  ;;  %v1140_v41 = vsel %vm246_vm0, %v1130_v39, 0  ;;  %v1270_v44 = vrot.slane %v1263_v42, 4 }
 0x1c4   :  { %4018 = vmatprep.subr.bf16.mxu0 %v4713_v6  ;;  %v872_v34 = vsel %vm246_vm0, %v862_v32, 0  ;;  %v1002_v36 = vrot.slane %v995_v35, 4  ;;  %v1051_v39 = vld [vmem:[#allocation11 + $0x58] sm:$0xff] }
 0x1c5   :  { %v1275_v45 = vsel %vm246_vm0, %v1270_v44, 0 }
 0x1c6   :  { %v1007_v38 = vsel %vm246_vm0, %v1002_v36, 0  ;;  %v1050_v36 = vld [vmem:[#allocation11 + $0x50] sm:$0xff] }
 0x1ca   :  { %4009 = vmatmul.mubr.msk.bf16.vlgmr.msra.gmra.mrb[12].mxu0 %vm233_vm1, %v4337_v29 }
 0x1cb   :  { %4019 = vmatpush3.bf16.msra.mxu0 %v739_v31  ;;  %4020 = vmatprep.mubr.msk.bf16.mxu0 %vm4714_vm2, %v4713_v6 }
 0x1cc   :  { %4030 = vmatprep.subr.bf16.mxu0 %v4713_v6 }
 0x1d2   :  { %4021 = vmatmul.mubr.msk.bf16.vlgmr.msra.gmra.mrb[16].mxu0 %vm233_vm1, %v4338_v33 }
 0x1d3   :  { %4031 = vmatpush3.bf16.msra.mxu0 %v872_v34  ;;  %4032 = vmatprep.mubr.msk.bf16.mxu0 %vm4714_vm2, %v4713_v6  ;;  %v4350_v34 = vld [vmem:[#allocation16 + $0x8] sm:$0xff]  }
 0x1d4   :  { %4042 = vmatprep.subr.bf16.mxu0 %v4713_v6 }
 0x1da   :  { %4033 = vmatmul.mubr.msk.bf16.vlgmr.msra.gmra.mrb[20].mxu0 %vm233_vm1, %v4339_v37  ;;  %v4351_v37 = vld [vmem:[#allocation16] sm:$0xff]  }
 0x1db   :  { %4043 = vmatpush3.bf16.msra.mxu0 %v1007_v38  ;;  %4044 = vmatprep.mubr.msk.bf16.mxu0 %vm4714_vm2, %v4713_v6 }
 0x1dc   :  { %4054 = vmatprep.subr.bf16.mxu0 %v4713_v6 }
 0x1e2   :  { %4045 = vmatmul.mubr.msk.bf16.vlgmr.msra.gmra.mrb[24].mxu0 %vm233_vm1, %v4340_v40 }
 0x1e3   :  { %4055 = vmatpush3.bf16.msra.mxu0 %v1140_v41  ;;  %4056 = vmatprep.mubr.msk.bf16.mxu0 %vm4714_vm2, %v4713_v6 }
 0x1e4   :  { %4066 = vmatprep.subr.bf16.mxu0 %v4713_v6 }
 0x1ea   :  { %4057 = vmatmul.mubr.msk.bf16.vlgmr.msra.gmra.mrb[28].mxu0 %vm233_vm1, %v4341_v43 }
 0x1eb   :  { %4067 = vmatpush3.bf16.msra.mxu0 %v1275_v45  ;;  %4068 = vmatprep.mubr.msk.bf16.mxu0 %vm4714_vm2, %v4713_v6  ;;  %v648_v6 = vld [vmem:[#allocation11 + $0x28] sm:$0xff] }
 0x1f2   :  { %4069 = vmatmul.mubr.msk.bf16.vlgmr.msra.gmra.mrb[32].mxu0 %vm233_vm1, %v4342_v46  ;;  %v4352_v46 = vld [vmem:[#allocation16 + $0x8] sm:$0xff]  }
 0x293   :  { %v372_v48 = vpop.f32.mrb[0].mxu1 }
 0x294   :  { %v3986_v52 = vpop.f32.mrb[1].mxu1  ;;  %v381_v56 = vsub.f32 %v372_v48, %v379_v49  ;;  %v1183_v48 = vld [vmem:[#allocation11 + $0x60] sm:$0xff] }
 0x295   :  { %v375_v53 = vpop.f32.mrb[2].mxu1  ;;  %v507_v54 = vpop.f32.mrb[8].mxu0 }
 0x296   :  { %v382_v57 = vsub.f32 %v375_v53, %v380_v50  ;;  %v3987_v58 = vpop.f32.mrb[3].mxu1  ;;  %v516_v59 = vsub.f32 %v507_v54, %v514_v51  ;;  %v3998_v60 = vpop.f32.mrb[9].mxu0  ;;  %v1184_v50 = vld [vmem:[#allocation11 + $0x68] sm:$0xff] }
 0x297   :  { %v510_v61 = vpop.f32.mrb[10].mxu0  ;;  %v1318_v58 = vld [vmem:[#allocation11 + $0x70] sm:$0xff] }
 0x298   :  { %v387_v62 = vpack.c.bf16 %v382_v57, %v381_v56  ;;  %v517_v63 = vsub.f32 %v510_v61, %v515_v55  ;;  %v3999_v0 = vpop.f32.mrb[11].mxu0  ;;  %v4354_v56 = vld [vmem:[#allocation16 + $0x8] sm:$0xff]  }
 0x299   :  { %v1319_v61 = vld [vmem:[#allocation11 + $0x78] sm:$0xff] }
 0x29a   :  { %3988 = vmatprep.subr.bf16.mxu1 %v387_v62  ;;  %v522_v1 = vpack.c.bf16 %v517_v63, %v516_v59  ;;  %v4355_v59 = vld [vmem:[#allocation16] sm:$0xff]  }
 0x29b   :  { %3989 = vmatpush3.bf16.msra.mxu1 %v387_v62 }
 0x29c   :  { %4000 = vmatprep.subr.bf16.mxu1 %v522_v1 }
 0x29d   :  { %v640_v5 = vpop.f32.mrb[12].mxu0 }
 0x29e   :  { %3991 = vmatmul.mubr.msk.bf16.vlgmr.msra.gmra.mrb[4].mxu1 %vm319_vm3, %v4344_v2  ;;  %v649_v7 = vsub.f32 %v640_v5, %v647_v4  ;;  %v4010_v8 = vpop.f32.mrb[13].mxu0  ;;  %v4356_v4 = vld [vmem:[#allocation16 + $0x8] sm:$0xff]   ;;  %v4357_v5 = vld [vmem:[#allocation16] sm:$0xff]  }
 0x29f   :  { %4001 = vmatpush3.bf16.msra.mxu1 %v522_v1  ;;  %4002 = vmatprep.mubr.msk.bf16.mxu1 %vm319_vm3, %v4345_v3  ;;  %v643_v9 = vpop.f32.mrb[14].mxu0  ;;  %v4360_v8 = vld [vmem:[#allocation19] sm:$0xff]  }
 0x2a0   :  { %v650_v10 = vsub.f32 %v643_v9, %v648_v6  ;;  %v4011_v11 = vpop.f32.mrb[15].mxu0  ;;  %v4358_v6 = vld [vmem:[#allocation16 + $0x8] sm:$0xff]  }
 0x2a2   :  { %v655_v13 = vpack.c.bf16 %v650_v10, %v649_v7  ;;  %v4359_v7 = vld [vmem:[#allocation17] sm:$0xff]  }
 0x2a3   :  { %4078 = vmatprep.subr.bf16.mxu0 %v4359_v7 }
 0x2a4   :  { %4012 = vmatprep.subr.bf16.mxu1 %v655_v13  ;;  %4079 = vmatpush3.bf16.msra.mxu0 %v4359_v7 }
 0x2a5   :  { %v775_v16 = vpop.f32.mrb[16].mxu0 }
 0x2a6   :  { %4003 = vmatmul.mubr.msk.bf16.vlgmr.msra.gmra.mrb[8].mxu1 %vm319_vm3, %v4346_v12  ;;  %v784_v18 = vsub.f32 %v775_v16, %v782_v14  ;;  %v4022_v19 = vpop.f32.mrb[17].mxu0 }
 0x2a7   :  { %4013 = vmatpush3.bf16.msra.mxu1 %v655_v13  ;;  %4014 = vmatprep.mubr.msk.bf16.mxu1 %vm319_vm3, %v4347_v15  ;;  %v778_v20 = vpop.f32.mrb[18].mxu0 }
 0x2a8   :  { %v785_v21 = vsub.f32 %v778_v20, %v783_v17  ;;  %v4023_v22 = vpop.f32.mrb[19].mxu0 }
 0x2aa   :  { %v790_v23 = vpack.c.bf16 %v785_v21, %v784_v18 }
 0x2ac   :  { %4024 = vmatprep.subr.bf16.mxu1 %v790_v23 }
 0x2ad   :  { %v908_v27 = vpop.f32.mrb[20].mxu0 }
 0x2ae   :  { %4015 = vmatmul.mubr.msk.bf16.vlgmr.msra.gmra.mrb[12].mxu1 %vm319_vm3, %v4348_v24  ;;  %v917_v29 = vsub.f32 %v908_v27, %v915_v26  ;;  %v4034_v30 = vpop.f32.mrb[21].mxu0 }
 0x2af   :  { %4025 = vmatpush3.bf16.msra.mxu1 %v790_v23  ;;  %4026 = vmatprep.mubr.msk.bf16.mxu1 %vm319_vm3, %v4349_v25  ;;  %v911_v31 = vpop.f32.mrb[22].mxu0 }
 0x2b0   :  { %v918_v32 = vsub.f32 %v911_v31, %v916_v28  ;;  %v4035_v33 = vpop.f32.mrb[23].mxu0 }
 0x2b2   :  { %v923_v35 = vpack.c.bf16 %v918_v32, %v917_v29 }
 0x2b4   :  { %4036 = vmatprep.subr.bf16.mxu1 %v923_v35 }
 0x2b5   :  { %v1043_v38 = vpop.f32.mrb[24].mxu0 }
 0x2b6   :  { %4027 = vmatmul.mubr.msk.bf16.vlgmr.msra.gmra.mrb[16].mxu1 %vm319_vm3, %v4350_v34  ;;  %v1052_v40 = vsub.f32 %v1043_v38, %v1050_v36  ;;  %v4046_v41 = vpop.f32.mrb[25].mxu0 }
 0x2b7   :  { %4037 = vmatpush3.bf16.msra.mxu1 %v923_v35  ;;  %4038 = vmatprep.mubr.msk.bf16.mxu1 %vm319_vm3, %v4351_v37  ;;  %v1046_v42 = vpop.f32.mrb[26].mxu0 }
 0x2b8   :  { %v1053_v43 = vsub.f32 %v1046_v42, %v1051_v39  ;;  %v4047_v44 = vpop.f32.mrb[27].mxu0 }
 0x2ba   :  { %v1058_v45 = vpack.c.bf16 %v1053_v43, %v1052_v40 }
 0x2bc   :  { %4048 = vmatprep.subr.bf16.mxu1 %v1058_v45 }
 0x2bd   :  { %v1176_v49 = vpop.f32.mrb[28].mxu0 }
 0x2be   :  { %4039 = vmatmul.mubr.msk.bf16.vlgmr.msra.gmra.mrb[20].mxu1 %vm319_vm3, %v4352_v46  ;;  %v1185_v51 = vsub.f32 %v1176_v49, %v1183_v48  ;;  %v4058_v52 = vpop.f32.mrb[29].mxu0 }
 0x2bf   :  { %4049 = vmatpush3.bf16.msra.mxu1 %v1058_v45  ;;  %4050 = vmatprep.mubr.msk.bf16.mxu1 %vm319_vm3, %v4353_v47  ;;  %v1179_v53 = vpop.f32.mrb[30].mxu0 }
 0x2c0   :  { %v1186_v54 = vsub.f32 %v1179_v53, %v1184_v50  ;;  %v4059_v55 = vpop.f32.mrb[31].mxu0 }
 0x2c2   :  { %v1191_v57 = vpack.c.bf16 %v1186_v54, %v1185_v51 }
 0x2c4   :  { %4060 = vmatprep.subr.bf16.mxu1 %v1191_v57 }
 0x2c5   :  { %v1311_v60 = vpop.f32.mrb[32].mxu0 }
 0x2c6   :  { %4051 = vmatmul.mubr.msk.bf16.vlgmr.msra.gmra.mrb[24].mxu1 %vm319_vm3, %v4354_v56  ;;  %v1320_v62 = vsub.f32 %v1311_v60, %v1318_v58  ;;  %v4070_v63 = vpop.f32.mrb[33].mxu0 }
 0x2c7   :  { %4061 = vmatpush3.bf16.msra.mxu1 %v1191_v57  ;;  %4062 = vmatprep.mubr.msk.bf16.mxu1 %vm319_vm3, %v4355_v59  ;;  %v1314_v0 = vpop.f32.mrb[34].mxu0 }
 0x2c8   :  { %v1321_v1 = vsub.f32 %v1314_v0, %v1319_v61  ;;  %v4071_v2 = vpop.f32.mrb[35].mxu0 }
 0x2ca   :  { %v1326_v3 = vpack.c.bf16 %v1321_v1, %v1320_v62 }
 0x2cc   :  { %4072 = vmatprep.subr.bf16.mxu1 %v1326_v3 }
 0x2ce   :  { %4063 = vmatmul.mubr.msk.bf16.vlgmr.msra.gmra.mrb[28].mxu1 %vm319_vm3, %v4356_v4 }
 0x2cf   :  { %4073 = vmatpush3.bf16.msra.mxu1 %v1326_v3  ;;  %4074 = vmatprep.mubr.msk.bf16.mxu1 %vm319_vm3, %v4357_v5 }
 0x2d0   :  { %4112 = vmatprep.subr.bf16.mxu1 %v4360_v8 }
 0x2d6   :  { %4075 = vmatmul.mubr.msk.bf16.vlgmr.msra.gmra.mrb[32].mxu1 %vm319_vm3, %v4358_v6 }
 0x2d7   :  { %4113 = vmatpush3.bf16.msra.mxu1 %v4360_v8 }
 0x371   :  { %v3992_v9 = vpop.f32.mrb[4].mxu1 }
 0x372   :  { %v438_v10 = vpop.f32.mrb[5].mxu1 }
 0x373   :  { %v3993_v11 = vpop.f32.mrb[6].mxu1 }
 0x374   :  { %v454_v12 = vpack.c.bf16 %v3993_v11, %v3992_v9  ;;  %v441_v13 = vpop.f32.mrb[7].mxu1  ;;  %v4361_v9 = vld [vmem:[#allocation22] sm:$0xff]  }
 0x375   :  { %v453_v14 = vpack.c.bf16 %v441_v13, %v438_v10  ;;  %v4363_v10 = vld [vmem:[#allocation22] sm:$0xff]  }
 0x376   :  { %456 = vst.msk [vmem:[#allocation3 + $0x8] sm:$0xff] %vm319_vm3, %v454_v12 }
 0x377   :  { %455 = vst.msk [vmem:[#allocation3] sm:$0xff] %vm319_vm3, %v453_v14 }
 0x379   :  { %v4004_v15 = vpop.f32.mrb[8].mxu1 }
 0x37a   :  { %v573_v16 = vpop.f32.mrb[9].mxu1 }
 0x37b   :  { %v4005_v17 = vpop.f32.mrb[10].mxu1 }
 0x37c   :  { %v589_v18 = vpack.c.bf16 %v4005_v17, %v4004_v15  ;;  %v576_v19 = vpop.f32.mrb[11].mxu1 }
 0x37d   :  { %v588_v20 = vpack.c.bf16 %v576_v19, %v573_v16  ;;  %v1397_v22 = vld [vmem:[#allocation3 + $0x8] sm:$0xff] }
 0x37e   :  { %591 = vst.msk [vmem:[#allocation3 + $0x18] sm:$0xff] %vm319_vm3, %v589_v18  ;;  %v1396_v21 = vld [vmem:[#allocation3] sm:$0xff] }
 0x37f   :  { %590 = vst.msk [vmem:[#allocation3 + $0x10] sm:$0xff] %vm319_vm3, %v588_v20  ;;  %4080 = vmatprep.mubr.msk.bf16.mxu0 %vm319_vm3, %v1396_v21  ;;  %4114 = vmatprep.mubr.msk.bf16.mxu1 %vm319_vm3, %v1396_v21 }
 0x380   :  { %4081 = vmatmul.mubr.msk.bf16.vlgmr.msra.gmra.mrb[36].mxu0 %vm319_vm3, %v1397_v22  ;;  %4115 = vmatmul.mubr.msk.bf16.vlgmr.msra.gmra.mrb[36].mxu1 %vm319_vm3, %v1397_v22 }
 0x381   :  { %v4016_v23 = vpop.f32.mrb[12].mxu1 }
 0x382   :  { %v706_v24 = vpop.f32.mrb[13].mxu1 }
 0x383   :  { %v4017_v25 = vpop.f32.mrb[14].mxu1 }
 0x384   :  { %v722_v26 = vpack.c.bf16 %v4017_v25, %v4016_v23  ;;  %v709_v27 = vpop.f32.mrb[15].mxu1 }
 0x385   :  { %v721_v28 = vpack.c.bf16 %v709_v27, %v706_v24  ;;  %v1399_v30 = vld [vmem:[#allocation3 + $0x18] sm:$0xff] }
 0x386   :  { %v1398_v29 = vld [vmem:[#allocation3 + $0x10] sm:$0xff]  ;;  %724 = vst.msk [vmem:[#allocation3 + $0x28] sm:$0xff] %vm319_vm3, %v722_v26 }
 0x387   :  { %4084 = vmatprep.mubr.msk.bf16.mxu0 %vm319_vm3, %v1398_v29  ;;  %4118 = vmatprep.mubr.msk.bf16.mxu1 %vm319_vm3, %v1398_v29  ;;  %723 = vst.msk [vmem:[#allocation3 + $0x20] sm:$0xff] %vm319_vm3, %v721_v28  ;;  %v5122_v29 = vld [vmem:[#allocation26] sm:$0xff] }
 0x388   :  { %4085 = vmatmul.mubr.msk.bf16.gmra.mrb[40].mxu0 %vm319_vm3, %v1399_v30  ;;  %4119 = vmatmul.mubr.msk.bf16.gmra.mrb[40].mxu1 %vm319_vm3, %v1399_v30 }
 0x389   :  { %v4028_v31 = vpop.f32.mrb[16].mxu1 }
 0x38a   :  { %v841_v32 = vpop.f32.mrb[17].mxu1 }
 0x38b   :  { %v4029_v33 = vpop.f32.mrb[18].mxu1 }
 0x38c   :  { %v857_v34 = vpack.c.bf16 %v4029_v33, %v4028_v31  ;;  %v844_v35 = vpop.f32.mrb[19].mxu1 }
 0x38d   :  { %v856_v36 = vpack.c.bf16 %v844_v35, %v841_v32  ;;  %v1667_v37 = vld [vmem:[#allocation3 + $0x28] sm:$0xff] }
 0x38e   :  { %859 = vst.msk [vmem:[#allocation3 + $0x38] sm:$0xff] %vm319_vm3, %v857_v34  ;;  %v1666_v38 = vld [vmem:[#allocation3 + $0x20] sm:$0xff] }
 0x38f   :  { %858 = vst.msk [vmem:[#allocation3 + $0x30] sm:$0xff] %vm319_vm3, %v856_v36  ;;  %4122 = vmatprep.mubr.msk.bf16.mxu1 %vm319_vm3, %v1666_v38  ;;  %4088 = vmatprep.mubr.msk.bf16.mxu0 %vm319_vm3, %v1666_v38  ;;  %v5126_v35 = vld [vmem:[#allocation26 + $0x8] sm:$0xff] }
 0x390   :  { %4123 = vmatmul.mubr.msk.bf16.gmra.mrb[44].mxu1 %vm319_vm3, %v1667_v37  ;;  %4089 = vmatmul.mubr.msk.bf16.gmra.mrb[44].mxu0 %vm319_vm3, %v1667_v37 }
 0x391   :  { %v4040_v39 = vpop.f32.mrb[20].mxu1 }
 0x392   :  { %v974_v40 = vpop.f32.mrb[21].mxu1 }
 0x393   :  { %v4041_v41 = vpop.f32.mrb[22].mxu1 }
 0x394   :  { %v990_v42 = vpack.c.bf16 %v4041_v41, %v4040_v39  ;;  %v977_v43 = vpop.f32.mrb[23].mxu1 }
 0x395   :  { %v989_v44 = vpack.c.bf16 %v977_v43, %v974_v40  ;;  %v1669_v45 = vld [vmem:[#allocation3 + $0x38] sm:$0xff] }
 0x396   :  { %992 = vst.msk [vmem:[#allocation3 + $0x48] sm:$0xff] %vm319_vm3, %v990_v42  ;;  %v1668_v46 = vld [vmem:[#allocation3 + $0x30] sm:$0xff] }
 0x397   :  { %4126 = vmatprep.mubr.msk.bf16.mxu1 %vm319_vm3, %v1668_v46  ;;  %991 = vst.msk [vmem:[#allocation3 + $0x40] sm:$0xff] %vm319_vm3, %v989_v44  ;;  %4092 = vmatprep.mubr.msk.bf16.mxu0 %vm319_vm3, %v1668_v46 }
 0x398   :  { %4127 = vmatmul.mubr.msk.bf16.gmra.mrb[48].mxu1 %vm319_vm3, %v1669_v45  ;;  %4093 = vmatmul.mubr.msk.bf16.gmra.mrb[48].mxu0 %vm319_vm3, %v1669_v45 }
 0x399   :  { %v4052_v47 = vpop.f32.mrb[24].mxu1 }
 0x39a   :  { %v1109_v48 = vpop.f32.mrb[25].mxu1 }
 0x39b   :  { %v4053_v49 = vpop.f32.mrb[26].mxu1 }
 0x39c   :  { %v1125_v50 = vpack.c.bf16 %v4053_v49, %v4052_v47  ;;  %v1112_v51 = vpop.f32.mrb[27].mxu1 }
 0x39d   :  { %v1124_v52 = vpack.c.bf16 %v1112_v51, %v1109_v48  ;;  %v1671_v53 = vld [vmem:[#allocation3 + $0x48] sm:$0xff] }
 0x39e   :  { %1127 = vst.msk [vmem:[#allocation3 + $0x58] sm:$0xff] %vm319_vm3, %v1125_v50  ;;  %v1670_v54 = vld [vmem:[#allocation3 + $0x40] sm:$0xff] }
 0x39f   :  { %1126 = vst.msk [vmem:[#allocation3 + $0x50] sm:$0xff] %vm319_vm3, %v1124_v52  ;;  %4130 = vmatprep.mubr.msk.bf16.mxu1 %vm319_vm3, %v1670_v54  ;;  %4096 = vmatprep.mubr.msk.bf16.mxu0 %vm319_vm3, %v1670_v54 }
 0x3a0   :  { %4131 = vmatmul.mubr.msk.bf16.gmra.mrb[52].mxu1 %vm319_vm3, %v1671_v53  ;;  %4097 = vmatmul.mubr.msk.bf16.gmra.mrb[52].mxu0 %vm319_vm3, %v1671_v53 }
 0x3a1   :  { %v4064_v55 = vpop.f32.mrb[28].mxu1 }
 0x3a2   :  { %v1242_v56 = vpop.f32.mrb[29].mxu1 }
 0x3a3   :  { %v4065_v57 = vpop.f32.mrb[30].mxu1 }
 0x3a4   :  { %v1258_v58 = vpack.c.bf16 %v4065_v57, %v4064_v55  ;;  %v1245_v59 = vpop.f32.mrb[31].mxu1  ;;  %v4362_v55 = vld [vmem:[#allocation22 + $0x8] sm:$0xff]  }
 0x3a5   :  { %v1257_v60 = vpack.c.bf16 %v1245_v59, %v1242_v56  ;;  %v1673_v61 = vld [vmem:[#allocation3 + $0x58] sm:$0xff] }
 0x3a6   :  { %1260 = vst.msk [vmem:[#allocation3 + $0x68] sm:$0xff] %vm319_vm3, %v1258_v58  ;;  %v1672_v62 = vld [vmem:[#allocation3 + $0x50] sm:$0xff] }
 0x3a7   :  { %4134 = vmatprep.mubr.msk.bf16.mxu1 %vm319_vm3, %v1672_v62  ;;  %1259 = vst.msk [vmem:[#allocation3 + $0x60] sm:$0xff] %vm319_vm3, %v1257_v60  ;;  %4100 = vmatprep.mubr.msk.bf16.mxu0 %vm319_vm3, %v1672_v62 }
 0x3a8   :  { %4135 = vmatmul.mubr.msk.bf16.gmra.mrb[56].mxu1 %vm319_vm3, %v1673_v61  ;;  %4101 = vmatmul.mubr.msk.bf16.gmra.mrb[56].mxu0 %vm319_vm3, %v1673_v61 }
 0x3a9   :  { %v4076_v63 = vpop.f32.mrb[32].mxu1 }
 0x3aa   :  { %v1377_v0 = vpop.f32.mrb[33].mxu1 }
 0x3ab   :  { %v4077_v1 = vpop.f32.mrb[34].mxu1 }
 0x3ac   :  { %v1393_v2 = vpack.c.bf16 %v4077_v1, %v4076_v63  ;;  %v1380_v3 = vpop.f32.mrb[35].mxu1  ;;  %v4365_v1 = vld [vmem:[#allocation20] sm:$0xff]  }
 0x3ad   :  { %v1392_v4 = vpack.c.bf16 %v1380_v3, %v1377_v0  ;;  %v1675_v5 = vld [vmem:[#allocation3 + $0x68] sm:$0xff] }
 0x3ae   :  { %1395 = vst.msk [vmem:[#allocation3 + $0x78] sm:$0xff] %vm319_vm3, %v1393_v2  ;;  %v1674_v6 = vld [vmem:[#allocation3 + $0x60] sm:$0xff] }
 0x3af   :  { %1394 = vst.msk [vmem:[#allocation3 + $0x70] sm:$0xff] %vm319_vm3, %v1392_v4  ;;  %4138 = vmatprep.mubr.msk.bf16.mxu1 %vm319_vm3, %v1674_v6  ;;  %4104 = vmatprep.mubr.msk.bf16.mxu0 %vm319_vm3, %v1674_v6 }
 0x3b0   :  { %4139 = vmatmul.mubr.msk.bf16.gmra.mrb[60].mxu1 %vm319_vm3, %v1675_v5  ;;  %4105 = vmatmul.mubr.msk.bf16.gmra.mrb[60].mxu0 %vm319_vm3, %v1675_v5 }
 0x3b5   :  { %v1677_v7 = vld [vmem:[#allocation3 + $0x78] sm:$0xff] }
 0x3b6   :  { %v1676_v8 = vld [vmem:[#allocation3 + $0x70] sm:$0xff] }
 0x3b7   :  { %4142 = vmatprep.mubr.msk.bf16.mxu1 %vm319_vm3, %v1676_v8  ;;  %4108 = vmatprep.mubr.msk.bf16.mxu0 %vm319_vm3, %v1676_v8 }
 0x3b8   :  { %4143 = vmatmul.mubr.msk.bf16.gmra.mrb[64].mxu1 %vm319_vm3, %v1677_v7  ;;  %4109 = vmatmul.mubr.msk.bf16.gmra.mrb[64].mxu0 %vm319_vm3, %v1677_v7 }
 0x3b9   :  { %4148 = vmatprep.mubr.msk.bf16.mxu0 %vm319_vm3, %v4361_v9  ;;  %4160 = vmatprep.mubr.msk.bf16.mxu1 %vm319_vm3, %v4363_v10 }
 0x453   :  { %v4082_v11 = vpop.f32.mrb[36].mxu0  ;;  %v4116_v12 = vpop.f32.mrb[36].mxu1 }
 0x454   :  { %1632 = vst.msk [vmem:[#allocation4 + $0x10] sm:$0xff] %vm1629_vm4, %v4082_v11  ;;  %1897 = vst.msk [vmem:[#allocation5 + $0x10] sm:$0xff] %vm1629_vm4, %v4116_v12  ;;  %v1502_v13 = vpop.f32.mrb[37].mxu0  ;;  %v1768_v14 = vpop.f32.mrb[37].mxu1 }
 0x455   :  { %1630 = vst.msk [vmem:[#allocation4] sm:$0xff] %vm1629_vm4, %v1502_v13  ;;  %1895 = vst.msk [vmem:[#allocation5] sm:$0xff] %vm1629_vm4, %v1768_v14  ;;  %v4083_v15 = vpop.f32.mrb[38].mxu0  ;;  %v4117_v16 = vpop.f32.mrb[38].mxu1 }
 0x456   :  { %1633 = vst.msk [vmem:[#allocation4 + $0x18] sm:$0xff] %vm1629_vm4, %v4083_v15  ;;  %1898 = vst.msk [vmem:[#allocation5 + $0x18] sm:$0xff] %vm1629_vm4, %v4117_v16  ;;  %v1505_v17 = vpop.f32.mrb[39].mxu0  ;;  %v1771_v18 = vpop.f32.mrb[39].mxu1 }
 0x457   :  { %1631 = vst.msk [vmem:[#allocation4 + $0x8] sm:$0xff] %vm1629_vm4, %v1505_v17  ;;  %1896 = vst.msk [vmem:[#allocation5 + $0x8] sm:$0xff] %vm1629_vm4, %v1771_v18 }
 0x45b   :  { %v4086_v19 = vpop.f32.mrb[40].mxu0  ;;  %v4120_v20 = vpop.f32.mrb[40].mxu1  ;;  %v1939_v21 = vld [vmem:[#allocation4 + $0x10] sm:$0xff] }
 0x45c   :  { %1636 = vst.msk [vmem:[#allocation4 + $0x30] sm:$0xff] %vm1629_vm4, %v4086_v19  ;;  %1901 = vst.msk [vmem:[#allocation5 + $0x30] sm:$0xff] %vm1629_vm4, %v4120_v20  ;;  %v1518_v22 = vpop.f32.mrb[41].mxu0  ;;  %v1784_v23 = vpop.f32.mrb[41].mxu1  ;;  %v1937_v24 = vld [vmem:[#allocation5] sm:$0xff]  ;;  %v1931_v26 = vld [vmem:[#allocation5 + $0x10] sm:$0xff] }
 0x45d   :  { %v1929_v25 = vld [vmem:[#allocation4] sm:$0xff]  ;;  %1634 = vst.msk [vmem:[#allocation4 + $0x20] sm:$0xff] %vm1629_vm4, %v1518_v22  ;;  %1899 = vst.msk [vmem:[#allocation5 + $0x20] sm:$0xff] %vm1629_vm4, %v1784_v23  ;;  %v4087_v27 = vpop.f32.mrb[42].mxu0  ;;  %v4121_v28 = vpop.f32.mrb[42].mxu1  ;;  %v1940_v30 = vld [vmem:[#allocation4 + $0x18] sm:$0xff]  ;;  %v1941_v31 = vadd.f32 %v1939_v21, %v1937_v24 }
 0x45e   :  { %v1932_v32 = vld [vmem:[#allocation5 + $0x18] sm:$0xff]  ;;  %1637 = vst.msk [vmem:[#allocation4 + $0x38] sm:$0xff] %vm1629_vm4, %v4087_v27  ;;  %1902 = vst.msk [vmem:[#allocation5 + $0x38] sm:$0xff] %vm1629_vm4, %v4121_v28  ;;  %v1521_v33 = vpop.f32.mrb[43].mxu0  ;;  %v1787_v34 = vpop.f32.mrb[43].mxu1  ;;  %v1938_v36 = vld [vmem:[#allocation5 + $0x8] sm:$0xff]  ;;  %v1933_v39 = vsub.f32 %v1929_v25, %v1931_v26 }
 0x45f   :  { %v1930_v37 = vld [vmem:[#allocation4 + $0x8] sm:$0xff]  ;;  %1635 = vst.msk [vmem:[#allocation4 + $0x28] sm:$0xff] %vm1629_vm4, %v1521_v33  ;;  %1900 = vst.msk [vmem:[#allocation5 + $0x28] sm:$0xff] %vm1629_vm4, %v1787_v34  ;;  %v1942_v38 = vadd.f32 %v1940_v30, %v1938_v36  ;;  %v1943_v41 = vmul.f32 %v1941_v31, %v5122_v29  ;;  %v4366_v34 = vld [vmem:[#allocation20 + $0x8] sm:$0xff]  }
 0x460   :  { %v1934_v40 = vsub.f32 %v1930_v37, %v1932_v32  ;;  %v1935_v45 = vmul.f32 %v1933_v39, %v5122_v29  ;;  %v4364_v19 = vld [vmem:[#allocation22 + $0x8] sm:$0xff]   ;;  %v4367_v26 = vld [vmem:[#allocation20] sm:$0xff]   ;;  %v4369_v39 = vld [vmem:[#allocation22] sm:$0xff]  }
 0x461   :  { %v1944_v42 = vmul.f32 %v1942_v38, %v5126_v35 }
 0x462   :  { %v1936_v43 = vmul.f32 %v1934_v40, %v5126_v35 }
 0x463   :  { %v1954_v44 = vpack.c.bf16 %v1944_v42, %v1943_v41  ;;  %v2101_v46 = vld [vmem:[#allocation4 + $0x30] sm:$0xff]  ;;  %v4124_v47 = vpop.f32.mrb[44].mxu1  ;;  %v4090_v48 = vpop.f32.mrb[44].mxu0 }
 0x464   :  { %v2099_v49 = vld [vmem:[#allocation5 + $0x20] sm:$0xff]  ;;  %v2093_v51 = vld [vmem:[#allocation5 + $0x30] sm:$0xff]  ;;  %1905 = vst.msk [vmem:[#allocation5 + $0x50] sm:$0xff] %vm1629_vm4, %v4124_v47  ;;  %1640 = vst.msk [vmem:[#allocation4 + $0x50] sm:$0xff] %vm1629_vm4, %v4090_v48  ;;  %v1800_v52 = vpop.f32.mrb[45].mxu1  ;;  %v1534_v53 = vpop.f32.mrb[45].mxu0  ;;  %v1949_v54 = vpack.c.bf16 %v1936_v43, %v1935_v45 }
 0x465   :  { %v2091_v50 = vld [vmem:[#allocation4 + $0x20] sm:$0xff]  ;;  %4146 = vmatprep.subr.bf16.mxu0 %v1954_v44  ;;  %v2102_v56 = vld [vmem:[#allocation4 + $0x38] sm:$0xff]  ;;  %v2103_v57 = vadd.f32 %v2101_v46, %v2099_v49  ;;  %1903 = vst.msk [vmem:[#allocation5 + $0x40] sm:$0xff] %vm1629_vm4, %v1800_v52  ;;  %1638 = vst.msk [vmem:[#allocation4 + $0x40] sm:$0xff] %vm1629_vm4, %v1534_v53  ;;  %v4125_v59 = vpop.f32.mrb[46].mxu1  ;;  %v4091_v60 = vpop.f32.mrb[46].mxu0 }
 0x466   :  { %v2094_v58 = vld [vmem:[#allocation5 + $0x38] sm:$0xff]  ;;  %4147 = vmatpush3.bf16.msra.mxu0 %v1954_v44  ;;  %v2100_v61 = vld [vmem:[#allocation5 + $0x28] sm:$0xff]  ;;  %1906 = vst.msk [vmem:[#allocation5 + $0x58] sm:$0xff] %vm1629_vm4, %v4125_v59  ;;  %1641 = vst.msk [vmem:[#allocation4 + $0x58] sm:$0xff] %vm1629_vm4, %v4091_v60  ;;  %v1803_v63 = vpop.f32.mrb[47].mxu1  ;;  %v1537_v0 = vpop.f32.mrb[47].mxu0  ;;  %v2095_v3 = vsub.f32 %v2091_v50, %v2093_v51 }
 0x467   :  { %v2092_v62 = vld [vmem:[#allocation4 + $0x28] sm:$0xff]  ;;  %4152 = vmatprep.subr.bf16.mxu0 %v1949_v54  ;;  %v2104_v2 = vadd.f32 %v2102_v56, %v2100_v61  ;;  %1904 = vst.msk [vmem:[#allocation5 + $0x48] sm:$0xff] %vm1629_vm4, %v1803_v63  ;;  %1639 = vst.msk [vmem:[#allocation4 + $0x48] sm:$0xff] %vm1629_vm4, %v1537_v0  ;;  %v2105_v5 = vmul.f32 %v2103_v57, %v5122_v29  ;;  %v4368_v63 = vld [vmem:[#allocation20 + $0x8] sm:$0xff]  }
 0x468   :  { %v2096_v4 = vsub.f32 %v2092_v62, %v2094_v58  ;;  %v2097_v9 = vmul.f32 %v2095_v3, %v5122_v29 }
 0x469   :  { %4149 = vmatmul.mubr.msk.bf16.vlgmr.msra.gmra.mrb[68].mxu0 %vm319_vm3, %v4362_v55  ;;  %v2106_v6 = vmul.f32 %v2104_v2, %v5126_v35  ;;  %v4370_v2 = vld [vmem:[#allocation22 + $0x8] sm:$0xff]  }
 0x46a   :  { %v2098_v7 = vmul.f32 %v2096_v4, %v5126_v35  ;;  %4153 = vmatpush3.bf16.msra.mxu0 %v1949_v54  ;;  %4154 = vmatprep.mubr.msk.bf16.mxu0 %vm319_vm3, %v4365_v1 }
 0x46b   :  { %v2116_v8 = vpack.c.bf16 %v2106_v6, %v2105_v5  ;;  %v4128_v10 = vpop.f32.mrb[48].mxu1  ;;  %v4094_v11 = vpop.f32.mrb[48].mxu0  ;;  %v2263_v12 = vld [vmem:[#allocation4 + $0x50] sm:$0xff] }
 0x46c   :  { %1909 = vst.msk [vmem:[#allocation5 + $0x70] sm:$0xff] %vm1629_vm4, %v4128_v10  ;;  %1644 = vst.msk [vmem:[#allocation4 + $0x70] sm:$0xff] %vm1629_vm4, %v4094_v11  ;;  %v1816_v13 = vpop.f32.mrb[49].mxu1  ;;  %v1550_v14 = vpop.f32.mrb[49].mxu0  ;;  %v2261_v15 = vld [vmem:[#allocation5 + $0x40] sm:$0xff]  ;;  %v2255_v17 = vld [vmem:[#allocation5 + $0x50] sm:$0xff]  ;;  %v2111_v18 = vpack.c.bf16 %v2098_v7, %v2097_v9 }
 0x46d   :  { %v2253_v16 = vld [vmem:[#allocation4 + $0x40] sm:$0xff]  ;;  %4158 = vmatprep.subr.bf16.mxu1 %v2116_v8  ;;  %1907 = vst.msk [vmem:[#allocation5 + $0x60] sm:$0xff] %vm1629_vm4, %v1816_v13  ;;  %1642 = vst.msk [vmem:[#allocation4 + $0x60] sm:$0xff] %vm1629_vm4, %v1550_v14  ;;  %v4129_v20 = vpop.f32.mrb[50].mxu1  ;;  %v4095_v21 = vpop.f32.mrb[50].mxu0  ;;  %v2264_v22 = vld [vmem:[#allocation4 + $0x58] sm:$0xff]  ;;  %v2265_v23 = vadd.f32 %v2263_v12, %v2261_v15 }
 0x46e   :  { %v2256_v24 = vld [vmem:[#allocation5 + $0x58] sm:$0xff]  ;;  %4159 = vmatpush3.bf16.msra.mxu1 %v2116_v8  ;;  %1910 = vst.msk [vmem:[#allocation5 + $0x78] sm:$0xff] %vm1629_vm4, %v4129_v20  ;;  %1645 = vst.msk [vmem:[#allocation4 + $0x78] sm:$0xff] %vm1629_vm4, %v4095_v21  ;;  %v1819_v25 = vpop.f32.mrb[51].mxu1  ;;  %v1553_v27 = vpop.f32.mrb[51].mxu0  ;;  %v2262_v28 = vld [vmem:[#allocation5 + $0x48] sm:$0xff]  ;;  %v2257_v32 = vsub.f32 %v2253_v16, %v2255_v17 }
 0x46f   :  { %v2254_v30 = vld [vmem:[#allocation4 + $0x48] sm:$0xff]  ;;  %4164 = vmatprep.subr.bf16.mxu1 %v2111_v18  ;;  %1908 = vst.msk [vmem:[#allocation5 + $0x68] sm:$0xff] %vm1629_vm4, %v1819_v25  ;;  %1643 = vst.msk [vmem:[#allocation4 + $0x68] sm:$0xff] %vm1629_vm4, %v1553_v27  ;;  %v2266_v31 = vadd.f32 %v2264_v22, %v2262_v28  ;;  %v2267_v36 = vmul.f32 %v2265_v23, %v5122_v29  ;;  %v4371_v7 = vld [vmem:[#allocation22] sm:$0xff]  }
 0x470   :  { %v2258_v33 = vsub.f32 %v2254_v30, %v2256_v24  ;;  %v2259_v44 = vmul.f32 %v2257_v32, %v5122_v29  ;;  %v4373_v12 = vld [vmem:[#allocation20] sm:$0xff]   ;;  %v4372_v28 = vld [vmem:[#allocation22 + $0x8] sm:$0xff]  }
 0x471   :  { %4161 = vmatmul.mubr.msk.bf16.vlgmr.msra.gmra.mrb[68].mxu1 %vm319_vm3, %v4364_v19  ;;  %v2268_v37 = vmul.f32 %v2266_v31, %v5126_v35  ;;  %v4375_v31 = vld [vmem:[#allocation20] sm:$0xff]  }
 0x472   :  { %v2260_v38 = vmul.f32 %v2258_v33, %v5126_v35  ;;  %4165 = vmatpush3.bf16.msra.mxu1 %v2111_v18  ;;  %4166 = vmatprep.mubr.msk.bf16.mxu1 %vm319_vm3, %v4367_v26 }
 0x473   :  { %v4132_v40 = vpop.f32.mrb[52].mxu1  ;;  %v4098_v41 = vpop.f32.mrb[52].mxu0  ;;  %v2278_v42 = vpack.c.bf16 %v2268_v37, %v2267_v36  ;;  %v2425_v43 = vld [vmem:[#allocation4 + $0x70] sm:$0xff] }
 0x474   :  { %1913 = vst.msk [vmem:[#allocation5 + $0x90] sm:$0xff] %vm1629_vm4, %v4132_v40  ;;  %1648 = vst.msk [vmem:[#allocation4 + $0x90] sm:$0xff] %vm1629_vm4, %v4098_v41  ;;  %v1832_v45 = vpop.f32.mrb[53].mxu1  ;;  %v1566_v46 = vpop.f32.mrb[53].mxu0  ;;  %v2423_v47 = vld [vmem:[#allocation5 + $0x60] sm:$0xff]  ;;  %v2417_v48 = vld [vmem:[#allocation5 + $0x70] sm:$0xff]  ;;  %v2273_v53 = vpack.c.bf16 %v2260_v38, %v2259_v44 }
 0x475   :  { %4155 = vmatmul.mubr.msk.bf16.vlgmr.msra.gmra.mrb[68].mxu0 %vm319_vm3, %v4366_v34  ;;  %1911 = vst.msk [vmem:[#allocation5 + $0x80] sm:$0xff] %vm1629_vm4, %v1832_v45  ;;  %4170 = vmatprep.subr.bf16.mxu0 %v2278_v42  ;;  %1646 = vst.msk [vmem:[#allocation4 + $0x80] sm:$0xff] %vm1629_vm4, %v1566_v46  ;;  %v4133_v49 = vpop.f32.mrb[54].mxu1  ;;  %v2426_v50 = vld [vmem:[#allocation4 + $0x78] sm:$0xff]  ;;  %v2427_v51 = vadd.f32 %v2425_v43, %v2423_v47  ;;  %v4099_v52 = vpop.f32.mrb[54].mxu0  ;;  %v2415_v54 = vld [vmem:[#allocation4 + $0x60] sm:$0xff] }
 0x476   :  { %v2418_v55 = vld [vmem:[#allocation5 + $0x78] sm:$0xff]  ;;  %1914 = vst.msk [vmem:[#allocation5 + $0x98] sm:$0xff] %vm1629_vm4, %v4133_v49  ;;  %4171 = vmatpush3.bf16.msra.mxu0 %v2278_v42  ;;  %v2424_v56 = vld [vmem:[#allocation5 + $0x68] sm:$0xff]  ;;  %1649 = vst.msk [vmem:[#allocation4 + $0x98] sm:$0xff] %vm1629_vm4, %v4099_v52  ;;  %v1835_v57 = vpop.f32.mrb[55].mxu1  ;;  %v1569_v58 = vpop.f32.mrb[55].mxu0  ;;  %4172 = vmatprep.mubr.msk.bf16.mxu0 %vm319_vm3, %v4369_v39  ;;  %v2419_v62 = vsub.f32 %v2415_v54, %v2417_v48 }
 0x477   :  { %v2416_v59 = vld [vmem:[#allocation4 + $0x68] sm:$0xff]  ;;  %v2428_v60 = vadd.f32 %v2426_v50, %v2424_v56  ;;  %1912 = vst.msk [vmem:[#allocation5 + $0x88] sm:$0xff] %vm1629_vm4, %v1835_v57  ;;  %1647 = vst.msk [vmem:[#allocation4 + $0x88] sm:$0xff] %vm1629_vm4, %v1569_v58  ;;  %4176 = vmatprep.subr.bf16.mxu0 %v2273_v53  ;;  %v2429_v0 = vmul.f32 %v2427_v51, %v5122_v29  ;;  %v4374_v42 = vld [vmem:[#allocation20 + $0x8] sm:$0xff]  }
 0x478   :  { %v2420_v61 = vsub.f32 %v2416_v59, %v2418_v55  ;;  %v2421_v11 = vmul.f32 %v2419_v62, %v5122_v29  ;;  %v4377_v50 = vld [vmem:[#allocation22] sm:$0xff]  }
 0x479   :  { %v2430_v1 = vmul.f32 %v2428_v60, %v5126_v35 }
 0x47a   :  { %v2422_v3 = vmul.f32 %v2420_v61, %v5126_v35 }
 0x47b   :  { %v2440_v4 = vpack.c.bf16 %v2430_v1, %v2429_v0  ;;  %v4136_v5 = vpop.f32.mrb[56].mxu1  ;;  %v4102_v6 = vpop.f32.mrb[56].mxu0  ;;  %v2587_v8 = vld [vmem:[#allocation4 + $0x90] sm:$0xff] }
 0x47c   :  { %1917 = vst.msk [vmem:[#allocation5 + $0xb0] sm:$0xff] %vm1629_vm4, %v4136_v5  ;;  %1652 = vst.msk [vmem:[#allocation4 + $0xb0] sm:$0xff] %vm1629_vm4, %v4102_v6  ;;  %v1848_v9 = vpop.f32.mrb[57].mxu1  ;;  %v1582_v10 = vpop.f32.mrb[57].mxu0  ;;  %v2585_v13 = vld [vmem:[#allocation5 + $0x80] sm:$0xff]  ;;  %v2435_v19 = vpack.c.bf16 %v2422_v3, %v2421_v11  ;;  %v2579_v22 = vld [vmem:[#allocation5 + $0x90] sm:$0xff] }
 0x47d   :  { %4167 = vmatmul.mubr.msk.bf16.vlgmr.msra.gmra.mrb[68].mxu1 %vm319_vm3, %v4368_v63  ;;  %4182 = vmatprep.subr.bf16.mxu1 %v2440_v4  ;;  %1915 = vst.msk [vmem:[#allocation5 + $0xa0] sm:$0xff] %vm1629_vm4, %v1848_v9  ;;  %1650 = vst.msk [vmem:[#allocation4 + $0xa0] sm:$0xff] %vm1629_vm4, %v1582_v10  ;;  %v4137_v14 = vpop.f32.mrb[58].mxu1  ;;  %v4103_v15 = vpop.f32.mrb[58].mxu0  ;;  %v2588_v16 = vld [vmem:[#allocation4 + $0x98] sm:$0xff]  ;;  %v2589_v17 = vadd.f32 %v2587_v8, %v2585_v13  ;;  %v2577_v25 = vld [vmem:[#allocation4 + $0x80] sm:$0xff] }
 0x47e   :  { %4183 = vmatpush3.bf16.msra.mxu1 %v2440_v4  ;;  %4173 = vmatmul.mubr.msk.bf16.vlgmr.msra.gmra.mrb[72].mxu0 %vm319_vm3, %v4370_v2  ;;  %1918 = vst.msk [vmem:[#allocation5 + $0xb8] sm:$0xff] %vm1629_vm4, %v4137_v14  ;;  %1653 = vst.msk [vmem:[#allocation4 + $0xb8] sm:$0xff] %vm1629_vm4, %v4103_v15  ;;  %v1851_v18 = vpop.f32.mrb[59].mxu1  ;;  %v1585_v20 = vpop.f32.mrb[59].mxu0  ;;  %v2586_v21 = vld [vmem:[#allocation5 + $0x88] sm:$0xff]  ;;  %v2580_v27 = vld [vmem:[#allocation5 + $0x98] sm:$0xff]  ;;  %v2581_v32 = vsub.f32 %v2577_v25, %v2579_v22 }
 0x47f   :  { %4184 = vmatprep.mubr.msk.bf16.mxu1 %vm319_vm3, %v4371_v7  ;;  %1916 = vst.msk [vmem:[#allocation5 + $0xa8] sm:$0xff] %vm1629_vm4, %v1851_v18  ;;  %4177 = vmatpush3.bf16.msra.mxu0 %v2273_v53  ;;  %1651 = vst.msk [vmem:[#allocation4 + $0xa8] sm:$0xff] %vm1629_vm4, %v1585_v20  ;;  %v2590_v23 = vadd.f32 %v2588_v16, %v2586_v21  ;;  %v2591_v24 = vmul.f32 %v2589_v17, %v5122_v29  ;;  %v2578_v26 = vld [vmem:[#allocation4 + $0x88] sm:$0xff]  ;;  %v4376_v6 = vld [vmem:[#allocation20 + $0x8] sm:$0xff]  }
 0x480   :  { %4188 = vmatprep.subr.bf16.mxu1 %v2435_v19  ;;  %4178 = vmatprep.mubr.msk.bf16.mxu0 %vm319_vm3, %v4373_v12  ;;  %v2582_v33 = vsub.f32 %v2578_v26, %v2580_v27  ;;  %v2583_v51 = vmul.f32 %v2581_v32, %v5122_v29  ;;  %v4378_v11 = vld [vmem:[#allocation22 + $0x8] sm:$0xff]   ;;  %v4379_v17 = vld [vmem:[#allocation22] sm:$0xff]   ;;  %v4381_v20 = vld [vmem:[#allocation20] sm:$0xff]  }
 0x481   :  { %v2592_v30 = vmul.f32 %v2590_v23, %v5126_v35 }
 0x482   :  { %v2584_v52 = vmul.f32 %v2582_v33, %v5126_v35  ;;  %v4380_v33 = vld [vmem:[#allocation22 + $0x8] sm:$0xff]  }
 0x483   :  { %v4140_v34 = vpop.f32.mrb[60].mxu1  ;;  %v4106_v36 = vpop.f32.mrb[60].mxu0  ;;  %v2602_v37 = vpack.c.bf16 %v2592_v30, %v2591_v24  ;;  %v2749_v38 = vld [vmem:[#allocation4 + $0xb0] sm:$0xff] }
 0x484   :  { %1921 = vst.msk [vmem:[#allocation5 + $0xd0] sm:$0xff] %vm1629_vm4, %v4140_v34  ;;  %1656 = vst.msk [vmem:[#allocation4 + $0xd0] sm:$0xff] %vm1629_vm4, %v4106_v36  ;;  %v1864_v39 = vpop.f32.mrb[61].mxu1  ;;  %v1598_v40 = vpop.f32.mrb[61].mxu0  ;;  %v2747_v41 = vld [vmem:[#allocation5 + $0xa0] sm:$0xff]  ;;  %v2741_v53 = vld [vmem:[#allocation5 + $0xb0] sm:$0xff]  ;;  %v2597_v60 = vpack.c.bf16 %v2584_v52, %v2583_v51 }
 0x485   :  { %4185 = vmatmul.mubr.msk.bf16.vlgmr.msra.gmra.mrb[72].mxu1 %vm319_vm3, %v4372_v28  ;;  %1919 = vst.msk [vmem:[#allocation5 + $0xc0] sm:$0xff] %vm1629_vm4, %v1864_v39  ;;  %4194 = vmatprep.subr.bf16.mxu0 %v2602_v37  ;;  %1654 = vst.msk [vmem:[#allocation4 + $0xc0] sm:$0xff] %vm1629_vm4, %v1598_v40  ;;  %v4141_v43 = vpop.f32.mrb[62].mxu1  ;;  %v2750_v44 = vld [vmem:[#allocation4 + $0xb8] sm:$0xff]  ;;  %v2751_v45 = vadd.f32 %v2749_v38, %v2747_v41  ;;  %v4107_v46 = vpop.f32.mrb[62].mxu0  ;;  %v2739_v56 = vld [vmem:[#allocation4 + $0xa0] sm:$0xff] }
 0x486   :  { %4189 = vmatpush3.bf16.msra.mxu1 %v2435_v19  ;;  %4190 = vmatprep.mubr.msk.bf16.mxu1 %vm319_vm3, %v4375_v31  ;;  %1922 = vst.msk [vmem:[#allocation5 + $0xd8] sm:$0xff] %vm1629_vm4, %v4141_v43  ;;  %v2748_v47 = vld [vmem:[#allocation5 + $0xa8] sm:$0xff]  ;;  %1657 = vst.msk [vmem:[#allocation4 + $0xd8] sm:$0xff] %vm1629_vm4, %v4107_v46  ;;  %v1867_v48 = vpop.f32.mrb[63].mxu1  ;;  %v1601_v49 = vpop.f32.mrb[63].mxu0  ;;  %v2742_v58 = vld [vmem:[#allocation5 + $0xb8] sm:$0xff]  ;;  %v2743_v61 = vsub.f32 %v2739_v56, %v2741_v53 }
 0x487   :  { %v2752_v54 = vadd.f32 %v2750_v44, %v2748_v47  ;;  %v2753_v55 = vmul.f32 %v2751_v45, %v5122_v29  ;;  %1920 = vst.msk [vmem:[#allocation5 + $0xc8] sm:$0xff] %vm1629_vm4, %v1867_v48  ;;  %1655 = vst.msk [vmem:[#allocation4 + $0xc8] sm:$0xff] %vm1629_vm4, %v1601_v49  ;;  %v2740_v57 = vld [vmem:[#allocation4 + $0xa8] sm:$0xff] }
 0x488   :  { %v2744_v62 = vsub.f32 %v2740_v57, %v2742_v58  ;;  %v2745_v13 = vmul.f32 %v2743_v61, %v5122_v29  ;;  %v4383_v39 = vld [vmem:[#allocation20] sm:$0xff]   ;;  %v4384_v57 = vld [vmem:[#allocation20 + $0x8] sm:$0xff]   ;;  %v4386_v58 = vld [vmem:[#allocation22 + $0x8] sm:$0xff]  }
 0x489   :  { %v2754_v59 = vmul.f32 %v2752_v54, %v5126_v35  ;;  %v4385_v54 = vld [vmem:[#allocation22] sm:$0xff]   ;;  %v4390_v61 = vld [vmem:[#allocation20 + $0x8] sm:$0xff]  }
 0x48a   :  { %4179 = vmatmul.mubr.msk.bf16.vlgmr.msra.gmra.mrb[72].mxu0 %vm319_vm3, %v4374_v42  ;;  %v2746_v14 = vmul.f32 %v2744_v62, %v5126_v35  ;;  %v4392_v62 = vld [vmem:[#allocation20 + $0x8] sm:$0xff]  }
 0x48b   :  { %4195 = vmatpush3.bf16.msra.mxu0 %v2602_v37  ;;  %v2764_v63 = vpack.c.bf16 %v2754_v59, %v2753_v55  ;;  %v4144_v0 = vpop.f32.mrb[64].mxu1  ;;  %4196 = vmatprep.mubr.msk.bf16.mxu0 %vm319_vm3, %v4377_v50  ;;  %v4110_v1 = vpop.f32.mrb[64].mxu0  ;;  %v2911_v2 = vld [vmem:[#allocation4 + $0xd0] sm:$0xff]  ;;  %v4387_v59 = vld [vmem:[#allocation22] sm:$0xff]  }
 0x48c   :  { %1925 = vst.msk [vmem:[#allocation5 + $0xf0] sm:$0xff] %vm1629_vm4, %v4144_v0  ;;  %1660 = vst.msk [vmem:[#allocation4 + $0xf0] sm:$0xff] %vm1629_vm4, %v4110_v1  ;;  %v1880_v3 = vpop.f32.mrb[65].mxu1  ;;  %v1614_v4 = vpop.f32.mrb[65].mxu0  ;;  %4200 = vmatprep.subr.bf16.mxu0 %v2597_v60  ;;  %v2909_v5 = vld [vmem:[#allocation5 + $0xc0] sm:$0xff]  ;;  %v2759_v22 = vpack.c.bf16 %v2746_v14, %v2745_v13  ;;  %v2903_v24 = vld [vmem:[#allocation5 + $0xd0] sm:$0xff] }
 0x48d   :  { %4206 = vmatprep.subr.bf16.mxu1 %v2764_v63  ;;  %1923 = vst.msk [vmem:[#allocation5 + $0xe0] sm:$0xff] %vm1629_vm4, %v1880_v3  ;;  %1658 = vst.msk [vmem:[#allocation4 + $0xe0] sm:$0xff] %vm1629_vm4, %v1614_v4  ;;  %v4145_v7 = vpop.f32.mrb[66].mxu1  ;;  %v4111_v8 = vpop.f32.mrb[66].mxu0  ;;  %v2912_v9 = vld [vmem:[#allocation4 + $0xd8] sm:$0xff]  ;;  %v2913_v10 = vadd.f32 %v2911_v2, %v2909_v5  ;;  %v2901_v23 = vld [vmem:[#allocation4 + $0xc0] sm:$0xff] }
 0x48e   :  { %1926 = vst.msk [vmem:[#allocation5 + $0xf8] sm:$0xff] %vm1629_vm4, %v4145_v7  ;;  %1661 = vst.msk [vmem:[#allocation4 + $0xf8] sm:$0xff] %vm1629_vm4, %v4111_v8  ;;  %v1883_v12 = vpop.f32.mrb[67].mxu1  ;;  %v1617_v15 = vpop.f32.mrb[67].mxu0  ;;  %v2910_v16 = vld [vmem:[#allocation5 + $0xc8] sm:$0xff]  ;;  %v2904_v25 = vld [vmem:[#allocation5 + $0xd8] sm:$0xff]  ;;  %v2905_v41 = vsub.f32 %v2901_v23, %v2903_v24 }
 0x48f   :  { %1924 = vst.msk [vmem:[#allocation5 + $0xe8] sm:$0xff] %vm1629_vm4, %v1883_v12  ;;  %1659 = vst.msk [vmem:[#allocation4 + $0xe8] sm:$0xff] %vm1629_vm4, %v1617_v15  ;;  %v2914_v18 = vadd.f32 %v2912_v9, %v2910_v16  ;;  %v2915_v19 = vmul.f32 %v2913_v10, %v5122_v29  ;;  %v2902_v28 = vld [vmem:[#allocation4 + $0xc8] sm:$0xff]  ;;  %v4382_v50 = vld [vmem:[#allocation20 + $0x8] sm:$0xff]   ;;  %v4715_v0 = vmov 65535  }
 0x490   :  { %v2906_v42 = vsub.f32 %v2902_v28, %v2904_v25  ;;  %v2907_v51 = vmul.f32 %v2905_v41, %v5122_v29  ;;  %v3263_v1 = vsel %vm246_vm0, 4294967295, %v4715_v0  ;;  %v4394_v2 = vld [vmem:[#allocation25] sm:$0x1f]  }
 0x491   :  { %4191 = vmatmul.mubr.msk.bf16.vlgmr.msra.gmra.mrb[72].mxu1 %vm319_vm3, %v4376_v6  ;;  %v2916_v21 = vmul.f32 %v2914_v18, %v5126_v35  ;;  %v3264_v3 = vsel %vm3262_vm5, %v3263_v1, 0 }
 0x492   :  { %4207 = vmatpush3.bf16.msra.mxu1 %v2764_v63  ;;  %4197 = vmatmul.mubr.msk.bf16.vlgmr.msra.gmra.mrb[76].mxu0 %vm319_vm3, %v4378_v11  ;;  %v2908_v52 = vmul.f32 %v2906_v42, %v5126_v35  ;;  %v4393_v63 = vld [vmem:[#allocation23] sm:$0x1f]   ;;  %v3437_v5 = vand.u32 %v4394_v2, %v3264_v3 }
 0x493   :  { %4208 = vmatprep.mubr.msk.bf16.mxu1 %vm319_vm3, %v4379_v17  ;;  %4201 = vmatpush3.bf16.msra.mxu0 %v2597_v60  ;;  %v2926_v26 = vpack.c.bf16 %v2916_v21, %v2915_v19  ;;  %v3073_v27 = vld [vmem:[#allocation4 + $0xf0] sm:$0xff]  ;;  %v3266_v4 = vand.u32 %v4393_v63, %v3264_v3 }
 0x494   :  { %v3065_v30 = vld [vmem:[#allocation5 + $0xf0] sm:$0xff]  ;;  %4212 = vmatprep.subr.bf16.mxu1 %v2759_v22  ;;  %4202 = vmatprep.mubr.msk.bf16.mxu0 %vm319_vm3, %v4381_v20  ;;  %v3071_v31 = vld [vmem:[#allocation5 + $0xe0] sm:$0xff]  ;;  %v2921_v56 = vpack.c.bf16 %v2908_v52, %v2907_v51 }
 0x495   :  { %v3063_v32 = vld [vmem:[#allocation4 + $0xe0] sm:$0xff]  ;;  %4218 = vmatprep.subr.bf16.mxu0 %v2926_v26  ;;  %v3074_v34 = vld [vmem:[#allocation4 + $0xf8] sm:$0xff]  ;;  %v3075_v36 = vadd.f32 %v3073_v27, %v3071_v31  ;;  %v4389_v60 = vld [vmem:[#allocation20] sm:$0xff]  }
 0x496   :  { %v3066_v37 = vld [vmem:[#allocation5 + $0xf8] sm:$0xff]  ;;  %v3067_v38 = vsub.f32 %v3063_v32, %v3065_v30  ;;  %v3072_v40 = vld [vmem:[#allocation5 + $0xe8] sm:$0xff] }
 0x497   :  { %v3064_v43 = vld [vmem:[#allocation4 + $0xe8] sm:$0xff]  ;;  %v3076_v44 = vadd.f32 %v3074_v34, %v3072_v40  ;;  %v3077_v45 = vmul.f32 %v3075_v36, %v5122_v29 }
 0x498   :  { %v3068_v46 = vsub.f32 %v3064_v43, %v3066_v37  ;;  %v3069_v47 = vmul.f32 %v3067_v38, %v5122_v29  ;;  %v4388_v29 = vld [vmem:[#allocation22 + $0x8] sm:$0xff]  }
 0x499   :  { %4209 = vmatmul.mubr.msk.bf16.vlgmr.msra.gmra.mrb[76].mxu1 %vm319_vm3, %v4380_v33  ;;  %v3078_v48 = vmul.f32 %v3076_v44, %v5126_v35 }
 0x49a   :  { %v3070_v49 = vmul.f32 %v3068_v46, %v5126_v35  ;;  %4213 = vmatpush3.bf16.msra.mxu1 %v2759_v22  ;;  %4214 = vmatprep.mubr.msk.bf16.mxu1 %vm319_vm3, %v4383_v39  ;;  %v4391_v35 = vld [vmem:[#allocation20] sm:$0xff]  }
 0x49b   :  { %v3088_v53 = vpack.c.bf16 %v3078_v48, %v3077_v45 }
 0x49c   :  { %v3083_v55 = vpack.c.bf16 %v3070_v49, %v3069_v47 }
 0x49d   :  { %4230 = vmatprep.subr.bf16.mxu1 %v3088_v53 }
 0x49e   :  { %4203 = vmatmul.mubr.msk.bf16.vlgmr.msra.gmra.mrb[76].mxu0 %vm319_vm3, %v4382_v50 }
 0x49f   :  { %4219 = vmatpush3.bf16.msra.mxu0 %v2926_v26  ;;  %4220 = vmatprep.mubr.msk.bf16.mxu0 %vm319_vm3, %v4385_v54 }
 0x4a0   :  { %4224 = vmatprep.subr.bf16.mxu0 %v2921_v56 }
 0x4a5   :  { %4215 = vmatmul.mubr.msk.bf16.vlgmr.msra.gmra.mrb[76].mxu1 %vm319_vm3, %v4384_v57 }
 0x4a6   :  { %4231 = vmatpush3.bf16.msra.mxu1 %v3088_v53  ;;  %4221 = vmatmul.mubr.msk.bf16.vlgmr.msra.gmra.mrb[80].mxu0 %vm319_vm3, %v4386_v58 }
 0x4a7   :  { %4232 = vmatprep.mubr.msk.bf16.mxu1 %vm319_vm3, %v4387_v59  ;;  %4225 = vmatpush3.bf16.msra.mxu0 %v2921_v56 }
 0x4a8   :  { %4236 = vmatprep.subr.bf16.mxu1 %v3083_v55  ;;  %4226 = vmatprep.mubr.msk.bf16.mxu0 %vm319_vm3, %v4389_v60 }
 0x4a9   :  { %4242 = vmatprep.subr.bf16.mxu0 %v3266_v4 }
 0x4ad   :  { %4233 = vmatmul.mubr.msk.bf16.vlgmr.msra.gmra.mrb[80].mxu1 %vm319_vm3, %v4388_v29 }
 0x4ae   :  { %4237 = vmatpush3.bf16.msra.mxu1 %v3083_v55  ;;  %4238 = vmatprep.mubr.msk.bf16.mxu1 %vm319_vm3, %v4391_v35 }
 0x4af   :  { %4260 = vmatprep.subr.bf16.mxu1 %v3437_v5 }
 0x4b2   :  { %4227 = vmatmul.mubr.msk.bf16.vlgmr.msra.gmra.mrb[80].mxu0 %vm319_vm3, %v4390_v61 }
 0x4b3   :  { %4243 = vmatpush3.bf16.msra.mxu0 %v3266_v4 }
 0x4b9   :  { %4239 = vmatmul.mubr.msk.bf16.vlgmr.msra.gmra.mrb[80].mxu1 %vm319_vm3, %v4392_v62 }
 0x4ba   :  { %4261 = vmatpush3.bf16.msra.mxu1 %v3437_v5 }
 0x548   :  { %v4156_v6 = vpop.f32.mrb[68].mxu0 }
 0x549   :  { %v2070_v7 = vpop.f32.mrb[69].mxu0 }
 0x54a   :  { %v4157_v8 = vpop.f32.mrb[70].mxu0 }
 0x54b   :  { %v2087_v9 = vpack.c.bf16 %v4157_v8, %v4156_v6  ;;  %v2073_v10 = vpop.f32.mrb[71].mxu0 }
 0x54c   :  { %v2085_v11 = vpack.c.bf16 %v2073_v10, %v2070_v7 }
 0x54d   :  { %2088 = vst.msk [vmem:[#allocation7] sm:$0xff] %vm1629_vm4, %v2087_v9 }
 0x54e   :  { %2086 = vst.msk [vmem:[#allocation6] sm:$0xff] %vm1629_vm4, %v2085_v11 }
 0x550   :  { %v4168_v12 = vpop.f32.mrb[68].mxu1 }
 0x551   :  { %v2232_v13 = vpop.f32.mrb[69].mxu1 }
 0x552   :  { %v4169_v14 = vpop.f32.mrb[70].mxu1 }
 0x553   :  { %v2249_v15 = vpack.c.bf16 %v4169_v14, %v4168_v12  ;;  %v2235_v16 = vpop.f32.mrb[71].mxu1 }
 0x554   :  { %v2247_v17 = vpack.c.bf16 %v2235_v16, %v2232_v13  ;;  %v3397_v18 = vld [vmem:[#allocation7] sm:$0xff] }
 0x555   :  { %2250 = vst.msk [vmem:[#allocation7 + $0x8] sm:$0xff] %vm1629_vm4, %v2249_v15  ;;  %v3223_v19 = vld [vmem:[#allocation6] sm:$0xff]  ;;  %4262 = vmatprep.mubr.msk.bf16.mxu1 %vm1629_vm4, %v3397_v18 }
 0x556   :  { %2248 = vst.msk [vmem:[#allocation6 + $0x8] sm:$0xff] %vm1629_vm4, %v2247_v17  ;;  %4244 = vmatprep.mubr.msk.bf16.mxu0 %vm1629_vm4, %v3223_v19 }
 0x55c   :  { %v3398_v20 = vld [vmem:[#allocation7 + $0x8] sm:$0xff] }
 0x55d   :  { %v3224_v21 = vld [vmem:[#allocation6 + $0x8] sm:$0xff]  ;;  %v4180_v22 = vpop.f32.mrb[72].mxu0  ;;  %4263 = vmatmul.mubr.msk.bf16.vlgmr.msra.gmra.mrb[84].mxu1 %vm1629_vm4, %v3398_v20 }
 0x55e   :  { %4245 = vmatmul.mubr.msk.bf16.vlgmr.msra.gmra.mrb[84].mxu0 %vm1629_vm4, %v3224_v21  ;;  %v2394_v23 = vpop.f32.mrb[73].mxu0 }
 0x55f   :  { %v4181_v24 = vpop.f32.mrb[74].mxu0 }
 0x560   :  { %v2411_v25 = vpack.c.bf16 %v4181_v24, %v4180_v22  ;;  %v2397_v26 = vpop.f32.mrb[75].mxu0  ;;  %v3586_v22 = vld [vmem:[#allocation11 + $0x10] sm:$0xff] }
 0x561   :  { %v2409_v27 = vpack.c.bf16 %v2397_v26, %v2394_v23  ;;  %v3584_v23 = vld [vmem:[#allocation11] sm:$0xff] }
 0x562   :  { %2412 = vst.msk [vmem:[#allocation7 + $0x10] sm:$0xff] %vm1629_vm4, %v2411_v25  ;;  %v3587_v25 = vld [vmem:[#allocation11 + $0x18] sm:$0xff] }
 0x563   :  { %2410 = vst.msk [vmem:[#allocation6 + $0x10] sm:$0xff] %vm1629_vm4, %v2409_v27 }
 0x564   :  { %v4192_v28 = vpop.f32.mrb[72].mxu1 }
 0x565   :  { %v2556_v30 = vpop.f32.mrb[73].mxu1 }
 0x566   :  { %v4193_v31 = vpop.f32.mrb[74].mxu1 }
 0x567   :  { %v2573_v32 = vpack.c.bf16 %v4193_v31, %v4192_v28  ;;  %v2559_v33 = vpop.f32.mrb[75].mxu1  ;;  %v3585_v28 = vld [vmem:[#allocation11 + $0x8] sm:$0xff] }
 0x568   :  { %v2571_v34 = vpack.c.bf16 %v2559_v33, %v2556_v30 }
 0x569   :  { %2574 = vst.msk [vmem:[#allocation7 + $0x18] sm:$0xff] %vm1629_vm4, %v2573_v32  ;;  %v3399_v36 = vld [vmem:[#allocation7 + $0x10] sm:$0xff] }
 0x56a   :  { %2572 = vst.msk [vmem:[#allocation6 + $0x18] sm:$0xff] %vm1629_vm4, %v2571_v34  ;;  %v3225_v37 = vld [vmem:[#allocation6 + $0x10] sm:$0xff]  ;;  %4266 = vmatprep.mubr.msk.bf16.mxu1 %vm1629_vm4, %v3399_v36 }
 0x56b   :  { %4248 = vmatprep.mubr.msk.bf16.mxu0 %vm1629_vm4, %v3225_v37 }
 0x570   :  { %v3400_v38 = vld [vmem:[#allocation7 + $0x18] sm:$0xff] }
 0x571   :  { %v3226_v39 = vld [vmem:[#allocation6 + $0x18] sm:$0xff]  ;;  %v4204_v40 = vpop.f32.mrb[76].mxu0  ;;  %4267 = vmatmul.mubr.msk.bf16.gmra.mrb[88].mxu1 %vm1629_vm4, %v3400_v38 }
 0x572   :  { %4249 = vmatmul.mubr.msk.bf16.gmra.mrb[88].mxu0 %vm1629_vm4, %v3226_v39  ;;  %v2718_v41 = vpop.f32.mrb[77].mxu0 }
 0x573   :  { %v4205_v42 = vpop.f32.mrb[78].mxu0 }
 0x574   :  { %v2735_v43 = vpack.c.bf16 %v4205_v42, %v4204_v40  ;;  %v2721_v44 = vpop.f32.mrb[79].mxu0 }
 0x575   :  { %v2733_v45 = vpack.c.bf16 %v2721_v44, %v2718_v41 }
 0x576   :  { %2736 = vst.msk [vmem:[#allocation7 + $0x20] sm:$0xff] %vm1629_vm4, %v2735_v43 }
 0x577   :  { %2734 = vst.msk [vmem:[#allocation6 + $0x20] sm:$0xff] %vm1629_vm4, %v2733_v45 }
 0x578   :  { %v4216_v46 = vpop.f32.mrb[76].mxu1 }
 0x579   :  { %v2880_v47 = vpop.f32.mrb[77].mxu1 }
 0x57a   :  { %v4217_v48 = vpop.f32.mrb[78].mxu1 }
 0x57b   :  { %v2897_v49 = vpack.c.bf16 %v4217_v48, %v4216_v46  ;;  %v2883_v50 = vpop.f32.mrb[79].mxu1 }
 0x57c   :  { %v2895_v51 = vpack.c.bf16 %v2883_v50, %v2880_v47 }
 0x57d   :  { %2898 = vst.msk [vmem:[#allocation7 + $0x28] sm:$0xff] %vm1629_vm4, %v2897_v49  ;;  %v3401_v52 = vld [vmem:[#allocation7 + $0x20] sm:$0xff] }
 0x57e   :  { %2896 = vst.msk [vmem:[#allocation6 + $0x28] sm:$0xff] %vm1629_vm4, %v2895_v51  ;;  %v3227_v53 = vld [vmem:[#allocation6 + $0x20] sm:$0xff]  ;;  %4270 = vmatprep.mubr.msk.bf16.mxu1 %vm1629_vm4, %v3401_v52  ;;  %v3590_v52 = vld [vmem:[#allocation11 + $0x30] sm:$0xff] }
 0x57f   :  { %4252 = vmatprep.mubr.msk.bf16.mxu0 %vm1629_vm4, %v3227_v53  ;;  %v3588_v53 = vld [vmem:[#allocation11 + $0x20] sm:$0xff] }
 0x584   :  { %v3402_v54 = vld [vmem:[#allocation7 + $0x28] sm:$0xff] }
 0x585   :  { %v3228_v55 = vld [vmem:[#allocation6 + $0x28] sm:$0xff]  ;;  %v4228_v56 = vpop.f32.mrb[80].mxu0  ;;  %4271 = vmatmul.mubr.msk.bf16.gmra.mrb[92].mxu1 %vm1629_vm4, %v3402_v54 }
 0x586   :  { %4253 = vmatmul.mubr.msk.bf16.gmra.mrb[92].mxu0 %vm1629_vm4, %v3228_v55  ;;  %v3042_v57 = vpop.f32.mrb[81].mxu0  ;;  %v3591_v55 = vld [vmem:[#allocation11 + $0x38] sm:$0xff] }
 0x587   :  { %v4229_v58 = vpop.f32.mrb[82].mxu0 }
 0x588   :  { %v3059_v59 = vpack.c.bf16 %v4229_v58, %v4228_v56  ;;  %v3045_v60 = vpop.f32.mrb[83].mxu0  ;;  %v3589_v58 = vld [vmem:[#allocation11 + $0x28] sm:$0xff] }
 0x589   :  { %v3057_v29 = vpack.c.bf16 %v3045_v60, %v3042_v57 }
 0x58a   :  { %3060 = vst.msk [vmem:[#allocation7 + $0x30] sm:$0xff] %vm1629_vm4, %v3059_v59 }
 0x58b   :  { %3058 = vst.msk [vmem:[#allocation6 + $0x30] sm:$0xff] %vm1629_vm4, %v3057_v29 }
 0x58c   :  { %v4240_v35 = vpop.f32.mrb[80].mxu1 }
 0x58d   :  { %v3204_v61 = vpop.f32.mrb[81].mxu1 }
 0x58e   :  { %v4241_v62 = vpop.f32.mrb[82].mxu1 }
 0x58f   :  { %v3221_v63 = vpack.c.bf16 %v4241_v62, %v4240_v35  ;;  %v3207_v0 = vpop.f32.mrb[83].mxu1 }
 0x590   :  { %v3219_v1 = vpack.c.bf16 %v3207_v0, %v3204_v61 }
 0x591   :  { %3222 = vst.msk [vmem:[#allocation7 + $0x38] sm:$0xff] %vm1629_vm4, %v3221_v63  ;;  %v3403_v2 = vld [vmem:[#allocation7 + $0x30] sm:$0xff] }
 0x592   :  { %3220 = vst.msk [vmem:[#allocation6 + $0x38] sm:$0xff] %vm1629_vm4, %v3219_v1  ;;  %v3229_v3 = vld [vmem:[#allocation6 + $0x30] sm:$0xff]  ;;  %4274 = vmatprep.mubr.msk.bf16.mxu1 %vm1629_vm4, %v3403_v2 }
 0x593   :  { %4256 = vmatprep.mubr.msk.bf16.mxu0 %vm1629_vm4, %v3229_v3 }
 0x598   :  { %v3404_v4 = vld [vmem:[#allocation7 + $0x38] sm:$0xff] }
 0x599   :  { %v3230_v5 = vld [vmem:[#allocation6 + $0x38] sm:$0xff]  ;;  %4275 = vmatmul.mubr.msk.bf16.gmra.mrb[96].mxu1 %vm1629_vm4, %v3404_v4 }
 0x59a   :  { %4257 = vmatmul.mubr.msk.bf16.gmra.mrb[96].mxu0 %vm1629_vm4, %v3230_v5 }
 0x630   :  { %v4264_v6 = vpop.f32.mrb[84].mxu1 }
 0x631   :  { %v4246_v7 = vpop.f32.mrb[84].mxu0  ;;  %v3473_v8 = vpop.f32.mrb[85].mxu1 }
 0x632   :  { %3367 = vst.msk [vmem:[#allocation28 + $0x10] sm:$0xff] %vm319_vm3, %v4246_v7  ;;  %v3302_v9 = vpop.f32.mrb[85].mxu0  ;;  %v4265_v10 = vpop.f32.mrb[86].mxu1 }
 0x633   :  { %3365 = vst.msk [vmem:[#allocation28] sm:$0xff] %vm319_vm3, %v3302_v9  ;;  %v4247_v11 = vpop.f32.mrb[86].mxu0  ;;  %v3476_v12 = vpop.f32.mrb[87].mxu1 }
 0x634   :  { %3368 = vst.msk [vmem:[#allocation28 + $0x18] sm:$0xff] %vm319_vm3, %v4247_v11  ;;  %v3305_v13 = vpop.f32.mrb[87].mxu0 }
 0x635   :  { %3366 = vst.msk [vmem:[#allocation28 + $0x8] sm:$0xff] %vm319_vm3, %v3305_v13 }
 0x639   :  { %v3383_v14 = vld [vmem:[#allocation28 + $0x10] sm:$0xff] }
 0x63a   :  { %v3538_v15 = vsub.f32 %v3383_v14, %v4264_v6  ;;  %v3381_v16 = vld [vmem:[#allocation28] sm:$0xff] }
 0x63b   :  { %v3536_v17 = vsub.f32 %v3381_v16, %v3473_v8  ;;  %v3384_v18 = vld [vmem:[#allocation28 + $0x18] sm:$0xff]  ;;  %v3594_v14 = vld [vmem:[#allocation11 + $0x50] sm:$0xff] }
 0x63c   :  { %3554 = vst.msk [vmem:[#allocation28 + $0x10] sm:$0xff] %vm319_vm3, %v3538_v15  ;;  %v3539_v19 = vsub.f32 %v3384_v18, %v4265_v10  ;;  %v3382_v20 = vld [vmem:[#allocation28 + $0x8] sm:$0xff]  ;;  %v3592_v15 = vld [vmem:[#allocation11 + $0x40] sm:$0xff] }
 0x63d   :  { %3552 = vst.msk [vmem:[#allocation28] sm:$0xff] %vm319_vm3, %v3536_v17  ;;  %v3537_v21 = vsub.f32 %v3382_v20, %v3476_v12  ;;  %v3595_v17 = vld [vmem:[#allocation11 + $0x58] sm:$0xff]  ;;  %v3593_v20 = vld [vmem:[#allocation11 + $0x48] sm:$0xff] }
 0x63e   :  { %3555 = vst.msk [vmem:[#allocation28 + $0x18] sm:$0xff] %vm319_vm3, %v3539_v19 }
 0x63f   :  { %3553 = vst.msk [vmem:[#allocation28 + $0x8] sm:$0xff] %vm319_vm3, %v3537_v21 }
 0x643   :  { %v3570_v24 = vld [vmem:[#allocation28 + $0x10] sm:$0xff] }
 0x644   :  { %v3602_v26 = vadd.f32 %v3586_v22, %v3570_v24  ;;  %v3568_v27 = vld [vmem:[#allocation28] sm:$0xff]  ;;  %v4268_v30 = vpop.f32.mrb[88].mxu1 }
 0x645   :  { %v3600_v31 = vadd.f32 %v3584_v23, %v3568_v27  ;;  %v3571_v32 = vld [vmem:[#allocation28 + $0x18] sm:$0xff]  ;;  %v4250_v33 = vpop.f32.mrb[88].mxu0  ;;  %v3489_v34 = vpop.f32.mrb[89].mxu1 }
 0x646   :  { %3618 = vst.msk [vmem:[#allocation28 + $0x10] sm:$0xff] %vm319_vm3, %v3602_v26  ;;  %v3603_v36 = vadd.f32 %v3587_v25, %v3571_v32  ;;  %v3569_v37 = vld [vmem:[#allocation28 + $0x8] sm:$0xff]  ;;  %3371 = vst.msk [vmem:[#allocation28 + $0x30] sm:$0xff] %vm319_vm3, %v4250_v33  ;;  %v3318_v38 = vpop.f32.mrb[89].mxu0  ;;  %v4269_v39 = vpop.f32.mrb[90].mxu1 }
 0x647   :  { %3616 = vst.msk [vmem:[#allocation28] sm:$0xff] %vm319_vm3, %v3600_v31  ;;  %v3601_v40 = vadd.f32 %v3585_v28, %v3569_v37  ;;  %3369 = vst.msk [vmem:[#allocation28 + $0x20] sm:$0xff] %vm319_vm3, %v3318_v38  ;;  %v4251_v41 = vpop.f32.mrb[90].mxu0  ;;  %v3492_v42 = vpop.f32.mrb[91].mxu1 }
 0x648   :  { %3619 = vst.msk [vmem:[#allocation28 + $0x18] sm:$0xff] %vm319_vm3, %v3603_v36  ;;  %3372 = vst.msk [vmem:[#allocation28 + $0x38] sm:$0xff] %vm319_vm3, %v4251_v41  ;;  %v3321_v43 = vpop.f32.mrb[91].mxu0 }
 0x649   :  { %3617 = vst.msk [vmem:[#allocation28 + $0x8] sm:$0xff] %vm319_vm3, %v3601_v40  ;;  %3370 = vst.msk [vmem:[#allocation28 + $0x28] sm:$0xff] %vm319_vm3, %v3321_v43 }
 0x64d   :  { %v3387_v44 = vld [vmem:[#allocation28 + $0x30] sm:$0xff] }
 0x64e   :  { %v3542_v45 = vsub.f32 %v3387_v44, %v4268_v30  ;;  %v3385_v46 = vld [vmem:[#allocation28 + $0x20] sm:$0xff] }
 0x64f   :  { %v3540_v47 = vsub.f32 %v3385_v46, %v3489_v34  ;;  %v3388_v48 = vld [vmem:[#allocation28 + $0x38] sm:$0xff]  ;;  %v3598_v44 = vld [vmem:[#allocation11 + $0x70] sm:$0xff] }
 0x650   :  { %3558 = vst.msk [vmem:[#allocation28 + $0x30] sm:$0xff] %vm319_vm3, %v3542_v45  ;;  %v3543_v49 = vsub.f32 %v3388_v48, %v4269_v39  ;;  %v3386_v50 = vld [vmem:[#allocation28 + $0x28] sm:$0xff]  ;;  %v3596_v45 = vld [vmem:[#allocation11 + $0x60] sm:$0xff] }
 0x651   :  { %3556 = vst.msk [vmem:[#allocation28 + $0x20] sm:$0xff] %vm319_vm3, %v3540_v47  ;;  %v3541_v51 = vsub.f32 %v3386_v50, %v3492_v42  ;;  %v3599_v47 = vld [vmem:[#allocation11 + $0x78] sm:$0xff]  ;;  %v3597_v50 = vld [vmem:[#allocation11 + $0x68] sm:$0xff] }
 0x652   :  { %3559 = vst.msk [vmem:[#allocation28 + $0x38] sm:$0xff] %vm319_vm3, %v3543_v49 }
 0x653   :  { %3557 = vst.msk [vmem:[#allocation28 + $0x28] sm:$0xff] %vm319_vm3, %v3541_v51 }
 0x657   :  { %v3574_v54 = vld [vmem:[#allocation28 + $0x30] sm:$0xff] }
 0x658   :  { %v3606_v56 = vadd.f32 %v3590_v52, %v3574_v54  ;;  %v3572_v57 = vld [vmem:[#allocation28 + $0x20] sm:$0xff]  ;;  %v4272_v59 = vpop.f32.mrb[92].mxu1 }
 0x659   :  { %v3604_v60 = vadd.f32 %v3588_v53, %v3572_v57  ;;  %v3575_v29 = vld [vmem:[#allocation28 + $0x38] sm:$0xff]  ;;  %v4254_v35 = vpop.f32.mrb[92].mxu0  ;;  %v3505_v61 = vpop.f32.mrb[93].mxu1 }
 0x65a   :  { %3622 = vst.msk [vmem:[#allocation28 + $0x30] sm:$0xff] %vm319_vm3, %v3606_v56  ;;  %v3607_v62 = vadd.f32 %v3591_v55, %v3575_v29  ;;  %v3573_v63 = vld [vmem:[#allocation28 + $0x28] sm:$0xff]  ;;  %3375 = vst.msk [vmem:[#allocation28 + $0x50] sm:$0xff] %vm319_vm3, %v4254_v35  ;;  %v3334_v0 = vpop.f32.mrb[93].mxu0  ;;  %v4273_v1 = vpop.f32.mrb[94].mxu1 }
 0x65b   :  { %3620 = vst.msk [vmem:[#allocation28 + $0x20] sm:$0xff] %vm319_vm3, %v3604_v60  ;;  %v3605_v2 = vadd.f32 %v3589_v58, %v3573_v63  ;;  %3373 = vst.msk [vmem:[#allocation28 + $0x40] sm:$0xff] %vm319_vm3, %v3334_v0  ;;  %v4255_v3 = vpop.f32.mrb[94].mxu0  ;;  %v3508_v4 = vpop.f32.mrb[95].mxu1 }
 0x65c   :  { %3623 = vst.msk [vmem:[#allocation28 + $0x38] sm:$0xff] %vm319_vm3, %v3607_v62  ;;  %3376 = vst.msk [vmem:[#allocation28 + $0x58] sm:$0xff] %vm319_vm3, %v4255_v3  ;;  %v3337_v5 = vpop.f32.mrb[95].mxu0 }
 0x65d   :  { %3621 = vst.msk [vmem:[#allocation28 + $0x28] sm:$0xff] %vm319_vm3, %v3605_v2  ;;  %3374 = vst.msk [vmem:[#allocation28 + $0x48] sm:$0xff] %vm319_vm3, %v3337_v5 }
 0x661   :  { %v3391_v6 = vld [vmem:[#allocation28 + $0x50] sm:$0xff] }
 0x662   :  { %v3546_v7 = vsub.f32 %v3391_v6, %v4272_v59  ;;  %v3389_v8 = vld [vmem:[#allocation28 + $0x40] sm:$0xff] }
 0x663   :  { %v3544_v9 = vsub.f32 %v3389_v8, %v3505_v61  ;;  %v3392_v10 = vld [vmem:[#allocation28 + $0x58] sm:$0xff] }
 0x664   :  { %3562 = vst.msk [vmem:[#allocation28 + $0x50] sm:$0xff] %vm319_vm3, %v3546_v7  ;;  %v3547_v11 = vsub.f32 %v3392_v10, %v4273_v1  ;;  %v3390_v12 = vld [vmem:[#allocation28 + $0x48] sm:$0xff] }
 0x665   :  { %3560 = vst.msk [vmem:[#allocation28 + $0x40] sm:$0xff] %vm319_vm3, %v3544_v9  ;;  %v3545_v13 = vsub.f32 %v3390_v12, %v3508_v4 }
 0x666   :  { %3563 = vst.msk [vmem:[#allocation28 + $0x58] sm:$0xff] %vm319_vm3, %v3547_v11 }
 0x667   :  { %3561 = vst.msk [vmem:[#allocation28 + $0x48] sm:$0xff] %vm319_vm3, %v3545_v13 }
 0x66b   :  { %v3578_v16 = vld [vmem:[#allocation28 + $0x50] sm:$0xff] }
 0x66c   :  { %v3610_v18 = vadd.f32 %v3594_v14, %v3578_v16  ;;  %v3576_v19 = vld [vmem:[#allocation28 + $0x40] sm:$0xff]  ;;  %v4276_v21 = vpop.f32.mrb[96].mxu1 }
 0x66d   :  { %v3608_v22 = vadd.f32 %v3592_v15, %v3576_v19  ;;  %v3579_v23 = vld [vmem:[#allocation28 + $0x58] sm:$0xff]  ;;  %v4258_v24 = vpop.f32.mrb[96].mxu0  ;;  %v3521_v25 = vpop.f32.mrb[97].mxu1 }
 0x66e   :  { %3626 = vst.msk [vmem:[#allocation28 + $0x50] sm:$0xff] %vm319_vm3, %v3610_v18  ;;  %v3611_v26 = vadd.f32 %v3595_v17, %v3579_v23  ;;  %v3577_v27 = vld [vmem:[#allocation28 + $0x48] sm:$0xff]  ;;  %3379 = vst.msk [vmem:[#allocation28 + $0x70] sm:$0xff] %vm319_vm3, %v4258_v24  ;;  %v3350_v28 = vpop.f32.mrb[97].mxu0  ;;  %v4277_v30 = vpop.f32.mrb[98].mxu1 }
 0x66f   :  { %3624 = vst.msk [vmem:[#allocation28 + $0x40] sm:$0xff] %vm319_vm3, %v3608_v22  ;;  %v3609_v31 = vadd.f32 %v3593_v20, %v3577_v27  ;;  %3377 = vst.msk [vmem:[#allocation28 + $0x60] sm:$0xff] %vm319_vm3, %v3350_v28  ;;  %v4259_v32 = vpop.f32.mrb[98].mxu0  ;;  %v3524_v33 = vpop.f32.mrb[99].mxu1 }
 0x670   :  { %3627 = vst.msk [vmem:[#allocation28 + $0x58] sm:$0xff] %vm319_vm3, %v3611_v26  ;;  %3380 = vst.msk [vmem:[#allocation28 + $0x78] sm:$0xff] %vm319_vm3, %v4259_v32  ;;  %v3353_v34 = vpop.f32.mrb[99].mxu0 }
 0x671   :  { %3625 = vst.msk [vmem:[#allocation28 + $0x48] sm:$0xff] %vm319_vm3, %v3609_v31  ;;  %3378 = vst.msk [vmem:[#allocation28 + $0x68] sm:$0xff] %vm319_vm3, %v3353_v34 }
 0x675   :  { %v3395_v36 = vld [vmem:[#allocation28 + $0x70] sm:$0xff] }
 0x676   :  { %v3550_v37 = vsub.f32 %v3395_v36, %v4276_v21  ;;  %v3393_v38 = vld [vmem:[#allocation28 + $0x60] sm:$0xff] }
 0x677   :  { %v3548_v39 = vsub.f32 %v3393_v38, %v3521_v25  ;;  %v3396_v40 = vld [vmem:[#allocation28 + $0x78] sm:$0xff] }
 0x678   :  { %3566 = vst.msk [vmem:[#allocation28 + $0x70] sm:$0xff] %vm319_vm3, %v3550_v37  ;;  %v3551_v41 = vsub.f32 %v3396_v40, %v4277_v30  ;;  %v3394_v42 = vld [vmem:[#allocation28 + $0x68] sm:$0xff] }
 0x679   :  { %3564 = vst.msk [vmem:[#allocation28 + $0x60] sm:$0xff] %vm319_vm3, %v3548_v39  ;;  %v3549_v43 = vsub.f32 %v3394_v42, %v3524_v33 }
 0x67a   :  { %3567 = vst.msk [vmem:[#allocation28 + $0x78] sm:$0xff] %vm319_vm3, %v3551_v41 }
 0x67b   :  { %3565 = vst.msk [vmem:[#allocation28 + $0x68] sm:$0xff] %vm319_vm3, %v3549_v43 }
 0x67f   :  { %v3582_v46 = vld [vmem:[#allocation28 + $0x70] sm:$0xff] }
 0x680   :  { %v3614_v48 = vadd.f32 %v3598_v44, %v3582_v46  ;;  %v3580_v49 = vld [vmem:[#allocation28 + $0x60] sm:$0xff] }
 0x681   :  { %v3612_v51 = vadd.f32 %v3596_v45, %v3580_v49  ;;  %v3583_v52 = vld [vmem:[#allocation28 + $0x78] sm:$0xff] }
 0x682   :  { %3630 = vst.msk [vmem:[#allocation28 + $0x70] sm:$0xff] %vm319_vm3, %v3614_v48  ;;  %v3615_v53 = vadd.f32 %v3599_v47, %v3583_v52  ;;  %v3581_v54 = vld [vmem:[#allocation28 + $0x68] sm:$0xff] }
 0x683   :  { %3628 = vst.msk [vmem:[#allocation28 + $0x60] sm:$0xff] %vm319_vm3, %v3612_v51  ;;  %v3613_v55 = vadd.f32 %v3597_v50, %v3581_v54 }
 0x684   :  { %3631 = vst.msk [vmem:[#allocation28 + $0x78] sm:$0xff] %vm319_vm3, %v3615_v53 }
 0x685   :  { %3629 = vst.msk [vmem:[#allocation28 + $0x68] sm:$0xff] %vm319_vm3, %v3613_v55 }
 0x686   :  { %4670 = shalt.err (!%p4667_p2)
}
 0x687   :  { %s4671_s15 = scalar_lea.hbm %s5348_s12, 2048 }
 0x688   :  { %p4672_p3 = scmp.ne.s32.totalorder %s5348_s12, %s4671_s15  ;;  %p4675_p4 = scmp.lt.u32.totalorder %s4671_s15, %s5348_s12 }
 0x68a   :  { %p4677_p5 = pnand %p4675_p4, %p4672_p3 }
 0x68c   :  { %4680 = shalt.err (!%p4677_p5)
}
 0x68d   :  { %3643 = dma.vmem_to_hbm [thread:$0]  %s3638_s25, 2048, %s5348_s12, [#allocation10], %s4698_s13, %s4698_s13, %s4699_s14  }
 0x68e   :  { %4695 = dma.done.wait [#allocation10], 2048  }
 0x68f   :  { %4696 = vsyncadd [#allocation10], 4294965248 }
 0x690   :  { %3647 = vsyncpa [#allocation9], 1 }
 0x691   :  { %3648 = vsyncpa [#allocation12], 1 }
 0x692   :  { %3649 = vsyncpa [#allocation15], 1 }
 0x693   :  { %3650 = vsyncpa [#allocation18], 1 }
 0x694   :  { %3651 = vsyncpa [#allocation21], 1 }
 0x695   :  { %3652 = vsyncpa [#allocation24], 1 }
 0x696   :  { %3653 = vsyncpa [#allocation27], 1 }
 0x697   :  { %3654 = vsyncpa [#allocation10], 1 }

</bundles_post_ra>
